<compile_context>
chip_gen: v7x
topology: tpu7x:2x2x1
jax: 0.10.0
libtpu: 0.0.40
codegen_flags: <defaults>
</compile_context>

<pallas_src>
import jax
import jax.numpy as jnp
from jax import lax
from jax.experimental import pallas as pl
from jax.experimental.pallas import tpu as pltpu


def _round_up(x, m):
    return ((x + m - 1) // m) * m


def mainmodel_forward(x_nchw, w_conv, fc_w, fc_b, *, block_batch=32):
    """x_nchw: (N, Cin, H, W) float32 -> logits (N, num_classes)."""
    N, Cin, H, W = x_nchw.shape
    KH, KW, _, Cout = w_conv.shape
    assert (KH, KW) == (3, 3)
    num_classes = fc_w.shape[1]

    Hp, Wp = H + 2, W + 2                     # SAME-padded spatial extents
    pp = Hp * Wp                              # padded pixels per image
    pp_pad = _round_up(pp, 8)                 # sublane-aligned rows per image
    cout_p = _round_up(Cout, 128)             # lane-dense conv channels
    nc_p = _round_up(num_classes, 128)        # lane-dense logits

    # ---- batch blocking -----------------------------------------------------
    # Small batch: one block equal to the full batch (block = full dim is legal).
    # Larger batch: blocks of a multiple of 8 images, and >=2 blocks so both
    # v7x TensorCores get work (harmless on 1-TC v5e/v6e).
    if N <= 8:
        b_blk = N
    else:
        b_blk = max(8, min(block_batch, _round_up(pl.cdiv(N, 2), 8)))
    n_blocks = pl.cdiv(N, b_blk)
    n_pad = n_blocks * b_blk
    rows_blk = b_blk * pp_pad                 # rows per grid step (mult of 8)

    # ---- activations: NCHW -> NHWC, spatial zero-pad, bf16, flatten ---------
    x_nhwc = jnp.transpose(x_nchw, (0, 2, 3, 1)).astype(jnp.bfloat16)
    if n_pad != N:
        x_nhwc = jnp.pad(x_nhwc, ((0, n_pad - N), (0, 0), (0, 0), (0, 0)))
    xp = jnp.pad(x_nhwc, ((0, 0), (1, 1), (1, 1), (0, 0)))   # (n_pad,Hp,Wp,Cin)
    x2 = xp.reshape(n_pad, pp, Cin)
    if pp_pad != pp:
        x2 = jnp.pad(x2, ((0, 0), (0, pp_pad - pp), (0, 0)))
    x2 = x2.reshape(n_pad * pp_pad, Cin)                      # bf16 HBM stream

    # ---- validity mask over one block's rows (drops halo + alignment rows) --
    idx = jnp.arange(pp_pad)
    r_i = idx // Wp
    c_i = idx % Wp
    valid = (idx < pp) & (r_i >= 1) & (r_i <= H) & (c_i >= 1) & (c_i <= W)
    mask = jnp.tile(valid.astype(jnp.float32), (b_blk,)).reshape(rows_blk, 1)

    # ---- weights in matmul form ----------------------------------------------
    # conv weight (3,3,Cin,Cout) -> (9,Cin,Cout_p); tap t = ky*3+kx corresponds
    # to flat row shift s_t = (ky-1)*Wp + (kx-1) in the flattened padded layout.
    wc = w_conv.astype(jnp.float32).reshape(9, Cin, Cout)
    wc = jnp.pad(wc, ((0, 0), (0, 0), (0, cout_p - Cout)))
    shifts = tuple((ky - 1) * Wp + (kx - 1)
                   for ky in range(3) for kx in range(3))

    # fc weight absorbs the 1/(H*W) GAP scale; zero-pad to lane-dense shapes.
    fcw = fc_w.astype(jnp.float32) * (1.0 / (H * W))
    fcw = jnp.pad(fcw, ((0, cout_p - Cout), (0, nc_p - num_classes)))
    fcb = jnp.pad(fc_b.astype(jnp.float32),
                  (0, nc_p - num_classes)).reshape(1, nc_p)

    def kernel(x_ref, mask_ref, wconv_ref, fcw_ref, fcb_ref, out_ref, acc_ref):
        rows = rows_blk
        acc_ref[...] = jnp.zeros_like(acc_ref)
        x = x_ref[...].astype(jnp.float32)                    # (rows, Cin)
        # 3x3 conv as 9 shifted-slice matmuls accumulated over the padded grid.
        # Out-of-range / wrapped rows only ever touch halo rows, which the
        # mask removes before the global average pool.
        for t, s in enumerate(shifts):
            w_t = wconv_ref[t]                                # (Cin, Cout_p)
            if s >= 0:
                contrib = jnp.dot(x[s:, :], w_t,
                                  preferred_element_type=jnp.float32)
                acc_ref[pl.ds(0, rows - s), :] += contrib
            else:
                contrib = jnp.dot(x[:rows + s, :], w_t,
                                  preferred_element_type=jnp.float32)
                acc_ref[pl.ds(-s, rows + s), :] += contrib
        # ReLU, mask away halo/alignment rows, GAP (scale folded into fcw),
        # then the classifier head.
        act = jnp.maximum(acc_ref[...], 0.0) * mask_ref[...]  # (rows, Cout_p)
        feat = act.reshape(b_blk, pp_pad, cout_p).sum(axis=1)  # (b_blk, Cout_p)
        logit = jnp.dot(feat, fcw_ref[...],
                        preferred_element_type=jnp.float32) + fcb_ref[...]
        out_ref[...] = logit.astype(out_ref.dtype)

    flops = int(2 * n_pad * pp_pad * Cin * cout_p * 9
                + 2 * n_pad * cout_p * nc_p)
    bytes_accessed = int(x2.size * 2
                         + n_blocks * (mask.size + wc.size + fcw.size
                                       + fcb.size) * 4
                         + n_pad * nc_p * 4)

    out_padded = pl.pallas_call(
        kernel,
        out_shape=jax.ShapeDtypeStruct((n_pad, nc_p), jnp.float32),
        grid_spec=pltpu.PrefetchScalarGridSpec(
            num_scalar_prefetch=0,
            grid=(n_blocks,),
            in_specs=[
                pl.BlockSpec((rows_blk, Cin), lambda b: (b, 0)),
                pl.BlockSpec((rows_blk, 1), lambda b: (0, 0)),
                pl.BlockSpec((9, Cin, cout_p), lambda b: (0, 0, 0)),
                pl.BlockSpec((cout_p, nc_p), lambda b: (0, 0)),
                pl.BlockSpec((1, nc_p), lambda b: (0, 0)),
            ],
            out_specs=pl.BlockSpec((b_blk, nc_p), lambda b: (b, 0)),
            scratch_shapes=[pltpu.VMEM((rows_blk, cout_p), jnp.float32)],
        ),
        compiler_params=pltpu.CompilerParams(
            dimension_semantics=("parallel",),
            vmem_limit_bytes=48 * 1024 * 1024),
        cost_estimate=pl.CostEstimate(flops=flops, transcendentals=0,
                                      bytes_accessed=bytes_accessed),
    )(x2, mask, wc, fcw, fcb)

    # Strip batch / class padding (lane-dense slab -> true logits).
    return out_padded[:N, :num_classes]


def _reference_forward(x_nchw, w_conv, fc_w, fc_b):
    """Pure-JAX reference (same math) for a correctness check."""
    x = jnp.transpose(x_nchw, (0, 2, 3, 1))                    # NHWC
    y = lax.conv_general_dilated(
        x, w_conv, window_strides=(1, 1), padding="SAME",
        dimension_numbers=("NHWC", "HWIO", "NHWC"))
    feat = jnp.mean(jax.nn.relu(y), axis=(1, 2))               # (N, Cout)
    return feat @ fc_w + fc_b[None, :]


if __name__ == "__main__":
    # Small shapes consistent with the module's forward:
    #   input image batch (N, Cin, H, W), n_feat=32 backbone features,
    #   num_classes=10 logits.
    N, Cin, H, W = 2, 4, 16, 16
    n_feat, num_classes = 32, 10

    key = jax.random.PRNGKey(0)
    k_x, k_wc, k_fw, k_fb = jax.random.split(key, 4)

    x = jax.random.normal(k_x, (N, Cin, H, W), dtype=jnp.float32)
    w_conv = jax.random.normal(k_wc, (3, 3, Cin, n_feat), dtype=jnp.float32) * 0.1
    fc_w = jax.random.normal(k_fw, (n_feat, num_classes), dtype=jnp.float32) * 0.1
    fc_b = jax.random.normal(k_fb, (num_classes,), dtype=jnp.float32) * 0.1

    logits = jax.block_until_ready(mainmodel_forward(x, w_conv, fc_w, fc_b))

    # Reference uses the same bf16-quantized activations the kernel streams,
    # so the comparison isolates kernel correctness (accumulation stays f32).
    xq = x.astype(jnp.bfloat16).astype(jnp.float32)
    ref = _reference_forward(xq, w_conv, fc_w, fc_b)
    assert logits.shape == (N, num_classes)
    assert jnp.allclose(logits, ref, atol=1e-2, rtol=1e-2), (
        f"max abs err = {jnp.max(jnp.abs(logits - ref))}")

    print("KERNEL_OK")
</pallas_src>

<mosaic_0001>
module attributes {stable_mosaic.version = 11 : i64} {
  func.func @kernel(%arg0: i32, %arg1: memref<656x4xbf16, #tpu.memory_space<vmem>>, %arg2: memref<656x1xf32, #tpu.memory_space<vmem>>, %arg3: memref<9x4x128xf32, #tpu.memory_space<vmem>>, %arg4: memref<128x128xf32, #tpu.memory_space<vmem>>, %arg5: memref<1x128xf32, #tpu.memory_space<vmem>>, %arg6: memref<2x128xf32, #tpu.memory_space<vmem>>, %arg7: memref<656x128xf32, #tpu.memory_space<vmem>>) attributes {dimension_semantics = [#tpu.dimension_semantics<parallel>], iteration_bounds = array<i64: 1>, scalar_prefetch = 0 : i64, scratch_operands = 1 : i64, tpu.core_type = #tpu.core_type<tc>, window_params = [{transform_indices = @transform_0, window_bounds = array<i64: 656, 4>}, {pipeline_mode = #tpu.pipeline_mode<synchronous>, transform_indices = @transform_1, window_bounds = array<i64: 656, 1>}, {pipeline_mode = #tpu.pipeline_mode<synchronous>, transform_indices = @transform_2, window_bounds = array<i64: 9, 4, 128>}, {pipeline_mode = #tpu.pipeline_mode<synchronous>, transform_indices = @transform_3, window_bounds = array<i64: 128, 128>}, {pipeline_mode = #tpu.pipeline_mode<synchronous>, transform_indices = @transform_4, window_bounds = array<i64: 1, 128>}, {transform_indices = @transform_5, window_bounds = array<i64: 2, 128>}]} {
    %cst = arith.constant 0.000000e+00 : f32
    %0 = vector.broadcast %cst : f32 to vector<656x128xf32>
    %c0 = arith.constant 0 : index
    %c0_0 = arith.constant 0 : index
    %1 = vector.load %arg7[%c0, %c0_0] : memref<656x128xf32, #tpu.memory_space<vmem>>, vector<656x128xf32>
    tpu.vector_store %arg7[%c0, %c0_0], %0 {strides = array<i32>} : memref<656x128xf32, #tpu.memory_space<vmem>>, vector<656x128xf32>,
    %c0_1 = arith.constant 0 : index
    %c0_2 = arith.constant 0 : index
    %2 = vector.load %arg1[%c0_1, %c0_2] : memref<656x4xbf16, #tpu.memory_space<vmem>>, vector<656x4xbf16>
    %3 = arith.extf %2 : vector<656x4xbf16> to vector<656x4xf32>
    %c0_3 = arith.constant 0 : index
    %c0_4 = arith.constant 0 : index
    %c0_5 = arith.constant 0 : index
    %4 = vector.load %arg3[%c0_3, %c0_4, %c0_5] : memref<9x4x128xf32, #tpu.memory_space<vmem>>, vector<1x4x128xf32>
    %5 = vector.shape_cast %4 : vector<1x4x128xf32> to vector<4x128xf32>
    %6 = vector.extract_strided_slice %3 {offsets = [0, 0], sizes = [637, 4], strides = [1, 1]} : vector<656x4xf32> to vector<637x4xf32>
    %cst_6 = arith.constant dense<0.000000e+00> : vector<637x128xf32>
    %7 = tpu.matmul %6, %5, %cst_6 {dimension_numbers = #tpu.dot_dimension_numbers<[1], [0], [0], [1], [0, 0, 1, 1], [], []>} : vector<637x4xf32>, vector<4x128xf32>, vector<637x128xf32> -> vector<637x128xf32>
    %c19 = arith.constant 19 : index
    %c0_7 = arith.constant 0 : index
    %8 = vector.load %arg7[%c19, %c0_7] : memref<656x128xf32, #tpu.memory_space<vmem>>, vector<637x128xf32>
    %9 = arith.addf %8, %7 : vector<637x128xf32>
    %c19_8 = arith.constant 19 : index
    %c0_9 = arith.constant 0 : index
    %10 = vector.load %arg7[%c19_8, %c0_9] : memref<656x128xf32, #tpu.memory_space<vmem>>, vector<637x128xf32>
    tpu.vector_store %arg7[%c19_8, %c0_9], %9 {strides = array<i32>} : memref<656x128xf32, #tpu.memory_space<vmem>>, vector<637x128xf32>,
    %c1 = arith.constant 1 : index
    %c0_10 = arith.constant 0 : index
    %c0_11 = arith.constant 0 : index
    %11 = vector.load %arg3[%c1, %c0_10, %c0_11] : memref<9x4x128xf32, #tpu.memory_space<vmem>>, vector<1x4x128xf32>
    %12 = vector.shape_cast %11 : vector<1x4x128xf32> to vector<4x128xf32>
    %13 = vector.extract_strided_slice %3 {offsets = [0, 0], sizes = [638, 4], strides = [1, 1]} : vector<656x4xf32> to vector<638x4xf32>
    %cst_12 = arith.constant dense<0.000000e+00> : vector<638x128xf32>
    %14 = tpu.matmul %13, %12, %cst_12 {dimension_numbers = #tpu.dot_dimension_numbers<[1], [0], [0], [1], [0, 0, 1, 1], [], []>} : vector<638x4xf32>, vector<4x128xf32>, vector<638x128xf32> -> vector<638x128xf32>
    %c18 = arith.constant 18 : index
    %c0_13 = arith.constant 0 : index
    %15 = vector.load %arg7[%c18, %c0_13] : memref<656x128xf32, #tpu.memory_space<vmem>>, vector<638x128xf32>
    %16 = arith.addf %15, %14 : vector<638x128xf32>
    %c18_14 = arith.constant 18 : index
    %c0_15 = arith.constant 0 : index
    %17 = vector.load %arg7[%c18_14, %c0_15] : memref<656x128xf32, #tpu.memory_space<vmem>>, vector<638x128xf32>
    tpu.vector_store %arg7[%c18_14, %c0_15], %16 {strides = array<i32>} : memref<656x128xf32, #tpu.memory_space<vmem>>, vector<638x128xf32>,
    %c2 = arith.constant 2 : index
    %c0_16 = arith.constant 0 : index
    %c0_17 = arith.constant 0 : index
    %18 = vector.load %arg3[%c2, %c0_16, %c0_17] : memref<9x4x128xf32, #tpu.memory_space<vmem>>, vector<1x4x128xf32>
    %19 = vector.shape_cast %18 : vector<1x4x128xf32> to vector<4x128xf32>
    %20 = vector.extract_strided_slice %3 {offsets = [0, 0], sizes = [639, 4], strides = [1, 1]} : vector<656x4xf32> to vector<639x4xf32>
    %cst_18 = arith.constant dense<0.000000e+00> : vector<639x128xf32>
    %21 = tpu.matmul %20, %19, %cst_18 {dimension_numbers = #tpu.dot_dimension_numbers<[1], [0], [0], [1], [0, 0, 1, 1], [], []>} : vector<639x4xf32>, vector<4x128xf32>, vector<639x128xf32> -> vector<639x128xf32>
    %c17 = arith.constant 17 : index
    %c0_19 = arith.constant 0 : index
    %22 = vector.load %arg7[%c17, %c0_19] : memref<656x128xf32, #tpu.memory_space<vmem>>, vector<639x128xf32>
    %23 = arith.addf %22, %21 : vector<639x128xf32>
    %c17_20 = arith.constant 17 : index
    %c0_21 = arith.constant 0 : index
    %24 = vector.load %arg7[%c17_20, %c0_21] : memref<656x128xf32, #tpu.memory_space<vmem>>, vector<639x128xf32>
    tpu.vector_store %arg7[%c17_20, %c0_21], %23 {strides = array<i32>} : memref<656x128xf32, #tpu.memory_space<vmem>>, vector<639x128xf32>,
    %c3 = arith.constant 3 : index
    %c0_22 = arith.constant 0 : index
    %c0_23 = arith.constant 0 : index
    %25 = vector.load %arg3[%c3, %c0_22, %c0_23] : memref<9x4x128xf32, #tpu.memory_space<vmem>>, vector<1x4x128xf32>
    %26 = vector.shape_cast %25 : vector<1x4x128xf32> to vector<4x128xf32>
    %27 = vector.extract_strided_slice %3 {offsets = [0, 0], sizes = [655, 4], strides = [1, 1]} : vector<656x4xf32> to vector<655x4xf32>
    %cst_24 = arith.constant dense<0.000000e+00> : vector<655x128xf32>
    %28 = tpu.matmul %27, %26, %cst_24 {dimension_numbers = #tpu.dot_dimension_numbers<[1], [0], [0], [1], [0, 0, 1, 1], [], []>} : vector<655x4xf32>, vector<4x128xf32>, vector<655x128xf32> -> vector<655x128xf32>
    %c1_25 = arith.constant 1 : index
    %c0_26 = arith.constant 0 : index
    %29 = vector.load %arg7[%c1_25, %c0_26] : memref<656x128xf32, #tpu.memory_space<vmem>>, vector<655x128xf32>
    %30 = arith.addf %29, %28 : vector<655x128xf32>
    %c1_27 = arith.constant 1 : index
    %c0_28 = arith.constant 0 : index
    %31 = vector.load %arg7[%c1_27, %c0_28] : memref<656x128xf32, #tpu.memory_space<vmem>>, vector<655x128xf32>
    tpu.vector_store %arg7[%c1_27, %c0_28], %30 {strides = array<i32>} : memref<656x128xf32, #tpu.memory_space<vmem>>, vector<655x128xf32>,
    %c4 = arith.constant 4 : index
    %c0_29 = arith.constant 0 : index
    %c0_30 = arith.constant 0 : index
    %32 = vector.load %arg3[%c4, %c0_29, %c0_30] : memref<9x4x128xf32, #tpu.memory_space<vmem>>, vector<1x4x128xf32>
    %33 = vector.shape_cast %32 : vector<1x4x128xf32> to vector<4x128xf32>
    %cst_31 = arith.constant dense<0.000000e+00> : vector<656x128xf32>
    %34 = tpu.matmul %3, %33, %cst_31 {dimension_numbers = #tpu.dot_dimension_numbers<[1], [0], [0], [1], [0, 0, 1, 1], [], []>} : vector<656x4xf32>, vector<4x128xf32>, vector<656x128xf32> -> vector<656x128xf32>
    %c0_32 = arith.constant 0 : index
    %c0_33 = arith.constant 0 : index
    %35 = vector.load %arg7[%c0_32, %c0_33] : memref<656x128xf32, #tpu.memory_space<vmem>>, vector<656x128xf32>
    %36 = arith.addf %35, %34 : vector<656x128xf32>
    %c0_34 = arith.constant 0 : index
    %c0_35 = arith.constant 0 : index
    %37 = vector.load %arg7[%c0_34, %c0_35] : memref<656x128xf32, #tpu.memory_space<vmem>>, vector<656x128xf32>
    tpu.vector_store %arg7[%c0_34, %c0_35], %36 {strides = array<i32>} : memref<656x128xf32, #tpu.memory_space<vmem>>, vector<656x128xf32>,
    %c5 = arith.constant 5 : index
    %c0_36 = arith.constant 0 : index
    %c0_37 = arith.constant 0 : index
    %38 = vector.load %arg3[%c5, %c0_36, %c0_37] : memref<9x4x128xf32, #tpu.memory_space<vmem>>, vector<1x4x128xf32>
    %39 = vector.shape_cast %38 : vector<1x4x128xf32> to vector<4x128xf32>
    %40 = vector.extract_strided_slice %3 {offsets = [1, 0], sizes = [655, 4], strides = [1, 1]} : vector<656x4xf32> to vector<655x4xf32>
    %cst_38 = arith.constant dense<0.000000e+00> : vector<655x128xf32>
    %41 = tpu.matmul %40, %39, %cst_38 {dimension_numbers = #tpu.dot_dimension_numbers<[1], [0], [0], [1], [0, 0, 1, 1], [], []>} : vector<655x4xf32>, vector<4x128xf32>, vector<655x128xf32> -> vector<655x128xf32>
    %c0_39 = arith.constant 0 : index
    %c0_40 = arith.constant 0 : index
    %42 = vector.load %arg7[%c0_39, %c0_40] : memref<656x128xf32, #tpu.memory_space<vmem>>, vector<655x128xf32>
    %43 = arith.addf %42, %41 : vector<655x128xf32>
    %c0_41 = arith.constant 0 : index
    %c0_42 = arith.constant 0 : index
    %44 = vector.load %arg7[%c0_41, %c0_42] : memref<656x128xf32, #tpu.memory_space<vmem>>, vector<655x128xf32>
    tpu.vector_store %arg7[%c0_41, %c0_42], %43 {strides = array<i32>} : memref<656x128xf32, #tpu.memory_space<vmem>>, vector<655x128xf32>,
    %c6 = arith.constant 6 : index
    %c0_43 = arith.constant 0 : index
    %c0_44 = arith.constant 0 : index
    %45 = vector.load %arg3[%c6, %c0_43, %c0_44] : memref<9x4x128xf32, #tpu.memory_space<vmem>>, vector<1x4x128xf32>
    %46 = vector.shape_cast %45 : vector<1x4x128xf32> to vector<4x128xf32>
    %47 = vector.extract_strided_slice %3 {offsets = [17, 0], sizes = [639, 4], strides = [1, 1]} : vector<656x4xf32> to vector<639x4xf32>
    %cst_45 = arith.constant dense<0.000000e+00> : vector<639x128xf32>
    %48 = tpu.matmul %47, %46, %cst_45 {dimension_numbers = #tpu.dot_dimension_numbers<[1], [0], [0], [1], [0, 0, 1, 1], [], []>} : vector<639x4xf32>, vector<4x128xf32>, vector<639x128xf32> -> vector<639x128xf32>
    %c0_46 = arith.constant 0 : index
    %c0_47 = arith.constant 0 : index
    %49 = vector.load %arg7[%c0_46, %c0_47] : memref<656x128xf32, #tpu.memory_space<vmem>>, vector<639x128xf32>
    %50 = arith.addf %49, %48 : vector<639x128xf32>
    %c0_48 = arith.constant 0 : index
    %c0_49 = arith.constant 0 : index
    %51 = vector.load %arg7[%c0_48, %c0_49] : memref<656x128xf32, #tpu.memory_space<vmem>>, vector<639x128xf32>
    tpu.vector_store %arg7[%c0_48, %c0_49], %50 {strides = array<i32>} : memref<656x128xf32, #tpu.memory_space<vmem>>, vector<639x128xf32>,
    %c7 = arith.constant 7 : index
    %c0_50 = arith.constant 0 : index
    %c0_51 = arith.constant 0 : index
    %52 = vector.load %arg3[%c7, %c0_50, %c0_51] : memref<9x4x128xf32, #tpu.memory_space<vmem>>, vector<1x4x128xf32>
    %53 = vector.shape_cast %52 : vector<1x4x128xf32> to vector<4x128xf32>
    %54 = vector.extract_strided_slice %3 {offsets = [18, 0], sizes = [638, 4], strides = [1, 1]} : vector<656x4xf32> to vector<638x4xf32>
    %cst_52 = arith.constant dense<0.000000e+00> : vector<638x128xf32>
    %55 = tpu.matmul %54, %53, %cst_52 {dimension_numbers = #tpu.dot_dimension_numbers<[1], [0], [0], [1], [0, 0, 1, 1], [], []>} : vector<638x4xf32>, vector<4x128xf32>, vector<638x128xf32> -> vector<638x128xf32>
    %c0_53 = arith.constant 0 : index
    %c0_54 = arith.constant 0 : index
    %56 = vector.load %arg7[%c0_53, %c0_54] : memref<656x128xf32, #tpu.memory_space<vmem>>, vector<638x128xf32>
    %57 = arith.addf %56, %55 : vector<638x128xf32>
    %c0_55 = arith.constant 0 : index
    %c0_56 = arith.constant 0 : index
    %58 = vector.load %arg7[%c0_55, %c0_56] : memref<656x128xf32, #tpu.memory_space<vmem>>, vector<638x128xf32>
    tpu.vector_store %arg7[%c0_55, %c0_56], %57 {strides = array<i32>} : memref<656x128xf32, #tpu.memory_space<vmem>>, vector<638x128xf32>,
    %c8 = arith.constant 8 : index
    %c0_57 = arith.constant 0 : index
    %c0_58 = arith.constant 0 : index
    %59 = vector.load %arg3[%c8, %c0_57, %c0_58] : memref<9x4x128xf32, #tpu.memory_space<vmem>>, vector<1x4x128xf32>
    %60 = vector.shape_cast %59 : vector<1x4x128xf32> to vector<4x128xf32>
    %61 = vector.extract_strided_slice %3 {offsets = [19, 0], sizes = [637, 4], strides = [1, 1]} : vector<656x4xf32> to vector<637x4xf32>
    %cst_59 = arith.constant dense<0.000000e+00> : vector<637x128xf32>
    %62 = tpu.matmul %61, %60, %cst_59 {dimension_numbers = #tpu.dot_dimension_numbers<[1], [0], [0], [1], [0, 0, 1, 1], [], []>} : vector<637x4xf32>, vector<4x128xf32>, vector<637x128xf32> -> vector<637x128xf32>
    %c0_60 = arith.constant 0 : index
    %c0_61 = arith.constant 0 : index
    %63 = vector.load %arg7[%c0_60, %c0_61] : memref<656x128xf32, #tpu.memory_space<vmem>>, vector<637x128xf32>
    %64 = arith.addf %63, %62 : vector<637x128xf32>
    %c0_62 = arith.constant 0 : index
    %c0_63 = arith.constant 0 : index
    %65 = vector.load %arg7[%c0_62, %c0_63] : memref<656x128xf32, #tpu.memory_space<vmem>>, vector<637x128xf32>
    tpu.vector_store %arg7[%c0_62, %c0_63], %64 {strides = array<i32>} : memref<656x128xf32, #tpu.memory_space<vmem>>, vector<637x128xf32>,
    %c0_64 = arith.constant 0 : index
    %c0_65 = arith.constant 0 : index
    %66 = vector.load %arg7[%c0_64, %c0_65] : memref<656x128xf32, #tpu.memory_space<vmem>>, vector<656x128xf32>
    %cst_66 = arith.constant 0.000000e+00 : f32
    %67 = vector.broadcast %cst_66 : f32 to vector<656x128xf32>
    %68 = arith.maximumf %66, %67 : vector<656x128xf32>
    %c0_67 = arith.constant 0 : index
    %c0_68 = arith.constant 0 : index
    %69 = vector.load %arg2[%c0_67, %c0_68] : memref<656x1xf32, #tpu.memory_space<vmem>>, vector<656x1xf32>
    %70 = vector.broadcast %69 : vector<656x1xf32> to vector<656x128xf32>
    %71 = arith.mulf %68, %70 : vector<656x128xf32>
    %72 = vector.shape_cast %71 : vector<656x128xf32> to vector<2x328x128xf32>
    %cst_69 = arith.constant dense<0.000000e+00> : vector<2x128xf32>
    %73 = vector.multi_reduction <add>, %72, %cst_69 [1] : vector<2x328x128xf32> to vector<2x128xf32>
    %c0_70 = arith.constant 0 : index
    %c0_71 = arith.constant 0 : index
    %74 = vector.load %arg4[%c0_70, %c0_71] : memref<128x128xf32, #tpu.memory_space<vmem>>, vector<128x128xf32>
    %cst_72 = arith.constant dense<0.000000e+00> : vector<2x128xf32>
    %75 = tpu.matmul %73, %74, %cst_72 {dimension_numbers = #tpu.dot_dimension_numbers<[1], [0], [0], [1], [0, 0, 1, 1], [], []>} : vector<2x128xf32>, vector<128x128xf32>, vector<2x128xf32> -> vector<2x128xf32>
    %c0_73 = arith.constant 0 : index
    %c0_74 = arith.constant 0 : index
    %76 = vector.load %arg5[%c0_73, %c0_74] : memref<1x128xf32, #tpu.memory_space<vmem>>, vector<1x128xf32>
    %77 = vector.broadcast %76 : vector<1x128xf32> to vector<2x128xf32>
    %78 = arith.addf %75, %77 : vector<2x128xf32>
    %c0_75 = arith.constant 0 : index
    %c0_76 = arith.constant 0 : index
    %79 = vector.load %arg6[%c0_75, %c0_76] : memref<2x128xf32, #tpu.memory_space<vmem>>, vector<2x128xf32>
    tpu.vector_store %arg6[%c0_75, %c0_76], %78 {strides = array<i32>} : memref<2x128xf32, #tpu.memory_space<vmem>>, vector<2x128xf32>,
    return
  }
  func.func @transform_0(%arg0: i32) -> (i32, i32) {
    %c0_i32 = arith.constant 0 : i32
    %c0_i32_0 = arith.constant 0 : i32
    return %arg0, %c0_i32 : i32, i32
  }
  func.func @transform_1(%arg0: i32) -> (i32, i32) {
    %c0_i32 = arith.constant 0 : i32
    %c0_i32_0 = arith.constant 0 : i32
    %c0_i32_1 = arith.constant 0 : i32
    return %c0_i32, %c0_i32_0 : i32, i32
  }
  func.func @transform_2(%arg0: i32) -> (i32, i32, i32) {
    %c0_i32 = arith.constant 0 : i32
    %c0_i32_0 = arith.constant 0 : i32
    %c0_i32_1 = arith.constant 0 : i32
    %c0_i32_2 = arith.constant 0 : i32
    return %c0_i32, %c0_i32_0, %c0_i32_1 : i32, i32, i32
  }
  func.func @transform_3(%arg0: i32) -> (i32, i32) {
    %c0_i32 = arith.constant 0 : i32
    %c0_i32_0 = arith.constant 0 : i32
    %c0_i32_1 = arith.constant 0 : i32
    return %c0_i32, %c0_i32_0 : i32, i32
  }
  func.func @transform_4(%arg0: i32) -> (i32, i32) {
    %c0_i32 = arith.constant 0 : i32
    %c0_i32_0 = arith.constant 0 : i32
    %c0_i32_1 = arith.constant 0 : i32
    return %c0_i32, %c0_i32_0 : i32, i32
  }
  func.func @transform_5(%arg0: i32) -> (i32, i32) {
    %c0_i32 = arith.constant 0 : i32
    %c0_i32_0 = arith.constant 0 : i32
    return %arg0, %c0_i32 : i32, i32
  }
}

</mosaic_0001>

<bundles_post_ra>
// kernel: tpu_custom_call.1
= control target key start
LH: loop header
LB: loop body
LE: loop exit
PB: predicated region body
PF: predicated region fallthrough
CT: control target
= control target key end

     0   :  { %vm509_vm0 = vcmask 1043456   ;;  %vm268_vm1 = vcmask 31744   ;;  %s15736_s0 = inlined_call_operand.vmem [shape: bf16[656,4], index: 0, kind: input, shape index: {}]   ;;  %s15737_s1 = inlined_call_operand.vmem [shape: f32[656,1], index: 1, kind: input, shape index: {}]   ;;  %s15738_s2 = inlined_call_operand.vmem [shape: f32[9,4,128], index: 2, kind: input, shape index: {}]   ;;  %s15739_s3 = inlined_call_operand.vmem [shape: f32[128,128], index: 3, kind: input, shape index: {}]   ;;  %s15740_s4 = inlined_call_operand.vmem [shape: f32[1,128], index: 4, kind: input, shape index: {}]   ;;  %s15741_s5 = inlined_call_operand.hbm [shape: f32[2,128], index: 5, kind: output, shape index: {}]  }
   0x1   :  { %v267_v0 = vld [vmem:[%s15738_s2] sm:$0xf]  ;;  %v8944_v1 = vld [vmem:[%s15738_s2 + $0x4] sm:$0xf]  ;;  %v9789_v4 = vld [vmem:[%s15736_s0 + $0x98] sm:$0xff]  }
   0x2   :  { %v9608_v2 = vld [vmem:[%s15736_s0] sm:$0xff]   ;;  %10563 = vmatprep.subr.msk.mxu0 %vm509_vm0, %v267_v0  ;;  %11729 = vmatprep.subr.msk.mxu1 %vm509_vm0, %v8944_v1  ;;  %v9771_v6 = vld [vmem:[%s15736_s0 + $0x8] sm:$0xff]   ;;  %v12690_v8 = vunpack.c.l.bf16 %v9789_v4  ;;  %v12692_v9 = vunpack.c.h.bf16 %v9789_v4  ;;  %v9772_v12 = vld [vmem:[%s15736_s0 + $0x10] sm:$0xff]  }
   0x3   :  { %v12675_v3 = vunpack.c.l.bf16 %v9608_v2  ;;  %v12680_v5 = vunpack.c.h.bf16 %v9608_v2  ;;  %v9790_v7 = vld [vmem:[%s15736_s0 + $0xa0] sm:$0xff]   ;;  %10564 = vmatpush3.msk.msra.mxu0 %vm509_vm0, %v267_v0  ;;  %11730 = vmatpush3.msk.msra.mxu1 %vm509_vm0, %v8944_v1  ;;  %v12694_v10 = vunpack.c.l.bf16 %v9771_v6  ;;  %v9791_v13 = vld [vmem:[%s15736_s0 + $0xa8] sm:$0xff]   ;;  %v12711_v14 = vunpack.c.h.bf16 %v9771_v6  ;;  %v9773_v18 = vld [vmem:[%s15736_s0 + $0x18] sm:$0xff]  }
   0x4   :  { %16037 = vst [vmem:[#allocation8_spill] sm:$0xff] %v12690_v8  ;;  %16038 = vst [vmem:[#allocation9_spill] sm:$0xff] %v12692_v9  ;;  %v12696_v11 = vunpack.c.l.bf16 %v9790_v7  ;;  %10685 = vmatprep.subr.msk.mxu0 %vm509_vm0, %v8944_v1  ;;  %10744 = vmatprep.mubr.msk.f32.mxu1 %vm268_vm1, %v12690_v8  ;;  %v12716_v15 = vunpack.c.h.bf16 %v9790_v7  ;;  %v12718_v16 = vunpack.c.l.bf16 %v9772_v12  ;;  %v12724_v17 = vunpack.c.l.bf16 %v9791_v13  ;;  %v9276_v19 = vld [vmem:[%s15738_s2 + $0x14] sm:$0xf]  ;;  %v9774_v25 = vld [vmem:[%s15736_s0 + $0x20] sm:$0xff]  }
   0x5   :  { %16035 = vst [vmem:[#allocation6_spill] sm:$0xff] %v12675_v3  ;;  %16036 = vst [vmem:[#allocation7_spill] sm:$0xff] %v12680_v5  ;;  %10565 = vmatprep.mubr.msk.f32.mxu0 %vm268_vm1, %v12675_v3  ;;  %10745 = vmatmul.mubr.msk.f32.vlgmr.msra.gmra.mrb[0].mxu1 %vm268_vm1, %v12692_v9  ;;  %v9792_v20 = vld [vmem:[%s15736_s0 + $0xb0] sm:$0xff]   ;;  %v12738_v21 = vunpack.c.h.bf16 %v9772_v12  ;;  %v12745_v22 = vunpack.c.h.bf16 %v9791_v13  ;;  %v12747_v23 = vunpack.c.l.bf16 %v9773_v18  ;;  %v9793_v26 = vld [vmem:[%s15736_s0 + $0xb8] sm:$0xff]   ;;  %v12761_v27 = vunpack.c.h.bf16 %v9773_v18 }
   0x6   :  { %16039 = vst [vmem:[#allocation10_spill] sm:$0xff] %v12694_v10  ;;  %16040 = vst [vmem:[#allocation11_spill] sm:$0xff] %v12696_v11  ;;  %10566 = vmatmul.mubr.msk.f32.vlgmr.msra.gmra.mrb[0].mxu0 %vm268_vm1, %v12680_v5  ;;  %10747 = vmatprep.mubr.msk.f32.mxu1 %vm268_vm1, %v12696_v11  ;;  %v12751_v24 = vunpack.c.l.bf16 %v9792_v20  ;;  %v12767_v28 = vunpack.c.h.bf16 %v9792_v20  ;;  %v12769_v29 = vunpack.c.l.bf16 %v9774_v25  ;;  %v12773_v30 = vunpack.c.l.bf16 %v9793_v26  ;;  %v9775_v31 = vld [vmem:[%s15736_s0 + $0x28] sm:$0xff]   ;;  %v12781_v32 = vld [vmem:[%s15738_s2 + $0x18] sm:$0xf] }
   0x7   :  { %16041 = vst [vmem:[#allocation12_spill] sm:$0xff] %v12711_v14  ;;  %10686 = vmatpush3.msk.msra.mxu0 %vm509_vm0, %v8944_v1  ;;  %16042 = vst [vmem:[#allocation13_spill] sm:$0xff] %v12716_v15  ;;  %10568 = vmatprep.mubr.msk.f32.mxu0 %vm268_vm1, %v12694_v10 }
   0x8   :  { %16043 = vst [vmem:[#allocation14_spill] sm:$0xff] %v12718_v16  ;;  %16044 = vst [vmem:[#allocation15_spill] sm:$0xff] %v12724_v17  ;;  %11179 = vmatprep.subr.msk.mxu1 %vm509_vm0, %v9276_v19 }
   0x9   :  { %16045 = vst [vmem:[#allocation16_spill] sm:$0xff] %v12738_v21  ;;  %11180 = vmatpush3.msk.msra.mxu1 %vm509_vm0, %v9276_v19  ;;  %16046 = vst [vmem:[#allocation17_spill] sm:$0xff] %v12745_v22 }
   0xa   :  { %10569 = vmatmul.mubr.msk.f32.gmra.mrb[2].mxu0 %vm268_vm1, %v12711_v14  ;;  %10748 = vmatmul.mubr.msk.f32.gmra.mrb[2].mxu1 %vm268_vm1, %v12716_v15  ;;  %16047 = vst [vmem:[#allocation18_spill] sm:$0xff] %v12747_v23  ;;  %16048 = vst [vmem:[#allocation19_spill] sm:$0xff] %v12751_v24 }
   0xb   :  { %10571 = vmatprep.mubr.msk.f32.mxu0 %vm268_vm1, %v12718_v16  ;;  %10750 = vmatprep.mubr.msk.f32.mxu1 %vm268_vm1, %v12724_v17  ;;  %16049 = vst [vmem:[#allocation20_spill] sm:$0xff] %v12761_v27  ;;  %16050 = vst [vmem:[#allocation21_spill] sm:$0xff] %v12767_v28 }
   0xc   :  { %16051 = vst [vmem:[#allocation22_spill] sm:$0xff] %v12769_v29  ;;  %16052 = vst [vmem:[#allocation23_spill] sm:$0xff] %v12773_v30 }
   0xe   :  { %10572 = vmatmul.mubr.msk.f32.gmra.mrb[4].mxu0 %vm268_vm1, %v12738_v21  ;;  %10751 = vmatmul.mubr.msk.f32.gmra.mrb[4].mxu1 %vm268_vm1, %v12745_v22 }
   0xf   :  { %10574 = vmatprep.mubr.msk.f32.mxu0 %vm268_vm1, %v12747_v23  ;;  %10753 = vmatprep.mubr.msk.f32.mxu1 %vm268_vm1, %v12751_v24 }
  0x10   :  { %10 = vsyncpa [#allocation4], 0  ;;  %v9794_v33 = vld [vmem:[%s15736_s0 + $0xc0] sm:$0xff]   ;;  %11304 = vmatprep.subr.msk.mxu1 %vm509_vm0, %v12781_v32  ;;  %v12790_v34 = vunpack.c.h.bf16 %v9774_v25  ;;  %v12796_v35 = vunpack.c.h.bf16 %v9793_v26  ;;  %v12798_v36 = vunpack.c.l.bf16 %v9775_v31  ;;  %v9776_v38 = vld [vmem:[%s15736_s0 + $0x30] sm:$0xff]   ;;  %v12812_v40 = vunpack.c.h.bf16 %v9775_v31  ;;  %s12633_s24 = smov [#allocation3]  }
  0x11   :  { %v12802_v37 = vunpack.c.l.bf16 %v9794_v33  ;;  %v9795_v39 = vld [vmem:[%s15736_s0 + $0xc8] sm:$0xff]   ;;  %v12818_v41 = vunpack.c.h.bf16 %v9794_v33  ;;  %v12820_v42 = vunpack.c.l.bf16 %v9776_v38  ;;  %v9777_v44 = vld [vmem:[%s15736_s0 + $0x38] sm:$0xff]   ;;  %v9796_v45 = vld [vmem:[%s15736_s0 + $0xd0] sm:$0xff]   ;;  %v12834_v46 = vunpack.c.h.bf16 %v9776_v38  ;;  %s8855_s25 = sshll.u32 %s12633_s24, 4  ;;  %s8856_s25 = int_to_ptr.vmem [resolvable:$true] %s8855_s25 }
  0x12   :  { %10575 = vmatmul.mubr.msk.f32.gmra.mrb[6].mxu0 %vm268_vm1, %v12761_v27  ;;  %16053 = vst [vmem:[#allocation24_spill] sm:$0xff] %v12790_v34  ;;  %10754 = vmatmul.mubr.msk.f32.gmra.mrb[6].mxu1 %vm268_vm1, %v12767_v28  ;;  %16054 = vst [vmem:[#allocation25_spill] sm:$0xff] %v12796_v35  ;;  %v12824_v43 = vunpack.c.l.bf16 %v9795_v39  ;;  %v12840_v47 = vunpack.c.h.bf16 %v9795_v39  ;;  %v12842_v48 = vunpack.c.l.bf16 %v9777_v44  ;;  %v12846_v49 = vunpack.c.l.bf16 %v9796_v45  ;;  %v9778_v50 = vld [vmem:[%s15736_s0 + $0x40] sm:$0xff]   ;;  %v9797_v51 = vld [vmem:[%s15736_s0 + $0xd8] sm:$0xff]   ;;  %s12605_s26 = scalar_lea.vmem %s8856_s25, 32  ;;  %p12610_p1 = scmp.lt.s32.totalorder %s8856_s25, %s8856_s25 }
  0x13   :  { %10577 = vmatprep.mubr.msk.f32.mxu0 %vm268_vm1, %v12769_v29  ;;  %16055 = vst [vmem:[#allocation26_spill] sm:$0xff] %v12798_v36  ;;  %10756 = vmatprep.mubr.msk.f32.mxu1 %vm268_vm1, %v12773_v30  ;;  %16056 = vst [vmem:[#allocation27_spill] sm:$0xff] %v12802_v37  ;;  %v12856_v52 = vunpack.c.h.bf16 %v9777_v44  ;;  %v12862_v53 = vunpack.c.h.bf16 %v9796_v45  ;;  %v12864_v54 = vunpack.c.l.bf16 %v9778_v50  ;;  %v12868_v55 = vunpack.c.l.bf16 %v9797_v51  ;;  %v9779_v56 = vld [vmem:[%s15736_s0 + $0x48] sm:$0xff]   ;;  %v9798_v57 = vld [vmem:[%s15736_s0 + $0xe0] sm:$0xff]   ;;  %p12606_p0 = scmp.ne.s32.totalorder %s8856_s25, %s12605_s26  ;;  %p12611_p2 = scmp.lt.s32.totalorder %s12605_s26, %s12605_s26 }
  0x14   :  { %16057 = vst [vmem:[#allocation28_spill] sm:$0xff] %v12812_v40  ;;  %16058 = vst [vmem:[#allocation29_spill] sm:$0xff] %v12818_v41  ;;  %v12878_v58 = vunpack.c.h.bf16 %v9778_v50  ;;  %v12884_v59 = vunpack.c.h.bf16 %v9797_v51  ;;  %v12886_v60 = vunpack.c.l.bf16 %v9779_v56  ;;  %v12891_v61 = vld [vmem:[%s15738_s2 + $0x8] sm:$0xf]  ;;  %v12895_v62 = vunpack.c.l.bf16 %v9798_v57  ;;  %v9780_v63 = vld [vmem:[%s15736_s0 + $0x50] sm:$0xff]  }
  0x15   :  { %16059 = vst [vmem:[#allocation30_spill] sm:$0xff] %v12820_v42  ;;  %16060 = vst [vmem:[#allocation31_spill] sm:$0xff] %v12824_v43  ;;  %10807 = vmatprep.subr.msk.mxu0 %vm509_vm0, %v12891_v61  ;;  %v9799_v0 = vld [vmem:[%s15736_s0 + $0xe8] sm:$0xff]   ;;  %v12907_v1 = vunpack.c.h.bf16 %v9779_v56  ;;  %v12913_v2 = vunpack.c.h.bf16 %v9798_v57  ;;  %v12915_v4 = vunpack.c.l.bf16 %v9780_v63  ;;  %v9781_v7 = vld [vmem:[%s15736_s0 + $0x58] sm:$0xff]   ;;  %v12929_v13 = vunpack.c.h.bf16 %v9780_v63  ;;  %p12612_p3 = por %p12611_p2, %p12610_p1 }
  0x16   :  { %10578 = vmatmul.mubr.msk.f32.gmra.mrb[8].mxu0 %vm268_vm1, %v12790_v34  ;;  %10757 = vmatmul.mubr.msk.f32.gmra.mrb[8].mxu1 %vm268_vm1, %v12796_v35  ;;  %16061 = vst [vmem:[#allocation32_spill] sm:$0xff] %v12834_v46  ;;  %16062 = vst [vmem:[#allocation33_spill] sm:$0xff] %v12840_v47  ;;  %v12919_v6 = vunpack.c.l.bf16 %v9799_v0  ;;  %v9800_v12 = vld [vmem:[%s15736_s0 + $0xf0] sm:$0xff]   ;;  %v12935_v18 = vunpack.c.h.bf16 %v9799_v0  ;;  %v12937_v19 = vunpack.c.l.bf16 %v9781_v7  ;;  %v9782_v25 = vld [vmem:[%s15736_s0 + $0x60] sm:$0xff]   ;;  %v12951_v31 = vunpack.c.h.bf16 %v9781_v7 }
  0x17   :  { %10580 = vmatprep.mubr.msk.f32.mxu0 %vm268_vm1, %v12798_v36  ;;  %10759 = vmatprep.mubr.msk.f32.mxu1 %vm268_vm1, %v12802_v37  ;;  %16063 = vst [vmem:[#allocation34_spill] sm:$0xff] %v12842_v48  ;;  %16064 = vst [vmem:[#allocation35_spill] sm:$0xff] %v12846_v49  ;;  %v12941_v20 = vunpack.c.l.bf16 %v9800_v12  ;;  %v9801_v26 = vld [vmem:[%s15736_s0 + $0xf8] sm:$0xff]   ;;  %v12957_v33 = vunpack.c.h.bf16 %v9800_v12  ;;  %v12959_v38 = vunpack.c.l.bf16 %v9782_v25  ;;  %v9783_v44 = vld [vmem:[%s15736_s0 + $0x68] sm:$0xff]   ;;  %v12973_v50 = vunpack.c.h.bf16 %v9782_v25  ;;  %p12613_p4 = pnand %p12612_p3, %p12606_p0 }
  0x18   :  { %16065 = vst [vmem:[#allocation36_spill] sm:$0xff] %v12856_v52  ;;  %16066 = vst [vmem:[#allocation37_spill] sm:$0xff] %v12862_v53  ;;  %v12963_v39 = vunpack.c.l.bf16 %v9801_v26  ;;  %v9802_v45 = vld [vmem:[%s15736_s0 + $0x100] sm:$0xff]   ;;  %v12979_v51 = vunpack.c.h.bf16 %v9801_v26  ;;  %v12981_v56 = vunpack.c.l.bf16 %v9783_v44  ;;  %v9784_v63 = vld [vmem:[%s15736_s0 + $0x70] sm:$0xff]   ;;  %v12995_v7 = vunpack.c.h.bf16 %v9783_v44 }
  0x19   :  { %16067 = vst [vmem:[#allocation38_spill] sm:$0xff] %v12864_v54  ;;  %16068 = vst [vmem:[#allocation39_spill] sm:$0xff] %v12868_v55  ;;  %v12985_v57 = vunpack.c.l.bf16 %v9802_v45  ;;  %v9803_v0 = vld [vmem:[%s15736_s0 + $0x108] sm:$0xff]   ;;  %v13001_v12 = vunpack.c.h.bf16 %v9802_v45  ;;  %v13003_v25 = vunpack.c.l.bf16 %v9784_v63  ;;  %v9785_v44 = vld [vmem:[%s15736_s0 + $0x78] sm:$0xff]   ;;  %v13017_v45 = vunpack.c.h.bf16 %v9784_v63 }
  0x1a   :  { %10581 = vmatmul.mubr.msk.f32.gmra.mrb[10].mxu0 %vm268_vm1, %v12812_v40  ;;  %10760 = vmatmul.mubr.msk.f32.gmra.mrb[10].mxu1 %vm268_vm1, %v12818_v41  ;;  %16069 = vst [vmem:[#allocation40_spill] sm:$0xff] %v12878_v58  ;;  %16070 = vst [vmem:[#allocation41_spill] sm:$0xff] %v12884_v59  ;;  %v13007_v26 = vunpack.c.l.bf16 %v9803_v0  ;;  %v9786_v63 = vld [vmem:[%s15736_s0 + $0x80] sm:$0xff]   ;;  %vm4098_vm2 = vcmask 1046528   ;;  %vm5862_vm3 = vcmask 1045504   ;;  %vm6892_vm4 = vcmask 1044480  }
  0x1b   :  { %10583 = vmatprep.mubr.msk.f32.mxu0 %vm268_vm1, %v12820_v42  ;;  %10762 = vmatprep.mubr.msk.f32.mxu1 %vm268_vm1, %v12824_v43  ;;  %16071 = vst [vmem:[#allocation42_spill] sm:$0xff] %v12886_v60  ;;  %16072 = vst [vmem:[#allocation43_spill] sm:$0xff] %v12891_v61  ;;  %v9804_v61 = vld [vmem:[%s15736_s0 + $0x110] sm:$0xff]   ;;  %vm12632_vm5 = vmmov 0   ;;  %vm8775_vm6 = vcmask 1041409  }
  0x1c   :  { %16073 = vst [vmem:[#allocation44_spill] sm:$0xff] %v12895_v62  ;;  %16074 = vst [vmem:[#allocation45_spill] sm:$0xff] %v12907_v1 }
  0x1d   :  { %16075 = vst [vmem:[#allocation46_spill] sm:$0xff] %v12913_v2  ;;  %16076 = vst [vmem:[#allocation47_spill] sm:$0xff] %v12915_v4 }
  0x1e   :  { %10584 = vmatmul.mubr.msk.f32.gmra.mrb[12].mxu0 %vm268_vm1, %v12834_v46  ;;  %10763 = vmatmul.mubr.msk.f32.gmra.mrb[12].mxu1 %vm268_vm1, %v12840_v47  ;;  %16077 = vst [vmem:[#allocation48_spill] sm:$0xff] %v12919_v6  ;;  %16078 = vst [vmem:[#allocation49_spill] sm:$0xff] %v12929_v13 }
  0x1f   :  { %10586 = vmatprep.mubr.msk.f32.mxu0 %vm268_vm1, %v12842_v48  ;;  %10765 = vmatprep.mubr.msk.f32.mxu1 %vm268_vm1, %v12846_v49  ;;  %16079 = vst [vmem:[#allocation50_spill] sm:$0xff] %v12935_v18  ;;  %16080 = vst [vmem:[#allocation51_spill] sm:$0xff] %v12937_v19 }
  0x20   :  { %16081 = vst [vmem:[#allocation52_spill] sm:$0xff] %v12941_v20  ;;  %16082 = vst [vmem:[#allocation53_spill] sm:$0xff] %v12951_v31 }
  0x21   :  { %16083 = vst [vmem:[#allocation54_spill] sm:$0xff] %v12957_v33  ;;  %16084 = vst [vmem:[#allocation55_spill] sm:$0xff] %v12959_v38 }
  0x22   :  { %10587 = vmatmul.mubr.msk.f32.gmra.mrb[14].mxu0 %vm268_vm1, %v12856_v52  ;;  %10766 = vmatmul.mubr.msk.f32.gmra.mrb[14].mxu1 %vm268_vm1, %v12862_v53  ;;  %16085 = vst [vmem:[#allocation56_spill] sm:$0xff] %v12963_v39  ;;  %16086 = vst [vmem:[#allocation57_spill] sm:$0xff] %v12973_v50 }
  0x23   :  { %10589 = vmatprep.mubr.msk.f32.mxu0 %vm268_vm1, %v12864_v54  ;;  %10768 = vmatprep.mubr.msk.f32.mxu1 %vm268_vm1, %v12868_v55  ;;  %16087 = vst [vmem:[#allocation58_spill] sm:$0xff] %v12979_v51  ;;  %16088 = vst [vmem:[#allocation59_spill] sm:$0xff] %v12981_v56 }
  0x24   :  { %16089 = vst [vmem:[#allocation60_spill] sm:$0xff] %v12985_v57  ;;  %16090 = vst [vmem:[#allocation61_spill] sm:$0xff] %v12995_v7 }
  0x25   :  { %16091 = vst [vmem:[#allocation62_spill] sm:$0xff] %v13001_v12  ;;  %16092 = vst [vmem:[#allocation63_spill] sm:$0xff] %v13003_v25 }
  0x26   :  { %10590 = vmatmul.mubr.msk.f32.gmra.mrb[16].mxu0 %vm268_vm1, %v12878_v58  ;;  %10769 = vmatmul.mubr.msk.f32.gmra.mrb[16].mxu1 %vm268_vm1, %v12884_v59  ;;  %16093 = vst [vmem:[#allocation64_spill] sm:$0xff] %v13007_v26  ;;  %16094 = vst [vmem:[#allocation65_spill] sm:$0xff] %v13017_v45 }
  0x27   :  { %10592 = vmatprep.mubr.msk.f32.mxu0 %vm268_vm1, %v12886_v60  ;;  %10771 = vmatprep.mubr.msk.f32.mxu1 %vm268_vm1, %v12895_v62 }
  0x2a   :  { %10593 = vmatmul.mubr.msk.f32.gmra.mrb[18].mxu0 %vm268_vm1, %v12907_v1  ;;  %10772 = vmatmul.mubr.msk.f32.gmra.mrb[18].mxu1 %vm268_vm1, %v12913_v2 }
  0x2b   :  { %10595 = vmatprep.mubr.msk.f32.mxu0 %vm268_vm1, %v12915_v4  ;;  %10774 = vmatprep.mubr.msk.f32.mxu1 %vm268_vm1, %v12919_v6 }
  0x2e   :  { %10596 = vmatmul.mubr.msk.f32.gmra.mrb[20].mxu0 %vm268_vm1, %v12929_v13  ;;  %10775 = vmatmul.mubr.msk.f32.gmra.mrb[20].mxu1 %vm268_vm1, %v12935_v18 }
  0x2f   :  { %10598 = vmatprep.mubr.msk.f32.mxu0 %vm268_vm1, %v12937_v19  ;;  %10777 = vmatprep.mubr.msk.f32.mxu1 %vm268_vm1, %v12941_v20 }
  0x32   :  { %10599 = vmatmul.mubr.msk.f32.gmra.mrb[22].mxu0 %vm268_vm1, %v12951_v31  ;;  %10778 = vmatmul.mubr.msk.f32.gmra.mrb[22].mxu1 %vm268_vm1, %v12957_v33 }
  0x33   :  { %10601 = vmatprep.mubr.msk.f32.mxu0 %vm268_vm1, %v12959_v38  ;;  %10780 = vmatprep.mubr.msk.f32.mxu1 %vm268_vm1, %v12963_v39 }
  0x36   :  { %10602 = vmatmul.mubr.msk.f32.gmra.mrb[24].mxu0 %vm268_vm1, %v12973_v50  ;;  %10781 = vmatmul.mubr.msk.f32.gmra.mrb[24].mxu1 %vm268_vm1, %v12979_v51  ;;  %v13029_v51 = vunpack.c.l.bf16 %v9804_v61 }
  0x37   :  { %10604 = vmatprep.mubr.msk.f32.mxu0 %vm268_vm1, %v12981_v56  ;;  %10783 = vmatprep.mubr.msk.f32.mxu1 %vm268_vm1, %v12985_v57  ;;  %v13023_v56 = vunpack.c.h.bf16 %v9803_v0  ;;  %v13025_v57 = vunpack.c.l.bf16 %v9785_v44  ;;  %v13039_v0 = vunpack.c.h.bf16 %v9785_v44  ;;  %v9787_v44 = vld [vmem:[%s15736_s0 + $0x88] sm:$0xff]  }
  0x38   :  { %16097 = vst [vmem:[#allocation68_spill] sm:$0xff] %v13029_v51 }
  0x39   :  { %16095 = vst [vmem:[#allocation66_spill] sm:$0xff] %v13023_v56  ;;  %16096 = vst [vmem:[#allocation67_spill] sm:$0xff] %v13025_v57 }
  0x3a   :  { %10605 = vmatmul.mubr.msk.f32.gmra.mrb[26].mxu0 %vm268_vm1, %v12995_v7  ;;  %10784 = vmatmul.mubr.msk.f32.gmra.mrb[26].mxu1 %vm268_vm1, %v13001_v12  ;;  %v9805_v12 = vld [vmem:[%s15736_s0 + $0x118] sm:$0xff]   ;;  %16098 = vst [vmem:[#allocation69_spill] sm:$0xff] %v13039_v0 }
  0x3b   :  { %10607 = vmatprep.mubr.msk.f32.mxu0 %vm268_vm1, %v13003_v25  ;;  %10786 = vmatprep.mubr.msk.f32.mxu1 %vm268_vm1, %v13007_v26  ;;  %v13045_v25 = vunpack.c.h.bf16 %v9804_v61  ;;  %v13047_v26 = vunpack.c.l.bf16 %v9786_v63  ;;  %v13051_v7 = vunpack.c.l.bf16 %v9805_v12  ;;  %v13061_v61 = vunpack.c.h.bf16 %v9786_v63  ;;  %v9788_v63 = vld [vmem:[%s15736_s0 + $0x90] sm:$0xff]  }
  0x3d   :  { %16099 = vst [vmem:[#allocation70_spill] sm:$0xff] %v13045_v25  ;;  %16100 = vst [vmem:[#allocation71_spill] sm:$0xff] %v13047_v26 }
  0x3e   :  { %10608 = vmatmul.mubr.msk.f32.gmra.mrb[28].mxu0 %vm268_vm1, %v13017_v45  ;;  %10787 = vmatmul.mubr.msk.f32.gmra.mrb[28].mxu1 %vm268_vm1, %v13023_v56  ;;  %16101 = vst [vmem:[#allocation72_spill] sm:$0xff] %v13051_v7  ;;  %v9806_v56 = vld [vmem:[%s15736_s0 + $0x120] sm:$0xff]   ;;  %16102 = vst [vmem:[#allocation73_spill] sm:$0xff] %v13061_v61 }
  0x3f   :  { %10610 = vmatprep.mubr.msk.f32.mxu0 %vm268_vm1, %v13025_v57  ;;  %10789 = vmatprep.mubr.msk.f32.mxu1 %vm268_vm1, %v13029_v51  ;;  %v13067_v57 = vunpack.c.h.bf16 %v9805_v12  ;;  %v13069_v51 = vunpack.c.l.bf16 %v9787_v44  ;;  %v13073_v45 = vunpack.c.l.bf16 %v9806_v56  ;;  %v13083_v12 = vunpack.c.h.bf16 %v9787_v44  ;;  %v9808_v44 = vld [vmem:[%s15736_s0 + $0x130] sm:$0xff]  }
  0x41   :  { %16103 = vst [vmem:[#allocation74_spill] sm:$0xff] %v13067_v57  ;;  %16104 = vst [vmem:[#allocation75_spill] sm:$0xff] %v13069_v51 }
  0x42   :  { %10611 = vmatmul.mubr.msk.f32.gmra.mrb[30].mxu0 %vm268_vm1, %v13039_v0  ;;  %10790 = vmatmul.mubr.msk.f32.gmra.mrb[30].mxu1 %vm268_vm1, %v13045_v25  ;;  %16105 = vst [vmem:[#allocation76_spill] sm:$0xff] %v13073_v45  ;;  %v9807_v25 = vld [vmem:[%s15736_s0 + $0x128] sm:$0xff]   ;;  %16106 = vst [vmem:[#allocation77_spill] sm:$0xff] %v13083_v12 }
  0x43   :  { %10613 = vmatprep.mubr.msk.f32.mxu0 %vm268_vm1, %v13047_v26  ;;  %10792 = vmatprep.mubr.msk.f32.mxu1 %vm268_vm1, %v13051_v7  ;;  %v13089_v26 = vunpack.c.h.bf16 %v9806_v56  ;;  %v13091_v7 = vunpack.c.l.bf16 %v9788_v63  ;;  %v13095_v0 = vunpack.c.l.bf16 %v9807_v25  ;;  %v13108_v56 = vunpack.c.h.bf16 %v9807_v25 }
  0x44   :  { %v13123_v25 = vunpack.c.h.bf16 %v9808_v44 }
  0x45   :  { %16107 = vst [vmem:[#allocation78_spill] sm:$0xff] %v13089_v26  ;;  %16108 = vst [vmem:[#allocation79_spill] sm:$0xff] %v13091_v7 }
  0x46   :  { %10614 = vmatmul.mubr.msk.f32.gmra.mrb[32].mxu0 %vm268_vm1, %v13061_v61  ;;  %10793 = vmatmul.mubr.msk.f32.gmra.mrb[32].mxu1 %vm268_vm1, %v13067_v57  ;;  %16109 = vst [vmem:[#allocation80_spill] sm:$0xff] %v13095_v0  ;;  %v13102_v57 = vunpack.c.h.bf16 %v9788_v63  ;;  %16111 = vst [vmem:[#allocation82_spill] sm:$0xff] %v13108_v56 }
  0x47   :  { %10616 = vmatprep.mubr.msk.f32.mxu0 %vm268_vm1, %v13069_v51  ;;  %10795 = vmatprep.mubr.msk.f32.mxu1 %vm268_vm1, %v13073_v45  ;;  %v13112_v51 = vunpack.c.l.bf16 %v9808_v44  ;;  %v9809_v45 = vld [vmem:[%s15736_s0 + $0x138] sm:$0xff]   ;;  %16113 = vst [vmem:[#allocation84_spill] sm:$0xff] %v13123_v25 }
  0x48   :  { %16110 = vst [vmem:[#allocation81_spill] sm:$0xff] %v13102_v57  ;;  %v13127_v63 = vunpack.c.l.bf16 %v9809_v45  ;;  %v13137_v44 = vunpack.c.h.bf16 %v9809_v45  ;;  %v4102_v45 = vrot.slane %v12694_v10, 1  ;;  %v4106_v10 = vrot.slane %v12718_v16, 1 }
  0x49   :  { %16112 = vst [vmem:[#allocation83_spill] sm:$0xff] %v13112_v51 }
  0x4a   :  { %10617 = vmatmul.mubr.msk.f32.gmra.mrb[34].mxu0 %vm268_vm1, %v13083_v12  ;;  %10796 = vmatmul.mubr.msk.f32.gmra.mrb[34].mxu1 %vm268_vm1, %v13089_v26  ;;  %16114 = vst [vmem:[#allocation85_spill] sm:$0xff] %v13127_v63  ;;  %16115 = vst [vmem:[#allocation86_spill] sm:$0xff] %v13137_v44 }
  0x4b   :  { %10619 = vmatprep.mubr.msk.f32.mxu0 %vm268_vm1, %v13091_v7  ;;  %10798 = vmatprep.mubr.msk.f32.mxu1 %vm268_vm1, %v13095_v0  ;;  %v4099_v7 = vrot.slane %v12675_v3, 1  ;;  %v4100_v0 = vrot.slane %v12680_v5, 1 }
  0x4e   :  { %10620 = vmatmul.mubr.msk.f32.gmra.mrb[36].mxu0 %vm268_vm1, %v13102_v57  ;;  %10799 = vmatmul.mubr.msk.f32.gmra.mrb[36].mxu1 %vm268_vm1, %v13108_v56 }
  0x4f   :  { %10622 = vmatprep.mubr.msk.f32.mxu0 %vm268_vm1, %v12690_v8  ;;  %10801 = vmatprep.mubr.msk.f32.mxu1 %vm268_vm1, %v13112_v51  ;;  %v15789_v8 = vmov 0.0  }
  0x50   :  { %24 = vst [vmem:[#allocation2 + $0x18] sm:$0xff] %v15789_v8  ;;  %25 = vst [vmem:[#allocation2 + $0x20] sm:$0xff] %v15789_v8 }
  0x51   :  { %21 = vst [vmem:[#allocation2] sm:$0xff] %v15789_v8  ;;  %22 = vst [vmem:[#allocation2 + $0x8] sm:$0xff] %v15789_v8 }
  0x52   :  { %10623 = vmatmul.mubr.msk.f32.gmra.mrb[38].mxu0 %vm268_vm1, %v12692_v9  ;;  %10802 = vmatmul.mubr.msk.f32.gmra.mrb[38].mxu1 %vm268_vm1, %v13123_v25  ;;  %23 = vst [vmem:[#allocation2 + $0x10] sm:$0xff] %v15789_v8  ;;  %26 = vst [vmem:[#allocation2 + $0x28] sm:$0xff] %v15789_v8  ;;  %v4104_v25 = vrot.slane %v12711_v14, 1  ;;  %v4108_v14 = vrot.slane %v12738_v21, 1  ;;  %v4112_v21 = vrot.slane %v12761_v27, 1 }
  0x53   :  { %10625 = vmatprep.mubr.msk.f32.mxu0 %vm268_vm1, %v12696_v11  ;;  %27 = vst [vmem:[#allocation2 + $0x30] sm:$0xff] %v15789_v8  ;;  %28 = vst [vmem:[#allocation2 + $0x38] sm:$0xff] %v15789_v8  ;;  %10804 = vmatprep.mubr.msk.f32.mxu1 %vm268_vm1, %v13127_v63  ;;  %v4101_v11 = vsel %vm4098_vm2, %v4099_v7, %v4100_v0 }
  0x54   :  { %29 = vst [vmem:[#allocation2 + $0x40] sm:$0xff] %v15789_v8  ;;  %30 = vst [vmem:[#allocation2 + $0x48] sm:$0xff] %v15789_v8  ;;  %v13242_v7 = vsel %vm4098_vm2, %v4102_v45, %v4104_v25 }
  0x55   :  { %31 = vst [vmem:[#allocation2 + $0x50] sm:$0xff] %v15789_v8  ;;  %32 = vst [vmem:[#allocation2 + $0x58] sm:$0xff] %v15789_v8 }
  0x56   :  { %33 = vst [vmem:[#allocation2 + $0x60] sm:$0xff] %v15789_v8  ;;  %34 = vst [vmem:[#allocation2 + $0x68] sm:$0xff] %v15789_v8  ;;  %10626 = vmatmul.mubr.msk.f32.gmra.mrb[40].mxu0 %vm268_vm1, %v12716_v15  ;;  %10805 = vmatmul.mubr.msk.f32.gmra.mrb[40].mxu1 %vm268_vm1, %v13137_v44 }
  0x57   :  { %35 = vst [vmem:[#allocation2 + $0x70] sm:$0xff] %v15789_v8  ;;  %36 = vst [vmem:[#allocation2 + $0x78] sm:$0xff] %v15789_v8  ;;  %10628 = vmatprep.mubr.msk.f32.mxu0 %vm268_vm1, %v12724_v17  ;;  %11181 = vmatprep.mubr.msk.f32.mxu1 %vm268_vm1, %v4101_v11  ;;  %v13253_v11 = vsel %vm4098_vm2, %v4104_v25, %v4106_v10  ;;  %v4116_v25 = vrot.slane %v12790_v34, 1 }
  0x58   :  { %37 = vst [vmem:[#allocation2 + $0x80] sm:$0xff] %v15789_v8  ;;  %38 = vst [vmem:[#allocation2 + $0x88] sm:$0xff] %v15789_v8 }
  0x59   :  { %39 = vst [vmem:[#allocation2 + $0x90] sm:$0xff] %v15789_v8  ;;  %40 = vst [vmem:[#allocation2 + $0x98] sm:$0xff] %v15789_v8 }
  0x5a   :  { %41 = vst [vmem:[#allocation2 + $0xa0] sm:$0xff] %v15789_v8  ;;  %42 = vst [vmem:[#allocation2 + $0xa8] sm:$0xff] %v15789_v8  ;;  %10629 = vmatmul.mubr.msk.f32.gmra.mrb[42].mxu0 %vm268_vm1, %v12745_v22 }
  0x5b   :  { %43 = vst [vmem:[#allocation2 + $0xb0] sm:$0xff] %v15789_v8  ;;  %44 = vst [vmem:[#allocation2 + $0xb8] sm:$0xff] %v15789_v8  ;;  %10631 = vmatprep.mubr.msk.f32.mxu0 %vm268_vm1, %v12751_v24 }
  0x5c   :  { %45 = vst [vmem:[#allocation2 + $0xc0] sm:$0xff] %v15789_v8  ;;  %46 = vst [vmem:[#allocation2 + $0xc8] sm:$0xff] %v15789_v8 }
  0x5d   :  { %47 = vst [vmem:[#allocation2 + $0xd0] sm:$0xff] %v15789_v8  ;;  %48 = vst [vmem:[#allocation2 + $0xd8] sm:$0xff] %v15789_v8 }
  0x5e   :  { %49 = vst [vmem:[#allocation2 + $0xe0] sm:$0xff] %v15789_v8  ;;  %50 = vst [vmem:[#allocation2 + $0xe8] sm:$0xff] %v15789_v8  ;;  %10632 = vmatmul.mubr.msk.f32.gmra.mrb[44].mxu0 %vm268_vm1, %v12767_v28 }
  0x5f   :  { %51 = vst [vmem:[#allocation2 + $0xf0] sm:$0xff] %v15789_v8  ;;  %52 = vst [vmem:[#allocation2 + $0xf8] sm:$0xff] %v15789_v8  ;;  %10634 = vmatprep.mubr.msk.f32.mxu0 %vm268_vm1, %v12773_v30 }
  0x60   :  { %53 = vst [vmem:[#allocation2 + $0x100] sm:$0xff] %v15789_v8  ;;  %54 = vst [vmem:[#allocation2 + $0x108] sm:$0xff] %v15789_v8 }
  0x61   :  { %55 = vst [vmem:[#allocation2 + $0x110] sm:$0xff] %v15789_v8  ;;  %56 = vst [vmem:[#allocation2 + $0x118] sm:$0xff] %v15789_v8 }
  0x62   :  { %57 = vst [vmem:[#allocation2 + $0x120] sm:$0xff] %v15789_v8  ;;  %58 = vst [vmem:[#allocation2 + $0x128] sm:$0xff] %v15789_v8  ;;  %10635 = vmatmul.mubr.msk.f32.gmra.mrb[46].mxu0 %vm268_vm1, %v12796_v35 }
  0x63   :  { %59 = vst [vmem:[#allocation2 + $0x130] sm:$0xff] %v15789_v8  ;;  %60 = vst [vmem:[#allocation2 + $0x138] sm:$0xff] %v15789_v8  ;;  %10637 = vmatprep.mubr.msk.f32.mxu0 %vm268_vm1, %v12802_v37 }
  0x64   :  { %61 = vst [vmem:[#allocation2 + $0x140] sm:$0xff] %v15789_v8  ;;  %62 = vst [vmem:[#allocation2 + $0x148] sm:$0xff] %v15789_v8 }
  0x65   :  { %63 = vst [vmem:[#allocation2 + $0x150] sm:$0xff] %v15789_v8  ;;  %64 = vst [vmem:[#allocation2 + $0x158] sm:$0xff] %v15789_v8 }
  0x66   :  { %65 = vst [vmem:[#allocation2 + $0x160] sm:$0xff] %v15789_v8  ;;  %66 = vst [vmem:[#allocation2 + $0x168] sm:$0xff] %v15789_v8  ;;  %10638 = vmatmul.mubr.msk.f32.gmra.mrb[48].mxu0 %vm268_vm1, %v12818_v41 }
  0x67   :  { %67 = vst [vmem:[#allocation2 + $0x170] sm:$0xff] %v15789_v8  ;;  %68 = vst [vmem:[#allocation2 + $0x178] sm:$0xff] %v15789_v8  ;;  %10640 = vmatprep.mubr.msk.f32.mxu0 %vm268_vm1, %v12824_v43 }
  0x68   :  { %69 = vst [vmem:[#allocation2 + $0x180] sm:$0xff] %v15789_v8  ;;  %70 = vst [vmem:[#allocation2 + $0x188] sm:$0xff] %v15789_v8 }
  0x69   :  { %71 = vst [vmem:[#allocation2 + $0x190] sm:$0xff] %v15789_v8  ;;  %72 = vst [vmem:[#allocation2 + $0x198] sm:$0xff] %v15789_v8 }
  0x6a   :  { %73 = vst [vmem:[#allocation2 + $0x1a0] sm:$0xff] %v15789_v8  ;;  %74 = vst [vmem:[#allocation2 + $0x1a8] sm:$0xff] %v15789_v8  ;;  %10641 = vmatmul.mubr.msk.f32.gmra.mrb[50].mxu0 %vm268_vm1, %v12840_v47 }
  0x6b   :  { %75 = vst [vmem:[#allocation2 + $0x1b0] sm:$0xff] %v15789_v8  ;;  %76 = vst [vmem:[#allocation2 + $0x1b8] sm:$0xff] %v15789_v8  ;;  %10643 = vmatprep.mubr.msk.f32.mxu0 %vm268_vm1, %v12846_v49 }
  0x6c   :  { %77 = vst [vmem:[#allocation2 + $0x1c0] sm:$0xff] %v15789_v8  ;;  %78 = vst [vmem:[#allocation2 + $0x1c8] sm:$0xff] %v15789_v8 }
  0x6d   :  { %79 = vst [vmem:[#allocation2 + $0x1d0] sm:$0xff] %v15789_v8  ;;  %80 = vst [vmem:[#allocation2 + $0x1d8] sm:$0xff] %v15789_v8 }
  0x6e   :  { %81 = vst [vmem:[#allocation2 + $0x1e0] sm:$0xff] %v15789_v8  ;;  %82 = vst [vmem:[#allocation2 + $0x1e8] sm:$0xff] %v15789_v8  ;;  %10644 = vmatmul.mubr.msk.f32.gmra.mrb[52].mxu0 %vm268_vm1, %v12862_v53 }
  0x6f   :  { %83 = vst [vmem:[#allocation2 + $0x1f0] sm:$0xff] %v15789_v8  ;;  %84 = vst [vmem:[#allocation2 + $0x1f8] sm:$0xff] %v15789_v8  ;;  %10646 = vmatprep.mubr.msk.f32.mxu0 %vm268_vm1, %v12868_v55 }
  0x70   :  { %85 = vst [vmem:[#allocation2 + $0x200] sm:$0xff] %v15789_v8  ;;  %86 = vst [vmem:[#allocation2 + $0x208] sm:$0xff] %v15789_v8 }
  0x71   :  { %87 = vst [vmem:[#allocation2 + $0x210] sm:$0xff] %v15789_v8  ;;  %88 = vst [vmem:[#allocation2 + $0x218] sm:$0xff] %v15789_v8 }
  0x72   :  { %89 = vst [vmem:[#allocation2 + $0x220] sm:$0xff] %v15789_v8  ;;  %90 = vst [vmem:[#allocation2 + $0x228] sm:$0xff] %v15789_v8  ;;  %10647 = vmatmul.mubr.msk.f32.gmra.mrb[54].mxu0 %vm268_vm1, %v12884_v59 }
  0x73   :  { %91 = vst [vmem:[#allocation2 + $0x230] sm:$0xff] %v15789_v8  ;;  %92 = vst [vmem:[#allocation2 + $0x238] sm:$0xff] %v15789_v8  ;;  %10649 = vmatprep.mubr.msk.f32.mxu0 %vm268_vm1, %v12895_v62 }
  0x74   :  { %93 = vst [vmem:[#allocation2 + $0x240] sm:$0xff] %v15789_v8  ;;  %94 = vst [vmem:[#allocation2 + $0x248] sm:$0xff] %v15789_v8 }
  0x75   :  { %95 = vst [vmem:[#allocation2 + $0x250] sm:$0xff] %v15789_v8  ;;  %96 = vst [vmem:[#allocation2 + $0x258] sm:$0xff] %v15789_v8 }
  0x76   :  { %97 = vst [vmem:[#allocation2 + $0x260] sm:$0xff] %v15789_v8  ;;  %98 = vst [vmem:[#allocation2 + $0x268] sm:$0xff] %v15789_v8  ;;  %10650 = vmatmul.mubr.msk.f32.gmra.mrb[56].mxu0 %vm268_vm1, %v12913_v2 }
  0x77   :  { %99 = vst [vmem:[#allocation2 + $0x270] sm:$0xff] %v15789_v8  ;;  %100 = vst [vmem:[#allocation2 + $0x278] sm:$0xff] %v15789_v8  ;;  %10652 = vmatprep.mubr.msk.f32.mxu0 %vm268_vm1, %v12919_v6 }
  0x78   :  { %101 = vst [vmem:[#allocation2 + $0x280] sm:$0xff] %v15789_v8  ;;  %102 = vst [vmem:[#allocation2 + $0x288] sm:$0xff] %v15789_v8  ;;  %v4103_v8 = vsel %vm4098_vm2, %v4100_v0, %v4102_v45  ;;  %v4110_v0 = vrot.slane %v12747_v23, 1  ;;  %v13259_v45 = vsel %vm4098_vm2, %v4106_v10, %v4108_v14  ;;  %v4114_v10 = vrot.slane %v12769_v29, 1 }
  0x79   :  { %16116 = vst [vmem:[#allocation87_spill] sm:$0xff] %v13242_v7  ;;  %11182 = vmatmul.mubr.msk.f32.vlgmr.msra.gmra.mrb[42].mxu1 %vm268_vm1, %v4103_v8  ;;  %16117 = vst [vmem:[#allocation88_spill] sm:$0xff] %v13253_v11 }
  0x7a   :  { %11184 = vmatprep.mubr.msk.f32.mxu1 %vm268_vm1, %v13242_v7  ;;  %11305 = vmatpush3.msk.msra.mxu1 %vm509_vm0, %v12781_v32  ;;  %16118 = vst [vmem:[#allocation89_spill] sm:$0xff] %v13259_v45  ;;  %v13271_v8 = vsel %vm4098_vm2, %v4108_v14, %v4110_v0  ;;  %v13275_v32 = vsel %vm4098_vm2, %v4110_v0, %v4112_v21  ;;  %v4118_v0 = vrot.slane %v12798_v36, 1  ;;  %v16137_v7 = vld [vmem:[#allocation58_spill] sm:$0xff] }
  0x7b   :  { %16119 = vst [vmem:[#allocation90_spill] sm:$0xff] %v13271_v8  ;;  %16120 = vst [vmem:[#allocation91_spill] sm:$0xff] %v13275_v32  ;;  %v13287_v14 = vsel %vm4098_vm2, %v4112_v21, %v4114_v10  ;;  %10653 = vmatmul.mubr.msk.f32.gmra.mrb[58].mxu0 %vm268_vm1, %v12935_v18 }
  0x7c   :  { %16121 = vst [vmem:[#allocation92_spill] sm:$0xff] %v13287_v14  ;;  %v13303_v21 = vsel %vm4098_vm2, %v4116_v25, %v4118_v0  ;;  %10655 = vmatprep.mubr.msk.f32.mxu0 %vm268_vm1, %v12941_v20 }
  0x7d   :  { %11185 = vmatmul.mubr.msk.f32.gmra.mrb[44].mxu1 %vm268_vm1, %v13253_v11  ;;  %v4120_v11 = vrot.slane %v12812_v40, 1  ;;  %16123 = vst [vmem:[#allocation94_spill] sm:$0xff] %v13303_v21 }
  0x7e   :  { %11187 = vmatprep.mubr.msk.f32.mxu1 %vm268_vm1, %v13259_v45  ;;  %v13291_v45 = vsel %vm4098_vm2, %v4114_v10, %v4116_v25  ;;  %v4122_v10 = vrot.slane %v12820_v42, 1 }
  0x7f   :  { %16122 = vst [vmem:[#allocation93_spill] sm:$0xff] %v13291_v45  ;;  %10656 = vmatmul.mubr.msk.f32.gmra.mrb[60].mxu0 %vm268_vm1, %v12957_v33 }
  0x80   :  { %v13319_v25 = vsel %vm4098_vm2, %v4120_v11, %v4122_v10  ;;  %10658 = vmatprep.mubr.msk.f32.mxu0 %vm268_vm1, %v12963_v39 }
  0x81   :  { %11188 = vmatmul.mubr.msk.f32.gmra.mrb[46].mxu1 %vm268_vm1, %v13271_v8  ;;  %v4124_v8 = vrot.slane %v12834_v46, 1  ;;  %16125 = vst [vmem:[#allocation96_spill] sm:$0xff] %v13319_v25 }
  0x82   :  { %11190 = vmatprep.mubr.msk.f32.mxu1 %vm268_vm1, %v13275_v32  ;;  %v13307_v32 = vsel %vm4098_vm2, %v4118_v0, %v4120_v11  ;;  %v4126_v0 = vrot.slane %v12842_v48, 1 }
  0x83   :  { %16124 = vst [vmem:[#allocation95_spill] sm:$0xff] %v13307_v32  ;;  %10659 = vmatmul.mubr.msk.f32.gmra.mrb[62].mxu0 %vm268_vm1, %v16137_v7 }
  0x84   :  { %v13335_v11 = vsel %vm4098_vm2, %v4124_v8, %v4126_v0 }
  0x85   :  { %11191 = vmatmul.mubr.msk.f32.gmra.mrb[48].mxu1 %vm268_vm1, %v13287_v14  ;;  %v4128_v14 = vrot.slane %v12856_v52, 1  ;;  %16127 = vst [vmem:[#allocation98_spill] sm:$0xff] %v13335_v11 }
  0x86   :  { %11193 = vmatprep.mubr.msk.f32.mxu1 %vm268_vm1, %v13291_v45  ;;  %v13323_v45 = vsel %vm4098_vm2, %v4122_v10, %v4124_v8  ;;  %v4130_v10 = vrot.slane %v12864_v54, 1 }
  0x87   :  { %16126 = vst [vmem:[#allocation97_spill] sm:$0xff] %v13323_v45 }
  0x88   :  { %v13351_v8 = vsel %vm4098_vm2, %v4128_v14, %v4130_v10 }
  0x89   :  { %11194 = vmatmul.mubr.msk.f32.gmra.mrb[50].mxu1 %vm268_vm1, %v13303_v21  ;;  %v4132_v21 = vrot.slane %v12878_v58, 1  ;;  %16129 = vst [vmem:[#allocation100_spill] sm:$0xff] %v13351_v8 }
  0x8a   :  { %11196 = vmatprep.mubr.msk.f32.mxu1 %vm268_vm1, %v13307_v32  ;;  %v13339_v32 = vsel %vm4098_vm2, %v4126_v0, %v4128_v14  ;;  %v4134_v0 = vrot.slane %v12886_v60, 1 }
  0x8b   :  { %16128 = vst [vmem:[#allocation99_spill] sm:$0xff] %v13339_v32 }
  0x8c   :  { %v13367_v14 = vsel %vm4098_vm2, %v4132_v21, %v4134_v0 }
  0x8d   :  { %11197 = vmatmul.mubr.msk.f32.gmra.mrb[52].mxu1 %vm268_vm1, %v13319_v25  ;;  %v4136_v25 = vrot.slane %v12907_v1, 1  ;;  %16131 = vst [vmem:[#allocation102_spill] sm:$0xff] %v13367_v14 }
  0x8e   :  { %11199 = vmatprep.mubr.msk.f32.mxu1 %vm268_vm1, %v13323_v45  ;;  %v13355_v45 = vsel %vm4098_vm2, %v4130_v10, %v4132_v21  ;;  %v4138_v10 = vrot.slane %v12915_v4, 1 }
  0x8f   :  { %16130 = vst [vmem:[#allocation101_spill] sm:$0xff] %v13355_v45 }
  0x90   :  { %v13383_v21 = vsel %vm4098_vm2, %v4136_v25, %v4138_v10 }
  0x91   :  { %11200 = vmatmul.mubr.msk.f32.gmra.mrb[54].mxu1 %vm268_vm1, %v13335_v11  ;;  %v4140_v11 = vrot.slane %v12929_v13, 1  ;;  %16133 = vst [vmem:[#allocation104_spill] sm:$0xff] %v13383_v21 }
  0x92   :  { %11202 = vmatprep.mubr.msk.f32.mxu1 %vm268_vm1, %v13339_v32  ;;  %v13371_v32 = vsel %vm4098_vm2, %v4134_v0, %v4136_v25  ;;  %v4142_v0 = vrot.slane %v12937_v19, 1  ;;  %v16143_v19 = vld [vmem:[#allocation62_spill] sm:$0xff] }
  0x93   :  { %16132 = vst [vmem:[#allocation103_spill] sm:$0xff] %v13371_v32 }
  0x94   :  { %v13399_v25 = vsel %vm4098_vm2, %v4140_v11, %v4142_v0 }
  0x95   :  { %11203 = vmatmul.mubr.msk.f32.gmra.mrb[56].mxu1 %vm268_vm1, %v13351_v8  ;;  %v4144_v8 = vrot.slane %v12951_v31, 1  ;;  %16135 = vst [vmem:[#allocation106_spill] sm:$0xff] %v13399_v25 }
  0x96   :  { %11205 = vmatprep.mubr.msk.f32.mxu1 %vm268_vm1, %v13355_v45  ;;  %v13387_v45 = vsel %vm4098_vm2, %v4138_v10, %v4140_v11  ;;  %v4146_v10 = vrot.slane %v12959_v38, 1 }
  0x97   :  { %16134 = vst [vmem:[#allocation105_spill] sm:$0xff] %v13387_v45 }
  0x98   :  { %v13415_v11 = vsel %vm4098_vm2, %v4144_v8, %v4146_v10 }
  0x99   :  { %11206 = vmatmul.mubr.msk.f32.gmra.mrb[58].mxu1 %vm268_vm1, %v13367_v14  ;;  %v4148_v14 = vrot.slane %v12973_v50, 1  ;;  %16139 = vst [vmem:[#allocation108_spill] sm:$0xff] %v13415_v11  ;;  %v16142_v50 = vld [vmem:[#allocation61_spill] sm:$0xff] }
  0x9a   :  { %11208 = vmatprep.mubr.msk.f32.mxu1 %vm268_vm1, %v13371_v32  ;;  %v13403_v32 = vsel %vm4098_vm2, %v4142_v0, %v4144_v8  ;;  %v4152_v31 = vrot.slane %v16142_v50, 1  ;;  %v16148_v50 = vld [vmem:[#allocation65_spill] sm:$0xff] }
  0x9b   :  { %16136 = vst [vmem:[#allocation107_spill] sm:$0xff] %v13403_v32  ;;  %v13419_v38 = vsel %vm4098_vm2, %v4146_v10, %v4148_v14 }
  0x9c   :  { %16141 = vst [vmem:[#allocation109_spill] sm:$0xff] %v13419_v38 }
  0x9d   :  { %11209 = vmatmul.mubr.msk.f32.gmra.mrb[60].mxu1 %vm268_vm1, %v13383_v21  ;;  %v16138_v21 = vld [vmem:[#allocation60_spill] sm:$0xff] }
  0x9e   :  { %11211 = vmatprep.mubr.msk.f32.mxu1 %vm268_vm1, %v13387_v45  ;;  %10661 = vmatprep.mubr.msk.f32.mxu0 %vm268_vm1, %v16138_v21  ;;  %v16140_v45 = vld [vmem:[#allocation59_spill] sm:$0xff]  ;;  %v4156_v21 = vrot.slane %v16148_v50, 1  ;;  %v16154_v50 = vld [vmem:[#allocation69_spill] sm:$0xff] }
  0x9f   :  { %v4150_v0 = vrot.slane %v16140_v45, 1  ;;  %10662 = vmatmul.mubr.msk.f32.gmra.mrb[64].mxu0 %vm268_vm1, %v16143_v19  ;;  %v16149_v19 = vld [vmem:[#allocation66_spill] sm:$0xff] }
  0xa1   :  { %11212 = vmatmul.mubr.msk.f32.gmra.mrb[62].mxu1 %vm268_vm1, %v13399_v25  ;;  %v16144_v25 = vld [vmem:[#allocation64_spill] sm:$0xff]  ;;  %v13431_v8 = vsel %vm4098_vm2, %v4148_v14, %v4150_v0  ;;  %v13435_v45 = vsel %vm4098_vm2, %v4150_v0, %v4152_v31 }
  0xa2   :  { %11214 = vmatprep.mubr.msk.f32.mxu1 %vm268_vm1, %v13403_v32  ;;  %10664 = vmatprep.mubr.msk.f32.mxu0 %vm268_vm1, %v16144_v25  ;;  %16145 = vst [vmem:[#allocation110_spill] sm:$0xff] %v13431_v8  ;;  %v16146_v32 = vld [vmem:[#allocation63_spill] sm:$0xff]  ;;  %16147 = vst [vmem:[#allocation111_spill] sm:$0xff] %v13435_v45  ;;  %v4160_v25 = vrot.slane %v16154_v50, 1  ;;  %v4164_v50 = vrot.slane %v13061_v61, 1  ;;  %v4168_v61 = vrot.slane %v13083_v12, 1 }
  0xa3   :  { %v4154_v10 = vrot.slane %v16146_v32, 1  ;;  %10665 = vmatmul.mubr.msk.f32.gmra.mrb[66].mxu0 %vm268_vm1, %v16149_v19  ;;  %v16155_v19 = vld [vmem:[#allocation70_spill] sm:$0xff]  ;;  %v4172_v12 = vrot.slane %v13102_v57, 1  ;;  %v4176_v57 = vrot.slane %v12692_v9, 1 }
  0xa4   :  { %v13533_v9 = vld [vmem:[%s15738_s2 + $0x1c] sm:$0xf] }
  0xa5   :  { %11215 = vmatmul.mubr.msk.f32.gmra.mrb[64].mxu1 %vm268_vm1, %v13415_v11  ;;  %v16150_v11 = vld [vmem:[#allocation68_spill] sm:$0xff]  ;;  %v13447_v14 = vsel %vm4098_vm2, %v4152_v31, %v4154_v10  ;;  %v13451_v32 = vsel %vm4098_vm2, %v4154_v10, %v4156_v21  ;;  %11426 = vmatprep.subr.msk.mxu1 %vm509_vm0, %v13533_v9 }
  0xa6   :  { %11217 = vmatprep.mubr.msk.f32.mxu1 %vm268_vm1, %v13419_v38  ;;  %10667 = vmatprep.mubr.msk.f32.mxu0 %vm268_vm1, %v16150_v11  ;;  %16151 = vst [vmem:[#allocation112_spill] sm:$0xff] %v13447_v14  ;;  %v16152_v38 = vld [vmem:[#allocation67_spill] sm:$0xff]  ;;  %16153 = vst [vmem:[#allocation113_spill] sm:$0xff] %v13451_v32 }
  0xa7   :  { %v4158_v0 = vrot.slane %v16152_v38, 1  ;;  %10668 = vmatmul.mubr.msk.f32.gmra.mrb[68].mxu0 %vm268_vm1, %v16155_v19  ;;  %v16160_v19 = vld [vmem:[#allocation74_spill] sm:$0xff] }
  0xa9   :  { %11218 = vmatmul.mubr.msk.f32.gmra.mrb[66].mxu1 %vm268_vm1, %v13431_v8  ;;  %v16156_v8 = vld [vmem:[#allocation72_spill] sm:$0xff]  ;;  %v13463_v31 = vsel %vm4098_vm2, %v4156_v21, %v4158_v0  ;;  %v13467_v38 = vsel %vm4098_vm2, %v4158_v0, %v4160_v25 }
  0xaa   :  { %11220 = vmatprep.mubr.msk.f32.mxu1 %vm268_vm1, %v13435_v45  ;;  %10670 = vmatprep.mubr.msk.f32.mxu0 %vm268_vm1, %v16156_v8  ;;  %16157 = vst [vmem:[#allocation114_spill] sm:$0xff] %v13463_v31  ;;  %v16158_v45 = vld [vmem:[#allocation71_spill] sm:$0xff]  ;;  %16159 = vst [vmem:[#allocation115_spill] sm:$0xff] %v13467_v38 }
  0xab   :  { %v4162_v10 = vrot.slane %v16158_v45, 1  ;;  %10671 = vmatmul.mubr.msk.f32.gmra.mrb[70].mxu0 %vm268_vm1, %v16160_v19 }
  0xad   :  { %11221 = vmatmul.mubr.msk.f32.gmra.mrb[68].mxu1 %vm268_vm1, %v13447_v14  ;;  %v16161_v14 = vld [vmem:[#allocation76_spill] sm:$0xff]  ;;  %v13479_v21 = vsel %vm4098_vm2, %v4160_v25, %v4162_v10  ;;  %v13483_v45 = vsel %vm4098_vm2, %v4162_v10, %v4164_v50 }
  0xae   :  { %11223 = vmatprep.mubr.msk.f32.mxu1 %vm268_vm1, %v13451_v32  ;;  %10673 = vmatprep.mubr.msk.f32.mxu0 %vm268_vm1, %v16161_v14  ;;  %16162 = vst [vmem:[#allocation116_spill] sm:$0xff] %v13479_v21  ;;  %v16163_v32 = vld [vmem:[#allocation75_spill] sm:$0xff]  ;;  %16164 = vst [vmem:[#allocation117_spill] sm:$0xff] %v13483_v45 }
  0xaf   :  { %v4166_v0 = vrot.slane %v16163_v32, 1  ;;  %10674 = vmatmul.mubr.msk.f32.gmra.mrb[72].mxu0 %vm268_vm1, %v13089_v26 }
  0xb1   :  { %11224 = vmatmul.mubr.msk.f32.gmra.mrb[70].mxu1 %vm268_vm1, %v13463_v31  ;;  %v16165_v31 = vld [vmem:[#allocation80_spill] sm:$0xff]  ;;  %v13495_v25 = vsel %vm4098_vm2, %v4164_v50, %v4166_v0  ;;  %v13499_v32 = vsel %vm4098_vm2, %v4166_v0, %v4168_v61 }
  0xb2   :  { %11226 = vmatprep.mubr.msk.f32.mxu1 %vm268_vm1, %v13467_v38  ;;  %10676 = vmatprep.mubr.msk.f32.mxu0 %vm268_vm1, %v16165_v31  ;;  %16166 = vst [vmem:[#allocation118_spill] sm:$0xff] %v13495_v25  ;;  %v16167_v38 = vld [vmem:[#allocation79_spill] sm:$0xff]  ;;  %16168 = vst [vmem:[#allocation119_spill] sm:$0xff] %v13499_v32 }
  0xb3   :  { %v4170_v10 = vrot.slane %v16167_v38, 1  ;;  %10677 = vmatmul.mubr.msk.f32.gmra.mrb[74].mxu0 %vm268_vm1, %v13108_v56  ;;  %v16172_v38 = vld [vmem:[#allocation84_spill] sm:$0xff] }
  0xb4   :  { %10679 = vmatprep.mubr.msk.f32.mxu0 %vm268_vm1, %v13112_v51 }
  0xb5   :  { %11227 = vmatmul.mubr.msk.f32.gmra.mrb[72].mxu1 %vm268_vm1, %v13479_v21  ;;  %v13511_v50 = vsel %vm4098_vm2, %v4168_v61, %v4170_v10  ;;  %v13515_v21 = vsel %vm4098_vm2, %v4170_v10, %v4172_v12 }
  0xb6   :  { %11229 = vmatprep.mubr.msk.f32.mxu1 %vm268_vm1, %v13483_v45  ;;  %16169 = vst [vmem:[#allocation120_spill] sm:$0xff] %v13511_v50  ;;  %v16170_v45 = vld [vmem:[#allocation8_spill] sm:$0xff]  ;;  %16171 = vst [vmem:[#allocation121_spill] sm:$0xff] %v13515_v21 }
  0xb7   :  { %v4174_v0 = vrot.slane %v16170_v45, 1  ;;  %10680 = vmatmul.mubr.msk.f32.gmra.mrb[76].mxu0 %vm268_vm1, %v16172_v38 }
  0xb8   :  { %10682 = vmatprep.mubr.msk.f32.mxu0 %vm268_vm1, %v13127_v63 }
  0xb9   :  { %11230 = vmatmul.mubr.msk.f32.gmra.mrb[74].mxu1 %vm268_vm1, %v13495_v25  ;;  %v13527_v61 = vsel %vm4098_vm2, %v4172_v12, %v4174_v0  ;;  %v13536_v45 = vsel %vm4098_vm2, %v4174_v0, %v4176_v57  ;;  %v4182_v0 = vrot.slane %v12724_v17, 1  ;;  %v4188_v17 = vrot.slane %v12767_v28, 1 }
  0xba   :  { %11232 = vmatprep.mubr.msk.f32.mxu1 %vm268_vm1, %v13499_v32  ;;  %16173 = vst [vmem:[#allocation122_spill] sm:$0xff] %v13527_v61  ;;  %v16174_v32 = vld [vmem:[#allocation11_spill] sm:$0xff]  ;;  %16175 = vst [vmem:[#allocation123_spill] sm:$0xff] %v13536_v45 }
  0xbb   :  { %v4178_v10 = vrot.slane %v16174_v32, 1  ;;  %10683 = vmatmul.mubr.msk.f32.gmra.mrb[78].mxu0 %vm268_vm1, %v13137_v44  ;;  %v16178_v32 = vld [vmem:[#allocation43_spill] sm:$0xff] }
  0xbc   :  { %10687 = vmatprep.mubr.msk.f32.mxu0 %vm268_vm1, %v12675_v3 }
  0xbd   :  { %11233 = vmatmul.mubr.msk.f32.gmra.mrb[76].mxu1 %vm268_vm1, %v13511_v50  ;;  %v4180_v50 = vrot.slane %v12716_v15, 1  ;;  %v13550_v12 = vsel %vm4098_vm2, %v4176_v57, %v4178_v10  ;;  %v16179_v57 = vld [vmem:[#allocation10_spill] sm:$0xff] }
  0xbe   :  { %11235 = vmatprep.mubr.msk.f32.mxu1 %vm268_vm1, %v13515_v21  ;;  %16176 = vst [vmem:[#allocation124_spill] sm:$0xff] %v13550_v12  ;;  %v4184_v21 = vrot.slane %v12745_v22, 1  ;;  %v4186_v22 = vrot.slane %v12751_v24, 1  ;;  %v16185_v24 = vld [vmem:[#allocation16_spill] sm:$0xff] }
  0xbf   :  { %v13554_v15 = vsel %vm4098_vm2, %v4178_v10, %v4180_v50  ;;  %10688 = vmatmul.mubr.msk.f32.vlgmr.msra.gmra.mrb[80].mxu0 %vm268_vm1, %v12680_v5  ;;  %v13573_v10 = vsel %vm4098_vm2, %v4180_v50, %v4182_v0 }
  0xc0   :  { %16177 = vst [vmem:[#allocation125_spill] sm:$0xff] %v13554_v15  ;;  %10808 = vmatpush3.msk.msra.mxu0 %vm509_vm0, %v16178_v32  ;;  %10690 = vmatprep.mubr.msk.f32.mxu0 %vm268_vm1, %v16179_v57  ;;  %16180 = vst [vmem:[#allocation43_spill] sm:$0xff] %v13573_v10  ;;  %v16182_v32 = vld [vmem:[#allocation12_spill] sm:$0xff]  ;;  %v13591_v50 = vsel %vm4098_vm2, %v4184_v21, %v4186_v22  ;;  %v13595_v28 = vsel %vm4098_vm2, %v4186_v22, %v4188_v17  ;;  %v4194_v22 = vrot.slane %v12802_v37, 1  ;;  %v16222_v37 = vld [vmem:[#allocation65_spill] sm:$0xff] }
  0xc1   :  { %11236 = vmatmul.mubr.msk.f32.gmra.mrb[78].mxu1 %vm268_vm1, %v13527_v61  ;;  %v13562_v61 = vld [vmem:[%s15738_s2 + $0xc] sm:$0xf]  ;;  %16183 = vst [vmem:[#allocation127_spill] sm:$0xff] %v13591_v50  ;;  %16184 = vst [vmem:[#allocation128_spill] sm:$0xff] %v13595_v28 }
  0xc2   :  { %11238 = vmatprep.mubr.msk.f32.mxu1 %vm268_vm1, %v13536_v45  ;;  %v13577_v45 = vsel %vm4098_vm2, %v4182_v0, %v4184_v21  ;;  %10929 = vmatprep.subr.msk.mxu0 %vm509_vm0, %v13562_v61  ;;  %v4190_v0 = vrot.slane %v12773_v30, 1  ;;  %v16226_v30 = vld [vmem:[#allocation69_spill] sm:$0xff] }
  0xc3   :  { %16181 = vst [vmem:[#allocation126_spill] sm:$0xff] %v13577_v45  ;;  %10691 = vmatmul.mubr.msk.f32.gmra.mrb[82].mxu0 %vm268_vm1, %v16182_v32 }
  0xc4   :  { %10693 = vmatprep.mubr.msk.f32.mxu0 %vm268_vm1, %v12718_v16  ;;  %v13607_v21 = vsel %vm4098_vm2, %v4188_v17, %v4190_v0 }
  0xc5   :  { %11239 = vmatmul.mubr.msk.f32.gmra.mrb[80].mxu1 %vm268_vm1, %v13550_v12  ;;  %16186 = vst [vmem:[#allocation129_spill] sm:$0xff] %v13607_v21  ;;  %v16231_v12 = vld [vmem:[#allocation73_spill] sm:$0xff] }
  0xc6   :  { %11241 = vmatprep.mubr.msk.f32.mxu1 %vm268_vm1, %v13554_v15  ;;  %v4192_v15 = vrot.slane %v12796_v35, 1  ;;  %v4196_v35 = vrot.slane %v12818_v41, 1  ;;  %v4200_v41 = vrot.slane %v12840_v47, 1  ;;  %v4204_v47 = vrot.slane %v12862_v53, 1 }
  0xc7   :  { %10694 = vmatmul.mubr.msk.f32.gmra.mrb[84].mxu0 %vm268_vm1, %v16185_v24  ;;  %v4208_v53 = vrot.slane %v12884_v59, 1  ;;  %v4212_v59 = vrot.slane %v12913_v2, 1  ;;  %v4216_v2 = vrot.slane %v12935_v18, 1  ;;  %v4220_v18 = vrot.slane %v12957_v33, 1 }
  0xc8   :  { %10696 = vmatprep.mubr.msk.f32.mxu0 %vm268_vm1, %v12747_v23  ;;  %v13623_v17 = vsel %vm4098_vm2, %v4192_v15, %v4194_v22  ;;  %v4224_v33 = vrot.slane %v16137_v7, 1  ;;  %v16206_v7 = vld [vmem:[#allocation62_spill] sm:$0xff] }
  0xc9   :  { %11242 = vmatmul.mubr.msk.f32.gmra.mrb[82].mxu1 %vm268_vm1, %v13573_v10  ;;  %16188 = vst [vmem:[#allocation131_spill] sm:$0xff] %v13623_v17 }
  0xca   :  { %11244 = vmatprep.mubr.msk.f32.mxu1 %vm268_vm1, %v13577_v45  ;;  %v13611_v45 = vsel %vm4098_vm2, %v4190_v0, %v4192_v15  ;;  %v4198_v0 = vrot.slane %v12824_v43, 1  ;;  %v16219_v43 = vld [vmem:[#allocation63_spill] sm:$0xff] }
  0xcb   :  { %16187 = vst [vmem:[#allocation130_spill] sm:$0xff] %v13611_v45  ;;  %10697 = vmatmul.mubr.msk.f32.gmra.mrb[86].mxu0 %vm268_vm1, %v12761_v27 }
  0xcc   :  { %10699 = vmatprep.mubr.msk.f32.mxu0 %vm268_vm1, %v12769_v29  ;;  %v13639_v15 = vsel %vm4098_vm2, %v4196_v35, %v4198_v0 }
  0xcd   :  { %11245 = vmatmul.mubr.msk.f32.gmra.mrb[84].mxu1 %vm268_vm1, %v13591_v50  ;;  %16190 = vst [vmem:[#allocation133_spill] sm:$0xff] %v13639_v15 }
  0xce   :  { %11247 = vmatprep.mubr.msk.f32.mxu1 %vm268_vm1, %v13595_v28  ;;  %v13627_v28 = vsel %vm4098_vm2, %v4194_v22, %v4196_v35  ;;  %v4202_v22 = vrot.slane %v12846_v49, 1  ;;  %v16218_v49 = vld [vmem:[#allocation61_spill] sm:$0xff] }
  0xcf   :  { %16189 = vst [vmem:[#allocation132_spill] sm:$0xff] %v13627_v28  ;;  %10700 = vmatmul.mubr.msk.f32.gmra.mrb[88].mxu0 %vm268_vm1, %v12790_v34 }
  0xd0   :  { %10702 = vmatprep.mubr.msk.f32.mxu0 %vm268_vm1, %v12798_v36  ;;  %v13655_v35 = vsel %vm4098_vm2, %v4200_v41, %v4202_v22 }
  0xd1   :  { %11248 = vmatmul.mubr.msk.f32.gmra.mrb[86].mxu1 %vm268_vm1, %v13607_v21  ;;  %16192 = vst [vmem:[#allocation135_spill] sm:$0xff] %v13655_v35 }
  0xd2   :  { %11250 = vmatprep.mubr.msk.f32.mxu1 %vm268_vm1, %v13611_v45  ;;  %v13643_v45 = vsel %vm4098_vm2, %v4198_v0, %v4200_v41  ;;  %v4206_v0 = vrot.slane %v12868_v55, 1 }
  0xd3   :  { %16191 = vst [vmem:[#allocation134_spill] sm:$0xff] %v13643_v45  ;;  %10703 = vmatmul.mubr.msk.f32.gmra.mrb[90].mxu0 %vm268_vm1, %v12812_v40 }
  0xd4   :  { %10705 = vmatprep.mubr.msk.f32.mxu0 %vm268_vm1, %v12820_v42  ;;  %v13671_v41 = vsel %vm4098_vm2, %v4204_v47, %v4206_v0 }
  0xd5   :  { %11251 = vmatmul.mubr.msk.f32.gmra.mrb[88].mxu1 %vm268_vm1, %v13623_v17  ;;  %16194 = vst [vmem:[#allocation137_spill] sm:$0xff] %v13671_v41 }
  0xd6   :  { %11253 = vmatprep.mubr.msk.f32.mxu1 %vm268_vm1, %v13627_v28  ;;  %v13659_v28 = vsel %vm4098_vm2, %v4202_v22, %v4204_v47  ;;  %v4210_v22 = vrot.slane %v12895_v62, 1  ;;  %v16214_v62 = vld [vmem:[#allocation59_spill] sm:$0xff] }
  0xd7   :  { %16193 = vst [vmem:[#allocation136_spill] sm:$0xff] %v13659_v28  ;;  %10706 = vmatmul.mubr.msk.f32.gmra.mrb[92].mxu0 %vm268_vm1, %v12834_v46 }
  0xd8   :  { %10708 = vmatprep.mubr.msk.f32.mxu0 %vm268_vm1, %v12842_v48  ;;  %v13687_v47 = vsel %vm4098_vm2, %v4208_v53, %v4210_v22  ;;  %v13776_v17 = vpop.f32.mrb[0].mxu1 }
  0xd9   :  { %11254 = vmatmul.mubr.msk.f32.gmra.mrb[90].mxu1 %vm268_vm1, %v13639_v15  ;;  %16196 = vst [vmem:[#allocation139_spill] sm:$0xff] %v13687_v47 }
  0xda   :  { %11256 = vmatprep.mubr.msk.f32.mxu1 %vm268_vm1, %v13643_v45  ;;  %v13675_v45 = vsel %vm4098_vm2, %v4206_v0, %v4208_v53  ;;  %v4214_v0 = vrot.slane %v12919_v6, 1 }
  0xdb   :  { %16195 = vst [vmem:[#allocation138_spill] sm:$0xff] %v13675_v45  ;;  %10709 = vmatmul.mubr.msk.f32.gmra.mrb[94].mxu0 %vm268_vm1, %v12856_v52 }
  0xdc   :  { %10711 = vmatprep.mubr.msk.f32.mxu0 %vm268_vm1, %v12864_v54  ;;  %v13703_v53 = vsel %vm4098_vm2, %v4212_v59, %v4214_v0 }
  0xdd   :  { %11257 = vmatmul.mubr.msk.f32.gmra.mrb[92].mxu1 %vm268_vm1, %v13655_v35  ;;  %16198 = vst [vmem:[#allocation141_spill] sm:$0xff] %v13703_v53  ;;  %v16217_v35 = vld [vmem:[#allocation70_spill] sm:$0xff] }
  0xde   :  { %11259 = vmatprep.mubr.msk.f32.mxu1 %vm268_vm1, %v13659_v28  ;;  %v13691_v28 = vsel %vm4098_vm2, %v4210_v22, %v4212_v59  ;;  %v4218_v22 = vrot.slane %v12941_v20, 1  ;;  %v4228_v20 = vrot.slane %v16206_v7, 1  ;;  %v16212_v7 = vld [vmem:[#allocation66_spill] sm:$0xff]  ;;  %v4236_v55 = vrot.slane %v16217_v35, 1 }
  0xdf   :  { %16197 = vst [vmem:[#allocation140_spill] sm:$0xff] %v13691_v28  ;;  %10712 = vmatmul.mubr.msk.f32.gmra.mrb[96].mxu0 %vm268_vm1, %v12878_v58  ;;  %v4232_v6 = vrot.slane %v16212_v7, 1  ;;  %v10567_v7 = vpop.f32.mrb[0].mxu0 }
  0xe0   :  { %10714 = vmatprep.mubr.msk.f32.mxu0 %vm268_vm1, %v12886_v60  ;;  %v13719_v59 = vsel %vm4098_vm2, %v4216_v2, %v4218_v22  ;;  %v579_v15 = vpop.f32.mrb[1].mxu0 }
  0xe1   :  { %11260 = vmatmul.mubr.msk.f32.gmra.mrb[94].mxu1 %vm268_vm1, %v13671_v41  ;;  %16200 = vst [vmem:[#allocation143_spill] sm:$0xff] %v13719_v59  ;;  %v16213_v41 = vld [vmem:[#allocation57_spill] sm:$0xff] }
  0xe2   :  { %11262 = vmatprep.mubr.msk.f32.mxu1 %vm268_vm1, %v13675_v45  ;;  %v13707_v45 = vsel %vm4098_vm2, %v4214_v0, %v4216_v2  ;;  %v4222_v0 = vrot.slane %v12963_v39, 1 }
  0xe3   :  { %16199 = vst [vmem:[#allocation142_spill] sm:$0xff] %v13707_v45  ;;  %10715 = vmatmul.mubr.msk.f32.gmra.mrb[98].mxu0 %vm268_vm1, %v12907_v1 }
  0xe4   :  { %10717 = vmatprep.mubr.msk.f32.mxu0 %vm268_vm1, %v12915_v4  ;;  %v13735_v2 = vsel %vm4098_vm2, %v4220_v18, %v4222_v0  ;;  %v13739_v39 = vsel %vm4098_vm2, %v4222_v0, %v4224_v33 }
  0xe5   :  { %11263 = vmatmul.mubr.msk.f32.gmra.mrb[96].mxu1 %vm268_vm1, %v13687_v47  ;;  %16203 = vst [vmem:[#allocation145_spill] sm:$0xff] %v13735_v2  ;;  %16205 = vst [vmem:[#allocation146_spill] sm:$0xff] %v13739_v39  ;;  %v16207_v47 = vld [vmem:[#allocation53_spill] sm:$0xff] }
  0xe6   :  { %11265 = vmatprep.mubr.msk.f32.mxu1 %vm268_vm1, %v13691_v28  ;;  %v13723_v28 = vsel %vm4098_vm2, %v4218_v22, %v4220_v18 }
  0xe7   :  { %16201 = vst [vmem:[#allocation144_spill] sm:$0xff] %v13723_v28  ;;  %10718 = vmatmul.mubr.msk.f32.gmra.mrb[100].mxu0 %vm268_vm1, %v12929_v13 }
  0xe9   :  { %11266 = vmatmul.mubr.msk.f32.gmra.mrb[98].mxu1 %vm268_vm1, %v13703_v53  ;;  %v16202_v53 = vld [vmem:[#allocation51_spill] sm:$0xff] }
  0xea   :  { %11268 = vmatprep.mubr.msk.f32.mxu1 %vm268_vm1, %v13707_v45  ;;  %10720 = vmatprep.mubr.msk.f32.mxu0 %vm268_vm1, %v16202_v53  ;;  %v16204_v45 = vld [vmem:[#allocation60_spill] sm:$0xff] }
  0xeb   :  { %v4226_v22 = vrot.slane %v16204_v45, 1  ;;  %10721 = vmatmul.mubr.msk.f32.gmra.mrb[102].mxu0 %vm268_vm1, %v16207_v47 }
  0xed   :  { %11269 = vmatmul.mubr.msk.f32.gmra.mrb[100].mxu1 %vm268_vm1, %v13719_v59  ;;  %v16208_v59 = vld [vmem:[#allocation55_spill] sm:$0xff]  ;;  %v13751_v18 = vsel %vm4098_vm2, %v4224_v33, %v4226_v22  ;;  %v13755_v45 = vsel %vm4098_vm2, %v4226_v22, %v4228_v20  ;;  %v4234_v22 = vrot.slane %v16150_v11, 1  ;;  %v13782_v11 = vpop.f32.mrb[1].mxu1 }
  0xee   :  { %11271 = vmatprep.mubr.msk.f32.mxu1 %vm268_vm1, %v13723_v28  ;;  %10723 = vmatprep.mubr.msk.f32.mxu0 %vm268_vm1, %v16208_v59  ;;  %16209 = vst [vmem:[#allocation147_spill] sm:$0xff] %v13751_v18  ;;  %v16210_v28 = vld [vmem:[#allocation64_spill] sm:$0xff]  ;;  %16211 = vst [vmem:[#allocation148_spill] sm:$0xff] %v13755_v45  ;;  %v978_v33 = vld [vmem:[#allocation2 + $0x13] sm:$0xff] }
  0xef   :  { %v4230_v0 = vrot.slane %v16210_v28, 1  ;;  %10724 = vmatmul.mubr.msk.f32.gmra.mrb[104].mxu0 %vm268_vm1, %v16213_v41 }
  0xf0   :  { %10726 = vmatprep.mubr.msk.f32.mxu0 %vm268_vm1, %v16214_v62 }
  0xf1   :  { %11272 = vmatmul.mubr.msk.f32.gmra.mrb[102].mxu1 %vm268_vm1, %v13735_v2  ;;  %v979_v2 = vld [vmem:[#allocation2 + $0x1b] sm:$0xff]  ;;  %v13771_v28 = vsel %vm4098_vm2, %v4230_v0, %v4232_v6 }
  0xf2   :  { %11274 = vmatprep.mubr.msk.f32.mxu1 %vm268_vm1, %v13739_v39  ;;  %v13767_v39 = vsel %vm4098_vm2, %v4228_v20, %v4230_v0  ;;  %16216 = vst [vmem:[#allocation150_spill] sm:$0xff] %v13771_v28  ;;  %v981_v20 = vld [vmem:[#allocation2 + $0x2b] sm:$0xff]  ;;  %v4238_v0 = vrot.slane %v16156_v8, 1  ;;  %v16223_v8 = vld [vmem:[#allocation67_spill] sm:$0xff] }
  0xf3   :  { %16215 = vst [vmem:[#allocation149_spill] sm:$0xff] %v13767_v39  ;;  %10727 = vmatmul.mubr.msk.f32.gmra.mrb[106].mxu0 %vm268_vm1, %v16218_v49 }
  0xf4   :  { %10729 = vmatprep.mubr.msk.f32.mxu0 %vm268_vm1, %v16219_v43 }
  0xf5   :  { %11275 = vmatmul.mubr.msk.f32.gmra.mrb[104].mxu1 %vm268_vm1, %v13751_v18  ;;  %v1059_v18 = vadd.f32 %v10567_v7, %v979_v2  ;;  %v980_v7 = vld [vmem:[#allocation2 + $0x23] sm:$0xff]  ;;  %v13787_v2 = vsel %vm4098_vm2, %v4232_v6, %v4234_v22  ;;  %v983_v6 = vld [vmem:[#allocation2 + $0x3b] sm:$0xff] }
  0xf6   :  { %11277 = vmatprep.mubr.msk.f32.mxu1 %vm268_vm1, %v13755_v45  ;;  %v1058_v45 = vadd.f32 %v978_v33, %v579_v15  ;;  %16220 = vst [vmem:[#allocation151_spill] sm:$0xff] %v13787_v2  ;;  %v10570_v15 = vpop.f32.mrb[2].mxu0  ;;  %v13791_v33 = vsel %vm4098_vm2, %v4234_v22, %v4236_v55  ;;  %v982_v22 = vld [vmem:[#allocation2 + $0x33] sm:$0xff] }
  0xf7   :  { %1139 = vst [vmem:[#allocation2 + $0x1b] sm:$0xff] %v1059_v18  ;;  %16221 = vst [vmem:[#allocation152_spill] sm:$0xff] %v13791_v33  ;;  %v1061_v35 = vadd.f32 %v10570_v15, %v981_v20  ;;  %v589_v21 = vpop.f32.mrb[3].mxu0  ;;  %10730 = vmatmul.mubr.msk.f32.gmra.mrb[108].mxu0 %vm268_vm1, %v16222_v37  ;;  %v13796_v18 = vpop.f32.mrb[2].mxu1  ;;  %v13807_v20 = vsel %vm4098_vm2, %v4236_v55, %v4238_v0  ;;  %v4242_v15 = vrot.slane %v16161_v14, 1  ;;  %v985_v55 = vld [vmem:[#allocation2 + $0x4b] sm:$0xff] }
  0xf8   :  { %1138 = vst [vmem:[#allocation2 + $0x13] sm:$0xff] %v1058_v45  ;;  %10732 = vmatprep.mubr.msk.f32.mxu0 %vm268_vm1, %v16223_v8  ;;  %v13802_v45 = vpop.f32.mrb[3].mxu1  ;;  %16224 = vst [vmem:[#allocation153_spill] sm:$0xff] %v13807_v20  ;;  %v16228_v14 = vld [vmem:[#allocation71_spill] sm:$0xff] }
  0xf9   :  { %11278 = vmatmul.mubr.msk.f32.gmra.mrb[106].mxu1 %vm268_vm1, %v13767_v39  ;;  %v4240_v39 = vrot.slane %v16160_v19, 1  ;;  %1141 = vst [vmem:[#allocation2 + $0x2b] sm:$0xff] %v1061_v35  ;;  %v13816_v35 = vpop.f32.mrb[4].mxu1 }
  0xfa   :  { %11280 = vmatprep.mubr.msk.f32.mxu1 %vm268_vm1, %v13771_v28  ;;  %v1060_v28 = vadd.f32 %v980_v7, %v589_v21  ;;  %v10573_v21 = vpop.f32.mrb[4].mxu0  ;;  %16227 = vst [vmem:[#allocation155_spill] sm:$0xff] %v13816_v35 }
  0xfb   :  { %v13811_v7 = vsel %vm4098_vm2, %v4238_v0, %v4240_v39  ;;  %v1063_v19 = vadd.f32 %v10573_v21, %v983_v6  ;;  %v599_v50 = vpop.f32.mrb[5].mxu0  ;;  %10733 = vmatmul.mubr.msk.f32.gmra.mrb[110].mxu0 %vm268_vm1, %v16226_v30  ;;  %v984_v0 = vld [vmem:[#allocation2 + $0x43] sm:$0xff]  ;;  %v13827_v6 = vsel %vm4098_vm2, %v4240_v39, %v4242_v15  ;;  %v4246_v21 = vrot.slane %v16165_v31, 1  ;;  %v987_v39 = vld [vmem:[#allocation2 + $0x5b] sm:$0xff] }
  0xfc   :  { %1140 = vst [vmem:[#allocation2 + $0x23] sm:$0xff] %v1060_v28  ;;  %16225 = vst [vmem:[#allocation154_spill] sm:$0xff] %v13811_v7  ;;  %10735 = vmatprep.mubr.msk.f32.mxu0 %vm268_vm1, %v16228_v14  ;;  %v13822_v28 = vpop.f32.mrb[5].mxu1  ;;  %v16233_v31 = vld [vmem:[#allocation75_spill] sm:$0xff] }
  0xfd   :  { %11281 = vmatmul.mubr.msk.f32.gmra.mrb[108].mxu1 %vm268_vm1, %v13787_v2  ;;  %v4244_v2 = vrot.slane %v13089_v26, 1  ;;  %1143 = vst [vmem:[#allocation2 + $0x3b] sm:$0xff] %v1063_v19  ;;  %16229 = vst [vmem:[#allocation156_spill] sm:$0xff] %v13827_v6  ;;  %v13836_v19 = vpop.f32.mrb[6].mxu1 }
  0xfe   :  { %11283 = vmatprep.mubr.msk.f32.mxu1 %vm268_vm1, %v13791_v33  ;;  %v1062_v33 = vadd.f32 %v982_v22, %v599_v50  ;;  %v10576_v50 = vpop.f32.mrb[6].mxu0  ;;  %16232 = vst [vmem:[#allocation73_spill] sm:$0xff] %v13836_v19 }
  0xff   :  { %v13831_v22 = vsel %vm4098_vm2, %v4242_v15, %v4244_v2  ;;  %v1065_v26 = vadd.f32 %v10576_v50, %v985_v55  ;;  %v609_v10 = vpop.f32.mrb[7].mxu0  ;;  %10736 = vmatmul.mubr.msk.f32.gmra.mrb[112].mxu0 %vm268_vm1, %v16231_v12  ;;  %v986_v15 = vld [vmem:[#allocation2 + $0x53] sm:$0xff]  ;;  %v13847_v55 = vsel %vm4098_vm2, %v4244_v2, %v4246_v21  ;;  %v4250_v50 = vrot.slane %v13112_v51, 1 }
 0x100   :  { %1142 = vst [vmem:[#allocation2 + $0x33] sm:$0xff] %v1062_v33  ;;  %16230 = vst [vmem:[#allocation157_spill] sm:$0xff] %v13831_v22  ;;  %10738 = vmatprep.mubr.msk.f32.mxu0 %vm268_vm1, %v16233_v31  ;;  %v13842_v33 = vpop.f32.mrb[7].mxu1  ;;  %v4254_v51 = vrot.slane %v13127_v63, 1 }
 0x101   :  { %11284 = vmatmul.mubr.msk.f32.gmra.mrb[110].mxu1 %vm268_vm1, %v13807_v20  ;;  %v4248_v20 = vrot.slane %v13108_v56, 1  ;;  %16234 = vst [vmem:[#allocation75_spill] sm:$0xff] %v13842_v33  ;;  %1145 = vst [vmem:[#allocation2 + $0x4b] sm:$0xff] %v1065_v26  ;;  %v9810_v26 = vld [vmem:[%s15736_s0 + $0x140] sm:$0xff]   ;;  %v13859_v2 = vpop.f32.mrb[8].mxu1 }
 0x102   :  { %11286 = vmatprep.mubr.msk.f32.mxu1 %vm268_vm1, %v13811_v7  ;;  %v1064_v7 = vadd.f32 %v984_v0, %v609_v10  ;;  %16235 = vst [vmem:[#allocation158_spill] sm:$0xff] %v13847_v55  ;;  %v10579_v10 = vpop.f32.mrb[8].mxu0 }
 0x103   :  { %v13851_v0 = vsel %vm4098_vm2, %v4246_v21, %v4248_v20  ;;  %v1067_v56 = vadd.f32 %v10579_v10, %v987_v39  ;;  %v619_v19 = vpop.f32.mrb[9].mxu0  ;;  %v16239_v21 = vld [vmem:[#allocation79_spill] sm:$0xff]  ;;  %v988_v39 = vld [vmem:[#allocation2 + $0x63] sm:$0xff]  ;;  %v13870_v10 = vsel %vm4098_vm2, %v4248_v20, %v4250_v50 }
 0x104   :  { %1144 = vst [vmem:[#allocation2 + $0x43] sm:$0xff] %v1064_v7  ;;  %16236 = vst [vmem:[#allocation159_spill] sm:$0xff] %v13851_v0  ;;  %v1066_v33 = vadd.f32 %v986_v15, %v619_v19  ;;  %v989_v7 = vld [vmem:[#allocation2 + $0x6b] sm:$0xff]  ;;  %v13873_v19 = vunpack.c.l.bf16 %v9810_v26  ;;  %v10582_v15 = vpop.f32.mrb[10].mxu0 }
 0x105   :  { %11287 = vmatmul.mubr.msk.f32.gmra.mrb[112].mxu1 %vm268_vm1, %v13827_v6  ;;  %v4252_v6 = vrot.slane %v16172_v38, 1  ;;  %v13865_v38 = vpop.f32.mrb[9].mxu1  ;;  %1147 = vst [vmem:[#allocation2 + $0x5b] sm:$0xff] %v1067_v56  ;;  %16241 = vst [vmem:[#allocation160_spill] sm:$0xff] %v13870_v10  ;;  %v1069_v56 = vadd.f32 %v10582_v15, %v989_v7  ;;  %v629_v25 = vpop.f32.mrb[11].mxu0 }
 0x106   :  { %11289 = vmatprep.mubr.msk.f32.mxu1 %vm268_vm1, %v13831_v22  ;;  %v16237_v22 = vld [vmem:[#allocation77_spill] sm:$0xff]  ;;  %16240 = vst [vmem:[#allocation79_spill] sm:$0xff] %v13865_v38  ;;  %16242 = vst [vmem:[#allocation161_spill] sm:$0xff] %v13873_v19  ;;  %v13879_v38 = vunpack.c.h.bf16 %v9810_v26  ;;  %v13883_v20 = vpop.f32.mrb[10].mxu1  ;;  %v1068_v35 = vadd.f32 %v988_v39, %v629_v25  ;;  %v990_v26 = vld [vmem:[#allocation2 + $0x73] sm:$0xff]  ;;  %v4258_v15 = vrot.slane %v13873_v19, 1 }
 0x107   :  { %10739 = vmatmul.mubr.msk.f32.gmra.mrb[114].mxu0 %vm268_vm1, %v16237_v22  ;;  %16238 = vst [vmem:[#allocation77_spill] sm:$0xff] %v13859_v2  ;;  %1146 = vst [vmem:[#allocation2 + $0x53] sm:$0xff] %v1066_v33  ;;  %v4256_v2 = vrot.slane %v13137_v44, 1  ;;  %v991_v33 = vld [vmem:[#allocation2 + $0x7b] sm:$0xff]  ;;  %v13894_v7 = vsel %vm4098_vm2, %v4252_v6, %v4254_v51  ;;  %v10585_v25 = vpop.f32.mrb[12].mxu0 }
 0x108   :  { %10741 = vmatprep.mubr.msk.f32.mxu0 %vm268_vm1, %v16239_v21  ;;  %16244 = vst [vmem:[#allocation163_spill] sm:$0xff] %v13879_v38  ;;  %1149 = vst [vmem:[#allocation2 + $0x6b] sm:$0xff] %v1069_v56  ;;  %v639_v44 = vpop.f32.mrb[13].mxu0  ;;  %v995_v19 = vld [vmem:[#allocation2 + $0x9b] sm:$0xff] }
 0x109   :  { %11290 = vmatmul.mubr.msk.f32.gmra.mrb[114].mxu1 %vm268_vm1, %v13847_v55  ;;  %v13876_v55 = vsel %vm4098_vm2, %v4250_v50, %v4252_v6  ;;  %v13889_v50 = vpop.f32.mrb[11].mxu1  ;;  %1148 = vst [vmem:[#allocation2 + $0x63] sm:$0xff] %v1068_v35  ;;  %v13898_v39 = vsel %vm4098_vm2, %v4254_v51, %v4256_v2  ;;  %v993_v35 = vld [vmem:[#allocation2 + $0x8b] sm:$0xff]  ;;  %v992_v6 = vld [vmem:[#allocation2 + $0x83] sm:$0xff] }
 0x10a   :  { %11292 = vmatprep.mubr.msk.f32.mxu1 %vm268_vm1, %v13851_v0  ;;  %16243 = vst [vmem:[#allocation162_spill] sm:$0xff] %v13876_v55  ;;  %v16245_v0 = vld [vmem:[#allocation81_spill] sm:$0xff]  ;;  %v13905_v56 = vpop.f32.mrb[12].mxu1 }
 0x10b   :  { %10742 = vmatmul.mubr.msk.f32.gmra.mrb[116].mxu0 %vm268_vm1, %v16245_v0  ;;  %v13911_v51 = vpop.f32.mrb[13].mxu1 }
 0x10c   :  { %10809 = vmatprep.mubr.msk.f32.mxu0 %vm268_vm1, %v12675_v3  ;;  %v1071_v3 = vadd.f32 %v10585_v25, %v991_v33  ;;  %v13918_v33 = vsel %vm4098_vm2, %v4256_v2, %v4258_v15  ;;  %v994_v2 = vld [vmem:[#allocation2 + $0x93] sm:$0xff] }
 0x10d   :  { %11293 = vmatmul.mubr.msk.f32.gmra.mrb[116].mxu1 %vm268_vm1, %v13870_v10  ;;  %v13901_v10 = vrot.slane %v13879_v38, 1 }
 0x10e   :  { %11295 = vmatprep.mubr.msk.f32.mxu1 %vm268_vm1, %v13876_v55  ;;  %v1070_v55 = vadd.f32 %v990_v26, %v639_v44  ;;  %1151 = vst [vmem:[#allocation2 + $0x7b] sm:$0xff] %v1071_v3  ;;  %v10588_v44 = vpop.f32.mrb[14].mxu0  ;;  %v13926_v3 = vpop.f32.mrb[14].mxu1 }
 0x10f   :  { %16246 = vst [vmem:[#allocation81_spill] sm:$0xff] %v13901_v10  ;;  %10810 = vmatmul.mubr.msk.f32.vlgmr.msra.gmra.mrb[118].mxu0 %vm268_vm1, %v12680_v5  ;;  %v1073_v26 = vadd.f32 %v10588_v44, %v993_v35  ;;  %v649_v25 = vpop.f32.mrb[15].mxu0 }
 0x110   :  { %10930 = vmatpush3.msk.msra.mxu0 %vm509_vm0, %v13562_v61  ;;  %10812 = vmatprep.mubr.msk.f32.mxu0 %vm268_vm1, %v16179_v57  ;;  %1150 = vst [vmem:[#allocation2 + $0x73] sm:$0xff] %v1070_v55  ;;  %v13922_v61 = vsel %vm4098_vm2, %v4258_v15, %v13901_v10  ;;  %v1072_v38 = vadd.f32 %v992_v6, %v649_v25  ;;  %v13932_v55 = vpop.f32.mrb[15].mxu1  ;;  %v10591_v15 = vpop.f32.mrb[16].mxu0 }
 0x111   :  { %11296 = vmatmul.mubr.msk.f32.gmra.mrb[118].mxu1 %vm268_vm1, %v13894_v7  ;;  %16247 = vst [vmem:[#allocation164_spill] sm:$0xff] %v13922_v61  ;;  %1153 = vst [vmem:[#allocation2 + $0x8b] sm:$0xff] %v1073_v26  ;;  %v1075_v35 = vadd.f32 %v10591_v15, %v995_v19  ;;  %v659_v44 = vpop.f32.mrb[17].mxu0  ;;  %v13938_v6 = vpop.f32.mrb[16].mxu1  ;;  %v996_v19 = vld [vmem:[#allocation2 + $0xa3] sm:$0xff] }
 0x112   :  { %11298 = vmatprep.mubr.msk.f32.mxu1 %vm268_vm1, %v13898_v39  ;;  %1152 = vst [vmem:[#allocation2 + $0x83] sm:$0xff] %v1072_v38  ;;  %v1074_v25 = vadd.f32 %v994_v2, %v659_v44  ;;  %v13944_v26 = vpop.f32.mrb[17].mxu1  ;;  %v16248_v38 = vld [vmem:[#allocation87_spill] sm:$0xff]  ;;  %v10594_v15 = vpop.f32.mrb[18].mxu0 }
 0x113   :  { %10813 = vmatmul.mubr.msk.f32.gmra.mrb[120].mxu0 %vm268_vm1, %v16182_v32  ;;  %1155 = vst [vmem:[#allocation2 + $0x9b] sm:$0xff] %v1075_v35  ;;  %v13950_v2 = vpop.f32.mrb[18].mxu1 }
 0x114   :  { %10815 = vmatprep.mubr.msk.f32.mxu0 %vm268_vm1, %v12718_v16  ;;  %v997_v16 = vld [vmem:[#allocation2 + $0xab] sm:$0xff]  ;;  %1154 = vst [vmem:[#allocation2 + $0x93] sm:$0xff] %v1074_v25  ;;  %v13956_v35 = vpop.f32.mrb[19].mxu1 }
 0x115   :  { %11299 = vmatmul.mubr.msk.f32.gmra.mrb[120].mxu1 %vm268_vm1, %v13918_v33  ;;  %v16250_v25 = vld [vmem:[#allocation89_spill] sm:$0xff] }
 0x116   :  { %11301 = vmatprep.mubr.msk.f32.mxu1 %vm268_vm1, %v13922_v61  ;;  %v669_v61 = vpop.f32.mrb[19].mxu0 }
 0x117   :  { %10816 = vmatmul.mubr.msk.f32.gmra.mrb[122].mxu0 %vm268_vm1, %v16185_v24  ;;  %v1077_v24 = vadd.f32 %v10594_v15, %v997_v16  ;;  %v1076_v44 = vadd.f32 %v996_v19, %v669_v61  ;;  %v998_v16 = vld [vmem:[#allocation2 + $0xb3] sm:$0xff] }
 0x118   :  { %10818 = vmatprep.mubr.msk.f32.mxu0 %vm268_vm1, %v12747_v23  ;;  %v999_v23 = vld [vmem:[#allocation2 + $0xbb] sm:$0xff] }
 0x119   :  { %11302 = vmatmul.mubr.msk.f32.gmra.mrb[122].mxu1 %vm268_vm1, %v13901_v10  ;;  %v16249_v10 = vld [vmem:[#allocation88_spill] sm:$0xff]  ;;  %1157 = vst [vmem:[#allocation2 + $0xab] sm:$0xff] %v1077_v24  ;;  %1156 = vst [vmem:[#allocation2 + $0xa3] sm:$0xff] %v1076_v44  ;;  %v1001_v24 = vld [vmem:[#allocation2 + $0xcb] sm:$0xff] }
 0x11a   :  { %11306 = vmatprep.mubr.msk.f32.mxu1 %vm268_vm1, %v16248_v38  ;;  %v10597_v38 = vpop.f32.mrb[20].mxu0 }
 0x11b   :  { %10819 = vmatmul.mubr.msk.f32.gmra.mrb[124].mxu0 %vm268_vm1, %v12761_v27  ;;  %v1079_v61 = vadd.f32 %v10597_v38, %v999_v23  ;;  %v679_v19 = vpop.f32.mrb[21].mxu0  ;;  %v1000_v23 = vld [vmem:[#allocation2 + $0xc3] sm:$0xff] }
 0x11c   :  { %10821 = vmatprep.mubr.msk.f32.mxu0 %vm268_vm1, %v12769_v29  ;;  %v1078_v15 = vadd.f32 %v998_v16, %v679_v19  ;;  %v16251_v29 = vld [vmem:[#allocation90_spill] sm:$0xff]  ;;  %v10600_v44 = vpop.f32.mrb[22].mxu0  ;;  %v16253_v19 = vld [vmem:[#allocation92_spill] sm:$0xff] }
 0x11d   :  { %11307 = vmatmul.mubr.msk.f32.vlgmr.msra.gmra.mrb[42].mxu1 %vm268_vm1, %v16249_v10  ;;  %v13964_v10 = vpop.f32.mrb[20].mxu1  ;;  %1159 = vst [vmem:[#allocation2 + $0xbb] sm:$0xff] %v1079_v61  ;;  %v1081_v38 = vadd.f32 %v10600_v44, %v1001_v24  ;;  %v1002_v24 = vld [vmem:[#allocation2 + $0xd3] sm:$0xff] }
 0x11e   :  { %11309 = vmatprep.mubr.msk.f32.mxu1 %vm268_vm1, %v16250_v25  ;;  %11427 = vmatpush3.msk.msra.mxu1 %vm509_vm0, %v13533_v9  ;;  %v13970_v25 = vpop.f32.mrb[21].mxu1  ;;  %v16252_v9 = vld [vmem:[#allocation91_spill] sm:$0xff]  ;;  %1158 = vst [vmem:[#allocation2 + $0xb3] sm:$0xff] %v1078_v15  ;;  %v16254_v15 = vld [vmem:[#allocation93_spill] sm:$0xff] }
 0x11f   :  { %10822 = vmatmul.mubr.msk.f32.gmra.mrb[126].mxu0 %vm268_vm1, %v12790_v34  ;;  %v689_v34 = vpop.f32.mrb[23].mxu0  ;;  %v13976_v16 = vpop.f32.mrb[22].mxu1  ;;  %1161 = vst [vmem:[#allocation2 + $0xcb] sm:$0xff] %v1081_v38 }
 0x120   :  { %10824 = vmatprep.mubr.msk.f32.mxu0 %vm268_vm1, %v12798_v36  ;;  %v1003_v36 = vld [vmem:[#allocation2 + $0xdb] sm:$0xff]  ;;  %v13982_v61 = vpop.f32.mrb[23].mxu1 }
 0x121   :  { %11310 = vmatmul.mubr.msk.f32.gmra.mrb[44].mxu1 %vm268_vm1, %v16251_v29  ;;  %v1080_v29 = vadd.f32 %v1000_v23, %v689_v34  ;;  %v13988_v34 = vpop.f32.mrb[24].mxu1 }
 0x122   :  { %11312 = vmatprep.mubr.msk.f32.mxu1 %vm268_vm1, %v16252_v9  ;;  %v10603_v9 = vpop.f32.mrb[24].mxu0  ;;  %v13994_v38 = vpop.f32.mrb[25].mxu1 }
 0x123   :  { %10825 = vmatmul.mubr.msk.f32.gmra.mrb[128].mxu0 %vm268_vm1, %v12812_v40  ;;  %1160 = vst [vmem:[#allocation2 + $0xc3] sm:$0xff] %v1080_v29  ;;  %v1083_v44 = vadd.f32 %v10603_v9, %v1003_v36  ;;  %v699_v40 = vpop.f32.mrb[25].mxu0  ;;  %v16256_v29 = vld [vmem:[#allocation95_spill] sm:$0xff]  ;;  %v1004_v36 = vld [vmem:[#allocation2 + $0xe3] sm:$0xff] }
 0x124   :  { %10827 = vmatprep.mubr.msk.f32.mxu0 %vm268_vm1, %v12820_v42  ;;  %v1082_v23 = vadd.f32 %v1002_v24, %v699_v40  ;;  %v1005_v42 = vld [vmem:[#allocation2 + $0xeb] sm:$0xff]  ;;  %v14000_v40 = vpop.f32.mrb[26].mxu1 }
 0x125   :  { %11313 = vmatmul.mubr.msk.f32.gmra.mrb[46].mxu1 %vm268_vm1, %v16253_v19  ;;  %v16255_v19 = vld [vmem:[#allocation94_spill] sm:$0xff]  ;;  %1163 = vst [vmem:[#allocation2 + $0xdb] sm:$0xff] %v1083_v44  ;;  %v14006_v44 = vpop.f32.mrb[27].mxu1 }
 0x126   :  { %11315 = vmatprep.mubr.msk.f32.mxu1 %vm268_vm1, %v16254_v15  ;;  %1162 = vst [vmem:[#allocation2 + $0xd3] sm:$0xff] %v1082_v23  ;;  %v10606_v15 = vpop.f32.mrb[26].mxu0  ;;  %v16258_v23 = vld [vmem:[#allocation97_spill] sm:$0xff] }
 0x127   :  { %10828 = vmatmul.mubr.msk.f32.gmra.mrb[130].mxu0 %vm268_vm1, %v12834_v46  ;;  %v1085_v9 = vadd.f32 %v10606_v15, %v1005_v42  ;;  %v709_v46 = vpop.f32.mrb[27].mxu0  ;;  %v1006_v42 = vld [vmem:[#allocation2 + $0xf3] sm:$0xff] }
 0x128   :  { %10830 = vmatprep.mubr.msk.f32.mxu0 %vm268_vm1, %v12842_v48  ;;  %v1084_v24 = vadd.f32 %v1004_v36, %v709_v46  ;;  %v1007_v48 = vld [vmem:[#allocation2 + $0xfb] sm:$0xff]  ;;  %v14012_v46 = vpop.f32.mrb[28].mxu1 }
 0x129   :  { %11316 = vmatmul.mubr.msk.f32.gmra.mrb[48].mxu1 %vm268_vm1, %v16255_v19  ;;  %v16257_v19 = vld [vmem:[#allocation96_spill] sm:$0xff]  ;;  %1165 = vst [vmem:[#allocation2 + $0xeb] sm:$0xff] %v1085_v9  ;;  %v14018_v9 = vpop.f32.mrb[29].mxu1 }
 0x12a   :  { %11318 = vmatprep.mubr.msk.f32.mxu1 %vm268_vm1, %v16256_v29  ;;  %1164 = vst [vmem:[#allocation2 + $0xe3] sm:$0xff] %v1084_v24  ;;  %v10609_v29 = vpop.f32.mrb[28].mxu0  ;;  %v16260_v24 = vld [vmem:[#allocation99_spill] sm:$0xff] }
 0x12b   :  { %10831 = vmatmul.mubr.msk.f32.gmra.mrb[132].mxu0 %vm268_vm1, %v12856_v52  ;;  %v1087_v15 = vadd.f32 %v10609_v29, %v1007_v48  ;;  %v719_v52 = vpop.f32.mrb[29].mxu0  ;;  %v1008_v48 = vld [vmem:[#allocation2 + $0x103] sm:$0xff] }
 0x12c   :  { %10833 = vmatprep.mubr.msk.f32.mxu0 %vm268_vm1, %v12864_v54  ;;  %v1086_v36 = vadd.f32 %v1006_v42, %v719_v52  ;;  %v1009_v54 = vld [vmem:[#allocation2 + $0x10b] sm:$0xff]  ;;  %v10612_v52 = vpop.f32.mrb[30].mxu0 }
 0x12d   :  { %11319 = vmatmul.mubr.msk.f32.gmra.mrb[50].mxu1 %vm268_vm1, %v16257_v19  ;;  %v16259_v19 = vld [vmem:[#allocation98_spill] sm:$0xff]  ;;  %1167 = vst [vmem:[#allocation2 + $0xfb] sm:$0xff] %v1087_v15  ;;  %v1089_v42 = vadd.f32 %v10612_v52, %v1009_v54  ;;  %v729_v29 = vpop.f32.mrb[31].mxu0 }
 0x12e   :  { %11321 = vmatprep.mubr.msk.f32.mxu1 %vm268_vm1, %v16258_v23  ;;  %v9192_v23 = vld [vmem:[%s15738_s2 + $0x10] sm:$0xf]  ;;  %1166 = vst [vmem:[#allocation2 + $0xf3] sm:$0xff] %v1086_v36  ;;  %v1088_v15 = vadd.f32 %v1008_v48, %v729_v29  ;;  %v1010_v54 = vld [vmem:[#allocation2 + $0x113] sm:$0xff] }
 0x12f   :  { %10834 = vmatmul.mubr.msk.f32.gmra.mrb[134].mxu0 %vm268_vm1, %v12878_v58  ;;  %11054 = vmatprep.subr.msk.mxu0 %vm509_vm0, %v9192_v23  ;;  %1169 = vst [vmem:[#allocation2 + $0x10b] sm:$0xff] %v1089_v42  ;;  %v16262_v36 = vld [vmem:[#allocation101_spill] sm:$0xff]  ;;  %v10615_v23 = vpop.f32.mrb[32].mxu0  ;;  %v16263_v29 = vld [vmem:[#allocation102_spill] sm:$0xff] }
 0x130   :  { %10836 = vmatprep.mubr.msk.f32.mxu0 %vm268_vm1, %v12886_v60  ;;  %v16261_v60 = vld [vmem:[#allocation100_spill] sm:$0xff]  ;;  %1168 = vst [vmem:[#allocation2 + $0x103] sm:$0xff] %v1088_v15  ;;  %v16264_v15 = vld [vmem:[#allocation103_spill] sm:$0xff] }
 0x131   :  { %11322 = vmatmul.mubr.msk.f32.gmra.mrb[52].mxu1 %vm268_vm1, %v16259_v19  ;;  %v14028_v19 = vpop.f32.mrb[30].mxu1 }
 0x132   :  { %11324 = vmatprep.mubr.msk.f32.mxu1 %vm268_vm1, %v16260_v24  ;;  %v1011_v24 = vld [vmem:[#allocation2 + $0x11b] sm:$0xff]  ;;  %v14034_v58 = vpop.f32.mrb[31].mxu1 }
 0x133   :  { %10837 = vmatmul.mubr.msk.f32.gmra.mrb[136].mxu0 %vm268_vm1, %v12907_v1  ;;  %v1091_v52 = vadd.f32 %v10615_v23, %v1011_v24  ;;  %v739_v1 = vpop.f32.mrb[33].mxu0  ;;  %v14040_v48 = vpop.f32.mrb[32].mxu1  ;;  %v1012_v24 = vld [vmem:[#allocation2 + $0x123] sm:$0xff] }
 0x134   :  { %10839 = vmatprep.mubr.msk.f32.mxu0 %vm268_vm1, %v12915_v4  ;;  %v1013_v4 = vld [vmem:[#allocation2 + $0x12b] sm:$0xff]  ;;  %v14046_v42 = vpop.f32.mrb[33].mxu1 }
 0x135   :  { %11325 = vmatmul.mubr.msk.f32.gmra.mrb[54].mxu1 %vm268_vm1, %v16261_v60  ;;  %v1090_v60 = vadd.f32 %v1010_v54, %v739_v1  ;;  %1171 = vst [vmem:[#allocation2 + $0x11b] sm:$0xff] %v1091_v52  ;;  %v14052_v1 = vpop.f32.mrb[34].mxu1 }
 0x136   :  { %11327 = vmatprep.mubr.msk.f32.mxu1 %vm268_vm1, %v16262_v36  ;;  %v10618_v36 = vpop.f32.mrb[34].mxu0  ;;  %v14058_v52 = vpop.f32.mrb[35].mxu1 }
 0x137   :  { %10840 = vmatmul.mubr.msk.f32.gmra.mrb[138].mxu0 %vm268_vm1, %v12929_v13  ;;  %1170 = vst [vmem:[#allocation2 + $0x113] sm:$0xff] %v1090_v60  ;;  %v1093_v23 = vadd.f32 %v10618_v36, %v1013_v4  ;;  %v749_v13 = vpop.f32.mrb[35].mxu0  ;;  %v16266_v60 = vld [vmem:[#allocation105_spill] sm:$0xff]  ;;  %v1014_v4 = vld [vmem:[#allocation2 + $0x133] sm:$0xff] }
 0x138   :  { %10842 = vmatprep.mubr.msk.f32.mxu0 %vm268_vm1, %v16202_v53  ;;  %v1092_v54 = vadd.f32 %v1012_v24, %v749_v13  ;;  %v1015_v53 = vld [vmem:[#allocation2 + $0x13b] sm:$0xff]  ;;  %v14064_v13 = vpop.f32.mrb[36].mxu1 }
 0x139   :  { %11328 = vmatmul.mubr.msk.f32.gmra.mrb[56].mxu1 %vm268_vm1, %v16263_v29  ;;  %v16265_v29 = vld [vmem:[#allocation104_spill] sm:$0xff]  ;;  %1173 = vst [vmem:[#allocation2 + $0x12b] sm:$0xff] %v1093_v23  ;;  %v14070_v23 = vpop.f32.mrb[37].mxu1 }
 0x13a   :  { %11330 = vmatprep.mubr.msk.f32.mxu1 %vm268_vm1, %v16264_v15  ;;  %1172 = vst [vmem:[#allocation2 + $0x123] sm:$0xff] %v1092_v54  ;;  %v10621_v15 = vpop.f32.mrb[36].mxu0  ;;  %v16268_v54 = vld [vmem:[#allocation107_spill] sm:$0xff] }
 0x13b   :  { %10843 = vmatmul.mubr.msk.f32.gmra.mrb[140].mxu0 %vm268_vm1, %v16207_v47  ;;  %v1095_v36 = vadd.f32 %v10621_v15, %v1015_v53  ;;  %v759_v47 = vpop.f32.mrb[37].mxu0  ;;  %v1016_v53 = vld [vmem:[#allocation2 + $0x143] sm:$0xff] }
 0x13c   :  { %10845 = vmatprep.mubr.msk.f32.mxu0 %vm268_vm1, %v16208_v59  ;;  %v1094_v24 = vadd.f32 %v1014_v4, %v759_v47  ;;  %v1017_v59 = vld [vmem:[#allocation2 + $0x14b] sm:$0xff]  ;;  %v14076_v47 = vpop.f32.mrb[38].mxu1 }
 0x13d   :  { %11331 = vmatmul.mubr.msk.f32.gmra.mrb[58].mxu1 %vm268_vm1, %v16265_v29  ;;  %v16267_v29 = vld [vmem:[#allocation106_spill] sm:$0xff]  ;;  %1175 = vst [vmem:[#allocation2 + $0x13b] sm:$0xff] %v1095_v36  ;;  %v14082_v36 = vpop.f32.mrb[39].mxu1 }
 0x13e   :  { %11333 = vmatprep.mubr.msk.f32.mxu1 %vm268_vm1, %v16266_v60  ;;  %1174 = vst [vmem:[#allocation2 + $0x133] sm:$0xff] %v1094_v24  ;;  %v10624_v60 = vpop.f32.mrb[38].mxu0  ;;  %v16270_v24 = vld [vmem:[#allocation109_spill] sm:$0xff] }
 0x13f   :  { %10846 = vmatmul.mubr.msk.f32.gmra.mrb[142].mxu0 %vm268_vm1, %v16213_v41  ;;  %v1097_v15 = vadd.f32 %v10624_v60, %v1017_v59  ;;  %v769_v41 = vpop.f32.mrb[39].mxu0  ;;  %v1018_v59 = vld [vmem:[#allocation2 + $0x153] sm:$0xff] }
 0x140   :  { %10848 = vmatprep.mubr.msk.f32.mxu0 %vm268_vm1, %v16214_v62  ;;  %v1096_v4 = vadd.f32 %v1016_v53, %v769_v41  ;;  %v1019_v62 = vld [vmem:[#allocation2 + $0x15b] sm:$0xff]  ;;  %v14088_v41 = vpop.f32.mrb[40].mxu1 }
 0x141   :  { %11334 = vmatmul.mubr.msk.f32.gmra.mrb[60].mxu1 %vm268_vm1, %v16267_v29  ;;  %v16269_v29 = vld [vmem:[#allocation108_spill] sm:$0xff]  ;;  %1177 = vst [vmem:[#allocation2 + $0x14b] sm:$0xff] %v1097_v15  ;;  %v14094_v15 = vpop.f32.mrb[41].mxu1 }
 0x142   :  { %11336 = vmatprep.mubr.msk.f32.mxu1 %vm268_vm1, %v16268_v54  ;;  %1176 = vst [vmem:[#allocation2 + $0x143] sm:$0xff] %v1096_v4  ;;  %v10627_v54 = vpop.f32.mrb[40].mxu0  ;;  %v16272_v4 = vld [vmem:[#allocation111_spill] sm:$0xff] }
 0x143   :  { %10849 = vmatmul.mubr.msk.f32.gmra.mrb[144].mxu0 %vm268_vm1, %v16218_v49  ;;  %v1099_v60 = vadd.f32 %v10627_v54, %v1019_v62  ;;  %v779_v49 = vpop.f32.mrb[41].mxu0  ;;  %v1020_v62 = vld [vmem:[#allocation2 + $0x163] sm:$0xff] }
 0x144   :  { %10851 = vmatprep.mubr.msk.f32.mxu0 %vm268_vm1, %v16219_v43  ;;  %v1098_v53 = vadd.f32 %v1018_v59, %v779_v49  ;;  %v1021_v43 = vld [vmem:[#allocation2 + $0x16b] sm:$0xff]  ;;  %v16273_v59 = vld [vmem:[#allocation112_spill] sm:$0xff] }
 0x145   :  { %11337 = vmatmul.mubr.msk.f32.gmra.mrb[62].mxu1 %vm268_vm1, %v16269_v29  ;;  %v16271_v29 = vld [vmem:[#allocation110_spill] sm:$0xff]  ;;  %1179 = vst [vmem:[#allocation2 + $0x15b] sm:$0xff] %v1099_v60  ;;  %v16274_v60 = vld [vmem:[#allocation113_spill] sm:$0xff] }
 0x146   :  { %11339 = vmatprep.mubr.msk.f32.mxu1 %vm268_vm1, %v16270_v24  ;;  %1178 = vst [vmem:[#allocation2 + $0x153] sm:$0xff] %v1098_v53  ;;  %v10630_v24 = vpop.f32.mrb[42].mxu0 }
 0x147   :  { %10852 = vmatmul.mubr.msk.f32.gmra.mrb[146].mxu0 %vm268_vm1, %v16222_v37  ;;  %v1101_v54 = vadd.f32 %v10630_v24, %v1021_v43  ;;  %v789_v37 = vpop.f32.mrb[43].mxu0 }
 0x148   :  { %10854 = vmatprep.mubr.msk.f32.mxu0 %vm268_vm1, %v16223_v8  ;;  %v1100_v49 = vadd.f32 %v1020_v62, %v789_v37  ;;  %v10633_v43 = vpop.f32.mrb[44].mxu0 }
 0x149   :  { %11340 = vmatmul.mubr.msk.f32.gmra.mrb[64].mxu1 %vm268_vm1, %v16271_v29  ;;  %v1023_v29 = vld [vmem:[#allocation2 + $0x17b] sm:$0xff]  ;;  %1181 = vst [vmem:[#allocation2 + $0x16b] sm:$0xff] %v1101_v54  ;;  %v1727_v8 = vld [vmem:[#allocation2 + $0x14a] sm:$0xff] }
 0x14a   :  { %11342 = vmatprep.mubr.msk.f32.mxu1 %vm268_vm1, %v16272_v4  ;;  %v1022_v4 = vld [vmem:[#allocation2 + $0x173] sm:$0xff]  ;;  %v1726_v53 = vld [vmem:[#allocation2 + $0x142] sm:$0xff]  ;;  %1180 = vst [vmem:[#allocation2 + $0x163] sm:$0xff] %v1100_v49  ;;  %v1807_v37 = vadd.f32 %v13776_v17, %v1727_v8  ;;  %v1103_v62 = vadd.f32 %v10633_v43, %v1023_v29  ;;  %v1025_v54 = vld [vmem:[#allocation2 + $0x18b] sm:$0xff] }
 0x14b   :  { %10855 = vmatmul.mubr.msk.f32.gmra.mrb[148].mxu0 %vm268_vm1, %v16226_v30  ;;  %v1806_v24 = vadd.f32 %v1726_v53, %v13782_v11  ;;  %v799_v30 = vpop.f32.mrb[45].mxu0  ;;  %v16276_v49 = vld [vmem:[#allocation115_spill] sm:$0xff]  ;;  %v1024_v11 = vld [vmem:[#allocation2 + $0x183] sm:$0xff] }
 0x14c   :  { %10857 = vmatprep.mubr.msk.f32.mxu0 %vm268_vm1, %v16228_v14  ;;  %v16275_v14 = vld [vmem:[#allocation114_spill] sm:$0xff]  ;;  %1887 = vst [vmem:[#allocation2 + $0x14a] sm:$0xff] %v1807_v37  ;;  %1183 = vst [vmem:[#allocation2 + $0x17b] sm:$0xff] %v1103_v62  ;;  %v10636_v29 = vpop.f32.mrb[46].mxu0  ;;  %v16277_v43 = vld [vmem:[#allocation116_spill] sm:$0xff] }
 0x14d   :  { %11343 = vmatmul.mubr.msk.f32.gmra.mrb[66].mxu1 %vm268_vm1, %v16273_v59  ;;  %v1102_v59 = vadd.f32 %v1022_v4, %v799_v30  ;;  %1886 = vst [vmem:[#allocation2 + $0x142] sm:$0xff] %v1806_v24  ;;  %v1728_v8 = vld [vmem:[#allocation2 + $0x152] sm:$0xff]  ;;  %v1729_v17 = vld [vmem:[#allocation2 + $0x15a] sm:$0xff]  ;;  %v809_v4 = vpop.f32.mrb[47].mxu0  ;;  %v16278_v37 = vld [vmem:[#allocation117_spill] sm:$0xff] }
 0x14e   :  { %11345 = vmatprep.mubr.msk.f32.mxu1 %vm268_vm1, %v16274_v60  ;;  %v1808_v30 = vadd.f32 %v1728_v8, %v13802_v45  ;;  %v1809_v60 = vadd.f32 %v13796_v18, %v1729_v17  ;;  %v1104_v53 = vadd.f32 %v1024_v11, %v809_v4  ;;  %v1027_v24 = vld [vmem:[#allocation2 + $0x19b] sm:$0xff]  ;;  %v1026_v18 = vld [vmem:[#allocation2 + $0x193] sm:$0xff] }
 0x14f   :  { %10858 = vmatmul.mubr.msk.f32.gmra.mrb[150].mxu0 %vm268_vm1, %v16231_v12  ;;  %1182 = vst [vmem:[#allocation2 + $0x173] sm:$0xff] %v1102_v59  ;;  %v10639_v59 = vpop.f32.mrb[48].mxu0  ;;  %v16282_v4 = vld [vmem:[#allocation119_spill] sm:$0xff] }
 0x150   :  { %10860 = vmatprep.mubr.msk.f32.mxu0 %vm268_vm1, %v16233_v31  ;;  %1888 = vst [vmem:[#allocation2 + $0x152] sm:$0xff] %v1808_v30  ;;  %1889 = vst [vmem:[#allocation2 + $0x15a] sm:$0xff] %v1809_v60  ;;  %v1107_v8 = vadd.f32 %v10639_v59, %v1027_v24  ;;  %v819_v17 = vpop.f32.mrb[49].mxu0  ;;  %v16280_v30 = vld [vmem:[#allocation118_spill] sm:$0xff] }
 0x151   :  { %11346 = vmatmul.mubr.msk.f32.gmra.mrb[68].mxu1 %vm268_vm1, %v16275_v14  ;;  %v1105_v14 = vadd.f32 %v10636_v29, %v1025_v54  ;;  %v1730_v45 = vld [vmem:[#allocation2 + $0x162] sm:$0xff]  ;;  %v1731_v62 = vld [vmem:[#allocation2 + $0x16a] sm:$0xff]  ;;  %1184 = vst [vmem:[#allocation2 + $0x183] sm:$0xff] %v1104_v53  ;;  %v1106_v29 = vadd.f32 %v1026_v18, %v819_v17  ;;  %v10642_v24 = vpop.f32.mrb[50].mxu0 }
 0x152   :  { %11348 = vmatprep.mubr.msk.f32.mxu1 %vm268_vm1, %v16276_v49  ;;  %v1810_v54 = vadd.f32 %v1730_v45, %v13822_v28  ;;  %v16279_v49 = vld [vmem:[#allocation155_spill] sm:$0xff]  ;;  %v1029_v60 = vld [vmem:[#allocation2 + $0x1ab] sm:$0xff]  ;;  %1187 = vst [vmem:[#allocation2 + $0x19b] sm:$0xff] %v1107_v8  ;;  %v1028_v28 = vld [vmem:[#allocation2 + $0x1a3] sm:$0xff] }
 0x153   :  { %10861 = vmatmul.mubr.msk.f32.gmra.mrb[152].mxu0 %vm268_vm1, %v16237_v22  ;;  %1185 = vst [vmem:[#allocation2 + $0x18b] sm:$0xff] %v1105_v14  ;;  %v1811_v11 = vadd.f32 %v16279_v49, %v1731_v62  ;;  %v16281_v14 = vld [vmem:[#allocation8_spill] sm:$0xff]  ;;  %1186 = vst [vmem:[#allocation2 + $0x193] sm:$0xff] %v1106_v29  ;;  %v16284_v45 = vld [vmem:[#allocation73_spill] sm:$0xff]  ;;  %v1109_v59 = vadd.f32 %v10642_v24, %v1029_v60  ;;  %v829_v49 = vpop.f32.mrb[51].mxu0 }
 0x154   :  { %10863 = vmatprep.mubr.msk.f32.mxu0 %vm268_vm1, %v16239_v21  ;;  %1890 = vst [vmem:[#allocation2 + $0x162] sm:$0xff] %v1810_v54  ;;  %v16285_v17 = vld [vmem:[#allocation9_spill] sm:$0xff]  ;;  %v1108_v54 = vadd.f32 %v1028_v28, %v829_v49  ;;  %v1031_v8 = vld [vmem:[#allocation2 + $0x1bb] sm:$0xff] }
 0x155   :  { %11349 = vmatmul.mubr.msk.f32.gmra.mrb[70].mxu1 %vm268_vm1, %v16277_v43  ;;  %1891 = vst [vmem:[#allocation2 + $0x16a] sm:$0xff] %v1811_v11  ;;  %v16286_v11 = vld [vmem:[#allocation120_spill] sm:$0xff]  ;;  %1189 = vst [vmem:[#allocation2 + $0x1ab] sm:$0xff] %v1109_v59  ;;  %v16288_v29 = vld [vmem:[#allocation121_spill] sm:$0xff] }
 0x156   :  { %11351 = vmatprep.mubr.msk.f32.mxu1 %vm268_vm1, %v16278_v37  ;;  %v1732_v53 = vld [vmem:[#allocation2 + $0x172] sm:$0xff]  ;;  %v1733_v43 = vld [vmem:[#allocation2 + $0x17a] sm:$0xff]  ;;  %1188 = vst [vmem:[#allocation2 + $0x1a3] sm:$0xff] %v1108_v54  ;;  %v16291_v49 = vld [vmem:[#allocation13_spill] sm:$0xff] }
 0x157   :  { %10864 = vmatmul.mubr.msk.f32.gmra.mrb[154].mxu0 %vm268_vm1, %v16245_v0  ;;  %v16283_v37 = vld [vmem:[#allocation75_spill] sm:$0xff]  ;;  %v1813_v62 = vadd.f32 %v16284_v45, %v1733_v43  ;;  %v10645_v43 = vpop.f32.mrb[52].mxu0 }
 0x158   :  { %10866 = vmatprep.mubr.msk.f32.mxu0 %vm268_vm1, %v16281_v14  ;;  %v1812_v18 = vadd.f32 %v1732_v53, %v16283_v37  ;;  %v14149_v60 = vld [vmem:[%s15738_s2 + $0x20] sm:$0xf]  ;;  %v1734_v28 = vld [vmem:[#allocation2 + $0x182] sm:$0xff]  ;;  %v839_v59 = vpop.f32.mrb[53].mxu0 }
 0x159   :  { %11352 = vmatmul.mubr.msk.f32.gmra.mrb[72].mxu1 %vm268_vm1, %v16280_v30  ;;  %v16287_v30 = vld [vmem:[#allocation11_spill] sm:$0xff]  ;;  %1893 = vst [vmem:[#allocation2 + $0x17a] sm:$0xff] %v1813_v62  ;;  %11548 = vmatprep.subr.msk.mxu1 %vm509_vm0, %v14149_v60  ;;  %v1111_v62 = vadd.f32 %v10645_v43, %v1031_v8  ;;  %v10648_v43 = vpop.f32.mrb[54].mxu0 }
 0x15a   :  { %11354 = vmatprep.mubr.msk.f32.mxu1 %vm268_vm1, %v16282_v4  ;;  %v1030_v4 = vld [vmem:[#allocation2 + $0x1b3] sm:$0xff]  ;;  %1892 = vst [vmem:[#allocation2 + $0x172] sm:$0xff] %v1812_v18  ;;  %v1735_v53 = vld [vmem:[#allocation2 + $0x18a] sm:$0xff] }
 0x15b   :  { %10867 = vmatmul.mubr.msk.f32.gmra.mrb[156].mxu0 %vm268_vm1, %v16285_v17  ;;  %v16289_v24 = vld [vmem:[#allocation79_spill] sm:$0xff]  ;;  %v16290_v18 = vld [vmem:[#allocation77_spill] sm:$0xff]  ;;  %1191 = vst [vmem:[#allocation2 + $0x1bb] sm:$0xff] %v1111_v62  ;;  %v1736_v8 = vld [vmem:[#allocation2 + $0x192] sm:$0xff] }
 0x15c   :  { %10869 = vmatprep.mubr.msk.f32.mxu0 %vm268_vm1, %v16287_v30  ;;  %v1814_v37 = vadd.f32 %v1734_v28, %v16289_v24  ;;  %v1815_v45 = vadd.f32 %v16290_v18, %v1735_v53  ;;  %v1033_v30 = vld [vmem:[#allocation2 + $0x1cb] sm:$0xff]  ;;  %v16293_v17 = vld [vmem:[#allocation15_spill] sm:$0xff]  ;;  %v1032_v28 = vld [vmem:[#allocation2 + $0x1c3] sm:$0xff] }
 0x15d   :  { %11355 = vmatmul.mubr.msk.f32.gmra.mrb[74].mxu1 %vm268_vm1, %v16286_v11  ;;  %v1110_v11 = vadd.f32 %v1030_v4, %v839_v59  ;;  %v16294_v54 = vld [vmem:[#allocation123_spill] sm:$0xff]  ;;  %v1816_v4 = vadd.f32 %v1736_v8, %v13889_v50  ;;  %v1113_v18 = vadd.f32 %v10648_v43, %v1033_v30  ;;  %v849_v59 = vpop.f32.mrb[55].mxu0  ;;  %v1738_v50 = vld [vmem:[#allocation2 + $0x1a2] sm:$0xff]  ;;  %v1739_v30 = vld [vmem:[#allocation2 + $0x1aa] sm:$0xff] }
 0x15e   :  { %11357 = vmatprep.mubr.msk.f32.mxu1 %vm268_vm1, %v16288_v29  ;;  %v16292_v29 = vld [vmem:[#allocation122_spill] sm:$0xff]  ;;  %1894 = vst [vmem:[#allocation2 + $0x182] sm:$0xff] %v1814_v37  ;;  %1895 = vst [vmem:[#allocation2 + $0x18a] sm:$0xff] %v1815_v45  ;;  %v1737_v53 = vld [vmem:[#allocation2 + $0x19a] sm:$0xff]  ;;  %v1112_v37 = vadd.f32 %v1032_v28, %v849_v59  ;;  %v10651_v8 = vpop.f32.mrb[56].mxu0  ;;  %v1818_v28 = vadd.f32 %v1738_v50, %v13911_v51 }
 0x15f   :  { %10870 = vmatmul.mubr.msk.f32.gmra.mrb[158].mxu0 %vm268_vm1, %v16291_v49  ;;  %1190 = vst [vmem:[#allocation2 + $0x1b3] sm:$0xff] %v1110_v11  ;;  %v1817_v24 = vadd.f32 %v13883_v20, %v1737_v53  ;;  %v16296_v45 = vld [vmem:[#allocation124_spill] sm:$0xff]  ;;  %1896 = vst [vmem:[#allocation2 + $0x192] sm:$0xff] %v1816_v4  ;;  %v16298_v11 = vld [vmem:[#allocation125_spill] sm:$0xff]  ;;  %v1819_v53 = vadd.f32 %v13905_v56, %v1739_v30  ;;  %v859_v59 = vpop.f32.mrb[57].mxu0 }
 0x160   :  { %10872 = vmatprep.mubr.msk.f32.mxu0 %vm268_vm1, %v16293_v17  ;;  %v1035_v62 = vld [vmem:[#allocation2 + $0x1db] sm:$0xff]  ;;  %1193 = vst [vmem:[#allocation2 + $0x1cb] sm:$0xff] %v1113_v18  ;;  %v1034_v20 = vld [vmem:[#allocation2 + $0x1d3] sm:$0xff]  ;;  %1192 = vst [vmem:[#allocation2 + $0x1c3] sm:$0xff] %v1112_v37  ;;  %v10654_v50 = vpop.f32.mrb[58].mxu0 }
 0x161   :  { %11358 = vmatmul.mubr.msk.f32.gmra.mrb[76].mxu1 %vm268_vm1, %v16292_v29  ;;  %v16295_v29 = vld [vmem:[#allocation17_spill] sm:$0xff]  ;;  %1897 = vst [vmem:[#allocation2 + $0x19a] sm:$0xff] %v1817_v24  ;;  %v1115_v43 = vadd.f32 %v10651_v8, %v1035_v62  ;;  %v1114_v4 = vadd.f32 %v1034_v20, %v859_v59  ;;  %v16300_v24 = vld [vmem:[#allocation43_spill] sm:$0xff]  ;;  %1898 = vst [vmem:[#allocation2 + $0x1a2] sm:$0xff] %v1818_v28  ;;  %v869_v59 = vpop.f32.mrb[59].mxu0 }
 0x162   :  { %11360 = vmatprep.mubr.msk.f32.mxu1 %vm268_vm1, %v16294_v54  ;;  %v16297_v54 = vld [vmem:[#allocation19_spill] sm:$0xff]  ;;  %v1037_v18 = vld [vmem:[#allocation2 + $0x1eb] sm:$0xff]  ;;  %1899 = vst [vmem:[#allocation2 + $0x1aa] sm:$0xff] %v1819_v53  ;;  %v1036_v56 = vld [vmem:[#allocation2 + $0x1e3] sm:$0xff] }
 0x163   :  { %10873 = vmatmul.mubr.msk.f32.gmra.mrb[160].mxu0 %vm268_vm1, %v16295_v29  ;;  %1195 = vst [vmem:[#allocation2 + $0x1db] sm:$0xff] %v1115_v43  ;;  %v16302_v37 = vld [vmem:[#allocation126_spill] sm:$0xff]  ;;  %1194 = vst [vmem:[#allocation2 + $0x1d3] sm:$0xff] %v1114_v4  ;;  %v1117_v8 = vadd.f32 %v10654_v50, %v1037_v18  ;;  %v1116_v28 = vadd.f32 %v1036_v56, %v869_v59  ;;  %v16304_v53 = vld [vmem:[#allocation127_spill] sm:$0xff] }
 0x164   :  { %10875 = vmatprep.mubr.msk.f32.mxu0 %vm268_vm1, %v16297_v54  ;;  %v1039_v43 = vld [vmem:[#allocation2 + $0x1fb] sm:$0xff] }
 0x165   :  { %11361 = vmatmul.mubr.msk.f32.gmra.mrb[78].mxu1 %vm268_vm1, %v16296_v45  ;;  %v16299_v45 = vld [vmem:[#allocation21_spill] sm:$0xff]  ;;  %1197 = vst [vmem:[#allocation2 + $0x1eb] sm:$0xff] %v1117_v8  ;;  %v16306_v4 = vld [vmem:[#allocation128_spill] sm:$0xff]  ;;  %1196 = vst [vmem:[#allocation2 + $0x1e3] sm:$0xff] %v1116_v28 }
 0x166   :  { %11363 = vmatprep.mubr.msk.f32.mxu1 %vm268_vm1, %v16298_v11  ;;  %v16301_v11 = vld [vmem:[#allocation23_spill] sm:$0xff]  ;;  %v1740_v51 = vld [vmem:[#allocation2 + $0x1b2] sm:$0xff] }
 0x167   :  { %10876 = vmatmul.mubr.msk.f32.gmra.mrb[162].mxu0 %vm268_vm1, %v16299_v45  ;;  %v1741_v62 = vld [vmem:[#allocation2 + $0x1ba] sm:$0xff]  ;;  %v1820_v20 = vadd.f32 %v1740_v51, %v13932_v55  ;;  %v1742_v55 = vld [vmem:[#allocation2 + $0x1c2] sm:$0xff]  ;;  %v1743_v18 = vld [vmem:[#allocation2 + $0x1ca] sm:$0xff]  ;;  %v10657_v51 = vpop.f32.mrb[60].mxu0 }
 0x168   :  { %10878 = vmatprep.mubr.msk.f32.mxu0 %vm268_vm1, %v16301_v11  ;;  %v1821_v30 = vadd.f32 %v13926_v3, %v1741_v62  ;;  %v1038_v3 = vld [vmem:[#allocation2 + $0x1f3] sm:$0xff]  ;;  %v1822_v56 = vadd.f32 %v1742_v55, %v13944_v26  ;;  %v1823_v62 = vadd.f32 %v13938_v6, %v1743_v18  ;;  %v1119_v50 = vadd.f32 %v10657_v51, %v1039_v43  ;;  %v879_v59 = vpop.f32.mrb[61].mxu0  ;;  %v1041_v8 = vld [vmem:[#allocation2 + $0x20b] sm:$0xff]  ;;  %v1040_v6 = vld [vmem:[#allocation2 + $0x203] sm:$0xff] }
 0x169   :  { %11364 = vmatmul.mubr.msk.f32.gmra.mrb[80].mxu1 %vm268_vm1, %v16300_v24  ;;  %v16303_v24 = vld [vmem:[#allocation25_spill] sm:$0xff]  ;;  %1900 = vst [vmem:[#allocation2 + $0x1b2] sm:$0xff] %v1820_v20  ;;  %v1118_v20 = vadd.f32 %v1038_v3, %v879_v59  ;;  %v16310_v28 = vld [vmem:[#allocation130_spill] sm:$0xff]  ;;  %v10660_v55 = vpop.f32.mrb[62].mxu0 }
 0x16a   :  { %11366 = vmatprep.mubr.msk.f32.mxu1 %vm268_vm1, %v16302_v37  ;;  %v16305_v37 = vld [vmem:[#allocation27_spill] sm:$0xff]  ;;  %1901 = vst [vmem:[#allocation2 + $0x1ba] sm:$0xff] %v1821_v30  ;;  %v16308_v30 = vld [vmem:[#allocation129_spill] sm:$0xff]  ;;  %1902 = vst [vmem:[#allocation2 + $0x1c2] sm:$0xff] %v1822_v56  ;;  %v1121_v51 = vadd.f32 %v10660_v55, %v1041_v8  ;;  %v889_v59 = vpop.f32.mrb[63].mxu0 }
 0x16b   :  { %10879 = vmatmul.mubr.msk.f32.gmra.mrb[164].mxu0 %vm268_vm1, %v16303_v24  ;;  %1903 = vst [vmem:[#allocation2 + $0x1ca] sm:$0xff] %v1823_v62  ;;  %1199 = vst [vmem:[#allocation2 + $0x1fb] sm:$0xff] %v1119_v50  ;;  %v1744_v26 = vld [vmem:[#allocation2 + $0x1d2] sm:$0xff]  ;;  %v1745_v43 = vld [vmem:[#allocation2 + $0x1da] sm:$0xff]  ;;  %v1120_v56 = vadd.f32 %v1040_v6, %v889_v59 }
 0x16c   :  { %10881 = vmatprep.mubr.msk.f32.mxu0 %vm268_vm1, %v16305_v37  ;;  %1198 = vst [vmem:[#allocation2 + $0x1f3] sm:$0xff] %v1118_v20  ;;  %v1824_v3 = vadd.f32 %v1744_v26, %v13956_v35  ;;  %v1825_v18 = vadd.f32 %v13950_v2, %v1745_v43  ;;  %v16312_v62 = vld [vmem:[#allocation131_spill] sm:$0xff]  ;;  %1201 = vst [vmem:[#allocation2 + $0x20b] sm:$0xff] %v1121_v51  ;;  %v16314_v20 = vld [vmem:[#allocation132_spill] sm:$0xff] }
 0x16d   :  { %11367 = vmatmul.mubr.msk.f32.gmra.mrb[82].mxu1 %vm268_vm1, %v16304_v53  ;;  %v16307_v53 = vld [vmem:[#allocation29_spill] sm:$0xff]  ;;  %v1043_v50 = vld [vmem:[#allocation2 + $0x21b] sm:$0xff]  ;;  %v1042_v2 = vld [vmem:[#allocation2 + $0x213] sm:$0xff]  ;;  %1200 = vst [vmem:[#allocation2 + $0x203] sm:$0xff] %v1120_v56 }
 0x16e   :  { %11369 = vmatprep.mubr.msk.f32.mxu1 %vm268_vm1, %v16306_v4  ;;  %v16309_v4 = vld [vmem:[#allocation31_spill] sm:$0xff]  ;;  %1904 = vst [vmem:[#allocation2 + $0x1d2] sm:$0xff] %v1824_v3  ;;  %1905 = vst [vmem:[#allocation2 + $0x1da] sm:$0xff] %v1825_v18  ;;  %v1746_v35 = vld [vmem:[#allocation2 + $0x1e2] sm:$0xff] }
 0x16f   :  { %10882 = vmatmul.mubr.msk.f32.gmra.mrb[166].mxu0 %vm268_vm1, %v16307_v53  ;;  %v1747_v8 = vld [vmem:[#allocation2 + $0x1ea] sm:$0xff]  ;;  %v1826_v6 = vadd.f32 %v1746_v35, %v13970_v25  ;;  %v16318_v56 = vld [vmem:[#allocation134_spill] sm:$0xff] }
 0x170   :  { %10884 = vmatprep.mubr.msk.f32.mxu0 %vm268_vm1, %v16309_v4  ;;  %v1827_v43 = vadd.f32 %v13964_v10, %v1747_v8  ;;  %v16316_v18 = vld [vmem:[#allocation133_spill] sm:$0xff] }
 0x171   :  { %11370 = vmatmul.mubr.msk.f32.gmra.mrb[84].mxu1 %vm268_vm1, %v16308_v30  ;;  %v16311_v30 = vld [vmem:[#allocation33_spill] sm:$0xff]  ;;  %1906 = vst [vmem:[#allocation2 + $0x1e2] sm:$0xff] %v1826_v6 }
 0x172   :  { %11372 = vmatprep.mubr.msk.f32.mxu1 %vm268_vm1, %v16310_v28  ;;  %v16313_v28 = vld [vmem:[#allocation35_spill] sm:$0xff]  ;;  %v10663_v26 = vpop.f32.mrb[64].mxu0  ;;  %v1045_v51 = vld [vmem:[#allocation2 + $0x22b] sm:$0xff]  ;;  %1907 = vst [vmem:[#allocation2 + $0x1ea] sm:$0xff] %v1827_v43  ;;  %v1044_v10 = vld [vmem:[#allocation2 + $0x223] sm:$0xff] }
 0x173   :  { %10885 = vmatmul.mubr.msk.f32.gmra.mrb[168].mxu0 %vm268_vm1, %v16311_v30  ;;  %v1123_v55 = vadd.f32 %v10663_v26, %v1043_v50  ;;  %v899_v59 = vpop.f32.mrb[65].mxu0  ;;  %v1748_v25 = vld [vmem:[#allocation2 + $0x1f2] sm:$0xff]  ;;  %v1749_v50 = vld [vmem:[#allocation2 + $0x1fa] sm:$0xff] }
 0x174   :  { %10887 = vmatprep.mubr.msk.f32.mxu0 %vm268_vm1, %v16313_v28  ;;  %v1122_v3 = vadd.f32 %v1042_v2, %v899_v59  ;;  %v1828_v2 = vadd.f32 %v1748_v25, %v13982_v61  ;;  %v1829_v8 = vadd.f32 %v13976_v16, %v1749_v50  ;;  %v16320_v43 = vld [vmem:[#allocation135_spill] sm:$0xff]  ;;  %v1750_v61 = vld [vmem:[#allocation2 + $0x202] sm:$0xff] }
 0x175   :  { %11373 = vmatmul.mubr.msk.f32.gmra.mrb[86].mxu1 %vm268_vm1, %v16312_v62  ;;  %v16315_v62 = vld [vmem:[#allocation37_spill] sm:$0xff]  ;;  %1203 = vst [vmem:[#allocation2 + $0x21b] sm:$0xff] %v1123_v55  ;;  %v1047_v55 = vld [vmem:[#allocation2 + $0x23b] sm:$0xff]  ;;  %v1046_v16 = vld [vmem:[#allocation2 + $0x233] sm:$0xff] }
 0x176   :  { %11375 = vmatprep.mubr.msk.f32.mxu1 %vm268_vm1, %v16314_v20  ;;  %v16317_v20 = vld [vmem:[#allocation39_spill] sm:$0xff]  ;;  %1202 = vst [vmem:[#allocation2 + $0x213] sm:$0xff] %v1122_v3  ;;  %v10666_v35 = vpop.f32.mrb[66].mxu0  ;;  %1908 = vst [vmem:[#allocation2 + $0x1f2] sm:$0xff] %v1828_v2  ;;  %v16322_v3 = vld [vmem:[#allocation136_spill] sm:$0xff] }
 0x177   :  { %10888 = vmatmul.mubr.msk.f32.gmra.mrb[170].mxu0 %vm268_vm1, %v16315_v62  ;;  %v1125_v26 = vadd.f32 %v10666_v35, %v1045_v51  ;;  %v909_v59 = vpop.f32.mrb[67].mxu0  ;;  %1909 = vst [vmem:[#allocation2 + $0x1fa] sm:$0xff] %v1829_v8  ;;  %v1751_v51 = vld [vmem:[#allocation2 + $0x20a] sm:$0xff] }
 0x178   :  { %10890 = vmatprep.mubr.msk.f32.mxu0 %vm268_vm1, %v16317_v20  ;;  %v1124_v6 = vadd.f32 %v1044_v10, %v909_v59  ;;  %v1830_v10 = vadd.f32 %v1750_v61, %v13994_v38  ;;  %v1831_v50 = vadd.f32 %v13988_v34, %v1751_v51  ;;  %v16324_v8 = vld [vmem:[#allocation137_spill] sm:$0xff] }
 0x179   :  { %11376 = vmatmul.mubr.msk.f32.gmra.mrb[88].mxu1 %vm268_vm1, %v16316_v18  ;;  %v16319_v18 = vld [vmem:[#allocation41_spill] sm:$0xff]  ;;  %1205 = vst [vmem:[#allocation2 + $0x22b] sm:$0xff] %v1125_v26 }
 0x17a   :  { %11378 = vmatprep.mubr.msk.f32.mxu1 %vm268_vm1, %v16318_v56  ;;  %v16321_v56 = vld [vmem:[#allocation44_spill] sm:$0xff]  ;;  %1204 = vst [vmem:[#allocation2 + $0x223] sm:$0xff] %v1124_v6  ;;  %v10669_v25 = vpop.f32.mrb[68].mxu0  ;;  %v1049_v26 = vld [vmem:[#allocation2 + $0x24b] sm:$0xff]  ;;  %1910 = vst [vmem:[#allocation2 + $0x202] sm:$0xff] %v1830_v10 }
 0x17b   :  { %10891 = vmatmul.mubr.msk.f32.gmra.mrb[172].mxu0 %vm268_vm1, %v16319_v18  ;;  %v1127_v35 = vadd.f32 %v10669_v25, %v1047_v55  ;;  %v919_v59 = vpop.f32.mrb[69].mxu0  ;;  %1911 = vst [vmem:[#allocation2 + $0x20a] sm:$0xff] %v1831_v50  ;;  %v16326_v6 = vld [vmem:[#allocation138_spill] sm:$0xff]  ;;  %v1048_v34 = vld [vmem:[#allocation2 + $0x243] sm:$0xff]  ;;  %v16328_v50 = vld [vmem:[#allocation139_spill] sm:$0xff] }
 0x17c   :  { %10893 = vmatprep.mubr.msk.f32.mxu0 %vm268_vm1, %v16321_v56  ;;  %v1126_v2 = vadd.f32 %v1046_v16, %v919_v59 }
 0x17d   :  { %11379 = vmatmul.mubr.msk.f32.gmra.mrb[90].mxu1 %vm268_vm1, %v16320_v43  ;;  %v16323_v43 = vld [vmem:[#allocation46_spill] sm:$0xff]  ;;  %1207 = vst [vmem:[#allocation2 + $0x23b] sm:$0xff] %v1127_v35  ;;  %v1753_v55 = vld [vmem:[#allocation2 + $0x21a] sm:$0xff] }
 0x17e   :  { %11381 = vmatprep.mubr.msk.f32.mxu1 %vm268_vm1, %v16322_v3  ;;  %v16325_v3 = vld [vmem:[#allocation48_spill] sm:$0xff]  ;;  %v1752_v38 = vld [vmem:[#allocation2 + $0x212] sm:$0xff]  ;;  %1206 = vst [vmem:[#allocation2 + $0x233] sm:$0xff] %v1126_v2  ;;  %v10672_v61 = vpop.f32.mrb[70].mxu0  ;;  %v1833_v51 = vadd.f32 %v14000_v40, %v1753_v55 }
 0x17f   :  { %10894 = vmatmul.mubr.msk.f32.gmra.mrb[174].mxu0 %vm268_vm1, %v16323_v43  ;;  %v1832_v16 = vadd.f32 %v1752_v38, %v14006_v44  ;;  %v1129_v25 = vadd.f32 %v10672_v61, %v1049_v26  ;;  %v929_v59 = vpop.f32.mrb[71].mxu0  ;;  %v1051_v35 = vld [vmem:[#allocation2 + $0x25b] sm:$0xff]  ;;  %v1050_v40 = vld [vmem:[#allocation2 + $0x253] sm:$0xff] }
 0x180   :  { %10896 = vmatprep.mubr.msk.f32.mxu0 %vm268_vm1, %v16325_v3  ;;  %v1128_v10 = vadd.f32 %v1048_v34, %v929_v59  ;;  %1913 = vst [vmem:[#allocation2 + $0x21a] sm:$0xff] %v1833_v51  ;;  %v16330_v2 = vld [vmem:[#allocation140_spill] sm:$0xff]  ;;  %v16332_v51 = vld [vmem:[#allocation141_spill] sm:$0xff] }
 0x181   :  { %11382 = vmatmul.mubr.msk.f32.gmra.mrb[92].mxu1 %vm268_vm1, %v16324_v8  ;;  %v16327_v8 = vld [vmem:[#allocation50_spill] sm:$0xff]  ;;  %1912 = vst [vmem:[#allocation2 + $0x212] sm:$0xff] %v1832_v16  ;;  %1209 = vst [vmem:[#allocation2 + $0x24b] sm:$0xff] %v1129_v25  ;;  %v1754_v44 = vld [vmem:[#allocation2 + $0x222] sm:$0xff] }
 0x182   :  { %11384 = vmatprep.mubr.msk.f32.mxu1 %vm268_vm1, %v16326_v6  ;;  %v16329_v6 = vld [vmem:[#allocation52_spill] sm:$0xff]  ;;  %v1755_v26 = vld [vmem:[#allocation2 + $0x22a] sm:$0xff]  ;;  %1208 = vst [vmem:[#allocation2 + $0x243] sm:$0xff] %v1128_v10  ;;  %v10675_v38 = vpop.f32.mrb[72].mxu0  ;;  %v1834_v34 = vadd.f32 %v1754_v44, %v14018_v9  ;;  %v16334_v10 = vld [vmem:[#allocation142_spill] sm:$0xff] }
 0x183   :  { %10897 = vmatmul.mubr.msk.f32.gmra.mrb[176].mxu0 %vm268_vm1, %v16327_v8  ;;  %v1835_v55 = vadd.f32 %v14012_v46, %v1755_v26  ;;  %v1131_v61 = vadd.f32 %v10675_v38, %v1051_v35  ;;  %v939_v59 = vpop.f32.mrb[73].mxu0  ;;  %v1053_v25 = vld [vmem:[#allocation2 + $0x26b] sm:$0xff]  ;;  %v1052_v46 = vld [vmem:[#allocation2 + $0x263] sm:$0xff] }
 0x184   :  { %10899 = vmatprep.mubr.msk.f32.mxu0 %vm268_vm1, %v16329_v6  ;;  %v1130_v16 = vadd.f32 %v1050_v40, %v939_v59  ;;  %1914 = vst [vmem:[#allocation2 + $0x222] sm:$0xff] %v1834_v34 }
 0x185   :  { %11385 = vmatmul.mubr.msk.f32.gmra.mrb[94].mxu1 %vm268_vm1, %v16328_v50  ;;  %v16331_v50 = vld [vmem:[#allocation54_spill] sm:$0xff]  ;;  %1915 = vst [vmem:[#allocation2 + $0x22a] sm:$0xff] %v1835_v55  ;;  %1211 = vst [vmem:[#allocation2 + $0x25b] sm:$0xff] %v1131_v61  ;;  %v1757_v35 = vld [vmem:[#allocation2 + $0x23a] sm:$0xff] }
 0x186   :  { %11387 = vmatprep.mubr.msk.f32.mxu1 %vm268_vm1, %v16330_v2  ;;  %v16333_v2 = vld [vmem:[#allocation56_spill] sm:$0xff]  ;;  %v1756_v9 = vld [vmem:[#allocation2 + $0x232] sm:$0xff]  ;;  %1210 = vst [vmem:[#allocation2 + $0x253] sm:$0xff] %v1130_v16  ;;  %v10678_v44 = vpop.f32.mrb[74].mxu0  ;;  %v1837_v26 = vadd.f32 %v14028_v19, %v1757_v35  ;;  %v16336_v55 = vld [vmem:[#allocation143_spill] sm:$0xff] }
 0x187   :  { %10900 = vmatmul.mubr.msk.f32.gmra.mrb[178].mxu0 %vm268_vm1, %v16331_v50  ;;  %v1836_v40 = vadd.f32 %v1756_v9, %v14034_v58  ;;  %v1133_v38 = vadd.f32 %v10678_v44, %v1053_v25  ;;  %v949_v59 = vpop.f32.mrb[75].mxu0  ;;  %v1055_v61 = vld [vmem:[#allocation2 + $0x27b] sm:$0xff]  ;;  %v1054_v58 = vld [vmem:[#allocation2 + $0x273] sm:$0xff] }
 0x188   :  { %10902 = vmatprep.mubr.msk.f32.mxu0 %vm268_vm1, %v16333_v2  ;;  %v1132_v34 = vadd.f32 %v1052_v46, %v949_v59  ;;  %1917 = vst [vmem:[#allocation2 + $0x23a] sm:$0xff] %v1837_v26  ;;  %v16338_v16 = vld [vmem:[#allocation144_spill] sm:$0xff]  ;;  %v16340_v26 = vld [vmem:[#allocation145_spill] sm:$0xff] }
 0x189   :  { %11388 = vmatmul.mubr.msk.f32.gmra.mrb[96].mxu1 %vm268_vm1, %v16332_v51  ;;  %v16335_v51 = vld [vmem:[#allocation58_spill] sm:$0xff]  ;;  %1916 = vst [vmem:[#allocation2 + $0x232] sm:$0xff] %v1836_v40  ;;  %1213 = vst [vmem:[#allocation2 + $0x26b] sm:$0xff] %v1133_v38  ;;  %v1758_v19 = vld [vmem:[#allocation2 + $0x242] sm:$0xff] }
 0x18a   :  { %11390 = vmatprep.mubr.msk.f32.mxu1 %vm268_vm1, %v16334_v10  ;;  %v16337_v10 = vld [vmem:[#allocation60_spill] sm:$0xff]  ;;  %v1759_v25 = vld [vmem:[#allocation2 + $0x24a] sm:$0xff]  ;;  %1212 = vst [vmem:[#allocation2 + $0x263] sm:$0xff] %v1132_v34  ;;  %v10681_v9 = vpop.f32.mrb[76].mxu0  ;;  %v1838_v46 = vadd.f32 %v1758_v19, %v14046_v42  ;;  %v16342_v34 = vld [vmem:[#allocation146_spill] sm:$0xff] }
 0x18b   :  { %10903 = vmatmul.mubr.msk.f32.gmra.mrb[180].mxu0 %vm268_vm1, %v16335_v51  ;;  %v1839_v35 = vadd.f32 %v14040_v48, %v1759_v25  ;;  %v1135_v44 = vadd.f32 %v10681_v9, %v1055_v61  ;;  %v959_v59 = vpop.f32.mrb[77].mxu0  ;;  %v1057_v38 = vld [vmem:[#allocation2 + $0x28b] sm:$0x1f]  ;;  %v1056_v48 = vld [vmem:[#allocation2 + $0x283] sm:$0xff] }
 0x18c   :  { %10905 = vmatprep.mubr.msk.f32.mxu0 %vm268_vm1, %v16337_v10  ;;  %v1134_v40 = vadd.f32 %v1054_v58, %v959_v59  ;;  %1918 = vst [vmem:[#allocation2 + $0x242] sm:$0xff] %v1838_v46 }
 0x18d   :  { %11391 = vmatmul.mubr.msk.f32.gmra.mrb[98].mxu1 %vm268_vm1, %v16336_v55  ;;  %v16339_v55 = vld [vmem:[#allocation62_spill] sm:$0xff]  ;;  %1919 = vst [vmem:[#allocation2 + $0x24a] sm:$0xff] %v1839_v35  ;;  %1215 = vst [vmem:[#allocation2 + $0x27b] sm:$0xff] %v1135_v44  ;;  %v1761_v61 = vld [vmem:[#allocation2 + $0x25a] sm:$0xff] }
 0x18e   :  { %11393 = vmatprep.mubr.msk.f32.mxu1 %vm268_vm1, %v16338_v16  ;;  %v16341_v16 = vld [vmem:[#allocation64_spill] sm:$0xff]  ;;  %v1760_v42 = vld [vmem:[#allocation2 + $0x252] sm:$0xff]  ;;  %1214 = vst [vmem:[#allocation2 + $0x273] sm:$0xff] %v1134_v40  ;;  %v10684_v19 = vpop.f32.mrb[78].mxu0  ;;  %v1841_v25 = vadd.f32 %v14052_v1, %v1761_v61  ;;  %v16344_v35 = vld [vmem:[#allocation147_spill] sm:$0xff] }
 0x18f   :  { %10906 = vmatmul.mubr.msk.f32.gmra.mrb[182].mxu0 %vm268_vm1, %v16339_v55  ;;  %v1840_v58 = vadd.f32 %v1760_v42, %v14058_v52  ;;  %v1137_v9 = vadd.f32 %v10684_v19, %v1057_v38  ;;  %v969_v59 = vpop.f32.mrb[79].mxu0  ;;  %v16345_v44 = vld [vmem:[#allocation68_spill] sm:$0xff]  ;;  %v1689_v42 = vld [vmem:[#allocation2 + $0x1a] sm:$0xff] }
 0x190   :  { %10908 = vmatprep.mubr.msk.f32.mxu0 %vm268_vm1, %v16341_v16  ;;  %v1136_v46 = vadd.f32 %v1056_v48, %v969_v59  ;;  %1921 = vst [vmem:[#allocation2 + $0x25a] sm:$0xff] %v1841_v25  ;;  %v16346_v52 = vld [vmem:[#allocation148_spill] sm:$0xff]  ;;  %v1688_v59 = vld [vmem:[#allocation2 + $0x12] sm:$0xff]  ;;  %v16348_v25 = vld [vmem:[#allocation149_spill] sm:$0xff] }
 0x191   :  { %11394 = vmatmul.mubr.msk.f32.gmra.mrb[100].mxu1 %vm268_vm1, %v16340_v26  ;;  %v16343_v26 = vld [vmem:[#allocation66_spill] sm:$0xff]  ;;  %1920 = vst [vmem:[#allocation2 + $0x252] sm:$0xff] %v1840_v58  ;;  %v1762_v40 = vld [vmem:[#allocation2 + $0x262] sm:$0xff]  ;;  %1217 = vst [vmem:[#allocation2 + $0x28b] sm:$0x1f] %v1137_v9 }
 0x192   :  { %11396 = vmatprep.mubr.msk.f32.mxu1 %vm268_vm1, %v16342_v34  ;;  %v1763_v34 = vld [vmem:[#allocation2 + $0x26a] sm:$0xff]  ;;  %v1842_v1 = vadd.f32 %v1762_v40, %v14070_v23  ;;  %1216 = vst [vmem:[#allocation2 + $0x283] sm:$0xff] %v1136_v46  ;;  %v10689_v48 = vpop.f32.mrb[80].mxu0  ;;  %v16349_v9 = vld [vmem:[#allocation72_spill] sm:$0xff] }
 0x193   :  { %10909 = vmatmul.mubr.msk.f32.gmra.mrb[184].mxu0 %vm268_vm1, %v16343_v26  ;;  %v1843_v38 = vadd.f32 %v14064_v13, %v1763_v34  ;;  %v1769_v61 = vadd.f32 %v10689_v48, %v1689_v42  ;;  %v1289_v19 = vpop.f32.mrb[81].mxu0  ;;  %v16350_v13 = vld [vmem:[#allocation150_spill] sm:$0xff]  ;;  %v1690_v42 = vld [vmem:[#allocation2 + $0x22] sm:$0xff] }
 0x194   :  { %10911 = vmatprep.mubr.msk.f32.mxu0 %vm268_vm1, %v16345_v44  ;;  %1922 = vst [vmem:[#allocation2 + $0x262] sm:$0xff] %v1842_v1  ;;  %v1768_v58 = vadd.f32 %v1688_v59, %v1289_v19  ;;  %v16351_v19 = vld [vmem:[#allocation74_spill] sm:$0xff] }
 0x195   :  { %11397 = vmatmul.mubr.msk.f32.gmra.mrb[102].mxu1 %vm268_vm1, %v16344_v35  ;;  %v16347_v35 = vld [vmem:[#allocation70_spill] sm:$0xff]  ;;  %1923 = vst [vmem:[#allocation2 + $0x26a] sm:$0xff] %v1843_v38  ;;  %1849 = vst [vmem:[#allocation2 + $0x1a] sm:$0xff] %v1769_v61  ;;  %v1765_v46 = vld [vmem:[#allocation2 + $0x27a] sm:$0xff] }
 0x196   :  { %11399 = vmatprep.mubr.msk.f32.mxu1 %vm268_vm1, %v16346_v52  ;;  %v1764_v23 = vld [vmem:[#allocation2 + $0x272] sm:$0xff]  ;;  %1848 = vst [vmem:[#allocation2 + $0x12] sm:$0xff] %v1768_v58  ;;  %v10692_v34 = vpop.f32.mrb[82].mxu0  ;;  %v1691_v52 = vld [vmem:[#allocation2 + $0x2a] sm:$0xff]  ;;  %v1845_v1 = vadd.f32 %v14076_v47, %v1765_v46  ;;  %v16352_v61 = vld [vmem:[#allocation151_spill] sm:$0xff] }
 0x197   :  { %10912 = vmatmul.mubr.msk.f32.gmra.mrb[186].mxu0 %vm268_vm1, %v16347_v35  ;;  %v1844_v40 = vadd.f32 %v1764_v23, %v14082_v36  ;;  %v1771_v38 = vadd.f32 %v10692_v34, %v1691_v52  ;;  %v1299_v48 = vpop.f32.mrb[83].mxu0  ;;  %v16354_v23 = vld [vmem:[#allocation152_spill] sm:$0xff] }
 0x198   :  { %10914 = vmatprep.mubr.msk.f32.mxu0 %vm268_vm1, %v16349_v9  ;;  %v1770_v59 = vadd.f32 %v1690_v42, %v1299_v48  ;;  %1925 = vst [vmem:[#allocation2 + $0x27a] sm:$0xff] %v1845_v1  ;;  %v1692_v48 = vld [vmem:[#allocation2 + $0x32] sm:$0xff] }
 0x199   :  { %11400 = vmatmul.mubr.msk.f32.gmra.mrb[104].mxu1 %vm268_vm1, %v16348_v25  ;;  %1924 = vst [vmem:[#allocation2 + $0x272] sm:$0xff] %v1844_v40  ;;  %v16353_v25 = vld [vmem:[#allocation76_spill] sm:$0xff]  ;;  %v1767_v58 = vld [vmem:[#allocation2 + $0x28a] sm:$0x3f]  ;;  %1851 = vst [vmem:[#allocation2 + $0x2a] sm:$0xff] %v1771_v38 }
 0x19a   :  { %11402 = vmatprep.mubr.msk.f32.mxu1 %vm268_vm1, %v16350_v13  ;;  %v1766_v36 = vld [vmem:[#allocation2 + $0x282] sm:$0xff]  ;;  %v1847_v13 = vadd.f32 %v14088_v41, %v1767_v58  ;;  %1850 = vst [vmem:[#allocation2 + $0x22] sm:$0xff] %v1770_v59  ;;  %v10695_v46 = vpop.f32.mrb[84].mxu0  ;;  %v1693_v40 = vld [vmem:[#allocation2 + $0x3a] sm:$0xff]  ;;  %v16355_v42 = vld [vmem:[#allocation78_spill] sm:$0xff] }
 0x19b   :  { %10915 = vmatmul.mubr.msk.f32.gmra.mrb[188].mxu0 %vm268_vm1, %v16351_v19  ;;  %v1846_v47 = vadd.f32 %v1766_v36, %v14094_v15  ;;  %v1773_v34 = vadd.f32 %v10695_v46, %v1693_v40  ;;  %v1309_v52 = vpop.f32.mrb[85].mxu0  ;;  %v16356_v38 = vld [vmem:[#allocation153_spill] sm:$0xff]  ;;  %v16358_v41 = vld [vmem:[#allocation154_spill] sm:$0xff]  ;;  %v16361_v40 = vld [vmem:[#allocation83_spill] sm:$0xff] }
 0x19c   :  { %10917 = vmatprep.mubr.msk.f32.mxu0 %vm268_vm1, %v16353_v25  ;;  %1927 = vst [vmem:[#allocation2 + $0x28a] sm:$0x3f] %v1847_v13  ;;  %v1772_v1 = vadd.f32 %v1692_v48, %v1309_v52  ;;  %v1695_v59 = vld [vmem:[#allocation2 + $0x4a] sm:$0xff]  ;;  %v16359_v46 = vld [vmem:[#allocation82_spill] sm:$0xff]  ;;  %v16360_v13 = vld [vmem:[#allocation156_spill] sm:$0xff] }
 0x19d   :  { %11403 = vmatmul.mubr.msk.f32.gmra.mrb[106].mxu1 %vm268_vm1, %v16352_v61  ;;  %1926 = vst [vmem:[#allocation2 + $0x282] sm:$0xff] %v1846_v47  ;;  %v16357_v61 = vld [vmem:[#allocation80_spill] sm:$0xff]  ;;  %1853 = vst [vmem:[#allocation2 + $0x3a] sm:$0xff] %v1773_v34  ;;  %v16362_v34 = vld [vmem:[#allocation157_spill] sm:$0xff] }
 0x19e   :  { %11405 = vmatprep.mubr.msk.f32.mxu1 %vm268_vm1, %v16354_v23  ;;  %1852 = vst [vmem:[#allocation2 + $0x32] sm:$0xff] %v1772_v1  ;;  %v10698_v15 = vpop.f32.mrb[86].mxu0  ;;  %v1694_v23 = vld [vmem:[#allocation2 + $0x42] sm:$0xff]  ;;  %v1697_v48 = vld [vmem:[#allocation2 + $0x5a] sm:$0xff] }
 0x19f   :  { %10918 = vmatmul.mubr.msk.f32.gmra.mrb[190].mxu0 %vm268_vm1, %v16355_v42  ;;  %v1775_v36 = vadd.f32 %v10698_v15, %v1695_v59  ;;  %v1319_v58 = vpop.f32.mrb[87].mxu0  ;;  %v16363_v15 = vld [vmem:[#allocation84_spill] sm:$0xff] }
 0x1a0   :  { %10920 = vmatprep.mubr.msk.f32.mxu0 %vm268_vm1, %v16357_v61  ;;  %v1774_v47 = vadd.f32 %v1694_v23, %v1319_v58  ;;  %v16364_v58 = vld [vmem:[#allocation158_spill] sm:$0xff] }
 0x1a1   :  { %11406 = vmatmul.mubr.msk.f32.gmra.mrb[108].mxu1 %vm268_vm1, %v16356_v38  ;;  %1855 = vst [vmem:[#allocation2 + $0x4a] sm:$0xff] %v1775_v36  ;;  %v16365_v36 = vld [vmem:[#allocation159_spill] sm:$0xff] }
 0x1a2   :  { %11408 = vmatprep.mubr.msk.f32.mxu1 %vm268_vm1, %v16358_v41  ;;  %1854 = vst [vmem:[#allocation2 + $0x42] sm:$0xff] %v1774_v47  ;;  %v10701_v52 = vpop.f32.mrb[88].mxu0  ;;  %v1696_v41 = vld [vmem:[#allocation2 + $0x52] sm:$0xff]  ;;  %v1699_v47 = vld [vmem:[#allocation2 + $0x6a] sm:$0xff] }
 0x1a3   :  { %10921 = vmatmul.mubr.msk.f32.gmra.mrb[192].mxu0 %vm268_vm1, %v16359_v46  ;;  %v1777_v1 = vadd.f32 %v10701_v52, %v1697_v48  ;;  %v1329_v38 = vpop.f32.mrb[89].mxu0  ;;  %v1698_v52 = vld [vmem:[#allocation2 + $0x62] sm:$0xff]  ;;  %v16366_v48 = vld [vmem:[#allocation86_spill] sm:$0xff] }
 0x1a4   :  { %10923 = vmatprep.mubr.msk.f32.mxu0 %vm268_vm1, %v16361_v40  ;;  %v1776_v59 = vadd.f32 %v1696_v41, %v1329_v38  ;;  %v16367_v41 = vld [vmem:[#allocation160_spill] sm:$0xff] }
 0x1a5   :  { %11409 = vmatmul.mubr.msk.f32.gmra.mrb[110].mxu1 %vm268_vm1, %v16360_v13  ;;  %1857 = vst [vmem:[#allocation2 + $0x5a] sm:$0xff] %v1777_v1  ;;  %v16369_v1 = vld [vmem:[#allocation162_spill] sm:$0xff] }
 0x1a6   :  { %11411 = vmatprep.mubr.msk.f32.mxu1 %vm268_vm1, %v16362_v34  ;;  %1856 = vst [vmem:[#allocation2 + $0x52] sm:$0xff] %v1776_v59  ;;  %v10704_v23 = vpop.f32.mrb[90].mxu0 }
 0x1a7   :  { %10924 = vmatmul.mubr.msk.f32.gmra.mrb[194].mxu0 %vm268_vm1, %v16363_v15  ;;  %v1779_v13 = vadd.f32 %v10704_v23, %v1699_v47  ;;  %v1339_v34 = vpop.f32.mrb[91].mxu0 }
 0x1a8   :  { %10926 = vmatprep.mubr.msk.f32.mxu0 %vm268_vm1, %v13127_v63  ;;  %v1778_v38 = vadd.f32 %v1698_v52, %v1339_v34  ;;  %v1700_v63 = vld [vmem:[#allocation2 + $0x72] sm:$0xff]  ;;  %v12604_v52 = vld [vmem:[%s15738_s2 + $0x10] sm:$0xf] }
 0x1a9   :  { %11412 = vmatmul.mubr.msk.f32.gmra.mrb[112].mxu1 %vm268_vm1, %v16364_v58  ;;  %v16368_v58 = vld [vmem:[#allocation6_spill] sm:$0xff]  ;;  %1859 = vst [vmem:[#allocation2 + $0x6a] sm:$0xff] %v1779_v13 }
 0x1aa   :  { %11414 = vmatprep.mubr.msk.f32.mxu1 %vm268_vm1, %v16365_v36  ;;  %1858 = vst [vmem:[#allocation2 + $0x62] sm:$0xff] %v1778_v38  ;;  %v10707_v59 = vpop.f32.mrb[92].mxu0  ;;  %v1701_v36 = vld [vmem:[#allocation2 + $0x7a] sm:$0xff]  ;;  %v1703_v38 = vld [vmem:[#allocation2 + $0x8a] sm:$0xff] }
 0x1ab   :  { %10927 = vmatmul.mubr.msk.f32.gmra.mrb[196].mxu0 %vm268_vm1, %v16366_v48  ;;  %v1781_v23 = vadd.f32 %v10707_v59, %v1701_v36  ;;  %v1349_v47 = vpop.f32.mrb[93].mxu0  ;;  %v1702_v36 = vld [vmem:[#allocation2 + $0x82] sm:$0xff] }
 0x1ac   :  { %10931 = vmatprep.mubr.msk.f32.mxu0 %vm268_vm1, %v16368_v58  ;;  %v1780_v34 = vadd.f32 %v1700_v63, %v1349_v47  ;;  %v5863_v63 = vrot.slane %v16179_v57, 2  ;;  %v1704_v58 = vld [vmem:[#allocation2 + $0x92] sm:$0xff] }
 0x1ad   :  { %11415 = vmatmul.mubr.msk.f32.gmra.mrb[114].mxu1 %vm268_vm1, %v16367_v41  ;;  %1861 = vst [vmem:[#allocation2 + $0x7a] sm:$0xff] %v1781_v23  ;;  %v5864_v41 = vrot.slane %v16182_v32, 2  ;;  %v8084_v23 = vld [vmem:[%s15737_s1] sm:$0xff] }
 0x1ae   :  { %11417 = vmatprep.mubr.msk.f32.mxu1 %vm268_vm1, %v16369_v1  ;;  %1860 = vst [vmem:[#allocation2 + $0x72] sm:$0xff] %v1780_v34  ;;  %v10710_v13 = vpop.f32.mrb[94].mxu0  ;;  %v16370_v34 = vld [vmem:[#allocation14_spill] sm:$0xff] }
 0x1af   :  { %10932 = vmatmul.mubr.msk.f32.vlgmr.msra.gmra.mrb[198].mxu0 %vm268_vm1, %v12680_v5  ;;  %v1783_v1 = vadd.f32 %v10710_v13, %v1703_v38  ;;  %v1359_v59 = vpop.f32.mrb[95].mxu0  ;;  %v5866_v13 = vrot.slane %v16370_v34, 2  ;;  %v1705_v5 = vld [vmem:[#allocation2 + $0x9a] sm:$0xff] }
 0x1b0   :  { %11055 = vmatpush3.msk.msra.mxu0 %vm509_vm0, %v12604_v52  ;;  %10934 = vmatprep.mubr.msk.f32.mxu0 %vm268_vm1, %v16179_v57  ;;  %v1782_v47 = vadd.f32 %v1702_v36, %v1359_v59  ;;  %v16371_v52 = vld [vmem:[#allocation164_spill] sm:$0xff] }
 0x1b1   :  { %11418 = vmatmul.mubr.msk.f32.gmra.mrb[116].mxu1 %vm268_vm1, %v13894_v7  ;;  %v12630_v7 = vmov 0   ;;  %1863 = vst [vmem:[#allocation2 + $0x8a] sm:$0xff] %v1783_v1  ;;  %v16372_v57 = vld [vmem:[#allocation16_spill] sm:$0xff] }
 0x1b2   :  { %11420 = vmatprep.mubr.msk.f32.mxu1 %vm268_vm1, %v13898_v39  ;;  %12603 = vset.pattern.permute.xlu1 %v12630_v7  ;;  %v8125_v39 = vld [vmem:[%s15737_s1 + $0x148] sm:$0xff]  ;;  %1862 = vst [vmem:[#allocation2 + $0x82] sm:$0xff] %v1782_v47  ;;  %v10713_v38 = vpop.f32.mrb[96].mxu0  ;;  %v5868_v59 = vrot.slane %v16372_v57, 2  ;;  %v8126_v1 = vld [vmem:[%s15737_s1 + $0x150] sm:$0xff] }
 0x1b3   :  { %10935 = vmatmul.mubr.msk.f32.gmra.mrb[118].mxu0 %vm268_vm1, %v16182_v32  ;;  %12602 = vset.pattern.permute.xlu0 %v12630_v7  ;;  %v5865_v32 = vsel %vm5862_vm3, %v5863_v63, %v5864_v41  ;;  %v1369_v36 = vpop.f32.mrb[97].mxu0  ;;  %v8085_v7 = vld [vmem:[%s15737_s1 + $0x8] sm:$0xff]  ;;  %v16373_v63 = vld [vmem:[#allocation81_spill] sm:$0xff] }
 0x1b4   :  { %10937 = vmatprep.mubr.msk.f32.mxu0 %vm268_vm1, %v16370_v34  ;;  %8373 = vperm.xlu1 %12603, %v8125_v39   ;;  %v1784_v47 = vadd.f32 %v1704_v58, %v1369_v36  ;;  %v16374_v39 = vld [vmem:[#allocation18_spill] sm:$0xff]  ;;  %v5872_v58 = vrot.slane %v12761_v27, 2  ;;  %v1706_v34 = vld [vmem:[#allocation2 + $0xa2] sm:$0xff] }
 0x1b5   :  { %11421 = vmatmul.mubr.msk.f32.gmra.mrb[118].mxu1 %vm268_vm1, %v13918_v33  ;;  %8168 = vperm.xlu0 %12602, %v8084_v23   ;;  %v1785_v33 = vadd.f32 %v10713_v38, %v1705_v5  ;;  %v5867_v5 = vsel %vm5862_vm3, %v5864_v41, %v5866_v13  ;;  %v5870_v23 = vrot.slane %v16374_v39, 2  ;;  %v1707_v38 = vld [vmem:[#allocation2 + $0xaa] sm:$0xff] }
 0x1b6   :  { %11423 = vmatprep.mubr.msk.f32.mxu1 %vm268_vm1, %v16371_v52  ;;  %1864 = vst [vmem:[#allocation2 + $0x92] sm:$0xff] %v1784_v47  ;;  %v10716_v52 = vpop.f32.mrb[98].mxu0  ;;  %v8086_v41 = vld [vmem:[%s15737_s1 + $0x10] sm:$0xff] }
 0x1b7   :  { %10938 = vmatmul.mubr.msk.f32.gmra.mrb[120].mxu0 %vm268_vm1, %v16372_v57  ;;  %1865 = vst [vmem:[#allocation2 + $0x9a] sm:$0xff] %v1785_v33  ;;  %v5869_v57 = vsel %vm5862_vm3, %v5866_v13, %v5868_v59  ;;  %v1787_v36 = vadd.f32 %v10716_v52, %v1707_v38  ;;  %v16375_v13 = vld [vmem:[#allocation22_spill] sm:$0xff]  ;;  %v1709_v52 = vld [vmem:[#allocation2 + $0xba] sm:$0xff]  ;;  %v16376_v38 = vld [vmem:[#allocation24_spill] sm:$0xff] }
 0x1b8   :  { %10940 = vmatprep.mubr.msk.f32.mxu0 %vm268_vm1, %v16374_v39  ;;  %8378 = vperm.xlu1 %12603, %v8126_v1   ;;  %v5871_v1 = vsel %vm5862_vm3, %v5868_v59, %v5870_v23 }
 0x1b9   :  { %11424 = vmatmul.mubr.msk.f32.gmra.mrb[124].mxu1 %vm268_vm1, %v16373_v63  ;;  %8173 = vperm.xlu0 %12602, %v8085_v7   ;;  %v1379_v63 = vpop.f32.mrb[99].mxu0  ;;  %1867 = vst [vmem:[#allocation2 + $0xaa] sm:$0xff] %v1787_v36  ;;  %v5874_v7 = vrot.slane %v16375_v13, 2 }
 0x1ba   :  { %11428 = vmatprep.mubr.msk.f32.mxu1 %vm268_vm1, %v5865_v32  ;;  %v8127_v32 = vld [vmem:[%s15737_s1 + $0x158] sm:$0xff]  ;;  %v1786_v33 = vadd.f32 %v1706_v34, %v1379_v63  ;;  %v10719_v47 = vpop.f32.mrb[100].mxu0  ;;  %v5873_v34 = vsel %vm5862_vm3, %v5870_v23, %v5872_v58 }
 0x1bb   :  { %10941 = vmatmul.mubr.msk.f32.gmra.mrb[122].mxu0 %vm268_vm1, %v12761_v27  ;;  %v1789_v63 = vadd.f32 %v10719_v47, %v1709_v52  ;;  %v1389_v36 = vpop.f32.mrb[101].mxu0  ;;  %v1708_v27 = vld [vmem:[#allocation2 + $0xb2] sm:$0xff]  ;;  %v1711_v47 = vld [vmem:[#allocation2 + $0xca] sm:$0xff] }
 0x1bc   :  { %10943 = vmatprep.mubr.msk.f32.mxu0 %vm268_vm1, %v16375_v13  ;;  %1866 = vst [vmem:[#allocation2 + $0xa2] sm:$0xff] %v1786_v33  ;;  %8383 = vperm.xlu1 %12603, %v8127_v32   ;;  %v1788_v59 = vadd.f32 %v1708_v27, %v1389_v36  ;;  %v16377_v23 = vld [vmem:[#allocation26_spill] sm:$0xff]  ;;  %v5875_v32 = vsel %vm5862_vm3, %v5872_v58, %v5874_v7  ;;  %v1710_v36 = vld [vmem:[#allocation2 + $0xc2] sm:$0xff] }
 0x1bd   :  { %11429 = vmatmul.mubr.msk.f32.vlgmr.msra.gmra.mrb[42].mxu1 %vm268_vm1, %v5867_v5  ;;  %v5876_v5 = vrot.slane %v16376_v38, 2  ;;  %8178 = vperm.xlu0 %12602, %v8086_v41   ;;  %1869 = vst [vmem:[#allocation2 + $0xba] sm:$0xff] %v1789_v63  ;;  %v5878_v41 = vrot.slane %v16377_v23, 2  ;;  %v8129_v58 = vld [vmem:[%s15737_s1 + $0x168] sm:$0xff] }
 0x1be   :  { %11431 = vmatprep.mubr.msk.f32.mxu1 %vm268_vm1, %v5869_v57  ;;  %11549 = vmatpush3.msk.msra.mxu1 %vm509_vm0, %v14149_v60  ;;  %v8128_v57 = vld [vmem:[%s15737_s1 + $0x160] sm:$0xff]  ;;  %v8087_v60 = vld [vmem:[%s15737_s1 + $0x18] sm:$0xff]  ;;  %1868 = vst [vmem:[#allocation2 + $0xb2] sm:$0xff] %v1788_v59  ;;  %v10722_v33 = vpop.f32.mrb[102].mxu0 }
 0x1bf   :  { %10944 = vmatmul.mubr.msk.f32.gmra.mrb[124].mxu0 %vm268_vm1, %v16376_v38  ;;  %v5877_v52 = vsel %vm5862_vm3, %v5874_v7, %v5876_v5  ;;  %v16378_v38 = vld [vmem:[#allocation28_spill] sm:$0xff]  ;;  %v1791_v27 = vadd.f32 %v10722_v33, %v1711_v47  ;;  %v16379_v7 = vld [vmem:[#allocation30_spill] sm:$0xff]  ;;  %v1713_v33 = vld [vmem:[#allocation2 + $0xda] sm:$0xff] }
 0x1c0   :  { %10946 = vmatprep.mubr.msk.f32.mxu0 %vm268_vm1, %v16377_v23  ;;  %v5880_v13 = vrot.slane %v16378_v38, 2  ;;  %8388 = vperm.xlu1 %12603, %v8128_v57   ;;  %v5879_v57 = vsel %vm5862_vm3, %v5876_v5, %v5878_v41  ;;  %v8130_v5 = vld [vmem:[%s15737_s1 + $0x170] sm:$0xff] }
 0x1c1   :  { %11432 = vmatmul.mubr.msk.f32.gmra.mrb[44].mxu1 %vm268_vm1, %v5871_v1  ;;  %8183 = vperm.xlu0 %12602, %v8087_v60   ;;  %v1399_v1 = vpop.f32.mrb[103].mxu0  ;;  %1871 = vst [vmem:[#allocation2 + $0xca] sm:$0xff] %v1791_v27  ;;  %v5882_v60 = vrot.slane %v16379_v7, 2 }
 0x1c2   :  { %11434 = vmatprep.mubr.msk.f32.mxu1 %vm268_vm1, %v5873_v34  ;;  %v8088_v34 = vld [vmem:[%s15737_s1 + $0x20] sm:$0xff]  ;;  %v1790_v63 = vadd.f32 %v1710_v36, %v1399_v1  ;;  %v10725_v59 = vpop.f32.mrb[104].mxu0  ;;  %v5881_v47 = vsel %vm5862_vm3, %v5878_v41, %v5880_v13 }
 0x1c3   :  { %10947 = vmatmul.mubr.msk.f32.gmra.mrb[126].mxu0 %vm268_vm1, %v16378_v38  ;;  %v16380_v38 = vld [vmem:[#allocation32_spill] sm:$0xff]  ;;  %v1409_v1 = vpop.f32.mrb[105].mxu0  ;;  %v1712_v36 = vld [vmem:[#allocation2 + $0xd2] sm:$0xff] }
 0x1c4   :  { %10949 = vmatprep.mubr.msk.f32.mxu0 %vm268_vm1, %v16379_v7  ;;  %1870 = vst [vmem:[#allocation2 + $0xc2] sm:$0xff] %v1790_v63  ;;  %v5884_v23 = vrot.slane %v16380_v38, 2  ;;  %8393 = vperm.xlu1 %12603, %v8129_v58   ;;  %v1792_v27 = vadd.f32 %v1712_v36, %v1409_v1  ;;  %v16381_v41 = vld [vmem:[#allocation34_spill] sm:$0xff]  ;;  %v5883_v58 = vsel %vm5862_vm3, %v5880_v13, %v5882_v60  ;;  %v1714_v36 = vld [vmem:[#allocation2 + $0xe2] sm:$0xff] }
 0x1c5   :  { %11435 = vmatmul.mubr.msk.f32.gmra.mrb[46].mxu1 %vm268_vm1, %v5875_v32  ;;  %8188 = vperm.xlu0 %12602, %v8088_v34   ;;  %v1793_v32 = vadd.f32 %v10725_v59, %v1713_v33  ;;  %v5886_v34 = vrot.slane %v16381_v41, 2  ;;  %v1715_v59 = vld [vmem:[#allocation2 + $0xea] sm:$0xff] }
 0x1c6   :  { %11437 = vmatprep.mubr.msk.f32.mxu1 %vm268_vm1, %v5877_v52  ;;  %v8089_v52 = vld [vmem:[%s15737_s1 + $0x28] sm:$0xff]  ;;  %1872 = vst [vmem:[#allocation2 + $0xd2] sm:$0xff] %v1792_v27  ;;  %v10728_v63 = vpop.f32.mrb[106].mxu0  ;;  %v5885_v33 = vsel %vm5862_vm3, %v5882_v60, %v5884_v23  ;;  %v8131_v13 = vld [vmem:[%s15737_s1 + $0x178] sm:$0xff] }
 0x1c7   :  { %10950 = vmatmul.mubr.msk.f32.gmra.mrb[128].mxu0 %vm268_vm1, %v16380_v38  ;;  %1873 = vst [vmem:[#allocation2 + $0xda] sm:$0xff] %v1793_v32  ;;  %v16382_v38 = vld [vmem:[#allocation36_spill] sm:$0xff]  ;;  %v1419_v1 = vpop.f32.mrb[107].mxu0  ;;  %v16383_v60 = vld [vmem:[#allocation38_spill] sm:$0xff] }
 0x1c8   :  { %10952 = vmatprep.mubr.msk.f32.mxu0 %vm268_vm1, %v16381_v41  ;;  %v5888_v7 = vrot.slane %v16382_v38, 2  ;;  %8398 = vperm.xlu1 %12603, %v8130_v5   ;;  %v1794_v32 = vadd.f32 %v1714_v36, %v1419_v1  ;;  %v5887_v5 = vsel %vm5862_vm3, %v5884_v23, %v5886_v34  ;;  %v1716_v36 = vld [vmem:[#allocation2 + $0xf2] sm:$0xff] }
 0x1c9   :  { %11438 = vmatmul.mubr.msk.f32.gmra.mrb[48].mxu1 %vm268_vm1, %v5879_v57  ;;  %8193 = vperm.xlu0 %12602, %v8089_v52   ;;  %v1795_v57 = vadd.f32 %v10728_v63, %v1715_v59  ;;  %v5890_v52 = vrot.slane %v16383_v60, 2  ;;  %v1717_v63 = vld [vmem:[#allocation2 + $0xfa] sm:$0xff] }
 0x1ca   :  { %11440 = vmatprep.mubr.msk.f32.mxu1 %vm268_vm1, %v5881_v47  ;;  %v8090_v47 = vld [vmem:[%s15737_s1 + $0x30] sm:$0xff]  ;;  %1874 = vst [vmem:[#allocation2 + $0xe2] sm:$0xff] %v1794_v32  ;;  %v10731_v27 = vpop.f32.mrb[108].mxu0  ;;  %v5889_v59 = vsel %vm5862_vm3, %v5886_v34, %v5888_v7  ;;  %v8132_v23 = vld [vmem:[%s15737_s1 + $0x180] sm:$0xff] }
 0x1cb   :  { %10953 = vmatmul.mubr.msk.f32.gmra.mrb[130].mxu0 %vm268_vm1, %v16382_v38  ;;  %1875 = vst [vmem:[#allocation2 + $0xea] sm:$0xff] %v1795_v57  ;;  %v16384_v38 = vld [vmem:[#allocation40_spill] sm:$0xff]  ;;  %v1429_v1 = vpop.f32.mrb[109].mxu0  ;;  %v16385_v34 = vld [vmem:[#allocation42_spill] sm:$0xff] }
 0x1cc   :  { %10955 = vmatprep.mubr.msk.f32.mxu0 %vm268_vm1, %v16383_v60  ;;  %v5892_v41 = vrot.slane %v16384_v38, 2  ;;  %8403 = vperm.xlu1 %12603, %v8131_v13   ;;  %v1796_v57 = vadd.f32 %v1716_v36, %v1429_v1  ;;  %v5891_v13 = vsel %vm5862_vm3, %v5888_v7, %v5890_v52  ;;  %v1718_v36 = vld [vmem:[#allocation2 + $0x102] sm:$0xff] }
 0x1cd   :  { %11441 = vmatmul.mubr.msk.f32.gmra.mrb[50].mxu1 %vm268_vm1, %v5883_v58  ;;  %8198 = vperm.xlu0 %12602, %v8090_v47   ;;  %v1797_v58 = vadd.f32 %v10731_v27, %v1717_v63  ;;  %v5894_v47 = vrot.slane %v16385_v34, 2  ;;  %v1719_v27 = vld [vmem:[#allocation2 + $0x10a] sm:$0xff]  ;;  %v8133_v7 = vld [vmem:[%s15737_s1 + $0x188] sm:$0xff] }
 0x1ce   :  { %11443 = vmatprep.mubr.msk.f32.mxu1 %vm268_vm1, %v5885_v33  ;;  %v8091_v33 = vld [vmem:[%s15737_s1 + $0x38] sm:$0xff]  ;;  %1876 = vst [vmem:[#allocation2 + $0xf2] sm:$0xff] %v1796_v57  ;;  %v10734_v32 = vpop.f32.mrb[110].mxu0  ;;  %v5893_v63 = vsel %vm5862_vm3, %v5890_v52, %v5892_v41  ;;  %v16387_v52 = vld [vmem:[#allocation47_spill] sm:$0xff] }
 0x1cf   :  { %10956 = vmatmul.mubr.msk.f32.gmra.mrb[132].mxu0 %vm268_vm1, %v16384_v38  ;;  %1877 = vst [vmem:[#allocation2 + $0xfa] sm:$0xff] %v1797_v58  ;;  %v16386_v38 = vld [vmem:[#allocation45_spill] sm:$0xff]  ;;  %v1439_v1 = vpop.f32.mrb[111].mxu0 }
 0x1d0   :  { %10958 = vmatprep.mubr.msk.f32.mxu0 %vm268_vm1, %v16385_v34  ;;  %v5896_v60 = vrot.slane %v16386_v38, 2  ;;  %8408 = vperm.xlu1 %12603, %v8132_v23   ;;  %v1798_v58 = vadd.f32 %v1718_v36, %v1439_v1  ;;  %v5895_v23 = vsel %vm5862_vm3, %v5892_v41, %v5894_v47  ;;  %v1720_v36 = vld [vmem:[#allocation2 + $0x112] sm:$0xff]  ;;  %v8134_v41 = vld [vmem:[%s15737_s1 + $0x190] sm:$0xff] }
 0x1d1   :  { %11444 = vmatmul.mubr.msk.f32.gmra.mrb[52].mxu1 %vm268_vm1, %v5887_v5  ;;  %8203 = vperm.xlu0 %12602, %v8091_v33   ;;  %v1799_v5 = vadd.f32 %v10734_v32, %v1719_v27  ;;  %v5898_v33 = vrot.slane %v16387_v52, 2  ;;  %v1721_v32 = vld [vmem:[#allocation2 + $0x11a] sm:$0xff] }
 0x1d2   :  { %11446 = vmatprep.mubr.msk.f32.mxu1 %vm268_vm1, %v5889_v59  ;;  %v8092_v59 = vld [vmem:[%s15737_s1 + $0x40] sm:$0xff]  ;;  %1878 = vst [vmem:[#allocation2 + $0x102] sm:$0xff] %v1798_v58  ;;  %v10737_v57 = vpop.f32.mrb[112].mxu0  ;;  %v5897_v27 = vsel %vm5862_vm3, %v5894_v47, %v5896_v60 }
 0x1d3   :  { %10959 = vmatmul.mubr.msk.f32.gmra.mrb[134].mxu0 %vm268_vm1, %v16386_v38  ;;  %1879 = vst [vmem:[#allocation2 + $0x10a] sm:$0xff] %v1799_v5  ;;  %v16388_v38 = vld [vmem:[#allocation49_spill] sm:$0xff]  ;;  %v1449_v1 = vpop.f32.mrb[113].mxu0  ;;  %v16389_v47 = vld [vmem:[#allocation51_spill] sm:$0xff] }
 0x1d4   :  { %10961 = vmatprep.mubr.msk.f32.mxu0 %vm268_vm1, %v16387_v52  ;;  %v5900_v34 = vrot.slane %v16388_v38, 2  ;;  %8413 = vperm.xlu1 %12603, %v8133_v7   ;;  %v1800_v5 = vadd.f32 %v1720_v36, %v1449_v1  ;;  %v5899_v7 = vsel %vm5862_vm3, %v5896_v60, %v5898_v33  ;;  %v1722_v36 = vld [vmem:[#allocation2 + $0x122] sm:$0xff]  ;;  %v8135_v60 = vld [vmem:[%s15737_s1 + $0x198] sm:$0xff] }
 0x1d5   :  { %11447 = vmatmul.mubr.msk.f32.gmra.mrb[54].mxu1 %vm268_vm1, %v5891_v13  ;;  %8208 = vperm.xlu0 %12602, %v8092_v59   ;;  %v1801_v13 = vadd.f32 %v10737_v57, %v1721_v32  ;;  %v5902_v59 = vrot.slane %v16389_v47, 2  ;;  %v1723_v57 = vld [vmem:[#allocation2 + $0x12a] sm:$0xff] }
 0x1d6   :  { %11449 = vmatprep.mubr.msk.f32.mxu1 %vm268_vm1, %v5893_v63  ;;  %v8093_v63 = vld [vmem:[%s15737_s1 + $0x48] sm:$0xff]  ;;  %1880 = vst [vmem:[#allocation2 + $0x112] sm:$0xff] %v1800_v5  ;;  %v5901_v32 = vsel %vm5862_vm3, %v5898_v33, %v5900_v34 }
 0x1d7   :  { %10962 = vmatmul.mubr.msk.f32.gmra.mrb[136].mxu0 %vm268_vm1, %v16388_v38  ;;  %1881 = vst [vmem:[#allocation2 + $0x11a] sm:$0xff] %v1801_v13  ;;  %v16390_v38 = vld [vmem:[#allocation53_spill] sm:$0xff]  ;;  %v16391_v33 = vld [vmem:[#allocation55_spill] sm:$0xff] }
 0x1d8   :  { %10964 = vmatprep.mubr.msk.f32.mxu0 %vm268_vm1, %v16389_v47  ;;  %v5904_v52 = vrot.slane %v16390_v38, 2  ;;  %8418 = vperm.xlu1 %12603, %v8134_v41   ;;  %v5903_v41 = vsel %vm5862_vm3, %v5900_v34, %v5902_v59  ;;  %v8136_v34 = vld [vmem:[%s15737_s1 + $0x1a0] sm:$0xff] }
 0x1d9   :  { %11450 = vmatmul.mubr.msk.f32.gmra.mrb[56].mxu1 %vm268_vm1, %v5895_v23  ;;  %8213 = vperm.xlu0 %12602, %v8093_v63   ;;  %v5906_v63 = vrot.slane %v16391_v33, 2 }
 0x1da   :  { %11452 = vmatprep.mubr.msk.f32.mxu1 %vm268_vm1, %v5897_v27  ;;  %v10740_v58 = vpop.f32.mrb[114].mxu0  ;;  %v8094_v27 = vld [vmem:[%s15737_s1 + $0x50] sm:$0xff] }
 0x1db   :  { %v1803_v23 = vadd.f32 %v10740_v58, %v1723_v57  ;;  %v1459_v1 = vpop.f32.mrb[115].mxu0  ;;  %10965 = vmatmul.mubr.msk.f32.gmra.mrb[138].mxu0 %vm268_vm1, %v16390_v38  ;;  %v1725_v58 = vld [vmem:[#allocation2 + $0x13a] sm:$0xff]  ;;  %v5905_v57 = vsel %vm5862_vm3, %v5902_v59, %v5904_v52  ;;  %v16392_v38 = vld [vmem:[#allocation57_spill] sm:$0xff] }
 0x1dc   :  { %v1802_v13 = vadd.f32 %v1722_v36, %v1459_v1  ;;  %10967 = vmatprep.mubr.msk.f32.mxu0 %vm268_vm1, %v16391_v33  ;;  %v5908_v47 = vrot.slane %v16392_v38, 2  ;;  %8423 = vperm.xlu1 %12603, %v8135_v60   ;;  %v1724_v36 = vld [vmem:[#allocation2 + $0x132] sm:$0xff]  ;;  %v16393_v59 = vld [vmem:[#allocation59_spill] sm:$0xff]  ;;  %v5907_v60 = vsel %vm5862_vm3, %v5904_v52, %v5906_v63 }
 0x1dd   :  { %11453 = vmatmul.mubr.msk.f32.gmra.mrb[58].mxu1 %vm268_vm1, %v5899_v7  ;;  %1883 = vst [vmem:[#allocation2 + $0x12a] sm:$0xff] %v1803_v23  ;;  %8218 = vperm.xlu0 %12602, %v8094_v27   ;;  %v5910_v27 = vrot.slane %v16393_v59, 2  ;;  %v8096_v52 = vld [vmem:[%s15737_s1 + $0x60] sm:$0xff] }
 0x1de   :  { %11455 = vmatprep.mubr.msk.f32.mxu1 %vm268_vm1, %v5901_v32  ;;  %1882 = vst [vmem:[#allocation2 + $0x122] sm:$0xff] %v1802_v13  ;;  %v10743_v5 = vpop.f32.mrb[116].mxu0  ;;  %v8095_v32 = vld [vmem:[%s15737_s1 + $0x58] sm:$0xff]  ;;  %v5909_v13 = vsel %vm5862_vm3, %v5906_v63, %v5908_v47 }
 0x1df   :  { %v1805_v7 = vadd.f32 %v10743_v5, %v1725_v58  ;;  %v1469_v1 = vpop.f32.mrb[117].mxu0  ;;  %10968 = vmatmul.mubr.msk.f32.gmra.mrb[140].mxu0 %vm268_vm1, %v16392_v38  ;;  %v16394_v5 = vld [vmem:[#allocation61_spill] sm:$0xff]  ;;  %v5911_v63 = vsel %vm5862_vm3, %v5908_v47, %v5910_v27  ;;  %v8097_v47 = vld [vmem:[%s15737_s1 + $0x68] sm:$0xff] }
 0x1e0   :  { %v1804_v23 = vadd.f32 %v1724_v36, %v1469_v1  ;;  %10970 = vmatprep.mubr.msk.f32.mxu0 %vm268_vm1, %v16393_v59  ;;  %v5912_v58 = vrot.slane %v16394_v5, 2  ;;  %8428 = vperm.xlu1 %12603, %v8136_v34   ;;  %v16396_v36 = vld [vmem:[#allocation65_spill] sm:$0xff] }
 0x1e1   :  { %11456 = vmatmul.mubr.msk.f32.gmra.mrb[60].mxu1 %vm268_vm1, %v5903_v41  ;;  %1885 = vst [vmem:[#allocation2 + $0x13a] sm:$0xff] %v1805_v7  ;;  %8223 = vperm.xlu0 %12602, %v8095_v32   ;;  %v8137_v41 = vld [vmem:[%s15737_s1 + $0x1a8] sm:$0xff]  ;;  %v5916_v34 = vrot.slane %v16396_v36, 2 }
 0x1e2   :  { %11458 = vmatprep.mubr.msk.f32.mxu1 %vm268_vm1, %v5905_v57  ;;  %1884 = vst [vmem:[#allocation2 + $0x132] sm:$0xff] %v1804_v23  ;;  %v16395_v57 = vld [vmem:[#allocation63_spill] sm:$0xff]  ;;  %v5913_v1 = vsel %vm5862_vm3, %v5910_v27, %v5912_v58  ;;  %v8138_v23 = vld [vmem:[%s15737_s1 + $0x1b0] sm:$0xff] }
 0x1e3   :  { %10971 = vmatmul.mubr.msk.f32.gmra.mrb[142].mxu0 %vm268_vm1, %v16394_v5  ;;  %v5914_v7 = vrot.slane %v16395_v57, 2 }
 0x1e4   :  { %10973 = vmatprep.mubr.msk.f32.mxu0 %vm268_vm1, %v16395_v57  ;;  %8433 = vperm.xlu1 %12603, %v8137_v41  }
 0x1e5   :  { %11459 = vmatmul.mubr.msk.f32.gmra.mrb[62].mxu1 %vm268_vm1, %v5907_v60  ;;  %8228 = vperm.xlu0 %12602, %v8096_v52   ;;  %v16398_v60 = vld [vmem:[#allocation67_spill] sm:$0xff]  ;;  %v5917_v52 = vsel %vm5862_vm3, %v5914_v7, %v5916_v34 }
 0x1e6   :  { %11461 = vmatprep.mubr.msk.f32.mxu1 %vm268_vm1, %v5909_v13  ;;  %v5915_v13 = vsel %vm5862_vm3, %v5912_v58, %v5914_v7  ;;  %v5918_v41 = vrot.slane %v16398_v60, 2  ;;  %v8098_v58 = vld [vmem:[%s15737_s1 + $0x70] sm:$0xff]  ;;  %v16402_v7 = vld [vmem:[#allocation71_spill] sm:$0xff] }
 0x1e7   :  { %10974 = vmatmul.mubr.msk.f32.gmra.mrb[144].mxu0 %vm268_vm1, %v16396_v36 }
 0x1e8   :  { %v14575_v32 = vpop.f32.mrb[120].mxu1  ;;  %10976 = vmatprep.mubr.msk.f32.mxu0 %vm268_vm1, %v16398_v60  ;;  %8438 = vperm.xlu1 %12603, %v8138_v23   ;;  %v5919_v23 = vsel %vm5862_vm3, %v5916_v34, %v5918_v41 }
 0x1e9   :  { %16397 = vst [vmem:[#allocation87_spill] sm:$0xff] %v14575_v32  ;;  %11462 = vmatmul.mubr.msk.f32.gmra.mrb[64].mxu1 %vm268_vm1, %v5911_v63  ;;  %v14586_v27 = vpop.f32.mrb[121].mxu1  ;;  %v16400_v32 = vld [vmem:[#allocation69_spill] sm:$0xff]  ;;  %8233 = vperm.xlu0 %12602, %v8097_v47   ;;  %v5922_v47 = vrot.slane %v16402_v7, 2 }
 0x1ea   :  { %16399 = vst [vmem:[#allocation88_spill] sm:$0xff] %v14586_v27  ;;  %11464 = vmatprep.mubr.msk.f32.mxu1 %vm268_vm1, %v5913_v1  ;;  %v5920_v36 = vrot.slane %v16400_v32, 2  ;;  %v8139_v27 = vld [vmem:[%s15737_s1 + $0x1b8] sm:$0xff] }
 0x1eb   :  { %10977 = vmatmul.mubr.msk.f32.gmra.mrb[146].mxu0 %vm268_vm1, %v16400_v32  ;;  %v5924_v32 = vrot.slane %v16231_v12, 2 }
 0x1ec   :  { %v14595_v63 = vpop.f32.mrb[122].mxu1  ;;  %10979 = vmatprep.mubr.msk.f32.mxu0 %vm268_vm1, %v16402_v7  ;;  %8443 = vperm.xlu1 %12603, %v8139_v27   ;;  %v5923_v34 = vsel %vm5862_vm3, %v5920_v36, %v5922_v47  ;;  %v5926_v27 = vrot.slane %v16233_v31, 2 }
 0x1ed   :  { %16401 = vst [vmem:[#allocation89_spill] sm:$0xff] %v14595_v63  ;;  %11465 = vmatmul.mubr.msk.f32.gmra.mrb[66].mxu1 %vm268_vm1, %v5915_v13  ;;  %v14606_v1 = vpop.f32.mrb[123].mxu1  ;;  %v5921_v63 = vsel %vm5862_vm3, %v5918_v41, %v5920_v36  ;;  %8238 = vperm.xlu0 %12602, %v8098_v58   ;;  %v8140_v13 = vld [vmem:[%s15737_s1 + $0x1c0] sm:$0xff]  ;;  %v5925_v41 = vsel %vm5862_vm3, %v5922_v47, %v5924_v32  ;;  %v5928_v58 = vrot.slane %v16237_v22, 2  ;;  %v5930_v47 = vrot.slane %v16239_v21, 2 }
 0x1ee   :  { %16403 = vst [vmem:[#allocation90_spill] sm:$0xff] %v14606_v1  ;;  %11467 = vmatprep.mubr.msk.f32.mxu1 %vm268_vm1, %v5917_v52  ;;  %v8099_v52 = vld [vmem:[%s15737_s1 + $0x78] sm:$0xff]  ;;  %v5927_v36 = vsel %vm5862_vm3, %v5924_v32, %v5926_v27 }
 0x1ef   :  { %10980 = vmatmul.mubr.msk.f32.gmra.mrb[148].mxu0 %vm268_vm1, %v16231_v12  ;;  %v5931_v32 = vsel %vm5862_vm3, %v5928_v58, %v5930_v47 }
 0x1f0   :  { %10982 = vmatprep.mubr.msk.f32.mxu0 %vm268_vm1, %v16233_v31  ;;  %8448 = vperm.xlu1 %12603, %v8140_v13   ;;  %v5929_v13 = vsel %vm5862_vm3, %v5926_v27, %v5928_v58  ;;  %v5934_v27 = vrot.slane %v16281_v14, 2  ;;  %v16405_v58 = vld [vmem:[#allocation11_spill] sm:$0xff] }
 0x1f1   :  { %11468 = vmatmul.mubr.msk.f32.gmra.mrb[68].mxu1 %vm268_vm1, %v5919_v23  ;;  %8243 = vperm.xlu0 %12602, %v8099_v52   ;;  %v8141_v23 = vld [vmem:[%s15737_s1 + $0x1c8] sm:$0xff]  ;;  %v5932_v52 = vrot.slane %v16245_v0, 2 }
 0x1f2   :  { %11470 = vmatprep.mubr.msk.f32.mxu1 %vm268_vm1, %v5921_v63  ;;  %v8100_v63 = vld [vmem:[%s15737_s1 + $0x80] sm:$0xff] }
 0x1f3   :  { %10983 = vmatmul.mubr.msk.f32.gmra.mrb[150].mxu0 %vm268_vm1, %v16237_v22 }
 0x1f4   :  { %10985 = vmatprep.mubr.msk.f32.mxu0 %vm268_vm1, %v16239_v21  ;;  %8453 = vperm.xlu1 %12603, %v8141_v23   ;;  %v5933_v23 = vsel %vm5862_vm3, %v5930_v47, %v5932_v52  ;;  %v5935_v47 = vsel %vm5862_vm3, %v5932_v52, %v5934_v27 }
 0x1f5   :  { %11471 = vmatmul.mubr.msk.f32.gmra.mrb[70].mxu1 %vm268_vm1, %v5923_v34  ;;  %8248 = vperm.xlu0 %12602, %v8100_v63   ;;  %v8142_v34 = vld [vmem:[%s15737_s1 + $0x1d0] sm:$0xff] }
 0x1f6   :  { %11473 = vmatprep.mubr.msk.f32.mxu1 %vm268_vm1, %v5925_v41  ;;  %v8101_v41 = vld [vmem:[%s15737_s1 + $0x88] sm:$0xff]  ;;  %v16404_v63 = vld [vmem:[#allocation9_spill] sm:$0xff] }
 0x1f7   :  { %10986 = vmatmul.mubr.msk.f32.gmra.mrb[152].mxu0 %vm268_vm1, %v16245_v0  ;;  %v5936_v1 = vrot.slane %v16404_v63, 2 }
 0x1f8   :  { %10988 = vmatprep.mubr.msk.f32.mxu0 %vm268_vm1, %v16281_v14  ;;  %8458 = vperm.xlu1 %12603, %v8142_v34   ;;  %v5938_v34 = vrot.slane %v16405_v58, 2 }
 0x1f9   :  { %11474 = vmatmul.mubr.msk.f32.gmra.mrb[72].mxu1 %vm268_vm1, %v5927_v36  ;;  %8253 = vperm.xlu0 %12602, %v8101_v41   ;;  %v8143_v36 = vld [vmem:[%s15737_s1 + $0x1d8] sm:$0xff]  ;;  %v5937_v41 = vsel %vm5862_vm3, %v5934_v27, %v5936_v1  ;;  %v5942_v27 = vrot.slane %v16293_v17, 2 }
 0x1fa   :  { %11476 = vmatprep.mubr.msk.f32.mxu1 %vm268_vm1, %v5929_v13  ;;  %v8102_v13 = vld [vmem:[%s15737_s1 + $0x90] sm:$0xff]  ;;  %v5939_v52 = vsel %vm5862_vm3, %v5936_v1, %v5938_v34 }
 0x1fb   :  { %10989 = vmatmul.mubr.msk.f32.gmra.mrb[154].mxu0 %vm268_vm1, %v16404_v63  ;;  %v5940_v63 = vrot.slane %v16291_v49, 2 }
 0x1fc   :  { %10991 = vmatprep.mubr.msk.f32.mxu0 %vm268_vm1, %v16405_v58  ;;  %8463 = vperm.xlu1 %12603, %v8143_v36  }
 0x1fd   :  { %11477 = vmatmul.mubr.msk.f32.gmra.mrb[74].mxu1 %vm268_vm1, %v5931_v32  ;;  %8258 = vperm.xlu0 %12602, %v8102_v13   ;;  %v8144_v32 = vld [vmem:[%s15737_s1 + $0x1e0] sm:$0xff]  ;;  %v5941_v36 = vsel %vm5862_vm3, %v5938_v34, %v5940_v63  ;;  %v5944_v13 = vrot.slane %v16295_v29, 2  ;;  %v5943_v1 = vsel %vm5862_vm3, %v5940_v63, %v5942_v27  ;;  %v5946_v34 = vrot.slane %v16297_v54, 2 }
 0x1fe   :  { %11479 = vmatprep.mubr.msk.f32.mxu1 %vm268_vm1, %v5933_v23  ;;  %v8103_v23 = vld [vmem:[%s15737_s1 + $0x98] sm:$0xff] }
 0x1ff   :  { %10992 = vmatmul.mubr.msk.f32.gmra.mrb[156].mxu0 %vm268_vm1, %v16291_v49  ;;  %v5947_v63 = vsel %vm5862_vm3, %v5944_v13, %v5946_v34 }
 0x200   :  { %10994 = vmatprep.mubr.msk.f32.mxu0 %vm268_vm1, %v16293_v17  ;;  %8468 = vperm.xlu1 %12603, %v8144_v32   ;;  %v5945_v32 = vsel %vm5862_vm3, %v5942_v27, %v5944_v13  ;;  %v5950_v27 = vrot.slane %v16301_v11, 2 }
 0x201   :  { %11480 = vmatmul.mubr.msk.f32.gmra.mrb[76].mxu1 %vm268_vm1, %v5935_v47  ;;  %8263 = vperm.xlu0 %12602, %v8103_v23   ;;  %v8145_v47 = vld [vmem:[%s15737_s1 + $0x1e8] sm:$0xff]  ;;  %v5948_v23 = vrot.slane %v16299_v45, 2 }
 0x202   :  { %11482 = vmatprep.mubr.msk.f32.mxu1 %vm268_vm1, %v5937_v41  ;;  %v8104_v41 = vld [vmem:[%s15737_s1 + $0xa0] sm:$0xff] }
 0x203   :  { %10995 = vmatmul.mubr.msk.f32.gmra.mrb[158].mxu0 %vm268_vm1, %v16295_v29  ;;  %v5951_v13 = vsel %vm5862_vm3, %v5948_v23, %v5950_v27 }
 0x204   :  { %10997 = vmatprep.mubr.msk.f32.mxu0 %vm268_vm1, %v16297_v54  ;;  %8473 = vperm.xlu1 %12603, %v8145_v47   ;;  %v5949_v47 = vsel %vm5862_vm3, %v5946_v34, %v5948_v23  ;;  %v5954_v34 = vrot.slane %v16305_v37, 2 }
 0x205   :  { %11483 = vmatmul.mubr.msk.f32.gmra.mrb[78].mxu1 %vm268_vm1, %v5939_v52  ;;  %8268 = vperm.xlu0 %12602, %v8104_v41   ;;  %v8146_v52 = vld [vmem:[%s15737_s1 + $0x1f0] sm:$0xff]  ;;  %v5952_v41 = vrot.slane %v16303_v24, 2 }
 0x206   :  { %11485 = vmatprep.mubr.msk.f32.mxu1 %vm268_vm1, %v5941_v36  ;;  %v8105_v36 = vld [vmem:[%s15737_s1 + $0xa8] sm:$0xff] }
 0x207   :  { %10998 = vmatmul.mubr.msk.f32.gmra.mrb[160].mxu0 %vm268_vm1, %v16299_v45  ;;  %v5955_v23 = vsel %vm5862_vm3, %v5952_v41, %v5954_v34 }
 0x208   :  { %11000 = vmatprep.mubr.msk.f32.mxu0 %vm268_vm1, %v16301_v11  ;;  %8478 = vperm.xlu1 %12603, %v8146_v52   ;;  %v5953_v52 = vsel %vm5862_vm3, %v5950_v27, %v5952_v41  ;;  %v5958_v27 = vrot.slane %v16309_v4, 2 }
 0x209   :  { %11486 = vmatmul.mubr.msk.f32.gmra.mrb[80].mxu1 %vm268_vm1, %v5943_v1  ;;  %8273 = vperm.xlu0 %12602, %v8105_v36   ;;  %v8147_v1 = vld [vmem:[%s15737_s1 + $0x1f8] sm:$0xff]  ;;  %v5956_v36 = vrot.slane %v16307_v53, 2 }
 0x20a   :  { %11488 = vmatprep.mubr.msk.f32.mxu1 %vm268_vm1, %v5945_v32  ;;  %v8106_v32 = vld [vmem:[%s15737_s1 + $0xb0] sm:$0xff] }
 0x20b   :  { %11001 = vmatmul.mubr.msk.f32.gmra.mrb[162].mxu0 %vm268_vm1, %v16303_v24  ;;  %v5959_v41 = vsel %vm5862_vm3, %v5956_v36, %v5958_v27 }
 0x20c   :  { %11003 = vmatprep.mubr.msk.f32.mxu0 %vm268_vm1, %v16305_v37  ;;  %8483 = vperm.xlu1 %12603, %v8147_v1   ;;  %v5957_v1 = vsel %vm5862_vm3, %v5954_v34, %v5956_v36  ;;  %v5962_v34 = vrot.slane %v16313_v28, 2 }
 0x20d   :  { %11489 = vmatmul.mubr.msk.f32.gmra.mrb[82].mxu1 %vm268_vm1, %v5947_v63  ;;  %8278 = vperm.xlu0 %12602, %v8106_v32   ;;  %v8148_v63 = vld [vmem:[%s15737_s1 + $0x200] sm:$0xff]  ;;  %v5960_v32 = vrot.slane %v16311_v30, 2 }
 0x20e   :  { %11491 = vmatprep.mubr.msk.f32.mxu1 %vm268_vm1, %v5949_v47  ;;  %v8107_v47 = vld [vmem:[%s15737_s1 + $0xb8] sm:$0xff] }
 0x20f   :  { %11004 = vmatmul.mubr.msk.f32.gmra.mrb[164].mxu0 %vm268_vm1, %v16307_v53  ;;  %v5963_v36 = vsel %vm5862_vm3, %v5960_v32, %v5962_v34 }
 0x210   :  { %11006 = vmatprep.mubr.msk.f32.mxu0 %vm268_vm1, %v16309_v4  ;;  %8488 = vperm.xlu1 %12603, %v8148_v63   ;;  %v5961_v63 = vsel %vm5862_vm3, %v5958_v27, %v5960_v32  ;;  %v5966_v27 = vrot.slane %v16317_v20, 2 }
 0x211   :  { %11492 = vmatmul.mubr.msk.f32.gmra.mrb[84].mxu1 %vm268_vm1, %v5951_v13  ;;  %8283 = vperm.xlu0 %12602, %v8107_v47   ;;  %v8149_v13 = vld [vmem:[%s15737_s1 + $0x208] sm:$0xff]  ;;  %v5964_v47 = vrot.slane %v16315_v62, 2 }
 0x212   :  { %11494 = vmatprep.mubr.msk.f32.mxu1 %vm268_vm1, %v5953_v52  ;;  %v8108_v52 = vld [vmem:[%s15737_s1 + $0xc0] sm:$0xff] }
 0x213   :  { %11007 = vmatmul.mubr.msk.f32.gmra.mrb[166].mxu0 %vm268_vm1, %v16311_v30  ;;  %v5967_v32 = vsel %vm5862_vm3, %v5964_v47, %v5966_v27 }
 0x214   :  { %11009 = vmatprep.mubr.msk.f32.mxu0 %vm268_vm1, %v16313_v28  ;;  %8493 = vperm.xlu1 %12603, %v8149_v13   ;;  %v5965_v13 = vsel %vm5862_vm3, %v5962_v34, %v5964_v47  ;;  %v5970_v34 = vrot.slane %v16321_v56, 2 }
 0x215   :  { %11495 = vmatmul.mubr.msk.f32.gmra.mrb[86].mxu1 %vm268_vm1, %v5955_v23  ;;  %8288 = vperm.xlu0 %12602, %v8108_v52   ;;  %v8150_v23 = vld [vmem:[%s15737_s1 + $0x210] sm:$0xff]  ;;  %v5968_v52 = vrot.slane %v16319_v18, 2 }
 0x216   :  { %11497 = vmatprep.mubr.msk.f32.mxu1 %vm268_vm1, %v5957_v1  ;;  %v8109_v1 = vld [vmem:[%s15737_s1 + $0xc8] sm:$0xff] }
 0x217   :  { %11010 = vmatmul.mubr.msk.f32.gmra.mrb[168].mxu0 %vm268_vm1, %v16315_v62  ;;  %v5971_v47 = vsel %vm5862_vm3, %v5968_v52, %v5970_v34 }
 0x218   :  { %11012 = vmatprep.mubr.msk.f32.mxu0 %vm268_vm1, %v16317_v20  ;;  %8498 = vperm.xlu1 %12603, %v8150_v23   ;;  %v5969_v23 = vsel %vm5862_vm3, %v5966_v27, %v5968_v52  ;;  %v5974_v27 = vrot.slane %v16325_v3, 2 }
 0x219   :  { %11498 = vmatmul.mubr.msk.f32.gmra.mrb[88].mxu1 %vm268_vm1, %v5959_v41  ;;  %8293 = vperm.xlu0 %12602, %v8109_v1   ;;  %v8151_v41 = vld [vmem:[%s15737_s1 + $0x218] sm:$0xff]  ;;  %v5972_v1 = vrot.slane %v16323_v43, 2 }
 0x21a   :  { %11500 = vmatprep.mubr.msk.f32.mxu1 %vm268_vm1, %v5961_v63  ;;  %v8110_v63 = vld [vmem:[%s15737_s1 + $0xd0] sm:$0xff] }
 0x21b   :  { %11013 = vmatmul.mubr.msk.f32.gmra.mrb[170].mxu0 %vm268_vm1, %v16319_v18  ;;  %v5975_v52 = vsel %vm5862_vm3, %v5972_v1, %v5974_v27 }
 0x21c   :  { %11015 = vmatprep.mubr.msk.f32.mxu0 %vm268_vm1, %v16321_v56  ;;  %8503 = vperm.xlu1 %12603, %v8151_v41   ;;  %v5973_v41 = vsel %vm5862_vm3, %v5970_v34, %v5972_v1  ;;  %v5978_v34 = vrot.slane %v16329_v6, 2 }
 0x21d   :  { %11501 = vmatmul.mubr.msk.f32.gmra.mrb[90].mxu1 %vm268_vm1, %v5963_v36  ;;  %8298 = vperm.xlu0 %12602, %v8110_v63   ;;  %v8152_v36 = vld [vmem:[%s15737_s1 + $0x220] sm:$0xff]  ;;  %v5976_v63 = vrot.slane %v16327_v8, 2 }
 0x21e   :  { %11503 = vmatprep.mubr.msk.f32.mxu1 %vm268_vm1, %v5965_v13  ;;  %v8111_v13 = vld [vmem:[%s15737_s1 + $0xd8] sm:$0xff] }
 0x21f   :  { %11016 = vmatmul.mubr.msk.f32.gmra.mrb[172].mxu0 %vm268_vm1, %v16323_v43  ;;  %v5979_v1 = vsel %vm5862_vm3, %v5976_v63, %v5978_v34 }
 0x220   :  { %11018 = vmatprep.mubr.msk.f32.mxu0 %vm268_vm1, %v16325_v3  ;;  %8508 = vperm.xlu1 %12603, %v8152_v36   ;;  %v5977_v36 = vsel %vm5862_vm3, %v5974_v27, %v5976_v63  ;;  %v5982_v27 = vrot.slane %v16333_v2, 2 }
 0x221   :  { %11504 = vmatmul.mubr.msk.f32.gmra.mrb[92].mxu1 %vm268_vm1, %v5967_v32  ;;  %8303 = vperm.xlu0 %12602, %v8111_v13   ;;  %v8153_v32 = vld [vmem:[%s15737_s1 + $0x228] sm:$0xff]  ;;  %v5980_v13 = vrot.slane %v16331_v50, 2 }
 0x222   :  { %11506 = vmatprep.mubr.msk.f32.mxu1 %vm268_vm1, %v5969_v23  ;;  %v8112_v23 = vld [vmem:[%s15737_s1 + $0xe0] sm:$0xff] }
 0x223   :  { %11019 = vmatmul.mubr.msk.f32.gmra.mrb[174].mxu0 %vm268_vm1, %v16327_v8  ;;  %v5983_v63 = vsel %vm5862_vm3, %v5980_v13, %v5982_v27 }
 0x224   :  { %11021 = vmatprep.mubr.msk.f32.mxu0 %vm268_vm1, %v16329_v6  ;;  %8513 = vperm.xlu1 %12603, %v8153_v32   ;;  %v5981_v32 = vsel %vm5862_vm3, %v5978_v34, %v5980_v13  ;;  %v5986_v34 = vrot.slane %v16337_v10, 2 }
 0x225   :  { %11507 = vmatmul.mubr.msk.f32.gmra.mrb[94].mxu1 %vm268_vm1, %v5971_v47  ;;  %8308 = vperm.xlu0 %12602, %v8112_v23   ;;  %v8154_v47 = vld [vmem:[%s15737_s1 + $0x230] sm:$0xff]  ;;  %v5984_v23 = vrot.slane %v16335_v51, 2 }
 0x226   :  { %11509 = vmatprep.mubr.msk.f32.mxu1 %vm268_vm1, %v5973_v41  ;;  %v8113_v41 = vld [vmem:[%s15737_s1 + $0xe8] sm:$0xff] }
 0x227   :  { %11022 = vmatmul.mubr.msk.f32.gmra.mrb[176].mxu0 %vm268_vm1, %v16331_v50  ;;  %v5987_v13 = vsel %vm5862_vm3, %v5984_v23, %v5986_v34 }
 0x228   :  { %11024 = vmatprep.mubr.msk.f32.mxu0 %vm268_vm1, %v16333_v2  ;;  %8518 = vperm.xlu1 %12603, %v8154_v47   ;;  %v5985_v47 = vsel %vm5862_vm3, %v5982_v27, %v5984_v23  ;;  %v5990_v27 = vrot.slane %v16341_v16, 2 }
 0x229   :  { %11510 = vmatmul.mubr.msk.f32.gmra.mrb[96].mxu1 %vm268_vm1, %v5975_v52  ;;  %8313 = vperm.xlu0 %12602, %v8113_v41   ;;  %v8155_v52 = vld [vmem:[%s15737_s1 + $0x238] sm:$0xff]  ;;  %v5988_v41 = vrot.slane %v16339_v55, 2 }
 0x22a   :  { %11512 = vmatprep.mubr.msk.f32.mxu1 %vm268_vm1, %v5977_v36  ;;  %v8114_v36 = vld [vmem:[%s15737_s1 + $0xf0] sm:$0xff] }
 0x22b   :  { %11025 = vmatmul.mubr.msk.f32.gmra.mrb[178].mxu0 %vm268_vm1, %v16335_v51  ;;  %v5991_v23 = vsel %vm5862_vm3, %v5988_v41, %v5990_v27 }
 0x22c   :  { %11027 = vmatprep.mubr.msk.f32.mxu0 %vm268_vm1, %v16337_v10  ;;  %8523 = vperm.xlu1 %12603, %v8155_v52   ;;  %v5989_v52 = vsel %vm5862_vm3, %v5986_v34, %v5988_v41  ;;  %v5994_v34 = vrot.slane %v16345_v44, 2 }
 0x22d   :  { %11513 = vmatmul.mubr.msk.f32.gmra.mrb[98].mxu1 %vm268_vm1, %v5979_v1  ;;  %8318 = vperm.xlu0 %12602, %v8114_v36   ;;  %v8156_v1 = vld [vmem:[%s15737_s1 + $0x240] sm:$0xff]  ;;  %v5992_v36 = vrot.slane %v16343_v26, 2 }
 0x22e   :  { %11515 = vmatprep.mubr.msk.f32.mxu1 %vm268_vm1, %v5981_v32  ;;  %v8115_v32 = vld [vmem:[%s15737_s1 + $0xf8] sm:$0xff] }
 0x22f   :  { %11028 = vmatmul.mubr.msk.f32.gmra.mrb[180].mxu0 %vm268_vm1, %v16339_v55  ;;  %v5995_v41 = vsel %vm5862_vm3, %v5992_v36, %v5994_v34 }
 0x230   :  { %11030 = vmatprep.mubr.msk.f32.mxu0 %vm268_vm1, %v16341_v16  ;;  %8528 = vperm.xlu1 %12603, %v8156_v1   ;;  %v5993_v1 = vsel %vm5862_vm3, %v5990_v27, %v5992_v36  ;;  %v5998_v27 = vrot.slane %v16349_v9, 2 }
 0x231   :  { %11516 = vmatmul.mubr.msk.f32.gmra.mrb[100].mxu1 %vm268_vm1, %v5983_v63  ;;  %8323 = vperm.xlu0 %12602, %v8115_v32   ;;  %v8157_v63 = vld [vmem:[%s15737_s1 + $0x248] sm:$0xff]  ;;  %v5996_v32 = vrot.slane %v16347_v35, 2 }
 0x232   :  { %11518 = vmatprep.mubr.msk.f32.mxu1 %vm268_vm1, %v5985_v47  ;;  %v8116_v47 = vld [vmem:[%s15737_s1 + $0x100] sm:$0xff] }
 0x233   :  { %11031 = vmatmul.mubr.msk.f32.gmra.mrb[182].mxu0 %vm268_vm1, %v16343_v26  ;;  %v5999_v36 = vsel %vm5862_vm3, %v5996_v32, %v5998_v27 }
 0x234   :  { %11033 = vmatprep.mubr.msk.f32.mxu0 %vm268_vm1, %v16345_v44  ;;  %8533 = vperm.xlu1 %12603, %v8157_v63   ;;  %v5997_v63 = vsel %vm5862_vm3, %v5994_v34, %v5996_v32  ;;  %v6002_v34 = vrot.slane %v16353_v25, 2 }
 0x235   :  { %11519 = vmatmul.mubr.msk.f32.gmra.mrb[102].mxu1 %vm268_vm1, %v5987_v13  ;;  %8328 = vperm.xlu0 %12602, %v8116_v47   ;;  %v8158_v13 = vld [vmem:[%s15737_s1 + $0x250] sm:$0xff]  ;;  %v6000_v47 = vrot.slane %v16351_v19, 2 }
 0x236   :  { %11521 = vmatprep.mubr.msk.f32.mxu1 %vm268_vm1, %v5989_v52  ;;  %v8117_v52 = vld [vmem:[%s15737_s1 + $0x108] sm:$0xff] }
 0x237   :  { %11034 = vmatmul.mubr.msk.f32.gmra.mrb[184].mxu0 %vm268_vm1, %v16347_v35  ;;  %v6003_v32 = vsel %vm5862_vm3, %v6000_v47, %v6002_v34 }
 0x238   :  { %11036 = vmatprep.mubr.msk.f32.mxu0 %vm268_vm1, %v16349_v9  ;;  %8538 = vperm.xlu1 %12603, %v8158_v13   ;;  %v6001_v13 = vsel %vm5862_vm3, %v5998_v27, %v6000_v47  ;;  %v6006_v27 = vrot.slane %v16357_v61, 2 }
 0x239   :  { %11522 = vmatmul.mubr.msk.f32.gmra.mrb[104].mxu1 %vm268_vm1, %v5991_v23  ;;  %8333 = vperm.xlu0 %12602, %v8117_v52   ;;  %v8159_v23 = vld [vmem:[%s15737_s1 + $0x258] sm:$0xff]  ;;  %v6004_v52 = vrot.slane %v16355_v42, 2 }
 0x23a   :  { %11524 = vmatprep.mubr.msk.f32.mxu1 %vm268_vm1, %v5993_v1  ;;  %v8118_v1 = vld [vmem:[%s15737_s1 + $0x110] sm:$0xff] }
 0x23b   :  { %11037 = vmatmul.mubr.msk.f32.gmra.mrb[186].mxu0 %vm268_vm1, %v16351_v19  ;;  %v6007_v47 = vsel %vm5862_vm3, %v6004_v52, %v6006_v27 }
 0x23c   :  { %11039 = vmatprep.mubr.msk.f32.mxu0 %vm268_vm1, %v16353_v25  ;;  %8543 = vperm.xlu1 %12603, %v8159_v23   ;;  %v6005_v23 = vsel %vm5862_vm3, %v6002_v34, %v6004_v52  ;;  %v6010_v34 = vrot.slane %v16361_v40, 2  ;;  %v16406_v52 = vld [vmem:[#allocation85_spill] sm:$0xff] }
 0x23d   :  { %11525 = vmatmul.mubr.msk.f32.gmra.mrb[106].mxu1 %vm268_vm1, %v5995_v41  ;;  %8338 = vperm.xlu0 %12602, %v8118_v1   ;;  %v8160_v41 = vld [vmem:[%s15737_s1 + $0x260] sm:$0xff]  ;;  %v6008_v1 = vrot.slane %v16359_v46, 2 }
 0x23e   :  { %11527 = vmatprep.mubr.msk.f32.mxu1 %vm268_vm1, %v5997_v63  ;;  %v8119_v63 = vld [vmem:[%s15737_s1 + $0x118] sm:$0xff] }
 0x23f   :  { %11040 = vmatmul.mubr.msk.f32.gmra.mrb[188].mxu0 %vm268_vm1, %v16355_v42 }
 0x240   :  { %11042 = vmatprep.mubr.msk.f32.mxu0 %vm268_vm1, %v16357_v61  ;;  %8548 = vperm.xlu1 %12603, %v8160_v41   ;;  %v6009_v41 = vsel %vm5862_vm3, %v6006_v27, %v6008_v1  ;;  %v6011_v27 = vsel %vm5862_vm3, %v6008_v1, %v6010_v34  ;;  %v16407_v1 = vld [vmem:[#allocation161_spill] sm:$0xff] }
 0x241   :  { %11528 = vmatmul.mubr.msk.f32.gmra.mrb[108].mxu1 %vm268_vm1, %v5999_v36  ;;  %8343 = vperm.xlu0 %12602, %v8119_v63   ;;  %v8161_v36 = vld [vmem:[%s15737_s1 + $0x268] sm:$0xff]  ;;  %v6012_v63 = vrot.slane %v16363_v15, 2 }
 0x242   :  { %11530 = vmatprep.mubr.msk.f32.mxu1 %vm268_vm1, %v6001_v13  ;;  %v8120_v13 = vld [vmem:[%s15737_s1 + $0x120] sm:$0xff] }
 0x243   :  { %11043 = vmatmul.mubr.msk.f32.gmra.mrb[190].mxu0 %vm268_vm1, %v16359_v46  ;;  %v16412_v46 = vld [vmem:[#allocation7_spill] sm:$0xff] }
 0x244   :  { %11045 = vmatprep.mubr.msk.f32.mxu0 %vm268_vm1, %v16361_v40  ;;  %8553 = vperm.xlu1 %12603, %v8161_v36   ;;  %v6014_v36 = vrot.slane %v16406_v52, 2 }
 0x245   :  { %11531 = vmatmul.mubr.msk.f32.gmra.mrb[110].mxu1 %vm268_vm1, %v6003_v32  ;;  %8348 = vperm.xlu0 %12602, %v8120_v13   ;;  %v8162_v32 = vld [vmem:[%s15737_s1 + $0x270] sm:$0xff]  ;;  %v6013_v13 = vsel %vm5862_vm3, %v6010_v34, %v6012_v63 }
 0x246   :  { %11533 = vmatprep.mubr.msk.f32.mxu1 %vm268_vm1, %v6005_v23  ;;  %v8121_v23 = vld [vmem:[%s15737_s1 + $0x128] sm:$0xff]  ;;  %v6015_v34 = vsel %vm5862_vm3, %v6012_v63, %v6014_v36  ;;  %v16409_v63 = vld [vmem:[#allocation6_spill] sm:$0xff] }
 0x247   :  { %11046 = vmatmul.mubr.msk.f32.gmra.mrb[192].mxu0 %vm268_vm1, %v16363_v15  ;;  %v6016_v15 = vrot.slane %v16366_v48, 2 }
 0x248   :  { %11048 = vmatprep.mubr.msk.f32.mxu0 %vm268_vm1, %v16406_v52  ;;  %8558 = vperm.xlu1 %12603, %v8162_v32   ;;  %v6018_v32 = vrot.slane %v16407_v1, 2 }
 0x249   :  { %11534 = vmatmul.mubr.msk.f32.gmra.mrb[112].mxu1 %vm268_vm1, %v6007_v47  ;;  %8353 = vperm.xlu0 %12602, %v8121_v23   ;;  %v8163_v47 = vld [vmem:[%s15737_s1 + $0x278] sm:$0xff]  ;;  %v6017_v23 = vsel %vm5862_vm3, %v6014_v36, %v6016_v15 }
 0x24a   :  { %11536 = vmatprep.mubr.msk.f32.mxu1 %vm268_vm1, %v6009_v41  ;;  %v8122_v41 = vld [vmem:[%s15737_s1 + $0x130] sm:$0xff]  ;;  %v6019_v36 = vsel %vm5862_vm3, %v6016_v15, %v6018_v32  ;;  %v8124_v15 = vld [vmem:[%s15737_s1 + $0x140] sm:$0xff] }
 0x24b   :  { %11049 = vmatmul.mubr.msk.f32.gmra.mrb[194].mxu0 %vm268_vm1, %v16366_v48  ;;  %v16408_v48 = vld [vmem:[#allocation163_spill] sm:$0xff] }
 0x24c   :  { %11051 = vmatprep.mubr.msk.f32.mxu0 %vm268_vm1, %v16407_v1  ;;  %v6020_v52 = vrot.slane %v16408_v48, 2  ;;  %8563 = vperm.xlu1 %12603, %v8163_v47   ;;  %v16411_v1 = vld [vmem:[#allocation12_spill] sm:$0xff] }
 0x24d   :  { %11537 = vmatmul.mubr.msk.f32.gmra.mrb[114].mxu1 %vm268_vm1, %v6011_v27  ;;  %8358 = vperm.xlu0 %12602, %v8122_v41   ;;  %v8164_v27 = vld [vmem:[%s15737_s1 + $0x280] sm:$0xff]  ;;  %v6894_v40 = vrot.slane %v16411_v1, 3 }
 0x24e   :  { %11539 = vmatprep.mubr.msk.f32.mxu1 %vm268_vm1, %v6013_v13  ;;  %v8123_v13 = vld [vmem:[%s15737_s1 + $0x138] sm:$0xff]  ;;  %v6021_v47 = vsel %vm5862_vm3, %v6018_v32, %v6020_v52 }
 0x24f   :  { %11052 = vmatmul.mubr.msk.f32.gmra.mrb[200].mxu0 %vm268_vm1, %v16408_v48  ;;  %v16410_v41 = vld [vmem:[#allocation10_spill] sm:$0xff] }
 0x250   :  { %11056 = vmatprep.mubr.msk.f32.mxu0 %vm268_vm1, %v16409_v63  ;;  %v6893_v48 = vrot.slane %v16410_v41, 3  ;;  %8568 = vperm.xlu1 %12603, %v8164_v27   ;;  %v16413_v32 = vld [vmem:[#allocation14_spill] sm:$0xff]  ;;  %v16414_v27 = vld [vmem:[#allocation16_spill] sm:$0xff] }
 0x251   :  { %11540 = vmatmul.mubr.msk.f32.gmra.mrb[116].mxu1 %vm268_vm1, %v6015_v34  ;;  %8363 = vperm.xlu0 %12602, %v8123_v13   ;;  %v8165_v34 = vld [vmem:[%s15737_s1 + $0x288] sm:$0xff]  ;;  %v6898_v13 = vrot.slane %v16414_v27, 3 }
 0x252   :  { %11542 = vmatprep.mubr.msk.f32.mxu1 %vm268_vm1, %v6017_v23  ;;  %v6896_v23 = vrot.slane %v16413_v32, 3 }
 0x253   :  { %11057 = vmatmul.mubr.msk.f32.vlgmr.msra.gmra.mrb[202].mxu0 %vm268_vm1, %v16412_v46  ;;  %v6895_v46 = vsel %vm6892_vm4, %v6893_v48, %v6894_v40 }
 0x254   :  { %11059 = vmatprep.mubr.msk.f32.mxu0 %vm268_vm1, %v16410_v41  ;;  %8573 = vperm.xlu1 %12603, %v8165_v34   ;;  %v6897_v63 = vsel %vm6892_vm4, %v6894_v40, %v6896_v23  ;;  %v6899_v48 = vsel %vm6892_vm4, %v6896_v23, %v6898_v13  ;;  %v16418_v23 = vld [vmem:[#allocation26_spill] sm:$0xff] }
 0x255   :  { %11543 = vmatmul.mubr.msk.f32.gmra.mrb[118].mxu1 %vm268_vm1, %v6019_v36  ;;  %8368 = vperm.xlu0 %12602, %v8124_v15   ;;  %v6900_v36 = vrot.slane %v16374_v39, 3  ;;  %v16417_v15 = vld [vmem:[#allocation24_spill] sm:$0xff] }
 0x256   :  { %11545 = vmatprep.mubr.msk.f32.mxu1 %vm268_vm1, %v6021_v47  ;;  %v16415_v47 = vld [vmem:[#allocation20_spill] sm:$0xff] }
 0x257   :  { %11060 = vmatmul.mubr.msk.f32.gmra.mrb[204].mxu0 %vm268_vm1, %v16411_v1  ;;  %v6902_v41 = vrot.slane %v16415_v47, 3  ;;  %v16416_v1 = vld [vmem:[#allocation22_spill] sm:$0xff] }
 0x258   :  { %11062 = vmatprep.mubr.msk.f32.mxu0 %vm268_vm1, %v16413_v32  ;;  %v6904_v40 = vrot.slane %v16416_v1, 3  ;;  %v6906_v32 = vrot.slane %v16417_v15, 3 }
 0x259   :  { %11546 = vmatmul.mubr.msk.f32.gmra.mrb[126].mxu1 %vm268_vm1, %v6020_v52  ;;  %v6901_v52 = vsel %vm6892_vm4, %v6898_v13, %v6900_v36  ;;  %v6903_v34 = vsel %vm6892_vm4, %v6900_v36, %v6902_v41  ;;  %v16419_v13 = vld [vmem:[#allocation28_spill] sm:$0xff] }
 0x25a   :  { %11550 = vmatprep.mubr.msk.f32.mxu1 %vm268_vm1, %v6895_v46  ;;  %v6908_v46 = vrot.slane %v16418_v23, 3 }
 0x25b   :  { %11063 = vmatmul.mubr.msk.f32.gmra.mrb[206].mxu0 %vm268_vm1, %v16414_v27  ;;  %v6907_v27 = vsel %vm6892_vm4, %v6904_v40, %v6906_v32 }
 0x25c   :  { %11065 = vmatprep.mubr.msk.f32.mxu0 %vm268_vm1, %v16374_v39  ;;  %v6905_v39 = vsel %vm6892_vm4, %v6902_v41, %v6904_v40  ;;  %v6909_v36 = vsel %vm6892_vm4, %v6906_v32, %v6908_v46 }
 0x25d   :  { %11551 = vmatmul.mubr.msk.f32.vlgmr.msra.gmra.mrb[42].mxu1 %vm268_vm1, %v6897_v63  ;;  %v6910_v63 = vrot.slane %v16419_v13, 3 }
 0x25e   :  { %11553 = vmatprep.mubr.msk.f32.mxu1 %vm268_vm1, %v6899_v48  ;;  %v16420_v48 = vld [vmem:[#allocation30_spill] sm:$0xff] }
 0x25f   :  { %11066 = vmatmul.mubr.msk.f32.gmra.mrb[208].mxu0 %vm268_vm1, %v16415_v47  ;;  %v6912_v47 = vrot.slane %v16420_v48, 3  ;;  %v6911_v41 = vsel %vm6892_vm4, %v6908_v46, %v6910_v63 }
 0x260   :  { %11068 = vmatprep.mubr.msk.f32.mxu0 %vm268_vm1, %v16416_v1 }
 0x261   :  { %11554 = vmatmul.mubr.msk.f32.gmra.mrb[44].mxu1 %vm268_vm1, %v6901_v52  ;;  %v16421_v52 = vld [vmem:[#allocation32_spill] sm:$0xff]  ;;  %v6913_v40 = vsel %vm6892_vm4, %v6910_v63, %v6912_v47 }
 0x262   :  { %11556 = vmatprep.mubr.msk.f32.mxu1 %vm268_vm1, %v6903_v34  ;;  %v6914_v1 = vrot.slane %v16421_v52, 3  ;;  %v16422_v34 = vld [vmem:[#allocation34_spill] sm:$0xff] }
 0x263   :  { %11069 = vmatmul.mubr.msk.f32.gmra.mrb[210].mxu0 %vm268_vm1, %v16417_v15  ;;  %v6916_v15 = vrot.slane %v16422_v34, 3 }
 0x264   :  { %11071 = vmatprep.mubr.msk.f32.mxu0 %vm268_vm1, %v16418_v23  ;;  %v6915_v32 = vsel %vm6892_vm4, %v6912_v47, %v6914_v1 }
 0x265   :  { %11557 = vmatmul.mubr.msk.f32.gmra.mrb[46].mxu1 %vm268_vm1, %v6905_v39  ;;  %v16423_v39 = vld [vmem:[#allocation36_spill] sm:$0xff]  ;;  %v6917_v46 = vsel %vm6892_vm4, %v6914_v1, %v6916_v15 }
 0x266   :  { %11559 = vmatprep.mubr.msk.f32.mxu1 %vm268_vm1, %v6907_v27  ;;  %v6918_v23 = vrot.slane %v16423_v39, 3  ;;  %v16424_v27 = vld [vmem:[#allocation38_spill] sm:$0xff] }
 0x267   :  { %11072 = vmatmul.mubr.msk.f32.gmra.mrb[212].mxu0 %vm268_vm1, %v16419_v13  ;;  %v6920_v13 = vrot.slane %v16424_v27, 3 }
 0x268   :  { %11074 = vmatprep.mubr.msk.f32.mxu0 %vm268_vm1, %v16420_v48  ;;  %v6919_v63 = vsel %vm6892_vm4, %v6916_v15, %v6918_v23 }
 0x269   :  { %11560 = vmatmul.mubr.msk.f32.gmra.mrb[48].mxu1 %vm268_vm1, %v6909_v36  ;;  %v16425_v36 = vld [vmem:[#allocation40_spill] sm:$0xff]  ;;  %v6921_v47 = vsel %vm6892_vm4, %v6918_v23, %v6920_v13 }
 0x26a   :  { %11562 = vmatprep.mubr.msk.f32.mxu1 %vm268_vm1, %v6911_v41  ;;  %v6922_v48 = vrot.slane %v16425_v36, 3  ;;  %v16426_v41 = vld [vmem:[#allocation42_spill] sm:$0xff] }
 0x26b   :  { %11075 = vmatmul.mubr.msk.f32.gmra.mrb[214].mxu0 %vm268_vm1, %v16421_v52  ;;  %v6924_v52 = vrot.slane %v16426_v41, 3 }
 0x26c   :  { %11077 = vmatprep.mubr.msk.f32.mxu0 %vm268_vm1, %v16422_v34  ;;  %v6923_v1 = vsel %vm6892_vm4, %v6920_v13, %v6922_v48 }
 0x26d   :  { %11563 = vmatmul.mubr.msk.f32.gmra.mrb[50].mxu1 %vm268_vm1, %v6913_v40  ;;  %v16427_v40 = vld [vmem:[#allocation45_spill] sm:$0xff]  ;;  %v6925_v15 = vsel %vm6892_vm4, %v6922_v48, %v6924_v52 }
 0x26e   :  { %11565 = vmatprep.mubr.msk.f32.mxu1 %vm268_vm1, %v6915_v32  ;;  %v6926_v34 = vrot.slane %v16427_v40, 3  ;;  %v16428_v32 = vld [vmem:[#allocation47_spill] sm:$0xff] }
 0x26f   :  { %11078 = vmatmul.mubr.msk.f32.gmra.mrb[216].mxu0 %vm268_vm1, %v16423_v39  ;;  %v6928_v39 = vrot.slane %v16428_v32, 3 }
 0x270   :  { %11080 = vmatprep.mubr.msk.f32.mxu0 %vm268_vm1, %v16424_v27  ;;  %v6927_v23 = vsel %vm6892_vm4, %v6924_v52, %v6926_v34 }
 0x271   :  { %11566 = vmatmul.mubr.msk.f32.gmra.mrb[52].mxu1 %vm268_vm1, %v6917_v46  ;;  %v16429_v46 = vld [vmem:[#allocation49_spill] sm:$0xff]  ;;  %v6929_v13 = vsel %vm6892_vm4, %v6926_v34, %v6928_v39 }
 0x272   :  { %11568 = vmatprep.mubr.msk.f32.mxu1 %vm268_vm1, %v6919_v63  ;;  %v6930_v27 = vrot.slane %v16429_v46, 3  ;;  %v16430_v63 = vld [vmem:[#allocation51_spill] sm:$0xff]  ;;  %v2477_v34 = vld [vmem:[#allocation2 + $0x289] sm:$0x7f] }
 0x273   :  { %11081 = vmatmul.mubr.msk.f32.gmra.mrb[218].mxu0 %vm268_vm1, %v16425_v36  ;;  %v6932_v36 = vrot.slane %v16430_v63, 3 }
 0x274   :  { %11083 = vmatprep.mubr.msk.f32.mxu0 %vm268_vm1, %v16426_v41  ;;  %v6931_v48 = vsel %vm6892_vm4, %v6928_v39, %v6930_v27 }
 0x275   :  { %11569 = vmatmul.mubr.msk.f32.gmra.mrb[54].mxu1 %vm268_vm1, %v6921_v47  ;;  %v16431_v47 = vld [vmem:[#allocation53_spill] sm:$0xff]  ;;  %v6933_v52 = vsel %vm6892_vm4, %v6930_v27, %v6932_v36  ;;  %v3124_v27 = vld [vmem:[#allocation2 + $0x1] sm:$0xff] }
 0x276   :  { %11571 = vmatprep.mubr.msk.f32.mxu1 %vm268_vm1, %v6923_v1  ;;  %v6934_v41 = vrot.slane %v16431_v47, 3  ;;  %v6936_v1 = vrot.slane %v16391_v33, 3 }
 0x277   :  { %11084 = vmatmul.mubr.msk.f32.gmra.mrb[220].mxu0 %vm268_vm1, %v16427_v40 }
 0x278   :  { %11086 = vmatprep.mubr.msk.f32.mxu0 %vm268_vm1, %v16428_v32  ;;  %v6938_v32 = vrot.slane %v16392_v38, 3 }
 0x279   :  { %11572 = vmatmul.mubr.msk.f32.gmra.mrb[56].mxu1 %vm268_vm1, %v6925_v15  ;;  %v6935_v15 = vsel %vm6892_vm4, %v6932_v36, %v6934_v41  ;;  %v6937_v36 = vsel %vm6892_vm4, %v6934_v41, %v6936_v1 }
 0x27a   :  { %11574 = vmatprep.mubr.msk.f32.mxu1 %vm268_vm1, %v6927_v23 }
 0x27b   :  { %11087 = vmatmul.mubr.msk.f32.gmra.mrb[222].mxu0 %vm268_vm1, %v16429_v46  ;;  %v2476_v46 = vld [vmem:[#allocation2 + $0x281] sm:$0xff] }
 0x27c   :  { %11089 = vmatprep.mubr.msk.f32.mxu0 %vm268_vm1, %v16430_v63  ;;  %v3125_v63 = vld [vmem:[#allocation2 + $0x9] sm:$0xff] }
 0x27d   :  { %11575 = vmatmul.mubr.msk.f32.gmra.mrb[58].mxu1 %vm268_vm1, %v6929_v13 }
 0x27e   :  { %11577 = vmatprep.mubr.msk.f32.mxu1 %vm268_vm1, %v6931_v48  ;;  %v10928_v40 = vpop.f32.mrb[196].mxu0  ;;  %v6940_v48 = vrot.slane %v16393_v59, 3 }
 0x27f   :  { %v2557_v39 = vadd.f32 %v10928_v40, %v2477_v34  ;;  %v2389_v23 = vpop.f32.mrb[197].mxu0  ;;  %11090 = vmatmul.mubr.msk.f32.gmra.mrb[224].mxu0 %vm268_vm1, %v16431_v47  ;;  %v6939_v34 = vsel %vm6892_vm4, %v6936_v1, %v6938_v32  ;;  %v6942_v47 = vrot.slane %v16394_v5, 3  ;;  %v6944_v1 = vrot.slane %v16395_v57, 3 }
 0x280   :  { %v2556_v13 = vadd.f32 %v2476_v46, %v2389_v23  ;;  %11092 = vmatprep.mubr.msk.f32.mxu0 %vm268_vm1, %v16391_v33  ;;  %v6941_v41 = vsel %vm6892_vm4, %v6938_v32, %v6940_v48 }
 0x281   :  { %11578 = vmatmul.mubr.msk.f32.gmra.mrb[60].mxu1 %vm268_vm1, %v6933_v52  ;;  %2637 = vst [vmem:[#allocation2 + $0x289] sm:$0x7f] %v2557_v39  ;;  %v6943_v46 = vsel %vm6892_vm4, %v6940_v48, %v6942_v47  ;;  %v6945_v32 = vsel %vm6892_vm4, %v6942_v47, %v6944_v1  ;;  %v6948_v48 = vrot.slane %v16398_v60, 3 }
 0x282   :  { %11580 = vmatprep.mubr.msk.f32.mxu1 %vm268_vm1, %v6935_v15  ;;  %2636 = vst [vmem:[#allocation2 + $0x281] sm:$0xff] %v2556_v13  ;;  %v10933_v40 = vpop.f32.mrb[198].mxu0  ;;  %v2399_v15 = vld [vmem:[#allocation2 + $0x19] sm:$0xff]  ;;  %v16432_v13 = vld [vmem:[#allocation65_spill] sm:$0xff] }
 0x283   :  { %v3207_v23 = vadd.f32 %v10933_v40, %v3125_v63  ;;  %v2715_v52 = vpop.f32.mrb[199].mxu0  ;;  %11093 = vmatmul.mubr.msk.f32.gmra.mrb[226].mxu0 %vm268_vm1, %v16392_v38  ;;  %v6946_v38 = vrot.slane %v16432_v13, 3  ;;  %v2401_v40 = vld [vmem:[#allocation2 + $0x29] sm:$0xff] }
 0x284   :  { %v3206_v33 = vadd.f32 %v3124_v27, %v2715_v52  ;;  %11095 = vmatprep.mubr.msk.f32.mxu0 %vm268_vm1, %v16393_v59  ;;  %v2398_v27 = vld [vmem:[#allocation2 + $0x11] sm:$0xff] }
 0x285   :  { %11581 = vmatmul.mubr.msk.f32.gmra.mrb[62].mxu1 %vm268_vm1, %v6937_v36  ;;  %3289 = vst [vmem:[#allocation2 + $0x9] sm:$0xff] %v3207_v23  ;;  %v6947_v23 = vsel %vm6892_vm4, %v6944_v1, %v6946_v38  ;;  %v16433_v52 = vld [vmem:[#allocation69_spill] sm:$0xff]  ;;  %v6949_v1 = vsel %vm6892_vm4, %v6946_v38, %v6948_v48 }
 0x286   :  { %11583 = vmatprep.mubr.msk.f32.mxu1 %vm268_vm1, %v6939_v34  ;;  %3288 = vst [vmem:[#allocation2 + $0x1] sm:$0xff] %v3206_v33  ;;  %v10936_v39 = vpop.f32.mrb[118].mxu0 }
 0x287   :  { %v11733_v63 = vadd.f32 %v10936_v39, %v2399_v15  ;;  %v2725_v36 = vpop.f32.mrb[119].mxu0  ;;  %11096 = vmatmul.mubr.msk.f32.gmra.mrb[228].mxu0 %vm268_vm1, %v16394_v5  ;;  %v6950_v5 = vrot.slane %v16433_v52, 3  ;;  %v2400_v15 = vld [vmem:[#allocation2 + $0x21] sm:$0xff] }
 0x288   :  { %v11736_v59 = vadd.f32 %v2725_v36, %v2398_v27  ;;  %11098 = vmatprep.mubr.msk.f32.mxu0 %vm268_vm1, %v16395_v57  ;;  %v6954_v36 = vrot.slane %v16231_v12, 3 }
 0x289   :  { %11584 = vmatmul.mubr.msk.f32.gmra.mrb[64].mxu1 %vm268_vm1, %v6941_v41  ;;  %3291 = vst [vmem:[#allocation2 + $0x19] sm:$0xff] %v11733_v63  ;;  %v2403_v63 = vld [vmem:[#allocation2 + $0x39] sm:$0xff]  ;;  %v6951_v27 = vsel %vm6892_vm4, %v6948_v48, %v6950_v5  ;;  %v6956_v48 = vrot.slane %v16233_v31, 3 }
 0x28a   :  { %11586 = vmatprep.mubr.msk.f32.mxu1 %vm268_vm1, %v6943_v46  ;;  %3290 = vst [vmem:[#allocation2 + $0x11] sm:$0xff] %v11736_v59  ;;  %v10939_v34 = vpop.f32.mrb[120].mxu0  ;;  %v6952_v46 = vrot.slane %v16402_v7, 3 }
 0x28b   :  { %v11739_v33 = vadd.f32 %v10939_v34, %v2401_v40  ;;  %v2735_v41 = vpop.f32.mrb[121].mxu0  ;;  %11099 = vmatmul.mubr.msk.f32.gmra.mrb[230].mxu0 %vm268_vm1, %v16432_v13  ;;  %v2405_v34 = vld [vmem:[#allocation2 + $0x49] sm:$0xff] }
 0x28c   :  { %v15160_v57 = vpop.f32.mrb[124].mxu1  ;;  %v11742_v39 = vadd.f32 %v2735_v41, %v2400_v15  ;;  %11101 = vmatprep.mubr.msk.f32.mxu0 %vm268_vm1, %v16398_v60  ;;  %v6953_v38 = vsel %vm6892_vm4, %v6950_v5, %v6952_v46  ;;  %v2404_v41 = vld [vmem:[#allocation2 + $0x41] sm:$0xff]  ;;  %v6957_v5 = vsel %vm6892_vm4, %v6954_v36, %v6956_v48 }
 0x28d   :  { %16434 = vst [vmem:[#allocation91_spill] sm:$0xff] %v15160_v57  ;;  %11587 = vmatmul.mubr.msk.f32.gmra.mrb[66].mxu1 %vm268_vm1, %v6945_v32  ;;  %v15165_v47 = vpop.f32.mrb[125].mxu1  ;;  %3293 = vst [vmem:[#allocation2 + $0x29] sm:$0xff] %v11739_v33  ;;  %v2402_v32 = vld [vmem:[#allocation2 + $0x31] sm:$0xff]  ;;  %v6955_v33 = vsel %vm6892_vm4, %v6952_v46, %v6954_v36  ;;  %v2407_v46 = vld [vmem:[#allocation2 + $0x59] sm:$0xff] }
 0x28e   :  { %16435 = vst [vmem:[#allocation92_spill] sm:$0xff] %v15165_v47  ;;  %11589 = vmatprep.mubr.msk.f32.mxu1 %vm268_vm1, %v6947_v23  ;;  %3292 = vst [vmem:[#allocation2 + $0x21] sm:$0xff] %v11742_v39  ;;  %v10942_v13 = vpop.f32.mrb[122].mxu0 }
 0x28f   :  { %v11745_v59 = vadd.f32 %v10942_v13, %v2403_v63  ;;  %v2745_v40 = vpop.f32.mrb[123].mxu0  ;;  %11102 = vmatmul.mubr.msk.f32.gmra.mrb[232].mxu0 %vm268_vm1, %v16433_v52  ;;  %v6958_v52 = vrot.slane %v16237_v22, 3 }
 0x290   :  { %v11748_v60 = vadd.f32 %v2745_v40, %v2402_v32  ;;  %11104 = vmatprep.mubr.msk.f32.mxu0 %vm268_vm1, %v16402_v7  ;;  %v6964_v40 = vrot.slane %v16281_v14, 3 }
 0x291   :  { %11590 = vmatmul.mubr.msk.f32.gmra.mrb[68].mxu1 %vm268_vm1, %v6949_v1  ;;  %3295 = vst [vmem:[#allocation2 + $0x39] sm:$0xff] %v11745_v59  ;;  %v6960_v1 = vrot.slane %v16239_v21, 3  ;;  %v6959_v13 = vsel %vm6892_vm4, %v6956_v48, %v6958_v52  ;;  %v2406_v59 = vld [vmem:[#allocation2 + $0x51] sm:$0xff] }
 0x292   :  { %11592 = vmatprep.mubr.msk.f32.mxu1 %vm268_vm1, %v6951_v27  ;;  %3294 = vst [vmem:[#allocation2 + $0x31] sm:$0xff] %v11748_v60  ;;  %v10945_v23 = vpop.f32.mrb[124].mxu0  ;;  %v2409_v60 = vld [vmem:[#allocation2 + $0x69] sm:$0xff] }
 0x293   :  { %v11751_v15 = vadd.f32 %v10945_v23, %v2405_v34  ;;  %v2755_v39 = vpop.f32.mrb[125].mxu0  ;;  %11105 = vmatmul.mubr.msk.f32.gmra.mrb[234].mxu0 %vm268_vm1, %v16231_v12  ;;  %v6962_v12 = vrot.slane %v16245_v0, 3  ;;  %v6961_v36 = vsel %vm6892_vm4, %v6958_v52, %v6960_v1  ;;  %v16436_v34 = vld [vmem:[#allocation9_spill] sm:$0xff]  ;;  %v15202_v23 = vpop.permute.xlu0 %8168 }
 0x294   :  { %v11754_v7 = vadd.f32 %v2755_v39, %v2404_v41  ;;  %11107 = vmatprep.mubr.msk.f32.mxu0 %vm268_vm1, %v16233_v31  ;;  %v6968_v39 = vrot.slane %v16405_v58, 3 }
 0x295   :  { %11593 = vmatmul.mubr.msk.f32.gmra.mrb[70].mxu1 %vm268_vm1, %v6953_v38  ;;  %3297 = vst [vmem:[#allocation2 + $0x49] sm:$0xff] %v11751_v15  ;;  %v6963_v48 = vsel %vm6892_vm4, %v6960_v1, %v6962_v12  ;;  %v2408_v15 = vld [vmem:[#allocation2 + $0x61] sm:$0xff]  ;;  %v6965_v52 = vsel %vm6892_vm4, %v6962_v12, %v6964_v40 }
 0x296   :  { %11595 = vmatprep.mubr.msk.f32.mxu1 %vm268_vm1, %v6955_v33  ;;  %3296 = vst [vmem:[#allocation2 + $0x41] sm:$0xff] %v11754_v7  ;;  %v10948_v63 = vpop.f32.mrb[126].mxu0  ;;  %v2411_v7 = vld [vmem:[#allocation2 + $0x79] sm:$0xff] }
 0x297   :  { %v11757_v27 = vadd.f32 %v10948_v63, %v2407_v46  ;;  %v2765_v32 = vpop.f32.mrb[127].mxu0  ;;  %11108 = vmatmul.mubr.msk.f32.gmra.mrb[236].mxu0 %vm268_vm1, %v16237_v22  ;;  %v6966_v22 = vrot.slane %v16436_v34, 3  ;;  %v2410_v63 = vld [vmem:[#allocation2 + $0x71] sm:$0xff]  ;;  %v15219_v12 = vpop.permute.xlu0 %8173 }
 0x298   :  { %v11760_v31 = vadd.f32 %v2765_v32, %v2406_v59  ;;  %11110 = vmatprep.mubr.msk.f32.mxu0 %vm268_vm1, %v16239_v21  ;;  %v6972_v59 = vrot.slane %v16293_v17, 3  ;;  %v2413_v32 = vld [vmem:[#allocation2 + $0x89] sm:$0xff] }
 0x299   :  { %11596 = vmatmul.mubr.msk.f32.gmra.mrb[72].mxu1 %vm268_vm1, %v6957_v5  ;;  %3299 = vst [vmem:[#allocation2 + $0x59] sm:$0xff] %v11757_v27  ;;  %v6967_v1 = vsel %vm6892_vm4, %v6964_v40, %v6966_v22  ;;  %v6969_v27 = vsel %vm6892_vm4, %v6966_v22, %v6968_v39  ;;  %v6974_v40 = vrot.slane %v16295_v29, 3  ;;  %v6976_v22 = vrot.slane %v16297_v54, 3 }
 0x29a   :  { %11598 = vmatprep.mubr.msk.f32.mxu1 %vm268_vm1, %v6959_v13  ;;  %3298 = vst [vmem:[#allocation2 + $0x51] sm:$0xff] %v11760_v31  ;;  %v10951_v38 = vpop.f32.mrb[128].mxu0 }
 0x29b   :  { %v11763_v33 = vadd.f32 %v10951_v38, %v2409_v60  ;;  %v2775_v41 = vpop.f32.mrb[129].mxu0  ;;  %11111 = vmatmul.mubr.msk.f32.gmra.mrb[238].mxu0 %vm268_vm1, %v16245_v0  ;;  %v6970_v0 = vrot.slane %v16291_v49, 3  ;;  %v2412_v38 = vld [vmem:[#allocation2 + $0x81] sm:$0xff] }
 0x29c   :  { %v11766_v21 = vadd.f32 %v2775_v41, %v2408_v15  ;;  %11113 = vmatprep.mubr.msk.f32.mxu0 %vm268_vm1, %v16281_v14  ;;  %v6975_v41 = vsel %vm6892_vm4, %v6972_v59, %v6974_v40 }
 0x29d   :  { %11599 = vmatmul.mubr.msk.f32.gmra.mrb[74].mxu1 %vm268_vm1, %v6961_v36  ;;  %3301 = vst [vmem:[#allocation2 + $0x69] sm:$0xff] %v11763_v33  ;;  %v6971_v36 = vsel %vm6892_vm4, %v6968_v39, %v6970_v0  ;;  %v2415_v33 = vld [vmem:[#allocation2 + $0x99] sm:$0xff]  ;;  %v2414_v39 = vld [vmem:[#allocation2 + $0x91] sm:$0xff] }
 0x29e   :  { %11601 = vmatprep.mubr.msk.f32.mxu1 %vm268_vm1, %v6963_v48  ;;  %3300 = vst [vmem:[#allocation2 + $0x61] sm:$0xff] %v11766_v21  ;;  %v10954_v5 = vpop.f32.mrb[130].mxu0  ;;  %v15236_v21 = vpop.permute.xlu0 %8178 }
 0x29f   :  { %v11769_v46 = vadd.f32 %v10954_v5, %v2411_v7  ;;  %v2785_v13 = vpop.f32.mrb[131].mxu0  ;;  %11114 = vmatmul.mubr.msk.f32.gmra.mrb[240].mxu0 %vm268_vm1, %v16436_v34  ;;  %v6973_v34 = vsel %vm6892_vm4, %v6970_v0, %v6972_v59  ;;  %v6977_v5 = vsel %vm6892_vm4, %v6974_v40, %v6976_v22  ;;  %v2417_v0 = vld [vmem:[#allocation2 + $0xa9] sm:$0xff] }
 0x2a0   :  { %v11772_v14 = vadd.f32 %v2785_v13, %v2410_v63  ;;  %11116 = vmatprep.mubr.msk.f32.mxu0 %vm268_vm1, %v16405_v58 }
 0x2a1   :  { %11602 = vmatmul.mubr.msk.f32.gmra.mrb[76].mxu1 %vm268_vm1, %v6965_v52  ;;  %3303 = vst [vmem:[#allocation2 + $0x79] sm:$0xff] %v11769_v46 }
 0x2a2   :  { %11604 = vmatprep.mubr.msk.f32.mxu1 %vm268_vm1, %v6967_v1  ;;  %3302 = vst [vmem:[#allocation2 + $0x71] sm:$0xff] %v11772_v14  ;;  %v10957_v31 = vpop.f32.mrb[132].mxu0  ;;  %v6980_v1 = vrot.slane %v16301_v11, 3  ;;  %v2416_v14 = vld [vmem:[#allocation2 + $0xa1] sm:$0xff]  ;;  %v15253_v59 = vpop.permute.xlu0 %8183 }
 0x2a3   :  { %v11775_v60 = vadd.f32 %v10957_v31, %v2413_v32  ;;  %v2795_v48 = vpop.f32.mrb[133].mxu0  ;;  %11117 = vmatmul.mubr.msk.f32.gmra.mrb[242].mxu0 %vm268_vm1, %v16291_v49  ;;  %v6978_v49 = vrot.slane %v16299_v45, 3  ;;  %v6984_v31 = vrot.slane %v16305_v37, 3 }
 0x2a4   :  { %v11778_v58 = vadd.f32 %v2795_v48, %v2412_v38  ;;  %11119 = vmatprep.mubr.msk.f32.mxu0 %vm268_vm1, %v16293_v17  ;;  %v2418_v48 = vld [vmem:[#allocation2 + $0xb1] sm:$0xff] }
 0x2a5   :  { %11605 = vmatmul.mubr.msk.f32.gmra.mrb[78].mxu1 %vm268_vm1, %v6969_v27  ;;  %3305 = vst [vmem:[#allocation2 + $0x89] sm:$0xff] %v11775_v60  ;;  %v6979_v63 = vsel %vm6892_vm4, %v6976_v22, %v6978_v49  ;;  %v6981_v32 = vsel %vm6892_vm4, %v6978_v49, %v6980_v1  ;;  %v6986_v60 = vrot.slane %v16307_v53, 3  ;;  %v6988_v22 = vrot.slane %v16309_v4, 3 }
 0x2a6   :  { %11607 = vmatprep.mubr.msk.f32.mxu1 %vm268_vm1, %v6971_v36  ;;  %3304 = vst [vmem:[#allocation2 + $0x81] sm:$0xff] %v11778_v58  ;;  %v10960_v15 = vpop.f32.mrb[134].mxu0  ;;  %v2419_v36 = vld [vmem:[#allocation2 + $0xb9] sm:$0xff]  ;;  %v15270_v49 = vpop.permute.xlu0 %8188 }
 0x2a7   :  { %v11781_v52 = vadd.f32 %v10960_v15, %v2415_v33  ;;  %v2805_v7 = vpop.f32.mrb[135].mxu0  ;;  %11120 = vmatmul.mubr.msk.f32.gmra.mrb[244].mxu0 %vm268_vm1, %v16295_v29  ;;  %v6982_v29 = vrot.slane %v16303_v24, 3  ;;  %v2421_v33 = vld [vmem:[#allocation2 + $0xc9] sm:$0xff] }
 0x2a8   :  { %v11784_v17 = vadd.f32 %v2805_v7, %v2414_v39  ;;  %11122 = vmatprep.mubr.msk.f32.mxu0 %vm268_vm1, %v16297_v54  ;;  %v2420_v39 = vld [vmem:[#allocation2 + $0xc1] sm:$0xff] }
 0x2a9   :  { %11608 = vmatmul.mubr.msk.f32.gmra.mrb[80].mxu1 %vm268_vm1, %v6973_v34  ;;  %3307 = vst [vmem:[#allocation2 + $0x99] sm:$0xff] %v11781_v52  ;;  %v6985_v34 = vsel %vm6892_vm4, %v6982_v29, %v6984_v31 }
 0x2aa   :  { %11610 = vmatprep.mubr.msk.f32.mxu1 %vm268_vm1, %v6975_v41  ;;  %3306 = vst [vmem:[#allocation2 + $0x91] sm:$0xff] %v11784_v17  ;;  %v10963_v46 = vpop.f32.mrb[136].mxu0  ;;  %v6987_v41 = vsel %vm6892_vm4, %v6984_v31, %v6986_v60  ;;  %v6989_v17 = vsel %vm6892_vm4, %v6986_v60, %v6988_v22 }
 0x2ab   :  { %v11787_v13 = vadd.f32 %v10963_v46, %v2417_v0  ;;  %v2815_v27 = vpop.f32.mrb[137].mxu0  ;;  %11123 = vmatmul.mubr.msk.f32.gmra.mrb[246].mxu0 %vm268_vm1, %v16299_v45  ;;  %v6983_v45 = vsel %vm6892_vm4, %v6980_v1, %v6982_v29  ;;  %v2423_v1 = vld [vmem:[#allocation2 + $0xd9] sm:$0xff]  ;;  %v2422_v29 = vld [vmem:[#allocation2 + $0xd1] sm:$0xff] }
 0x2ac   :  { %v11790_v54 = vadd.f32 %v2815_v27, %v2416_v14  ;;  %11125 = vmatprep.mubr.msk.f32.mxu0 %vm268_vm1, %v16301_v11  ;;  %v15287_v14 = vpop.permute.xlu0 %8193 }
 0x2ad   :  { %11611 = vmatmul.mubr.msk.f32.gmra.mrb[82].mxu1 %vm268_vm1, %v6977_v5  ;;  %3309 = vst [vmem:[#allocation2 + $0xa9] sm:$0xff] %v11787_v13  ;;  %v6992_v5 = vrot.slane %v16313_v28, 3 }
 0x2ae   :  { %11613 = vmatprep.mubr.msk.f32.mxu1 %vm268_vm1, %v6979_v63  ;;  %3308 = vst [vmem:[#allocation2 + $0xa1] sm:$0xff] %v11790_v54  ;;  %v10966_v40 = vpop.f32.mrb[138].mxu0  ;;  %v6996_v54 = vrot.slane %v16317_v20, 3 }
 0x2af   :  { %v11793_v38 = vadd.f32 %v10966_v40, %v2419_v36  ;;  %v2825_v58 = vpop.f32.mrb[139].mxu0  ;;  %11126 = vmatmul.mubr.msk.f32.gmra.mrb[248].mxu0 %vm268_vm1, %v16303_v24  ;;  %v6990_v24 = vrot.slane %v16311_v30, 3  ;;  %v6998_v36 = vrot.slane %v16319_v18, 3 }
 0x2b0   :  { %v11796_v11 = vadd.f32 %v2825_v58, %v2418_v48  ;;  %11128 = vmatprep.mubr.msk.f32.mxu0 %vm268_vm1, %v16305_v37  ;;  %v7000_v48 = vrot.slane %v16321_v56, 3  ;;  %v2427_v58 = vld [vmem:[#allocation2 + $0xf9] sm:$0xff] }
 0x2b1   :  { %11614 = vmatmul.mubr.msk.f32.gmra.mrb[84].mxu1 %vm268_vm1, %v6981_v32  ;;  %3311 = vst [vmem:[#allocation2 + $0xb9] sm:$0xff] %v11793_v38  ;;  %v6991_v46 = vsel %vm6892_vm4, %v6988_v22, %v6990_v24  ;;  %v6993_v27 = vsel %vm6892_vm4, %v6990_v24, %v6992_v5  ;;  %v2425_v32 = vld [vmem:[#allocation2 + $0xe9] sm:$0xff]  ;;  %v15304_v22 = vpop.permute.xlu0 %8198 }
 0x2b2   :  { %11616 = vmatprep.mubr.msk.f32.mxu1 %vm268_vm1, %v6983_v45  ;;  %3310 = vst [vmem:[#allocation2 + $0xb1] sm:$0xff] %v11796_v11  ;;  %v10969_v15 = vpop.f32.mrb[140].mxu0  ;;  %v2424_v45 = vld [vmem:[#allocation2 + $0xe1] sm:$0xff]  ;;  %v7001_v24 = vsel %vm6892_vm4, %v6998_v36, %v7000_v48 }
 0x2b3   :  { %v11799_v52 = vadd.f32 %v10969_v15, %v2421_v33  ;;  %v2835_v7 = vpop.f32.mrb[141].mxu0  ;;  %11129 = vmatmul.mubr.msk.f32.gmra.mrb[250].mxu0 %vm268_vm1, %v16307_v53  ;;  %v6994_v53 = vrot.slane %v16315_v62, 3  ;;  %v2426_v15 = vld [vmem:[#allocation2 + $0xf1] sm:$0xff] }
 0x2b4   :  { %v11802_v37 = vadd.f32 %v2835_v7, %v2420_v39  ;;  %11131 = vmatprep.mubr.msk.f32.mxu0 %vm268_vm1, %v16309_v4  ;;  %v2429_v39 = vld [vmem:[#allocation2 + $0x109] sm:$0xff] }
 0x2b5   :  { %11617 = vmatmul.mubr.msk.f32.gmra.mrb[86].mxu1 %vm268_vm1, %v6985_v34  ;;  %3313 = vst [vmem:[#allocation2 + $0xc9] sm:$0xff] %v11799_v52  ;;  %v6997_v38 = vsel %vm6892_vm4, %v6994_v53, %v6996_v54  ;;  %v6999_v34 = vsel %vm6892_vm4, %v6996_v54, %v6998_v36  ;;  %v7004_v52 = vrot.slane %v16325_v3, 3 }
 0x2b6   :  { %11619 = vmatprep.mubr.msk.f32.mxu1 %vm268_vm1, %v6987_v41  ;;  %3312 = vst [vmem:[#allocation2 + $0xc1] sm:$0xff] %v11802_v37  ;;  %v10972_v0 = vpop.f32.mrb[142].mxu0 }
 0x2b7   :  { %v11805_v63 = vadd.f32 %v10972_v0, %v2423_v1  ;;  %v2845_v13 = vpop.f32.mrb[143].mxu0  ;;  %11132 = vmatmul.mubr.msk.f32.gmra.mrb[252].mxu0 %vm268_vm1, %v16311_v30  ;;  %v6995_v30 = vsel %vm6892_vm4, %v6992_v5, %v6994_v53  ;;  %v2428_v5 = vld [vmem:[#allocation2 + $0x101] sm:$0xff]  ;;  %v15321_v0 = vpop.permute.xlu0 %8203  ;;  %v7008_v53 = vrot.slane %v16329_v6, 3 }
 0x2b8   :  { %v11808_v4 = vadd.f32 %v2845_v13, %v2422_v29  ;;  %11134 = vmatprep.mubr.msk.f32.mxu0 %vm268_vm1, %v16313_v28  ;;  %v7010_v13 = vrot.slane %v16331_v50, 3 }
 0x2b9   :  { %11620 = vmatmul.mubr.msk.f32.gmra.mrb[88].mxu1 %vm268_vm1, %v6989_v17  ;;  %3315 = vst [vmem:[#allocation2 + $0xd9] sm:$0xff] %v11805_v63  ;;  %v2431_v63 = vld [vmem:[#allocation2 + $0x119] sm:$0xff] }
 0x2ba   :  { %11622 = vmatprep.mubr.msk.f32.mxu1 %vm268_vm1, %v6991_v46  ;;  %3314 = vst [vmem:[#allocation2 + $0xd1] sm:$0xff] %v11808_v4  ;;  %v10975_v31 = vpop.f32.mrb[144].mxu0 }
 0x2bb   :  { %v11811_v40 = vadd.f32 %v10975_v31, %v2425_v32  ;;  %v2855_v60 = vpop.f32.mrb[145].mxu0  ;;  %11135 = vmatmul.mubr.msk.f32.gmra.mrb[254].mxu0 %vm268_vm1, %v16315_v62  ;;  %v7002_v62 = vrot.slane %v16323_v43, 3  ;;  %v7012_v31 = vrot.slane %v16333_v2, 3 }
 0x2bc   :  { %v11814_v28 = vadd.f32 %v2855_v60, %v2424_v45  ;;  %11137 = vmatprep.mubr.msk.f32.mxu0 %vm268_vm1, %v16317_v20  ;;  %v15338_v45 = vpop.permute.xlu0 %8208 }
 0x2bd   :  { %11623 = vmatmul.mubr.msk.f32.gmra.mrb[90].mxu1 %vm268_vm1, %v6993_v27  ;;  %3317 = vst [vmem:[#allocation2 + $0xe9] sm:$0xff] %v11811_v40  ;;  %v7003_v37 = vsel %vm6892_vm4, %v7000_v48, %v7002_v62  ;;  %v7005_v46 = vsel %vm6892_vm4, %v7002_v62, %v7004_v52  ;;  %v2430_v27 = vld [vmem:[#allocation2 + $0x111] sm:$0xff]  ;;  %v7011_v40 = vsel %vm6892_vm4, %v7008_v53, %v7010_v13 }
 0x2be   :  { %11625 = vmatprep.mubr.msk.f32.mxu1 %vm268_vm1, %v6995_v30  ;;  %3316 = vst [vmem:[#allocation2 + $0xe1] sm:$0xff] %v11814_v28  ;;  %v10978_v11 = vpop.f32.mrb[146].mxu0  ;;  %v2433_v30 = vld [vmem:[#allocation2 + $0x129] sm:$0xff]  ;;  %v2432_v28 = vld [vmem:[#allocation2 + $0x121] sm:$0xff]  ;;  %v7013_v48 = vsel %vm6892_vm4, %v7010_v13, %v7012_v31  ;;  %v2438_v13 = vld [vmem:[#allocation2 + $0x151] sm:$0xff] }
 0x2bf   :  { %v11817_v33 = vadd.f32 %v10978_v11, %v2427_v58  ;;  %v2865_v41 = vpop.f32.mrb[147].mxu0  ;;  %11138 = vmatmul.mubr.msk.f32.gmra.mrb[0].mxu0 %vm268_vm1, %v16319_v18  ;;  %v7006_v18 = vrot.slane %v16327_v8, 3  ;;  %v7016_v58 = vrot.slane %v16337_v10, 3  ;;  %v2435_v11 = vld [vmem:[#allocation2 + $0x139] sm:$0xff] }
 0x2c0   :  { %v11820_v20 = vadd.f32 %v2865_v41, %v2426_v15  ;;  %11140 = vmatprep.mubr.msk.f32.mxu0 %vm268_vm1, %v16321_v56  ;;  %v2434_v15 = vld [vmem:[#allocation2 + $0x131] sm:$0xff] }
 0x2c1   :  { %11626 = vmatmul.mubr.msk.f32.gmra.mrb[92].mxu1 %vm268_vm1, %v6997_v38  ;;  %3319 = vst [vmem:[#allocation2 + $0xf9] sm:$0xff] %v11817_v33  ;;  %v7009_v32 = vsel %vm6892_vm4, %v7006_v18, %v7008_v53 }
 0x2c2   :  { %11628 = vmatprep.mubr.msk.f32.mxu1 %vm268_vm1, %v6999_v34  ;;  %3318 = vst [vmem:[#allocation2 + $0xf1] sm:$0xff] %v11820_v20  ;;  %v10981_v7 = vpop.f32.mrb[148].mxu0  ;;  %v15355_v20 = vpop.permute.xlu0 %8213 }
 0x2c3   :  { %v11823_v17 = vadd.f32 %v10981_v7, %v2429_v39  ;;  %v2875_v1 = vpop.f32.mrb[149].mxu0  ;;  %11141 = vmatmul.mubr.msk.f32.gmra.mrb[2].mxu0 %vm268_vm1, %v16323_v43  ;;  %v7007_v43 = vsel %vm6892_vm4, %v7004_v52, %v7006_v18  ;;  %v7020_v52 = vrot.slane %v16341_v16, 3  ;;  %v2437_v39 = vld [vmem:[#allocation2 + $0x149] sm:$0xff] }
 0x2c4   :  { %v11826_v56 = vadd.f32 %v2875_v1, %v2428_v5  ;;  %11143 = vmatprep.mubr.msk.f32.mxu0 %vm268_vm1, %v16325_v3 }
 0x2c5   :  { %11629 = vmatmul.mubr.msk.f32.gmra.mrb[94].mxu1 %vm268_vm1, %v7001_v24  ;;  %3321 = vst [vmem:[#allocation2 + $0x109] sm:$0xff] %v11823_v17  ;;  %v2436_v17 = vld [vmem:[#allocation2 + $0x141] sm:$0xff] }
 0x2c6   :  { %11631 = vmatprep.mubr.msk.f32.mxu1 %vm268_vm1, %v7003_v37  ;;  %3320 = vst [vmem:[#allocation2 + $0x101] sm:$0xff] %v11826_v56  ;;  %v10984_v29 = vpop.f32.mrb[150].mxu0  ;;  %v7022_v37 = vrot.slane %v16343_v26, 3  ;;  %v7024_v56 = vrot.slane %v16345_v44, 3 }
 0x2c7   :  { %v11829_v4 = vadd.f32 %v10984_v29, %v2431_v63  ;;  %v2885_v54 = vpop.f32.mrb[151].mxu0  ;;  %11144 = vmatmul.mubr.msk.f32.gmra.mrb[4].mxu0 %vm268_vm1, %v16327_v8  ;;  %v7014_v8 = vrot.slane %v16335_v51, 3  ;;  %v15372_v29 = vpop.permute.xlu0 %8218 }
 0x2c8   :  { %v11832_v3 = vadd.f32 %v2885_v54, %v2430_v27  ;;  %11146 = vmatprep.mubr.msk.f32.mxu0 %vm268_vm1, %v16329_v6  ;;  %v7023_v63 = vsel %vm6892_vm4, %v7020_v52, %v7022_v37  ;;  %v7025_v27 = vsel %vm6892_vm4, %v7022_v37, %v7024_v56  ;;  %v7028_v54 = vrot.slane %v16349_v9, 3  ;;  %v16438_v37 = vld [vmem:[#allocation83_spill] sm:$0xff] }
 0x2c9   :  { %11632 = vmatmul.mubr.msk.f32.gmra.mrb[96].mxu1 %vm268_vm1, %v7005_v46  ;;  %3323 = vst [vmem:[#allocation2 + $0x119] sm:$0xff] %v11829_v4  ;;  %v7015_v62 = vsel %vm6892_vm4, %v7012_v31, %v7014_v8  ;;  %v7017_v24 = vsel %vm6892_vm4, %v7014_v8, %v7016_v58  ;;  %v2439_v46 = vld [vmem:[#allocation2 + $0x159] sm:$0xff] }
 0x2ca   :  { %11634 = vmatprep.mubr.msk.f32.mxu1 %vm268_vm1, %v7007_v43  ;;  %3322 = vst [vmem:[#allocation2 + $0x111] sm:$0xff] %v11832_v3  ;;  %v10987_v36 = vpop.f32.mrb[152].mxu0  ;;  %v2441_v3 = vld [vmem:[#allocation2 + $0x169] sm:$0xff] }
 0x2cb   :  { %v11835_v60 = vadd.f32 %v10987_v36, %v2433_v30  ;;  %v2895_v38 = vpop.f32.mrb[153].mxu0  ;;  %11147 = vmatmul.mubr.msk.f32.gmra.mrb[6].mxu0 %vm268_vm1, %v16331_v50  ;;  %v7018_v50 = vrot.slane %v16339_v55, 3  ;;  %v2440_v36 = vld [vmem:[#allocation2 + $0x161] sm:$0xff]  ;;  %v15389_v8 = vpop.permute.xlu0 %8223 }
 0x2cc   :  { %v11838_v6 = vadd.f32 %v2895_v38, %v2432_v28  ;;  %11149 = vmatprep.mubr.msk.f32.mxu0 %vm268_vm1, %v16333_v2  ;;  %v7032_v28 = vrot.slane %v16353_v25, 3  ;;  %v2443_v38 = vld [vmem:[#allocation2 + $0x179] sm:$0xff] }
 0x2cd   :  { %11635 = vmatmul.mubr.msk.f32.gmra.mrb[98].mxu1 %vm268_vm1, %v7009_v32  ;;  %3325 = vst [vmem:[#allocation2 + $0x129] sm:$0xff] %v11835_v60  ;;  %v7021_v1 = vsel %vm6892_vm4, %v7018_v50, %v7020_v52 }
 0x2ce   :  { %11637 = vmatprep.mubr.msk.f32.mxu1 %vm268_vm1, %v7011_v40  ;;  %3324 = vst [vmem:[#allocation2 + $0x121] sm:$0xff] %v11838_v6  ;;  %v10990_v34 = vpop.f32.mrb[154].mxu0 }
 0x2cf   :  { %v11841_v33 = vadd.f32 %v10990_v34, %v2435_v11  ;;  %v2905_v41 = vpop.f32.mrb[155].mxu0  ;;  %11150 = vmatmul.mubr.msk.f32.gmra.mrb[8].mxu0 %vm268_vm1, %v16335_v51  ;;  %v7019_v51 = vsel %vm6892_vm4, %v7016_v58, %v7018_v50  ;;  %v2442_v11 = vld [vmem:[#allocation2 + $0x171] sm:$0xff]  ;;  %v7036_v50 = vrot.slane %v16357_v61, 3 }
 0x2d0   :  { %v11844_v2 = vadd.f32 %v2905_v41, %v2434_v15  ;;  %11152 = vmatprep.mubr.msk.f32.mxu0 %vm268_vm1, %v16337_v10 }
 0x2d1   :  { %11638 = vmatmul.mubr.msk.f32.gmra.mrb[100].mxu1 %vm268_vm1, %v7013_v48  ;;  %3327 = vst [vmem:[#allocation2 + $0x139] sm:$0xff] %v11841_v33  ;;  %v7034_v48 = vrot.slane %v16355_v42, 3  ;;  %v2445_v33 = vld [vmem:[#allocation2 + $0x189] sm:$0xff] }
 0x2d2   :  { %11640 = vmatprep.mubr.msk.f32.mxu1 %vm268_vm1, %v7015_v62  ;;  %3326 = vst [vmem:[#allocation2 + $0x131] sm:$0xff] %v11844_v2  ;;  %v10993_v7 = vpop.f32.mrb[156].mxu0  ;;  %v16437_v2 = vld [vmem:[#allocation82_spill] sm:$0xff] }
 0x2d3   :  { %v11847_v18 = vadd.f32 %v10993_v7, %v2437_v39  ;;  %v2915_v5 = vpop.f32.mrb[157].mxu0  ;;  %11153 = vmatmul.mubr.msk.f32.gmra.mrb[10].mxu0 %vm268_vm1, %v16339_v55  ;;  %v7026_v55 = vrot.slane %v16347_v35, 3  ;;  %v7035_v41 = vsel %vm6892_vm4, %v7032_v28, %v7034_v48  ;;  %v2444_v39 = vld [vmem:[#allocation2 + $0x181] sm:$0xff] }
 0x2d4   :  { %v11850_v10 = vadd.f32 %v2915_v5, %v2436_v17  ;;  %11155 = vmatprep.mubr.msk.f32.mxu0 %vm268_vm1, %v16341_v16  ;;  %v2447_v17 = vld [vmem:[#allocation2 + $0x199] sm:$0xff] }
 0x2d5   :  { %11641 = vmatmul.mubr.msk.f32.gmra.mrb[102].mxu1 %vm268_vm1, %v7017_v24  ;;  %3329 = vst [vmem:[#allocation2 + $0x149] sm:$0xff] %v11847_v18  ;;  %v7027_v31 = vsel %vm6892_vm4, %v7024_v56, %v7026_v55  ;;  %v7029_v60 = vsel %vm6892_vm4, %v7026_v55, %v7028_v54  ;;  %v15406_v24 = vpop.permute.xlu0 %8228  ;;  %v7040_v18 = vrot.slane %v16438_v37, 3 }
 0x2d6   :  { %11643 = vmatprep.mubr.msk.f32.mxu1 %vm268_vm1, %v7019_v51  ;;  %3328 = vst [vmem:[#allocation2 + $0x141] sm:$0xff] %v11850_v10  ;;  %v10996_v53 = vpop.f32.mrb[158].mxu0  ;;  %v7037_v51 = vsel %vm6892_vm4, %v7034_v48, %v7036_v50 }
 0x2d7   :  { %v11853_v43 = vadd.f32 %v10996_v53, %v2439_v46  ;;  %v2925_v4 = vpop.f32.mrb[159].mxu0  ;;  %11156 = vmatmul.mubr.msk.f32.gmra.mrb[12].mxu0 %vm268_vm1, %v16343_v26  ;;  %v7030_v26 = vrot.slane %v16351_v19, 3  ;;  %v2446_v46 = vld [vmem:[#allocation2 + $0x191] sm:$0xff] }
 0x2d8   :  { %v11856_v16 = vadd.f32 %v2925_v4, %v2438_v13  ;;  %11158 = vmatprep.mubr.msk.f32.mxu0 %vm268_vm1, %v16345_v44  ;;  %v2449_v4 = vld [vmem:[#allocation2 + $0x1a9] sm:$0xff] }
 0x2d9   :  { %11644 = vmatmul.mubr.msk.f32.gmra.mrb[104].mxu1 %vm268_vm1, %v7021_v1  ;;  %3331 = vst [vmem:[#allocation2 + $0x159] sm:$0xff] %v11853_v43  ;;  %v7033_v62 = vsel %vm6892_vm4, %v7030_v26, %v7032_v28  ;;  %v16439_v1 = vld [vmem:[#allocation84_spill] sm:$0xff]  ;;  %v16440_v43 = vld [vmem:[#allocation85_spill] sm:$0xff] }
 0x2da   :  { %11646 = vmatprep.mubr.msk.f32.mxu1 %vm268_vm1, %v7023_v63  ;;  %3330 = vst [vmem:[#allocation2 + $0x151] sm:$0xff] %v11856_v16  ;;  %v10999_v32 = vpop.f32.mrb[160].mxu0  ;;  %v15423_v63 = vpop.permute.xlu0 %8233  ;;  %v7044_v13 = vrot.slane %v16440_v43, 3 }
 0x2db   :  { %v11859_v30 = vadd.f32 %v10999_v32, %v2441_v3  ;;  %v2935_v40 = vpop.f32.mrb[161].mxu0  ;;  %11159 = vmatmul.mubr.msk.f32.gmra.mrb[14].mxu0 %vm268_vm1, %v16347_v35  ;;  %v7031_v35 = vsel %vm6892_vm4, %v7028_v54, %v7030_v26  ;;  %v16441_v54 = vld [vmem:[#allocation86_spill] sm:$0xff] }
 0x2dc   :  { %v11862_v44 = vadd.f32 %v2935_v40, %v2440_v36  ;;  %11161 = vmatprep.mubr.msk.f32.mxu0 %vm268_vm1, %v16349_v9  ;;  %v7046_v3 = vrot.slane %v16441_v54, 3  ;;  %v16442_v40 = vld [vmem:[#allocation161_spill] sm:$0xff] }
 0x2dd   :  { %11647 = vmatmul.mubr.msk.f32.gmra.mrb[106].mxu1 %vm268_vm1, %v7025_v27  ;;  %3333 = vst [vmem:[#allocation2 + $0x169] sm:$0xff] %v11859_v30 }
 0x2de   :  { %11649 = vmatprep.mubr.msk.f32.mxu1 %vm268_vm1, %v7027_v31  ;;  %3332 = vst [vmem:[#allocation2 + $0x161] sm:$0xff] %v11862_v44  ;;  %v11002_v6 = vpop.f32.mrb[162].mxu0  ;;  %v2448_v31 = vld [vmem:[#allocation2 + $0x1a1] sm:$0xff]  ;;  %v7048_v44 = vrot.slane %v16442_v40, 3 }
 0x2df   :  { %v11865_v58 = vadd.f32 %v11002_v6, %v2443_v38  ;;  %v2945_v34 = vpop.f32.mrb[163].mxu0  ;;  %11162 = vmatmul.mubr.msk.f32.gmra.mrb[16].mxu0 %vm268_vm1, %v16351_v19  ;;  %v7038_v19 = vrot.slane %v16437_v2, 3  ;;  %v7047_v38 = vsel %vm6892_vm4, %v7044_v13, %v7046_v3  ;;  %v15439_v6 = vpop.permute.xlu0 %8238 }
 0x2e0   :  { %v11868_v9 = vadd.f32 %v2945_v34, %v2442_v11  ;;  %11164 = vmatprep.mubr.msk.f32.mxu0 %vm268_vm1, %v16353_v25  ;;  %v2450_v11 = vld [vmem:[#allocation2 + $0x1b1] sm:$0xff] }
 0x2e1   :  { %11650 = vmatmul.mubr.msk.f32.gmra.mrb[108].mxu1 %vm268_vm1, %v7029_v60  ;;  %3335 = vst [vmem:[#allocation2 + $0x179] sm:$0xff] %v11865_v58  ;;  %v7039_v10 = vsel %vm6892_vm4, %v7036_v50, %v7038_v19  ;;  %v7041_v55 = vsel %vm6892_vm4, %v7038_v19, %v7040_v18  ;;  %v2451_v60 = vld [vmem:[#allocation2 + $0x1b9] sm:$0xff]  ;;  %v16033_v50 = vmov 0.0|0.0  }
 0x2e2   :  { %11652 = vmatprep.mubr.msk.f32.mxu1 %vm268_vm1, %v7031_v35  ;;  %3334 = vst [vmem:[#allocation2 + $0x171] sm:$0xff] %v11868_v9  ;;  %v11005_v15 = vpop.f32.mrb[164].mxu0  ;;  %v16443_v35 = vld [vmem:[#allocation163_spill] sm:$0xff]  ;;  %11705 = vmatprep.subr.bf16.mxu0 %v16033_v50 }
 0x2e3   :  { %v11871_v52 = vadd.f32 %v11005_v15, %v2445_v33  ;;  %v2955_v7 = vpop.f32.mrb[165].mxu0  ;;  %11165 = vmatmul.mubr.msk.f32.gmra.mrb[18].mxu0 %vm268_vm1, %v16355_v42  ;;  %v7042_v42 = vrot.slane %v16439_v1, 3  ;;  %v7050_v48 = vrot.slane %v16443_v35, 3  ;;  %v15450_v33 = vpop.permute.xlu1 %8373  ;;  %v2453_v15 = vld [vmem:[#allocation2 + $0x1c9] sm:$0xff] }
 0x2e4   :  { %v11874_v25 = vadd.f32 %v2955_v7, %v2444_v39  ;;  %11167 = vmatprep.mubr.msk.f32.mxu0 %vm268_vm1, %v16357_v61  ;;  %v8750_v7 = vld [vmem:[%s15739_s3] sm:$0xff] }
 0x2e5   :  { %11653 = vmatmul.mubr.msk.f32.gmra.mrb[110].mxu1 %vm268_vm1, %v7033_v62  ;;  %3337 = vst [vmem:[#allocation2 + $0x189] sm:$0xff] %v11871_v52  ;;  %v7043_v27 = vsel %vm6892_vm4, %v7040_v18, %v7042_v42  ;;  %v7045_v36 = vsel %vm6892_vm4, %v7042_v42, %v7044_v13  ;;  %v7049_v62 = vsel %vm6892_vm4, %v7046_v3, %v7048_v44  ;;  %v2452_v52 = vld [vmem:[#allocation2 + $0x1c1] sm:$0xff] }
 0x2e6   :  { %11655 = vmatprep.mubr.msk.f32.mxu1 %vm268_vm1, %v7035_v41  ;;  %3336 = vst [vmem:[#allocation2 + $0x181] sm:$0xff] %v11874_v25  ;;  %v11008_v5 = vpop.f32.mrb[166].mxu0  ;;  %v8751_v25 = vld [vmem:[%s15739_s3 + $0x8] sm:$0xff] }
 0x2e7   :  { %v11877_v56 = vadd.f32 %v11008_v5, %v2447_v17  ;;  %v2965_v53 = vpop.f32.mrb[167].mxu0  ;;  %11168 = vmatmul.mubr.msk.f32.gmra.mrb[20].mxu0 %vm268_vm1, %v16437_v2  ;;  %v7051_v2 = vsel %vm6892_vm4, %v7048_v44, %v7050_v48  ;;  %v11706_v18 = vpack.c.bf16 %v8751_v25, %v8750_v7  ;;  %v2455_v17 = vld [vmem:[#allocation2 + $0x1d9] sm:$0xff]  ;;  %v2456_v13 = vld [vmem:[#allocation2 + $0x1e1] sm:$0xff]  ;;  %v2465_v7 = vld [vmem:[#allocation2 + $0x229] sm:$0xff] }
 0x2e8   :  { %v11880_v61 = vadd.f32 %v2965_v53, %v2446_v46  ;;  %11170 = vmatprep.mubr.msk.f32.mxu0 %vm268_vm1, %v16438_v37  ;;  %v15462_v37 = vpop.permute.xlu0 %8243  ;;  %v2457_v53 = vld [vmem:[#allocation2 + $0x1e9] sm:$0xff] }
 0x2e9   :  { %11656 = vmatmul.mubr.msk.f32.gmra.mrb[112].mxu1 %vm268_vm1, %v7037_v51  ;;  %3339 = vst [vmem:[#allocation2 + $0x199] sm:$0xff] %v11877_v56  ;;  %11707 = vmatpush3.bf16.msra.mxu0 %v11706_v18  ;;  %v15466_v56 = vpop.permute.xlu1 %8378  ;;  %v2464_v18 = vld [vmem:[#allocation2 + $0x221] sm:$0xff] }
 0x2ea   :  { %11658 = vmatprep.mubr.msk.f32.mxu1 %vm268_vm1, %v7039_v10  ;;  %3338 = vst [vmem:[#allocation2 + $0x191] sm:$0xff] %v11880_v61  ;;  %v11011_v16 = vpop.f32.mrb[168].mxu0  ;;  %11708 = vmatprep.subr.bf16.mxu0 %v16033_v50 }
 0x2eb   :  { %v11883_v32 = vadd.f32 %v11011_v16, %v2449_v4  ;;  %v2975_v26 = vpop.f32.mrb[169].mxu0  ;;  %11171 = vmatmul.mubr.msk.f32.gmra.mrb[22].mxu0 %vm268_vm1, %v16439_v1  ;;  %v2454_v1 = vld [vmem:[#allocation2 + $0x1d1] sm:$0xff] }
 0x2ec   :  { %v11886_v30 = vadd.f32 %v2975_v26, %v2448_v31  ;;  %11173 = vmatprep.mubr.msk.f32.mxu0 %vm268_vm1, %v16440_v43  ;;  %v2458_v31 = vld [vmem:[#allocation2 + $0x1f1] sm:$0xff] }
 0x2ed   :  { %11659 = vmatmul.mubr.msk.f32.gmra.mrb[114].mxu1 %vm268_vm1, %v7041_v55  ;;  %3341 = vst [vmem:[#allocation2 + $0x1a9] sm:$0xff] %v11883_v32  ;;  %v15469_v55 = vpop.permute.xlu0 %8248 }
 0x2ee   :  { %11661 = vmatprep.mubr.msk.f32.mxu1 %vm268_vm1, %v7043_v27  ;;  %3340 = vst [vmem:[#allocation2 + $0x1a1] sm:$0xff] %v11886_v30  ;;  %v11014_v28 = vpop.f32.mrb[170].mxu0  ;;  %v15471_v27 = vpop.permute.xlu1 %8383 }
 0x2ef   :  { %v11889_v58 = vadd.f32 %v11014_v28, %v2451_v60  ;;  %v2985_v34 = vpop.f32.mrb[171].mxu0  ;;  %11174 = vmatmul.mubr.msk.f32.gmra.mrb[24].mxu0 %vm268_vm1, %v16441_v54  ;;  %v2459_v54 = vld [vmem:[#allocation2 + $0x1f9] sm:$0xff]  ;;  %v2460_v28 = vld [vmem:[#allocation2 + $0x201] sm:$0xff] }
 0x2f0   :  { %v11892_v9 = vadd.f32 %v2985_v34, %v2450_v11  ;;  %11176 = vmatprep.mubr.msk.f32.mxu0 %vm268_vm1, %v16442_v40  ;;  %v2461_v40 = vld [vmem:[#allocation2 + $0x209] sm:$0xff] }
 0x2f1   :  { %11662 = vmatmul.mubr.msk.f32.gmra.mrb[116].mxu1 %vm268_vm1, %v7045_v36  ;;  %3343 = vst [vmem:[#allocation2 + $0x1b9] sm:$0xff] %v11889_v58  ;;  %v15473_v36 = vpop.permute.xlu0 %8253  ;;  %v8752_v58 = vld [vmem:[%s15739_s3 + $0x10] sm:$0xff]  ;;  %v8753_v11 = vld [vmem:[%s15739_s3 + $0x18] sm:$0xff] }
 0x2f2   :  { %11664 = vmatprep.mubr.msk.f32.mxu1 %vm268_vm1, %v7047_v38  ;;  %3342 = vst [vmem:[#allocation2 + $0x1b1] sm:$0xff] %v11892_v9  ;;  %v11017_v41 = vpop.f32.mrb[172].mxu0  ;;  %v11709_v34 = vpack.c.bf16 %v8753_v11, %v8752_v58  ;;  %v2473_v11 = vld [vmem:[#allocation2 + $0x269] sm:$0xff] }
 0x2f3   :  { %v11895_v19 = vadd.f32 %v11017_v41, %v2453_v15  ;;  %v2995_v39 = vpop.f32.mrb[173].mxu0  ;;  %11177 = vmatmul.mubr.msk.f32.gmra.mrb[26].mxu0 %vm268_vm1, %v16443_v35  ;;  %v15475_v35 = vpop.permute.xlu1 %8388 }
 0x2f4   :  { %v11898_v51 = vadd.f32 %v2995_v39, %v2452_v52  ;;  %11710 = vmatpush3.bf16.msra.mxu0 %v11709_v34 }
 0x2f5   :  { %11665 = vmatmul.mubr.msk.f32.gmra.mrb[118].mxu1 %vm268_vm1, %v7049_v62  ;;  %3345 = vst [vmem:[#allocation2 + $0x1c9] sm:$0xff] %v11895_v19  ;;  %v15483_v9 = vpop.permute.xlu0 %8258  ;;  %v2463_v62 = vld [vmem:[#allocation2 + $0x219] sm:$0xff]  ;;  %11711 = vmatprep.subr.bf16.mxu0 %v16033_v50 }
 0x2f6   :  { %11667 = vmatprep.mubr.msk.f32.mxu1 %vm268_vm1, %v7051_v2  ;;  %3344 = vst [vmem:[#allocation2 + $0x1c1] sm:$0xff] %v11898_v51  ;;  %v11020_v5 = vpop.f32.mrb[174].mxu0  ;;  %v2462_v2 = vld [vmem:[#allocation2 + $0x211] sm:$0xff] }
 0x2f7   :  { %v11901_v10 = vadd.f32 %v11020_v5, %v2455_v17  ;;  %v3005_v42 = vpop.f32.mrb[175].mxu0  ;;  %v15486_v39 = vpop.permute.xlu1 %8393 }
 0x2f8   :  { %v11904_v46 = vadd.f32 %v3005_v42, %v2454_v1  ;;  %v2467_v1 = vld [vmem:[#allocation2 + $0x239] sm:$0xff] }
 0x2f9   :  { %11668 = vmatmul.mubr.msk.f32.gmra.mrb[128].mxu1 %vm268_vm1, %v7050_v48  ;;  %3347 = vst [vmem:[#allocation2 + $0x1d9] sm:$0xff] %v11901_v10  ;;  %v15488_v5 = vpop.permute.xlu0 %8263 }
 0x2fa   :  { %3346 = vst [vmem:[#allocation2 + $0x1d1] sm:$0xff] %v11904_v46  ;;  %v11023_v61 = vpop.f32.mrb[176].mxu0 }
 0x2fb   :  { %v11907_v43 = vadd.f32 %v11023_v61, %v2457_v53  ;;  %v3015_v4 = vpop.f32.mrb[177].mxu0  ;;  %v2466_v53 = vld [vmem:[#allocation2 + $0x231] sm:$0xff] }
 0x2fc   :  { %v11910_v16 = vadd.f32 %v3015_v4, %v2456_v13 }
 0x2fd   :  { %3349 = vst [vmem:[#allocation2 + $0x1e9] sm:$0xff] %v11907_v43  ;;  %v15490_v43 = vpop.permute.xlu1 %8398  ;;  %v15492_v4 = vpop.permute.xlu0 %8268 }
 0x2fe   :  { %3348 = vst [vmem:[#allocation2 + $0x1e1] sm:$0xff] %v11910_v16  ;;  %v11026_v3 = vpop.f32.mrb[178].mxu0  ;;  %v2469_v16 = vld [vmem:[#allocation2 + $0x249] sm:$0xff] }
 0x2ff   :  { %v11913_v32 = vadd.f32 %v11026_v3, %v2459_v54  ;;  %v3025_v26 = vpop.f32.mrb[179].mxu0 }
 0x300   :  { %v11916_v30 = vadd.f32 %v3025_v26, %v2458_v31 }
 0x301   :  { %3351 = vst [vmem:[#allocation2 + $0x1f9] sm:$0xff] %v11913_v32  ;;  %v2468_v32 = vld [vmem:[#allocation2 + $0x241] sm:$0xff] }
 0x302   :  { %3350 = vst [vmem:[#allocation2 + $0x1f1] sm:$0xff] %v11916_v30  ;;  %v11029_v44 = vpop.f32.mrb[180].mxu0  ;;  %v15494_v30 = vpop.permute.xlu1 %8403 }
 0x303   :  { %v11919_v60 = vadd.f32 %v11029_v44, %v2461_v40  ;;  %v3035_v38 = vpop.f32.mrb[181].mxu0  ;;  %v2471_v40 = vld [vmem:[#allocation2 + $0x259] sm:$0xff] }
 0x304   :  { %v11922_v48 = vadd.f32 %v3035_v38, %v2460_v28  ;;  %v2470_v28 = vld [vmem:[#allocation2 + $0x251] sm:$0xff] }
 0x305   :  { %3353 = vst [vmem:[#allocation2 + $0x209] sm:$0xff] %v11919_v60 }
 0x306   :  { %3352 = vst [vmem:[#allocation2 + $0x201] sm:$0xff] %v11922_v48  ;;  %v11032_v15 = vpop.f32.mrb[182].mxu0  ;;  %v15496_v48 = vpop.permute.xlu0 %8273 }
 0x307   :  { %v11925_v41 = vadd.f32 %v11032_v15, %v2463_v62  ;;  %v3045_v19 = vpop.f32.mrb[183].mxu0  ;;  %v2472_v15 = vld [vmem:[#allocation2 + $0x261] sm:$0xff] }
 0x308   :  { %v11928_v52 = vadd.f32 %v3045_v19, %v2462_v2  ;;  %v8754_v2 = vld [vmem:[%s15739_s3 + $0x20] sm:$0xff]  ;;  %v8755_v19 = vld [vmem:[%s15739_s3 + $0x28] sm:$0xff] }
 0x309   :  { %3355 = vst [vmem:[#allocation2 + $0x219] sm:$0xff] %v11925_v41 }
 0x30a   :  { %3354 = vst [vmem:[#allocation2 + $0x211] sm:$0xff] %v11928_v52  ;;  %v11035_v25 = vpop.f32.mrb[184].mxu0  ;;  %v15504_v52 = vpop.permute.xlu1 %8408 }
 0x30b   :  { %v11931_v51 = vadd.f32 %v11035_v25, %v2465_v7  ;;  %v3055_v17 = vpop.f32.mrb[185].mxu0  ;;  %v11712_v25 = vpack.c.bf16 %v8755_v19, %v8754_v2 }
 0x30c   :  { %v11934_v10 = vadd.f32 %v3055_v17, %v2464_v18  ;;  %v2475_v18 = vld [vmem:[#allocation2 + $0x279] sm:$0xff] }
 0x30d   :  { %3357 = vst [vmem:[#allocation2 + $0x229] sm:$0xff] %v11931_v51  ;;  %v15506_v51 = vpop.permute.xlu0 %8278  ;;  %11713 = vmatpush3.bf16.msra.mxu0 %v11712_v25 }
 0x30e   :  { %3356 = vst [vmem:[#allocation2 + $0x221] sm:$0xff] %v11934_v10  ;;  %v11038_v42 = vpop.f32.mrb[186].mxu0  ;;  %11714 = vmatprep.subr.bf16.mxu0 %v16033_v50 }
 0x30f   :  { %v11937_v46 = vadd.f32 %v11038_v42, %v2467_v1  ;;  %v3065_v61 = vpop.f32.mrb[187].mxu0  ;;  %v2474_v1 = vld [vmem:[#allocation2 + $0x271] sm:$0xff] }
 0x310   :  { %v11940_v13 = vadd.f32 %v3065_v61, %v2466_v53  ;;  %v15509_v53 = vpop.permute.xlu1 %8413 }
 0x311   :  { %3359 = vst [vmem:[#allocation2 + $0x239] sm:$0xff] %v11937_v46 }
 0x312   :  { %3358 = vst [vmem:[#allocation2 + $0x231] sm:$0xff] %v11940_v13  ;;  %v11041_v54 = vpop.f32.mrb[188].mxu0  ;;  %v3205_v13 = vld [vmem:[#allocation2 + $0x289] sm:$0x7f] }
 0x313   :  { %v11943_v3 = vadd.f32 %v11041_v54, %v2469_v16  ;;  %v3075_v31 = vpop.f32.mrb[189].mxu0 }
 0x314   :  { %v11946_v26 = vadd.f32 %v3075_v31, %v2468_v32  ;;  %v15511_v32 = vpop.permute.xlu0 %8283 }
 0x315   :  { %3361 = vst [vmem:[#allocation2 + $0x249] sm:$0xff] %v11943_v3  ;;  %v3204_v3 = vld [vmem:[#allocation2 + $0x281] sm:$0xff] }
 0x316   :  { %3360 = vst [vmem:[#allocation2 + $0x241] sm:$0xff] %v11946_v26  ;;  %v11044_v44 = vpop.f32.mrb[190].mxu0 }
 0x317   :  { %v11949_v60 = vadd.f32 %v11044_v44, %v2471_v40  ;;  %v3085_v38 = vpop.f32.mrb[191].mxu0  ;;  %v15513_v44 = vpop.permute.xlu1 %8418 }
 0x318   :  { %v11952_v58 = vadd.f32 %v3085_v38, %v2470_v28 }
 0x319   :  { %3363 = vst [vmem:[#allocation2 + $0x259] sm:$0xff] %v11949_v60  ;;  %v15515_v60 = vpop.permute.xlu0 %8288 }
 0x31a   :  { %3362 = vst [vmem:[#allocation2 + $0x251] sm:$0xff] %v11952_v58  ;;  %v11047_v34 = vpop.f32.mrb[192].mxu0 }
 0x31b   :  { %v11955_v62 = vadd.f32 %v11047_v34, %v2473_v11  ;;  %v3095_v41 = vpop.f32.mrb[193].mxu0  ;;  %v3851_v34 = vld [vmem:[#allocation2 + $0x8] sm:$0xff] }
 0x31c   :  { %v11958_v7 = vadd.f32 %v3095_v41, %v2472_v15  ;;  %v3850_v41 = vld [vmem:[#allocation2] sm:$0xff] }
 0x31d   :  { %3365 = vst [vmem:[#allocation2 + $0x269] sm:$0xff] %v11955_v62  ;;  %v15521_v62 = vpop.permute.xlu1 %8423 }
 0x31e   :  { %3364 = vst [vmem:[#allocation2 + $0x261] sm:$0xff] %v11958_v7  ;;  %v11050_v17 = vpop.f32.mrb[194].mxu0 }
 0x31f   :  { %v11961_v10 = vadd.f32 %v11050_v17, %v2475_v18  ;;  %v3105_v42 = vpop.f32.mrb[195].mxu0  ;;  %v8756_v18 = vld [vmem:[%s15739_s3 + $0x30] sm:$0xff]  ;;  %v8757_v17 = vld [vmem:[%s15739_s3 + $0x38] sm:$0xff] }
 0x320   :  { %v11964_v46 = vadd.f32 %v3105_v42, %v2474_v1 }
 0x321   :  { %3367 = vst [vmem:[#allocation2 + $0x279] sm:$0xff] %v11961_v10  ;;  %v15529_v10 = vpop.permute.xlu0 %8293 }
 0x322   :  { %3366 = vst [vmem:[#allocation2 + $0x271] sm:$0xff] %v11964_v46  ;;  %v11053_v61 = vpop.f32.mrb[200].mxu0  ;;  %v11715_v46 = vpack.c.bf16 %v8757_v17, %v8756_v18 }
 0x323   :  { %v3287_v16 = vadd.f32 %v11053_v61, %v3205_v13  ;;  %v3115_v54 = vpop.f32.mrb[201].mxu0  ;;  %v3853_v61 = vld [vmem:[#allocation2 + $0x18] sm:$0xff] }
 0x324   :  { %v3286_v31 = vadd.f32 %v3204_v3, %v3115_v54  ;;  %v3852_v54 = vld [vmem:[#allocation2 + $0x10] sm:$0xff]  ;;  %11716 = vmatpush3.bf16.msra.mxu0 %v11715_v46 }
 0x325   :  { %3369 = vst [vmem:[#allocation2 + $0x289] sm:$0x7f] %v3287_v16  ;;  %11717 = vmatprep.subr.bf16.mxu0 %v16033_v50 }
 0x326   :  { %3368 = vst [vmem:[#allocation2 + $0x281] sm:$0xff] %v3286_v31  ;;  %v11058_v26 = vpop.f32.mrb[202].mxu0 }
 0x327   :  { %v3441_v40 = vpop.f32.mrb[203].mxu0  ;;  %v3933_v15 = vadd.f32 %v11058_v26, %v3851_v34 }
 0x328   :  { %v3932_v19 = vadd.f32 %v3850_v41, %v3441_v40 }
 0x32a   :  { %v11061_v28 = vpop.f32.mrb[204].mxu0 }
 0x32b   :  { %v3451_v38 = vpop.f32.mrb[205].mxu0  ;;  %v3935_v16 = vadd.f32 %v11061_v28, %v3853_v61 }
 0x32c   :  { %v15517_v58 = vpop.f32.mrb[126].mxu1  ;;  %v3934_v26 = vadd.f32 %v3852_v54, %v3451_v38  ;;  %v3854_v38 = vld [vmem:[#allocation2 + $0x20] sm:$0xff] }
 0x32d   :  { %16444 = vst [vmem:[#allocation93_spill] sm:$0xff] %v15517_v58  ;;  %v15519_v11 = vpop.f32.mrb[127].mxu1  ;;  %v15532_v58 = vpop.permute.xlu1 %8428 }
 0x32e   :  { %16445 = vst [vmem:[#allocation94_spill] sm:$0xff] %v15519_v11  ;;  %v11064_v2 = vpop.f32.mrb[206].mxu0 }
 0x32f   :  { %v3461_v25 = vpop.f32.mrb[207].mxu0 }
 0x330   :  { %v11552_v7 = vpop.f32.mrb[42].mxu1  ;;  %v3936_v61 = vadd.f32 %v3854_v38, %v3461_v25 }
 0x331   :  { %v11968_v1 = vadd.f32 %v11552_v7, %v3933_v15  ;;  %v7281_v42 = vpop.f32.mrb[43].mxu1 }
 0x332   :  { %v11972_v13 = vadd.f32 %v7281_v42, %v3932_v19  ;;  %v11067_v31 = vpop.f32.mrb[208].mxu0  ;;  %v3855_v19 = vld [vmem:[#allocation2 + $0x28] sm:$0xff] }
 0x333   :  { %7841 = vst [vmem:[#allocation2 + $0x8] sm:$0xff] %v11968_v1  ;;  %v8003_v3 = vmax.f32 %v11968_v1, 0.0  ;;  %v3471_v41 = vpop.f32.mrb[209].mxu0  ;;  %v15536_v1 = vpop.permute.xlu0 %8298  ;;  %v3937_v42 = vadd.f32 %v11064_v2, %v3855_v19 }
 0x334   :  { %7840 = vst [vmem:[#allocation2] sm:$0xff] %v11972_v13  ;;  %v8002_v40 = vmax.f32 %v11972_v13, 0.0  ;;  %v11555_v34 = vpop.f32.mrb[44].mxu1 }
 0x335   :  { %v8577_v15 = vmul.f32 %v15219_v12, %v8003_v3  ;;  %v11976_v7 = vadd.f32 %v11555_v34, %v3935_v16  ;;  %v7291_v18 = vpop.f32.mrb[45].mxu1  ;;  %v3857_v3 = vld [vmem:[#allocation2 + $0x38] sm:$0xff]  ;;  %v3856_v34 = vld [vmem:[#allocation2 + $0x30] sm:$0xff] }
 0x336   :  { %v8576_v28 = vmul.f32 %v15202_v23, %v8002_v40  ;;  %v11980_v17 = vadd.f32 %v7291_v18, %v3934_v26  ;;  %v11070_v46 = vpop.f32.mrb[210].mxu0  ;;  %v15539_v40 = vpop.permute.xlu1 %8433  ;;  %v3939_v2 = vadd.f32 %v11067_v31, %v3857_v3  ;;  %v3938_v18 = vadd.f32 %v3856_v34, %v3471_v41 }
 0x337   :  { %7843 = vst [vmem:[#allocation2 + $0x18] sm:$0xff] %v11976_v7  ;;  %v8005_v54 = vmax.f32 %v11976_v7, 0.0  ;;  %v3481_v11 = vpop.f32.mrb[211].mxu0 }
 0x338   :  { %v8658_v13 = vadd.f32 %v8577_v15, %v8576_v28  ;;  %7842 = vst [vmem:[#allocation2 + $0x10] sm:$0xff] %v11980_v17  ;;  %v8004_v50 = vmax.f32 %v11980_v17, 0.0  ;;  %v11558_v57 = vpop.f32.mrb[46].mxu1 }
 0x339   :  { %v11984_v12 = vadd.f32 %v11558_v57, %v3937_v42  ;;  %v7301_v16 = vpop.f32.mrb[47].mxu1  ;;  %v8579_v25 = vmul.f32 %v15253_v59, %v8005_v54  ;;  %v15542_v42 = vpop.permute.xlu0 %8303 }
 0x33a   :  { %v8578_v23 = vmul.f32 %v15236_v21, %v8004_v50  ;;  %v11988_v26 = vadd.f32 %v7301_v16, %v3936_v61  ;;  %v11073_v19 = vpop.f32.mrb[212].mxu0  ;;  %v3859_v21 = vld [vmem:[#allocation2 + $0x48] sm:$0xff]  ;;  %v3858_v16 = vld [vmem:[#allocation2 + $0x40] sm:$0xff] }
 0x33b   :  { %7845 = vst [vmem:[#allocation2 + $0x28] sm:$0xff] %v11984_v12  ;;  %v8007_v7 = vmax.f32 %v11984_v12, 0.0  ;;  %v3491_v57 = vpop.f32.mrb[213].mxu0  ;;  %v3941_v41 = vadd.f32 %v11070_v46, %v3859_v21  ;;  %v3940_v54 = vadd.f32 %v3858_v16, %v3481_v11  ;;  %v3860_v11 = vld [vmem:[#allocation2 + $0x50] sm:$0xff] }
 0x33c   :  { %v8659_v15 = vadd.f32 %v8658_v13, %v8578_v23  ;;  %7844 = vst [vmem:[#allocation2 + $0x20] sm:$0xff] %v11988_v26  ;;  %v8006_v28 = vmax.f32 %v11988_v26, 0.0  ;;  %v11561_v17 = vpop.f32.mrb[48].mxu1 }
 0x33d   :  { %v11992_v38 = vadd.f32 %v11561_v17, %v3939_v2  ;;  %v7311_v47 = vpop.f32.mrb[49].mxu1  ;;  %v8581_v13 = vmul.f32 %v15287_v14, %v8007_v7  ;;  %v15546_v2 = vpop.permute.xlu1 %8438 }
 0x33e   :  { %v8580_v50 = vmul.f32 %v15270_v49, %v8006_v28  ;;  %v8660_v61 = vadd.f32 %v8659_v15, %v8579_v25  ;;  %v11996_v31 = vadd.f32 %v7311_v47, %v3938_v18  ;;  %v11076_v59 = vpop.f32.mrb[214].mxu0  ;;  %v3861_v47 = vld [vmem:[#allocation2 + $0x58] sm:$0xff]  ;;  %v15550_v28 = vpop.permute.xlu0 %8308 }
 0x33f   :  { %7847 = vst [vmem:[#allocation2 + $0x38] sm:$0xff] %v11992_v38  ;;  %v8009_v3 = vmax.f32 %v11992_v38, 0.0  ;;  %v3501_v26 = vpop.f32.mrb[215].mxu0  ;;  %v3943_v14 = vadd.f32 %v11073_v19, %v3861_v47  ;;  %v3942_v38 = vadd.f32 %v3860_v11, %v3491_v57 }
 0x340   :  { %v8661_v12 = vadd.f32 %v8660_v61, %v8580_v50  ;;  %7846 = vst [vmem:[#allocation2 + $0x30] sm:$0xff] %v11996_v31  ;;  %v8008_v34 = vmax.f32 %v11996_v31, 0.0  ;;  %v11564_v23 = vpop.f32.mrb[50].mxu1 }
 0x341   :  { %v8583_v17 = vmul.f32 %v15321_v0, %v8009_v3  ;;  %v12000_v49 = vadd.f32 %v11564_v23, %v3941_v41  ;;  %v7321_v25 = vpop.f32.mrb[51].mxu1  ;;  %v8758_v41 = vld [vmem:[%s15739_s3 + $0x40] sm:$0xff]  ;;  %v15559_v23 = vpop.permute.xlu1 %8443 }
 0x342   :  { %v8582_v46 = vmul.f32 %v15304_v22, %v8008_v34  ;;  %v8662_v18 = vadd.f32 %v8661_v12, %v8581_v13  ;;  %v12004_v15 = vadd.f32 %v7321_v25, %v3940_v54  ;;  %v11079_v7 = vpop.f32.mrb[216].mxu0  ;;  %v8759_v22 = vld [vmem:[%s15739_s3 + $0x48] sm:$0xff]  ;;  %v3863_v13 = vld [vmem:[#allocation2 + $0x68] sm:$0xff]  ;;  %16446 = vst [vmem:[#allocation95_spill] sm:$0xff] %v15559_v23 }
 0x343   :  { %7849 = vst [vmem:[#allocation2 + $0x48] sm:$0xff] %v12000_v49  ;;  %v8011_v50 = vmax.f32 %v12000_v49, 0.0  ;;  %v3511_v0 = vpop.f32.mrb[217].mxu0  ;;  %v11718_v3 = vpack.c.bf16 %v8759_v22, %v8758_v41  ;;  %v3862_v54 = vld [vmem:[#allocation2 + $0x60] sm:$0xff]  ;;  %v3945_v49 = vadd.f32 %v11076_v59, %v3863_v13  ;;  %v16447_v41 = vmov 0.0|0.0   ;;  %v3864_v59 = vld [vmem:[#allocation2 + $0x70] sm:$0xff] }
 0x344   :  { %v8663_v21 = vadd.f32 %v8662_v18, %v8582_v46  ;;  %7848 = vst [vmem:[#allocation2 + $0x40] sm:$0xff] %v12004_v15  ;;  %v8010_v61 = vmax.f32 %v12004_v15, 0.0  ;;  %v11567_v31 = vpop.f32.mrb[52].mxu1  ;;  %v3944_v25 = vadd.f32 %v3862_v54, %v3501_v26  ;;  %v3867_v23 = vld [vmem:[#allocation2 + $0x88] sm:$0xff] }
 0x345   :  { %v12008_v16 = vadd.f32 %v11567_v31, %v3943_v14  ;;  %v7331_v19 = vpop.f32.mrb[53].mxu1  ;;  %11719 = vmatpush3.bf16.msra.mxu0 %v11718_v3  ;;  %v8585_v46 = vmul.f32 %v15355_v20, %v8011_v50  ;;  %v3946_v20 = vadd.f32 %v3864_v59, %v3511_v0 }
 0x346   :  { %v8584_v57 = vmul.f32 %v15338_v45, %v8010_v61  ;;  %v8664_v12 = vadd.f32 %v8663_v21, %v8583_v17  ;;  %v12012_v34 = vadd.f32 %v7331_v19, %v3942_v38  ;;  %v11082_v47 = vpop.f32.mrb[218].mxu0  ;;  %11720 = vmatprep.subr.bf16.mxu0 %v16447_v41  ;;  %v15563_v45 = vpop.permute.xlu0 %8313  ;;  %v3865_v21 = vld [vmem:[#allocation2 + $0x78] sm:$0xff] }
 0x347   :  { %7851 = vst [vmem:[#allocation2 + $0x58] sm:$0xff] %v12008_v16  ;;  %v8013_v15 = vmax.f32 %v12008_v16, 0.0  ;;  %v3521_v31 = vpop.f32.mrb[219].mxu0  ;;  %v3947_v19 = vadd.f32 %v11079_v7, %v3865_v21 }
 0x348   :  { %v8665_v18 = vadd.f32 %v8664_v12, %v8584_v57  ;;  %7850 = vst [vmem:[#allocation2 + $0x50] sm:$0xff] %v12012_v34  ;;  %v8012_v14 = vmax.f32 %v12012_v34, 0.0  ;;  %v11570_v11 = vpop.f32.mrb[54].mxu1  ;;  %v15567_v34 = vpop.permute.xlu1 %8448 }
 0x349   :  { %v12016_v17 = vadd.f32 %v11570_v11, %v3945_v49  ;;  %v7341_v38 = vpop.f32.mrb[55].mxu1  ;;  %v8587_v16 = vmul.f32 %v15389_v8, %v8013_v15 }
 0x34a   :  { %v8586_v26 = vmul.f32 %v15372_v29, %v8012_v14  ;;  %v8666_v61 = vadd.f32 %v8665_v18, %v8585_v46  ;;  %v12020_v22 = vadd.f32 %v7341_v38, %v3944_v25  ;;  %v11085_v50 = vpop.f32.mrb[220].mxu0  ;;  %v3866_v29 = vld [vmem:[#allocation2 + $0x80] sm:$0xff]  ;;  %v15570_v46 = vpop.permute.xlu0 %8318  ;;  %v3949_v18 = vadd.f32 %v11082_v47, %v3867_v23  ;;  %v3868_v47 = vld [vmem:[#allocation2 + $0x90] sm:$0xff] }
 0x34b   :  { %7853 = vst [vmem:[#allocation2 + $0x68] sm:$0xff] %v12016_v17  ;;  %v8015_v13 = vmax.f32 %v12016_v17, 0.0  ;;  %v3531_v12 = vpop.f32.mrb[221].mxu0  ;;  %v3948_v8 = vadd.f32 %v3866_v29, %v3521_v31 }
 0x34c   :  { %v8667_v3 = vadd.f32 %v8666_v61, %v8586_v26  ;;  %7852 = vst [vmem:[#allocation2 + $0x60] sm:$0xff] %v12020_v22  ;;  %v8014_v54 = vmax.f32 %v12020_v22, 0.0  ;;  %v11573_v57 = vpop.f32.mrb[56].mxu1 }
 0x34d   :  { %v12024_v49 = vadd.f32 %v11573_v57, %v3947_v19  ;;  %v7351_v11 = vpop.f32.mrb[57].mxu1  ;;  %v8589_v14 = vmul.f32 %v15423_v63, %v8015_v13  ;;  %v3869_v19 = vld [vmem:[#allocation2 + $0x98] sm:$0xff] }
 0x34e   :  { %v8588_v25 = vmul.f32 %v15406_v24, %v8014_v54  ;;  %v8668_v7 = vadd.f32 %v8667_v3, %v8587_v16  ;;  %v12028_v0 = vadd.f32 %v7351_v11, %v3946_v20  ;;  %v11088_v15 = vpop.f32.mrb[222].mxu0  ;;  %v15574_v3 = vpop.permute.xlu1 %8453  ;;  %v3951_v23 = vadd.f32 %v11085_v50, %v3869_v19  ;;  %v8761_v50 = vld [vmem:[%s15739_s3 + $0x58] sm:$0xff] }
 0x34f   :  { %7855 = vst [vmem:[#allocation2 + $0x78] sm:$0xff] %v12024_v49  ;;  %v8017_v38 = vmax.f32 %v12024_v49, 0.0  ;;  %v3541_v26 = vpop.f32.mrb[223].mxu0  ;;  %v3950_v54 = vadd.f32 %v3868_v47, %v3531_v12 }
 0x350   :  { %v8669_v17 = vadd.f32 %v8668_v7, %v8588_v25  ;;  %7854 = vst [vmem:[#allocation2 + $0x70] sm:$0xff] %v12028_v0  ;;  %v8016_v21 = vmax.f32 %v12028_v0, 0.0  ;;  %v11576_v59 = vpop.f32.mrb[58].mxu1  ;;  %v8762_v25 = vld [vmem:[%s15739_s3 + $0x60] sm:$0xff]  ;;  %v15586_v7 = vpop.permute.xlu0 %8323 }
 0x351   :  { %v12032_v61 = vadd.f32 %v11576_v59, %v3949_v18  ;;  %v7361_v22 = vpop.f32.mrb[59].mxu1  ;;  %v8591_v13 = vmul.f32 %v15462_v37, %v8017_v38  ;;  %v8763_v18 = vld [vmem:[%s15739_s3 + $0x68] sm:$0xff] }
 0x352   :  { %v8590_v24 = vmul.f32 %v15439_v6, %v8016_v21  ;;  %v8670_v20 = vadd.f32 %v8669_v17, %v8589_v14  ;;  %v12036_v16 = vadd.f32 %v7361_v22, %v3948_v8  ;;  %v11091_v63 = vpop.f32.mrb[224].mxu0  ;;  %v8760_v6 = vld [vmem:[%s15739_s3 + $0x50] sm:$0xff]  ;;  %v3870_v14 = vld [vmem:[#allocation2 + $0xa0] sm:$0xff]  ;;  %v11724_v19 = vpack.c.bf16 %v8763_v18, %v8762_v25 }
 0x353   :  { %7857 = vst [vmem:[#allocation2 + $0x88] sm:$0xff] %v12032_v61  ;;  %v8019_v31 = vmax.f32 %v12032_v61, 0.0  ;;  %v3551_v29 = vpop.f32.mrb[225].mxu0  ;;  %v11721_v0 = vpack.c.bf16 %v8761_v50, %v8760_v6  ;;  %v3871_v8 = vld [vmem:[#allocation2 + $0xa8] sm:$0xff]  ;;  %v3952_v61 = vadd.f32 %v3870_v14, %v3541_v26  ;;  %v15594_v6 = vpop.permute.xlu1 %8458  ;;  %v3872_v26 = vld [vmem:[#allocation2 + $0xb0] sm:$0xff] }
 0x354   :  { %v8671_v57 = vadd.f32 %v8670_v20, %v8590_v24  ;;  %7856 = vst [vmem:[#allocation2 + $0x80] sm:$0xff] %v12036_v16  ;;  %v8018_v49 = vmax.f32 %v12036_v16, 0.0  ;;  %v11579_v11 = vpop.f32.mrb[60].mxu1  ;;  %v3953_v59 = vadd.f32 %v11088_v15, %v3871_v8  ;;  %v3873_v15 = vld [vmem:[#allocation2 + $0xb8] sm:$0xff]  ;;  %v15597_v50 = vpop.permute.xlu0 %8328 }
 0x355   :  { %v12040_v37 = vadd.f32 %v11579_v11, %v3951_v23  ;;  %v7371_v12 = vpop.f32.mrb[61].mxu1  ;;  %11722 = vmatpush3.bf16.msra.mxu0 %v11721_v0  ;;  %v8593_v24 = vmul.f32 %v15473_v36, %v8019_v31  ;;  %v3955_v36 = vadd.f32 %v11091_v63, %v3873_v15  ;;  %v3954_v31 = vadd.f32 %v3872_v26, %v3551_v29  ;;  %v3877_v26 = vld [vmem:[#allocation2 + $0xd8] sm:$0xff] }
 0x356   :  { %v8592_v17 = vmul.f32 %v15469_v55, %v8018_v49  ;;  %v8672_v38 = vadd.f32 %v8671_v57, %v8591_v13  ;;  %v12044_v21 = vadd.f32 %v7371_v12, %v3950_v54  ;;  %v11094_v22 = vpop.f32.mrb[226].mxu0  ;;  %11723 = vmatprep.subr.bf16.mxu0 %v16447_v41 }
 0x357   :  { %7859 = vst [vmem:[#allocation2 + $0x98] sm:$0xff] %v12040_v37  ;;  %v8021_v16 = vmax.f32 %v12040_v37, 0.0  ;;  %v3561_v11 = vpop.f32.mrb[227].mxu0 }
 0x358   :  { %v8673_v20 = vadd.f32 %v8672_v38, %v8592_v17  ;;  %7858 = vst [vmem:[#allocation2 + $0x90] sm:$0xff] %v12044_v21  ;;  %v8020_v23 = vmax.f32 %v12044_v21, 0.0  ;;  %v11582_v47 = vpop.f32.mrb[62].mxu1  ;;  %v3875_v38 = vld [vmem:[#allocation2 + $0xc8] sm:$0xff]  ;;  %v3874_v21 = vld [vmem:[#allocation2 + $0xc0] sm:$0xff] }
 0x359   :  { %v12048_v55 = vadd.f32 %v11582_v47, %v3953_v59  ;;  %v7381_v13 = vpop.f32.mrb[63].mxu1  ;;  %11725 = vmatpush3.bf16.msra.mxu0 %v11724_v19  ;;  %v8595_v37 = vmul.f32 %v15488_v5, %v8021_v16  ;;  %v3957_v19 = vadd.f32 %v11094_v22, %v3875_v38  ;;  %v3956_v5 = vadd.f32 %v3874_v21, %v3561_v11 }
 0x35a   :  { %v8594_v54 = vmul.f32 %v15483_v9, %v8020_v23  ;;  %v8674_v57 = vadd.f32 %v8673_v20, %v8593_v24  ;;  %v12052_v49 = vadd.f32 %v7381_v13, %v3952_v61  ;;  %v11097_v25 = vpop.f32.mrb[228].mxu0  ;;  %11726 = vmatprep.subr.bf16.mxu0 %v16447_v41  ;;  %v15602_v61 = vpop.permute.xlu1 %8463 }
 0x35b   :  { %7861 = vst [vmem:[#allocation2 + $0xa8] sm:$0xff] %v12048_v55  ;;  %v8023_v0 = vmax.f32 %v12048_v55, 0.0  ;;  %v3571_v14 = vpop.f32.mrb[229].mxu0  ;;  %v15605_v13 = vpop.permute.xlu0 %8333 }
 0x35c   :  { %v8675_v12 = vadd.f32 %v8674_v57, %v8594_v54  ;;  %7860 = vst [vmem:[#allocation2 + $0xa0] sm:$0xff] %v12052_v49  ;;  %v8022_v18 = vmax.f32 %v12052_v49, 0.0  ;;  %v11585_v8 = vpop.f32.mrb[64].mxu1  ;;  %v3876_v54 = vld [vmem:[#allocation2 + $0xd0] sm:$0xff]  ;;  %v3959_v49 = vadd.f32 %v11097_v25, %v3877_v26 }
 0x35d   :  { %v12056_v9 = vadd.f32 %v11585_v8, %v3955_v36  ;;  %v7391_v17 = vpop.f32.mrb[65].mxu1  ;;  %v8597_v20 = vmul.f32 %v15496_v48, %v8023_v0  ;;  %v3958_v36 = vadd.f32 %v3876_v54, %v3571_v14 }
 0x35e   :  { %v8596_v63 = vmul.f32 %v15492_v4, %v8022_v18  ;;  %v8676_v29 = vadd.f32 %v8675_v12, %v8595_v37  ;;  %v12060_v59 = vadd.f32 %v7391_v17, %v3954_v31  ;;  %v11100_v24 = vpop.f32.mrb[230].mxu0  ;;  %v3879_v17 = vld [vmem:[#allocation2 + $0xe8] sm:$0xff] }
 0x35f   :  { %7863 = vst [vmem:[#allocation2 + $0xb8] sm:$0xff] %v12056_v9  ;;  %v8025_v23 = vmax.f32 %v12056_v9, 0.0  ;;  %v3581_v55 = vpop.f32.mrb[231].mxu0  ;;  %v15609_v9 = vpop.permute.xlu1 %8468 }
 0x360   :  { %v8677_v16 = vadd.f32 %v8676_v29, %v8596_v63  ;;  %7862 = vst [vmem:[#allocation2 + $0xb0] sm:$0xff] %v12060_v59  ;;  %v8024_v41 = vmax.f32 %v12060_v59, 0.0  ;;  %v11588_v47 = vpop.f32.mrb[66].mxu1  ;;  %v8765_v29 = vld [vmem:[%s15739_s3 + $0x78] sm:$0xff]  ;;  %v15618_v59 = vpop.permute.xlu0 %8338 }
 0x361   :  { %v12064_v15 = vadd.f32 %v11588_v47, %v3957_v19  ;;  %v7401_v4 = vpop.f32.mrb[67].mxu1  ;;  %v8599_v31 = vmul.f32 %v15511_v32, %v8025_v23  ;;  %v8764_v32 = vld [vmem:[%s15739_s3 + $0x70] sm:$0xff]  ;;  %v3961_v19 = vadd.f32 %v11100_v24, %v3879_v17  ;;  %v16448_v23 = vmov 0.0   ;;  %v3880_v24 = vld [vmem:[#allocation2 + $0xf0] sm:$0xff] }
 0x362   :  { %v8598_v57 = vmul.f32 %v15506_v51, %v8024_v41  ;;  %v8678_v22 = vadd.f32 %v8677_v16, %v8597_v20  ;;  %v12068_v11 = vadd.f32 %v7401_v4, %v3956_v5  ;;  %v11103_v48 = vpop.f32.mrb[232].mxu0  ;;  %v3878_v51 = vld [vmem:[#allocation2 + $0xe0] sm:$0xff]  ;;  %v11727_v16 = vpack.c.bf16 %v8765_v29, %v8764_v32  ;;  %11702 = vmatprep.mubr.msk.f32.mxu0 %vm12632_vm5, %v16448_v23 }
 0x363   :  { %7865 = vst [vmem:[#allocation2 + $0xc8] sm:$0xff] %v12064_v15  ;;  %v8027_v12 = vmax.f32 %v12064_v15, 0.0  ;;  %v3591_v8 = vpop.f32.mrb[233].mxu0  ;;  %v3960_v5 = vadd.f32 %v3878_v51, %v3581_v55 }
 0x364   :  { %v8679_v37 = vadd.f32 %v8678_v22, %v8598_v57  ;;  %7864 = vst [vmem:[#allocation2 + $0xc0] sm:$0xff] %v12068_v11  ;;  %v8026_v0 = vmax.f32 %v12068_v11, 0.0  ;;  %v11591_v18 = vpop.f32.mrb[68].mxu1  ;;  %11728 = vmatpush3.bf16.msra.mxu0 %v11727_v16  ;;  %v3881_v22 = vld [vmem:[#allocation2 + $0xf8] sm:$0xff]  ;;  %v15626_v51 = vpop.permute.xlu0 %8343 }
 0x365   :  { %v12072_v38 = vadd.f32 %v11591_v18, %v3959_v49  ;;  %v7411_v21 = vpop.f32.mrb[69].mxu1 }
 0x366   :  { %v8600_v63 = vmul.f32 %v15515_v60, %v8026_v0  ;;  %v8680_v25 = vadd.f32 %v8679_v37, %v8599_v31  ;;  %v12076_v14 = vadd.f32 %v7411_v21, %v3958_v36  ;;  %v11106_v20 = vpop.f32.mrb[234].mxu0  ;;  %v8601_v60 = vmul.f32 %v15529_v10, %v8027_v12  ;;  %v15623_v36 = vpop.permute.xlu1 %8473 }
 0x367   :  { %7867 = vst [vmem:[#allocation2 + $0xd8] sm:$0xff] %v12072_v38  ;;  %v8029_v47 = vmax.f32 %v12072_v38, 0.0  ;;  %v3601_v26 = vpop.f32.mrb[235].mxu0  ;;  %v3963_v31 = vadd.f32 %v11103_v48, %v3881_v22  ;;  %v3962_v37 = vadd.f32 %v3880_v24, %v3591_v8 }
 0x368   :  { %v8681_v41 = vadd.f32 %v8680_v25, %v8600_v63  ;;  %7866 = vst [vmem:[#allocation2 + $0xd0] sm:$0xff] %v12076_v14  ;;  %v8028_v15 = vmax.f32 %v12076_v14, 0.0  ;;  %v11594_v4 = vpop.f32.mrb[70].mxu1  ;;  %v3883_v25 = vld [vmem:[#allocation2 + $0x108] sm:$0xff]  ;;  %v3882_v14 = vld [vmem:[#allocation2 + $0x100] sm:$0xff]  ;;  %v15633_v24 = vpop.permute.xlu0 %8348 }
 0x369   :  { %v12080_v54 = vadd.f32 %v11594_v4, %v3961_v19  ;;  %v7421_v57 = vpop.f32.mrb[71].mxu1  ;;  %v8603_v12 = vmul.f32 %v15542_v42, %v8029_v47  ;;  %v3965_v29 = vadd.f32 %v11106_v20, %v3883_v25  ;;  %v3964_v19 = vadd.f32 %v3882_v14, %v3601_v26 }
 0x36a   :  { %v8602_v55 = vmul.f32 %v15536_v1, %v8028_v15  ;;  %v8682_v11 = vadd.f32 %v8681_v41, %v8601_v60  ;;  %v12084_v49 = vadd.f32 %v7421_v57, %v3960_v5  ;;  %v11109_v10 = vpop.f32.mrb[236].mxu0  ;;  %v15630_v15 = vpop.permute.xlu1 %8478  ;;  %v3885_v57 = vld [vmem:[#allocation2 + $0x118] sm:$0xff] }
 0x36b   :  { %7869 = vst [vmem:[#allocation2 + $0xe8] sm:$0xff] %v12080_v54  ;;  %v8031_v18 = vmax.f32 %v12080_v54, 0.0  ;;  %v3611_v21 = vpop.f32.mrb[237].mxu0 }
 0x36c   :  { %v8683_v0 = vadd.f32 %v8682_v11, %v8602_v55  ;;  %7868 = vst [vmem:[#allocation2 + $0xe0] sm:$0xff] %v12084_v49  ;;  %v8030_v17 = vmax.f32 %v12084_v49, 0.0  ;;  %v11597_v38 = vpop.f32.mrb[72].mxu1  ;;  %v3967_v55 = vadd.f32 %v11109_v10, %v3885_v57  ;;  %v3888_v57 = vld [vmem:[#allocation2 + $0x130] sm:$0xff] }
 0x36d   :  { %v12088_v63 = vadd.f32 %v11597_v38, %v3963_v31  ;;  %v7431_v1 = vpop.f32.mrb[73].mxu1  ;;  %v8605_v5 = vmul.f32 %v15563_v45, %v8031_v18 }
 0x36e   :  { %v8604_v32 = vmul.f32 %v15550_v28, %v8030_v17  ;;  %v8684_v48 = vadd.f32 %v8683_v0, %v8603_v12  ;;  %v12092_v8 = vadd.f32 %v7431_v1, %v3962_v37  ;;  %v11112_v42 = vpop.f32.mrb[238].mxu0  ;;  %v3884_v28 = vld [vmem:[#allocation2 + $0x110] sm:$0xff]  ;;  %v15637_v10 = vpop.permute.xlu1 %8483 }
 0x36f   :  { %7871 = vst [vmem:[#allocation2 + $0xf8] sm:$0xff] %v12088_v63  ;;  %v8033_v23 = vmax.f32 %v12088_v63, 0.0  ;;  %v3621_v47 = vpop.f32.mrb[239].mxu0  ;;  %v3966_v45 = vadd.f32 %v3884_v28, %v3611_v21  ;;  %v3887_v63 = vld [vmem:[#allocation2 + $0x128] sm:$0xff] }
 0x370   :  { %v8685_v16 = vadd.f32 %v8684_v48, %v8604_v32  ;;  %7870 = vst [vmem:[#allocation2 + $0xf0] sm:$0xff] %v12092_v8  ;;  %v8032_v60 = vmax.f32 %v12092_v8, 0.0  ;;  %v11600_v41 = vpop.f32.mrb[74].mxu1  ;;  %v3969_v21 = vadd.f32 %v11112_v42, %v3887_v63 }
 0x371   :  { %v12096_v4 = vadd.f32 %v11600_v41, %v3965_v29  ;;  %v7441_v54 = vpop.f32.mrb[75].mxu1  ;;  %v8607_v49 = vmul.f32 %v15586_v7, %v8033_v23  ;;  %v15640_v23 = vpop.permute.xlu0 %8353  ;;  %v3889_v41 = vld [vmem:[#allocation2 + $0x138] sm:$0xff] }
 0x372   :  { %v8606_v22 = vmul.f32 %v15570_v46, %v8032_v60  ;;  %v8686_v20 = vadd.f32 %v8685_v16, %v8605_v5  ;;  %v12100_v26 = vadd.f32 %v7441_v54, %v3964_v19  ;;  %v11115_v11 = vpop.f32.mrb[240].mxu0  ;;  %v3886_v46 = vld [vmem:[#allocation2 + $0x120] sm:$0xff] }
 0x373   :  { %7873 = vst [vmem:[#allocation2 + $0x108] sm:$0xff] %v12096_v4  ;;  %v8035_v37 = vmax.f32 %v12096_v4, 0.0  ;;  %v3631_v18 = vpop.f32.mrb[241].mxu0  ;;  %v3968_v32 = vadd.f32 %v3886_v46, %v3621_v47  ;;  %v3971_v47 = vadd.f32 %v11115_v11, %v3889_v41  ;;  %v3890_v11 = vld [vmem:[#allocation2 + $0x140] sm:$0xff] }
 0x374   :  { %v8687_v31 = vadd.f32 %v8686_v20, %v8606_v22  ;;  %7872 = vst [vmem:[#allocation2 + $0x100] sm:$0xff] %v12100_v26  ;;  %v8034_v12 = vmax.f32 %v12100_v26, 0.0  ;;  %v11603_v0 = vpop.f32.mrb[76].mxu1 }
 0x375   :  { %v12104_v17 = vadd.f32 %v11603_v0, %v3967_v55  ;;  %v7451_v38 = vpop.f32.mrb[77].mxu1  ;;  %v8609_v48 = vmul.f32 %v15605_v13, %v8035_v37  ;;  %v3970_v13 = vadd.f32 %v3888_v57, %v3631_v18  ;;  %v3891_v37 = vld [vmem:[#allocation2 + $0x148] sm:$0xff]  ;;  %v3894_v57 = vld [vmem:[#allocation2 + $0x160] sm:$0xff] }
 0x376   :  { %v8608_v1 = vmul.f32 %v15597_v50, %v8034_v12  ;;  %v12108_v25 = vadd.f32 %v7451_v38, %v3966_v45  ;;  %v8688_v14 = vadd.f32 %v8687_v31, %v8607_v49  ;;  %v11118_v7 = vpop.f32.mrb[242].mxu0  ;;  %v15644_v45 = vpop.permute.xlu1 %8488 }
 0x377   :  { %7875 = vst [vmem:[#allocation2 + $0x118] sm:$0xff] %v12104_v17  ;;  %v8037_v8 = vmax.f32 %v12104_v17, 0.0  ;;  %v3641_v5 = vpop.f32.mrb[243].mxu0  ;;  %v3973_v17 = vadd.f32 %v11118_v7, %v3891_v37 }
 0x378   :  { %7874 = vst [vmem:[#allocation2 + $0x110] sm:$0xff] %v12108_v25  ;;  %v8036_v29 = vmax.f32 %v12108_v25, 0.0  ;;  %v11606_v19 = vpop.f32.mrb[78].mxu1  ;;  %v8689_v16 = vadd.f32 %v8688_v14, %v8608_v1  ;;  %v3972_v63 = vadd.f32 %v3890_v11, %v3641_v5 }
 0x379   :  { %v12112_v60 = vadd.f32 %v11606_v19, %v3969_v21  ;;  %v7461_v50 = vpop.f32.mrb[79].mxu1  ;;  %v8611_v26 = vmul.f32 %v15626_v51, %v8037_v8  ;;  %v3893_v51 = vld [vmem:[#allocation2 + $0x158] sm:$0xff]  ;;  %v3892_v8 = vld [vmem:[#allocation2 + $0x150] sm:$0xff] }
 0x37a   :  { %v12116_v4 = vadd.f32 %v7461_v50, %v3968_v32  ;;  %v8610_v54 = vmul.f32 %v15618_v59, %v8036_v29  ;;  %v8690_v42 = vadd.f32 %v8689_v16, %v8609_v48  ;;  %v11121_v28 = vpop.f32.mrb[244].mxu0  ;;  %v8359_v59 = vpop.permute.xlu0 %8358 }
 0x37b   :  { %7877 = vst [vmem:[#allocation2 + $0x128] sm:$0xff] %v12112_v60  ;;  %v3651_v20 = vpop.f32.mrb[245].mxu0  ;;  %v15648_v32 = vpop.permute.xlu1 %8493  ;;  %v3975_v48 = vadd.f32 %v11121_v28, %v3893_v51 }
 0x37c   :  { %7876 = vst [vmem:[#allocation2 + $0x120] sm:$0xff] %v12116_v4  ;;  %v11609_v22 = vpop.f32.mrb[80].mxu1  ;;  %v8691_v55 = vadd.f32 %v8690_v42, %v8610_v54  ;;  %v3974_v16 = vadd.f32 %v3892_v8, %v3651_v20 }
 0x37d   :  { %v12120_v49 = vadd.f32 %v11609_v22, %v3971_v47  ;;  %v7471_v31 = vpop.f32.mrb[81].mxu1  ;;  %v3895_v47 = vld [vmem:[#allocation2 + $0x168] sm:$0xff] }
 0x37e   :  { %v12124_v12 = vadd.f32 %v7471_v31, %v3970_v13  ;;  %v8692_v0 = vadd.f32 %v8691_v55, %v8611_v26  ;;  %v11124_v38 = vpop.f32.mrb[246].mxu0  ;;  %v8364_v41 = vpop.permute.xlu0 %8363 }
 0x37f   :  { %7879 = vst [vmem:[#allocation2 + $0x138] sm:$0xff] %v12120_v49  ;;  %v3661_v46 = vpop.f32.mrb[247].mxu0  ;;  %v3977_v26 = vadd.f32 %v11124_v38, %v3895_v47 }
 0x380   :  { %7878 = vst [vmem:[#allocation2 + $0x130] sm:$0xff] %v12124_v12  ;;  %v11612_v18 = vpop.f32.mrb[82].mxu1  ;;  %v3976_v55 = vadd.f32 %v3894_v57, %v3661_v46 }
 0x381   :  { %v12128_v1 = vadd.f32 %v11612_v18, %v3973_v17  ;;  %v7481_v25 = vpop.f32.mrb[83].mxu1 }
 0x382   :  { %v15646_v14 = vadd.f32 %v7481_v25, %v3972_v63  ;;  %v7957_v21 = vld [vmem:[#allocation2 + $0x128] sm:$0xff]  ;;  %v11127_v29 = vpop.f32.mrb[248].mxu0  ;;  %v15653_v25 = vpop.permute.xlu1 %8498 }
 0x383   :  { %7881 = vst [vmem:[#allocation2 + $0x148] sm:$0xff] %v12128_v1  ;;  %v7956_v7 = vld [vmem:[#allocation2 + $0x120] sm:$0xff]  ;;  %v8039_v19 = vmax.f32 %v7957_v21, 0.0  ;;  %v3671_v60 = vpop.f32.mrb[249].mxu0  ;;  %v8043_v4 = vmax.f32 %v12128_v1, 0.0  ;;  %v3897_v21 = vld [vmem:[#allocation2 + $0x178] sm:$0xff] }
 0x384   :  { %7880 = vst [vmem:[#allocation2 + $0x140] sm:$0xff] %v15646_v14  ;;  %v11615_v5 = vpop.f32.mrb[84].mxu1  ;;  %v8038_v50 = vmax.f32 %v7956_v7, 0.0  ;;  %v8042_v46 = vmax.f32 %v15646_v14, 0.0 }
 0x385   :  { %v12136_v54 = vadd.f32 %v11615_v5, %v3975_v48  ;;  %v7491_v42 = vpop.f32.mrb[85].mxu1  ;;  %v8613_v37 = vmul.f32 %v15640_v23, %v8039_v19  ;;  %v8617_v51 = vmul.f32 %v15450_v33, %v8043_v4  ;;  %v3896_v48 = vld [vmem:[#allocation2 + $0x170] sm:$0xff]  ;;  %v3979_v5 = vadd.f32 %v11127_v29, %v3897_v21 }
 0x386   :  { %v12140_v13 = vadd.f32 %v7491_v42, %v3974_v16  ;;  %v7959_v22 = vld [vmem:[#allocation2 + $0x138] sm:$0xff]  ;;  %v8612_v28 = vmul.f32 %v15633_v24, %v8038_v50  ;;  %v11130_v20 = vpop.f32.mrb[250].mxu0  ;;  %v8369_v16 = vpop.permute.xlu0 %8368 }
 0x387   :  { %7883 = vst [vmem:[#allocation2 + $0x158] sm:$0xff] %v12136_v54  ;;  %v8045_v49 = vmax.f32 %v12136_v54, 0.0  ;;  %v7958_v31 = vld [vmem:[#allocation2 + $0x130] sm:$0xff]  ;;  %v3681_v11 = vpop.f32.mrb[251].mxu0  ;;  %v8041_v18 = vmax.f32 %v7959_v22, 0.0 }
 0x388   :  { %7882 = vst [vmem:[#allocation2 + $0x150] sm:$0xff] %v12140_v13  ;;  %v8044_v12 = vmax.f32 %v12140_v13, 0.0  ;;  %v11618_v17 = vpop.f32.mrb[86].mxu1  ;;  %v8040_v63 = vmax.f32 %v7958_v31, 0.0  ;;  %v8693_v1 = vadd.f32 %v8692_v0, %v8612_v28  ;;  %v3978_v0 = vadd.f32 %v3896_v48, %v3671_v60 }
 0x389   :  { %v12144_v24 = vadd.f32 %v11618_v17, %v3977_v26  ;;  %v7501_v38 = vpop.f32.mrb[87].mxu1  ;;  %v8619_v50 = vmul.f32 %v15471_v27, %v8045_v49  ;;  %v8615_v57 = vmul.f32 %v8364_v41, %v8041_v18  ;;  %v8616_v28 = vmul.f32 %v8369_v16, %v8042_v46  ;;  %v3898_v26 = vld [vmem:[#allocation2 + $0x180] sm:$0xff]  ;;  %v15660_v49 = vpop.permute.xlu1 %8503  ;;  %v3901_v46 = vld [vmem:[#allocation2 + $0x198] sm:$0xff] }
 0x38a   :  { %v8618_v8 = vmul.f32 %v15466_v56, %v8044_v12  ;;  %v12148_v23 = vadd.f32 %v7501_v38, %v3976_v55  ;;  %v8614_v7 = vmul.f32 %v8359_v59, %v8040_v63  ;;  %v8694_v19 = vadd.f32 %v8693_v1, %v8613_v37  ;;  %v11133_v42 = vpop.f32.mrb[252].mxu0  ;;  %v3899_v59 = vld [vmem:[#allocation2 + $0x188] sm:$0xff] }
 0x38b   :  { %7885 = vst [vmem:[#allocation2 + $0x168] sm:$0xff] %v12144_v24  ;;  %v8047_v54 = vmax.f32 %v12144_v24, 0.0  ;;  %v3691_v14 = vpop.f32.mrb[253].mxu0  ;;  %v3981_v31 = vadd.f32 %v11130_v20, %v3899_v59  ;;  %v3980_v12 = vadd.f32 %v3898_v26, %v3681_v11 }
 0x38c   :  { %v8704_v33 = vadd.f32 %v8618_v8, %v8617_v51  ;;  %7884 = vst [vmem:[#allocation2 + $0x160] sm:$0xff] %v12148_v23  ;;  %v8046_v4 = vmax.f32 %v12148_v23, 0.0  ;;  %v11621_v47 = vpop.f32.mrb[88].mxu1  ;;  %v8695_v13 = vadd.f32 %v8694_v19, %v8614_v7  ;;  %v3983_v8 = vadd.f32 %v11133_v42, %v3901_v46 }
 0x38d   :  { %v12152_v22 = vadd.f32 %v11621_v47, %v3979_v5  ;;  %v7511_v56 = vpop.f32.mrb[89].mxu1  ;;  %v8621_v37 = vmul.f32 %v15486_v39, %v8047_v54  ;;  %v3900_v39 = vld [vmem:[#allocation2 + $0x190] sm:$0xff]  ;;  %v15667_v54 = vpop.permute.xlu1 %8508  ;;  %v3903_v47 = vld [vmem:[#allocation2 + $0x1a8] sm:$0xff] }
 0x38e   :  { %v8620_v29 = vmul.f32 %v15475_v35, %v8046_v4  ;;  %v8705_v55 = vadd.f32 %v8704_v33, %v8619_v50  ;;  %v12156_v27 = vadd.f32 %v7511_v56, %v3978_v0  ;;  %v8696_v60 = vadd.f32 %v8695_v13, %v8615_v57  ;;  %v11136_v17 = vpop.f32.mrb[254].mxu0  ;;  %v3902_v56 = vld [vmem:[#allocation2 + $0x1a0] sm:$0xff] }
 0x38f   :  { %7887 = vst [vmem:[#allocation2 + $0x178] sm:$0xff] %v12152_v22  ;;  %v8049_v63 = vmax.f32 %v12152_v22, 0.0  ;;  %v3701_v51 = vpop.f32.mrb[255].mxu0  ;;  %v3982_v19 = vadd.f32 %v3900_v39, %v3691_v14  ;;  %v3985_v22 = vadd.f32 %v11136_v17, %v3903_v47 }
 0x390   :  { %v8706_v41 = vadd.f32 %v8705_v55, %v8620_v29  ;;  %7886 = vst [vmem:[#allocation2 + $0x170] sm:$0xff] %v12156_v27  ;;  %v8048_v18 = vmax.f32 %v12156_v27, 0.0  ;;  %v11624_v1 = vpop.f32.mrb[90].mxu1  ;;  %v15663_v24 = vadd.f32 %v8696_v60, %v8616_v28  ;;  %v3984_v14 = vadd.f32 %v3902_v56, %v3701_v51  ;;  %v3905_v60 = vld [vmem:[#allocation2 + $0x1b8] sm:$0xff] }
 0x391   :  { %v12160_v35 = vadd.f32 %v11624_v1, %v3981_v31  ;;  %v7521_v38 = vpop.f32.mrb[91].mxu1  ;;  %v8623_v7 = vmul.f32 %v15494_v30, %v8049_v63  ;;  %v3904_v31 = vld [vmem:[#allocation2 + $0x1b0] sm:$0xff] }
 0x392   :  { %v8622_v21 = vmul.f32 %v15490_v43, %v8048_v18  ;;  %v8707_v48 = vadd.f32 %v8706_v41, %v8621_v37  ;;  %v12164_v20 = vadd.f32 %v7521_v38, %v3980_v12  ;;  %v11139_v23 = vpop.f32.mrb[0].mxu0  ;;  %v15672_v41 = vpop.permute.xlu1 %8513 }
 0x393   :  { %7889 = vst [vmem:[#allocation2 + $0x188] sm:$0xff] %v12160_v35  ;;  %v8051_v11 = vmax.f32 %v12160_v35, 0.0  ;;  %v3711_v0 = vpop.f32.mrb[1].mxu0  ;;  %v3987_v17 = vadd.f32 %v11139_v23, %v3905_v60 }
 0x394   :  { %v8708_v16 = vadd.f32 %v8707_v48, %v8622_v21  ;;  %7888 = vst [vmem:[#allocation2 + $0x180] sm:$0xff] %v12164_v20  ;;  %v8050_v5 = vmax.f32 %v12164_v20, 0.0  ;;  %v11627_v50 = vpop.f32.mrb[92].mxu1  ;;  %v3986_v63 = vadd.f32 %v3904_v31, %v3711_v0 }
 0x395   :  { %v8625_v33 = vmul.f32 %v15509_v53, %v8051_v11  ;;  %v12168_v43 = vadd.f32 %v11627_v50, %v3983_v8  ;;  %v7531_v4 = vpop.f32.mrb[93].mxu1  ;;  %v3907_v8 = vld [vmem:[#allocation2 + $0x1c8] sm:$0xff] }
 0x396   :  { %v8624_v42 = vmul.f32 %v15504_v52, %v8050_v5  ;;  %v8709_v57 = vadd.f32 %v8708_v16, %v8623_v7  ;;  %v12172_v13 = vadd.f32 %v7531_v4, %v3982_v19  ;;  %v11142_v30 = vpop.f32.mrb[2].mxu0  ;;  %v15677_v4 = vpop.permute.xlu1 %8518 }
 0x397   :  { %7891 = vst [vmem:[#allocation2 + $0x198] sm:$0xff] %v12168_v43  ;;  %v8053_v59 = vmax.f32 %v12168_v43, 0.0  ;;  %v3721_v55 = vpop.f32.mrb[3].mxu0  ;;  %v3989_v23 = vadd.f32 %v11142_v30, %v3907_v8 }
 0x398   :  { %v8710_v28 = vadd.f32 %v8709_v57, %v8624_v42  ;;  %7890 = vst [vmem:[#allocation2 + $0x190] sm:$0xff] %v12172_v13  ;;  %v8052_v26 = vmax.f32 %v12172_v13, 0.0  ;;  %v11630_v29 = vpop.f32.mrb[94].mxu1  ;;  %v3909_v57 = vld [vmem:[#allocation2 + $0x1d8] sm:$0xff] }
 0x399   :  { %v12176_v27 = vadd.f32 %v11630_v29, %v3985_v22  ;;  %v7541_v53 = vpop.f32.mrb[95].mxu1  ;;  %v8627_v1 = vmul.f32 %v15521_v62, %v8053_v59 }
 0x39a   :  { %v8626_v37 = vmul.f32 %v15513_v44, %v8052_v26  ;;  %v8711_v52 = vadd.f32 %v8710_v28, %v8625_v33  ;;  %v12180_v12 = vadd.f32 %v7541_v53, %v3984_v14  ;;  %v11145_v18 = vpop.f32.mrb[4].mxu0  ;;  %v3906_v44 = vld [vmem:[#allocation2 + $0x1c0] sm:$0xff] }
 0x39b   :  { %7893 = vst [vmem:[#allocation2 + $0x1a8] sm:$0xff] %v12176_v27  ;;  %v8055_v35 = vmax.f32 %v12176_v27, 0.0  ;;  %v3731_v21 = vpop.f32.mrb[5].mxu0  ;;  %v3988_v19 = vadd.f32 %v3906_v44, %v3721_v55  ;;  %v3991_v30 = vadd.f32 %v11145_v18, %v3909_v57  ;;  %v16449_v28 = vld [vmem:[#allocation95_spill] sm:$0xff] }
 0x39c   :  { %v8712_v51 = vadd.f32 %v8711_v52, %v8626_v37  ;;  %7892 = vst [vmem:[#allocation2 + $0x1a0] sm:$0xff] %v12180_v12  ;;  %v8054_v38 = vmax.f32 %v12180_v12, 0.0  ;;  %v11633_v46 = vpop.f32.mrb[96].mxu1  ;;  %v3911_v37 = vld [vmem:[#allocation2 + $0x1e8] sm:$0xff]  ;;  %v3910_v52 = vld [vmem:[#allocation2 + $0x1e0] sm:$0xff] }
 0x39d   :  { %v12184_v48 = vadd.f32 %v11633_v46, %v3987_v17  ;;  %v7551_v20 = vpop.f32.mrb[97].mxu1  ;;  %v8629_v62 = vmul.f32 %v15539_v40, %v8055_v35 }
 0x39e   :  { %v8628_v39 = vmul.f32 %v15532_v58, %v8054_v38  ;;  %v8713_v11 = vadd.f32 %v8712_v51, %v8627_v1  ;;  %v12188_v7 = vadd.f32 %v7551_v20, %v3986_v63  ;;  %v11148_v16 = vpop.f32.mrb[6].mxu0  ;;  %v3908_v58 = vld [vmem:[#allocation2 + $0x1d0] sm:$0xff]  ;;  %v15682_v63 = vpop.permute.xlu1 %8523 }
 0x39f   :  { %7895 = vst [vmem:[#allocation2 + $0x1b8] sm:$0xff] %v12184_v48  ;;  %v8057_v50 = vmax.f32 %v12184_v48, 0.0  ;;  %v3741_v43 = vpop.f32.mrb[7].mxu0  ;;  %v3990_v14 = vadd.f32 %v3908_v58, %v3731_v21  ;;  %v3993_v18 = vadd.f32 %v11148_v16, %v3911_v37  ;;  %v3915_v58 = vld [vmem:[#allocation2 + $0x208] sm:$0xff] }
 0x3a0   :  { %v8714_v5 = vadd.f32 %v8713_v11, %v8628_v39  ;;  %7894 = vst [vmem:[#allocation2 + $0x1b0] sm:$0xff] %v12188_v7  ;;  %v8056_v0 = vmax.f32 %v12188_v7, 0.0  ;;  %v11636_v33 = vpop.f32.mrb[98].mxu1  ;;  %v3992_v1 = vadd.f32 %v3910_v52, %v3741_v43  ;;  %v3913_v39 = vld [vmem:[#allocation2 + $0x1f8] sm:$0xff] }
 0x3a1   :  { %v12192_v47 = vadd.f32 %v11636_v33, %v3989_v23  ;;  %v7561_v42 = vpop.f32.mrb[99].mxu1  ;;  %v8631_v59 = vmul.f32 %v16449_v28, %v8057_v50 }
 0x3a2   :  { %v8630_v13 = vmul.f32 %v15546_v2, %v8056_v0  ;;  %v8715_v22 = vadd.f32 %v8714_v5, %v8629_v62  ;;  %v12196_v56 = vadd.f32 %v7561_v42, %v3988_v19  ;;  %v11151_v40 = vpop.f32.mrb[8].mxu0 }
 0x3a3   :  { %7897 = vst [vmem:[#allocation2 + $0x1c8] sm:$0xff] %v12192_v47  ;;  %v8059_v29 = vmax.f32 %v12192_v47, 0.0  ;;  %v3751_v53 = vpop.f32.mrb[9].mxu0  ;;  %v3995_v19 = vadd.f32 %v11151_v40, %v3913_v39  ;;  %v15687_v47 = vpop.permute.xlu1 %8528 }
 0x3a4   :  { %v8716_v26 = vadd.f32 %v8715_v22, %v8630_v13  ;;  %7896 = vst [vmem:[#allocation2 + $0x1c0] sm:$0xff] %v12196_v56  ;;  %v8058_v55 = vmax.f32 %v12196_v56, 0.0  ;;  %v11639_v27 = vpop.f32.mrb[100].mxu1 }
 0x3a5   :  { %v12200_v60 = vadd.f32 %v11639_v27, %v3991_v30  ;;  %v7571_v31 = vpop.f32.mrb[101].mxu1  ;;  %v8633_v35 = vmul.f32 %v15574_v3, %v8059_v29 }
 0x3a6   :  { %v8632_v2 = vmul.f32 %v15567_v34, %v8058_v55  ;;  %v8717_v12 = vadd.f32 %v8716_v26, %v8631_v59  ;;  %v12204_v17 = vadd.f32 %v7571_v31, %v3990_v14  ;;  %v11154_v51 = vpop.f32.mrb[10].mxu0  ;;  %v3912_v34 = vld [vmem:[#allocation2 + $0x1f0] sm:$0xff] }
 0x3a7   :  { %7899 = vst [vmem:[#allocation2 + $0x1d8] sm:$0xff] %v12200_v60  ;;  %v8061_v46 = vmax.f32 %v12200_v60, 0.0  ;;  %v3761_v20 = vpop.f32.mrb[11].mxu0  ;;  %v3994_v16 = vadd.f32 %v3912_v34, %v3751_v53  ;;  %v3997_v30 = vadd.f32 %v11154_v51, %v3915_v58  ;;  %v3917_v60 = vld [vmem:[#allocation2 + $0x218] sm:$0xff]  ;;  %v3916_v31 = vld [vmem:[#allocation2 + $0x210] sm:$0xff] }
 0x3a8   :  { %v8718_v38 = vadd.f32 %v8717_v12, %v8632_v2  ;;  %7898 = vst [vmem:[#allocation2 + $0x1d0] sm:$0xff] %v12204_v17  ;;  %v8060_v21 = vmax.f32 %v12204_v17, 0.0  ;;  %v11642_v48 = vpop.f32.mrb[102].mxu1  ;;  %v15692_v2 = vpop.permute.xlu1 %8533 }
 0x3a9   :  { %v12208_v8 = vadd.f32 %v11642_v48, %v3993_v18  ;;  %v7581_v44 = vpop.f32.mrb[103].mxu1  ;;  %v8635_v3 = vmul.f32 %v15602_v61, %v8061_v46 }
 0x3aa   :  { %v8634_v11 = vmul.f32 %v15594_v6, %v8060_v21  ;;  %v8719_v7 = vadd.f32 %v8718_v38, %v8633_v35  ;;  %v12212_v23 = vadd.f32 %v7581_v44, %v3992_v1  ;;  %v11157_v62 = vpop.f32.mrb[12].mxu0  ;;  %v3914_v6 = vld [vmem:[#allocation2 + $0x200] sm:$0xff] }
 0x3ab   :  { %7901 = vst [vmem:[#allocation2 + $0x1e8] sm:$0xff] %v12208_v8  ;;  %v8063_v50 = vmax.f32 %v12208_v8, 0.0  ;;  %v3771_v43 = vpop.f32.mrb[13].mxu0  ;;  %v3996_v14 = vadd.f32 %v3914_v6, %v3761_v20  ;;  %v3999_v12 = vadd.f32 %v11157_v62, %v3917_v60  ;;  %v3919_v20 = vld [vmem:[#allocation2 + $0x228] sm:$0xff] }
 0x3ac   :  { %v8720_v5 = vadd.f32 %v8719_v7, %v8634_v11  ;;  %7900 = vst [vmem:[#allocation2 + $0x1e0] sm:$0xff] %v12212_v23  ;;  %v8062_v0 = vmax.f32 %v12212_v23, 0.0  ;;  %v11645_v33 = vpop.f32.mrb[104].mxu1  ;;  %v3998_v17 = vadd.f32 %v3916_v31, %v3771_v43 }
 0x3ad   :  { %v12216_v42 = vadd.f32 %v11645_v33, %v3995_v19  ;;  %v7591_v57 = vpop.f32.mrb[105].mxu1  ;;  %v8637_v40 = vmul.f32 %v15623_v36, %v8063_v50  ;;  %v3921_v33 = vld [vmem:[#allocation2 + $0x238] sm:$0xff] }
 0x3ae   :  { %v8636_v13 = vmul.f32 %v15609_v9, %v8062_v0  ;;  %v8721_v22 = vadd.f32 %v8720_v5, %v8635_v3  ;;  %v12220_v56 = vadd.f32 %v7591_v57, %v3994_v16  ;;  %v11160_v61 = vpop.f32.mrb[14].mxu0  ;;  %v15697_v5 = vpop.permute.xlu1 %8538 }
 0x3af   :  { %7903 = vst [vmem:[#allocation2 + $0x1f8] sm:$0xff] %v12216_v42  ;;  %v8065_v59 = vmax.f32 %v12216_v42, 0.0  ;;  %v3781_v55 = vpop.f32.mrb[15].mxu0  ;;  %v4001_v34 = vadd.f32 %v11160_v61, %v3919_v20 }
 0x3b0   :  { %v8722_v28 = vadd.f32 %v8721_v22, %v8636_v13  ;;  %7902 = vst [vmem:[#allocation2 + $0x1f0] sm:$0xff] %v12220_v56  ;;  %v8064_v26 = vmax.f32 %v12220_v56, 0.0  ;;  %v11648_v29 = vpop.f32.mrb[106].mxu1 }
 0x3b1   :  { %v12224_v27 = vadd.f32 %v11648_v29, %v3997_v30  ;;  %v7601_v53 = vpop.f32.mrb[107].mxu1  ;;  %v8639_v18 = vmul.f32 %v15637_v10, %v8065_v59  ;;  %v3923_v59 = vld [vmem:[#allocation2 + $0x248] sm:$0xff] }
 0x3b2   :  { %v8638_v9 = vmul.f32 %v15630_v15, %v8064_v26  ;;  %v8723_v37 = vadd.f32 %v8722_v28, %v8637_v40  ;;  %v12228_v52 = vadd.f32 %v7601_v53, %v3996_v14  ;;  %v11163_v36 = vpop.f32.mrb[16].mxu0  ;;  %v3918_v15 = vld [vmem:[#allocation2 + $0x220] sm:$0xff] }
 0x3b3   :  { %7905 = vst [vmem:[#allocation2 + $0x208] sm:$0xff] %v12224_v27  ;;  %v8067_v51 = vmax.f32 %v12224_v27, 0.0  ;;  %v3791_v46 = vpop.f32.mrb[17].mxu0  ;;  %v4000_v11 = vadd.f32 %v3918_v15, %v3781_v55  ;;  %v4003_v58 = vadd.f32 %v11163_v36, %v3921_v33  ;;  %v3922_v26 = vld [vmem:[#allocation2 + $0x240] sm:$0xff]  ;;  %v15702_v27 = vpop.permute.xlu1 %8543 }
 0x3b4   :  { %v8724_v1 = vadd.f32 %v8723_v37, %v8638_v9  ;;  %7904 = vst [vmem:[#allocation2 + $0x200] sm:$0xff] %v12228_v52  ;;  %v8066_v35 = vmax.f32 %v12228_v52, 0.0  ;;  %v11651_v38 = vpop.f32.mrb[108].mxu1 }
 0x3b5   :  { %v12232_v21 = vadd.f32 %v11651_v38, %v3999_v12  ;;  %v7611_v48 = vpop.f32.mrb[109].mxu1  ;;  %v8641_v10 = vmul.f32 %v15648_v32, %v8067_v51 }
 0x3b6   :  { %v8640_v8 = vmul.f32 %v15644_v45, %v8066_v35  ;;  %v8725_v44 = vadd.f32 %v8724_v1, %v8639_v18  ;;  %v12236_v39 = vadd.f32 %v7611_v48, %v3998_v17  ;;  %v11166_v7 = vpop.f32.mrb[18].mxu0  ;;  %v3920_v45 = vld [vmem:[#allocation2 + $0x230] sm:$0xff]  ;;  %v3925_v1 = vld [vmem:[#allocation2 + $0x258] sm:$0xff] }
 0x3b7   :  { %7907 = vst [vmem:[#allocation2 + $0x218] sm:$0xff] %v12232_v21  ;;  %v8069_v19 = vmax.f32 %v12232_v21, 0.0  ;;  %v3801_v3 = vpop.f32.mrb[19].mxu0  ;;  %v4002_v6 = vadd.f32 %v3920_v45, %v3791_v46  ;;  %v4005_v53 = vadd.f32 %v11166_v7, %v3923_v59  ;;  %v3928_v7 = vld [vmem:[#allocation2 + $0x270] sm:$0xff] }
 0x3b8   :  { %v8726_v23 = vadd.f32 %v8725_v44, %v8640_v8  ;;  %7906 = vst [vmem:[#allocation2 + $0x210] sm:$0xff] %v12236_v39  ;;  %v8068_v16 = vmax.f32 %v12236_v39, 0.0  ;;  %v11654_v62 = vpop.f32.mrb[110].mxu1  ;;  %v4004_v60 = vadd.f32 %v3922_v26, %v3801_v3  ;;  %v16452_v26 = vld [vmem:[#allocation92_spill] sm:$0xff] }
 0x3b9   :  { %v12240_v50 = vadd.f32 %v11654_v62, %v4001_v34  ;;  %v7621_v0 = vpop.f32.mrb[111].mxu1  ;;  %v8643_v13 = vmul.f32 %v15660_v49, %v8069_v19  ;;  %v3926_v62 = vld [vmem:[#allocation2 + $0x260] sm:$0xff] }
 0x3ba   :  { %v8642_v43 = vmul.f32 %v15653_v25, %v8068_v16  ;;  %v8727_v42 = vadd.f32 %v8726_v23, %v8641_v10  ;;  %v12244_v57 = vadd.f32 %v7621_v0, %v4000_v11  ;;  %v11169_v32 = vpop.f32.mrb[20].mxu0  ;;  %v8549_v10 = vpop.permute.xlu1 %8548  ;;  %v3927_v16 = vld [vmem:[#allocation2 + $0x268] sm:$0xff]  ;;  %v16450_v0 = vld [vmem:[#allocation87_spill] sm:$0xff] }
 0x3bb   :  { %7909 = vst [vmem:[#allocation2 + $0x228] sm:$0xff] %v12240_v50  ;;  %v8071_v56 = vmax.f32 %v12240_v50, 0.0  ;;  %v3811_v61 = vpop.f32.mrb[21].mxu0  ;;  %v4007_v46 = vadd.f32 %v11169_v32, %v3925_v1  ;;  %v3931_v32 = vld [vmem:[#allocation2 + $0x288] sm:$0xff] }
 0x3bc   :  { %v8728_v22 = vadd.f32 %v8727_v42, %v8642_v43  ;;  %7908 = vst [vmem:[#allocation2 + $0x220] sm:$0xff] %v12244_v57  ;;  %v8070_v30 = vmax.f32 %v12244_v57, 0.0  ;;  %v11657_v14 = vpop.f32.mrb[112].mxu1  ;;  %v16451_v57 = vld [vmem:[#allocation88_spill] sm:$0xff] }
 0x3bd   :  { %v12248_v40 = vadd.f32 %v11657_v14, %v4003_v58  ;;  %v7631_v28 = vpop.f32.mrb[113].mxu1  ;;  %v8645_v31 = vmul.f32 %v15672_v41, %v8071_v56  ;;  %v3929_v41 = vld [vmem:[#allocation2 + $0x278] sm:$0xff] }
 0x3be   :  { %v8644_v25 = vmul.f32 %v15667_v54, %v8070_v30  ;;  %v8729_v29 = vadd.f32 %v8728_v22, %v8643_v13  ;;  %v12252_v55 = vadd.f32 %v7631_v28, %v4002_v6  ;;  %v11172_v49 = vpop.f32.mrb[22].mxu0  ;;  %v3924_v54 = vld [vmem:[#allocation2 + $0x250] sm:$0xff] }
 0x3bf   :  { %7911 = vst [vmem:[#allocation2 + $0x238] sm:$0xff] %v12248_v40  ;;  %v8073_v37 = vmax.f32 %v12248_v40, 0.0  ;;  %v3821_v17 = vpop.f32.mrb[23].mxu0  ;;  %v4006_v21 = vadd.f32 %v3924_v54, %v3811_v61  ;;  %v3930_v61 = vld [vmem:[#allocation2 + $0x280] sm:$0xff] }
 0x3c0   :  { %v8730_v9 = vadd.f32 %v8729_v29, %v8644_v25  ;;  %7910 = vst [vmem:[#allocation2 + $0x230] sm:$0xff] %v12252_v55  ;;  %v8072_v52 = vmax.f32 %v12252_v55, 0.0  ;;  %v11660_v12 = vpop.f32.mrb[114].mxu1  ;;  %v4008_v42 = vadd.f32 %v3926_v62, %v3821_v17 }
 0x3c1   :  { %v12256_v36 = vadd.f32 %v11660_v12, %v4005_v53  ;;  %v7641_v18 = vpop.f32.mrb[115].mxu1  ;;  %v8647_v15 = vmul.f32 %v15682_v63, %v8073_v37  ;;  %v4009_v63 = vadd.f32 %v11172_v49, %v3927_v16  ;;  %v8554_v53 = vpop.permute.xlu1 %8553 }
 0x3c2   :  { %v8646_v51 = vmul.f32 %v15677_v4, %v8072_v52  ;;  %v8731_v35 = vadd.f32 %v8730_v9, %v8645_v31  ;;  %v12260_v38 = vadd.f32 %v7641_v18, %v4004_v60  ;;  %v11175_v20 = vpop.f32.mrb[24].mxu0  ;;  %v16453_v60 = vld [vmem:[#allocation90_spill] sm:$0xff] }
 0x3c3   :  { %7913 = vst [vmem:[#allocation2 + $0x248] sm:$0xff] %v12256_v36  ;;  %v8075_v48 = vmax.f32 %v12256_v36, 0.0  ;;  %v4011_v39 = vadd.f32 %v11175_v20, %v3929_v41  ;;  %v3831_v11 = vpop.f32.mrb[25].mxu0  ;;  %v16454_v31 = vld [vmem:[#allocation94_spill] sm:$0xff] }
 0x3c4   :  { %v8732_v8 = vadd.f32 %v8731_v35, %v8646_v51  ;;  %7912 = vst [vmem:[#allocation2 + $0x240] sm:$0xff] %v12260_v38  ;;  %v8074_v44 = vmax.f32 %v12260_v38, 0.0  ;;  %v11663_v34 = vpop.f32.mrb[116].mxu1  ;;  %v4010_v4 = vadd.f32 %v3928_v7, %v3831_v11  ;;  %v16455_v35 = vld [vmem:[#allocation91_spill] sm:$0xff]  ;;  %v16457_v11 = vld [vmem:[#allocation93_spill] sm:$0xff] }
 0x3c5   :  { %v12264_v23 = vadd.f32 %v11663_v34, %v4007_v46  ;;  %v7651_v19 = vpop.f32.mrb[117].mxu1  ;;  %v12280_v33 = vadd.f32 %v16450_v0, %v4011_v39  ;;  %v8649_v43 = vmul.f32 %v15692_v2, %v8075_v48  ;;  %v8559_v20 = vpop.permute.xlu1 %8558  ;;  %v8698_v0 = vrot.slane %v15663_v24, 4 }
 0x3c6   :  { %v8648_v3 = vmul.f32 %v15687_v47, %v8074_v44  ;;  %v8733_v50 = vadd.f32 %v8732_v8, %v8647_v15  ;;  %v12268_v45 = vadd.f32 %v7651_v19, %v4006_v21  ;;  %v12284_v58 = vadd.f32 %v16451_v57, %v4010_v4  ;;  %v11178_v6 = vpop.f32.mrb[26].mxu0  ;;  %v16456_v15 = vld [vmem:[#allocation89_spill] sm:$0xff] }
 0x3c7   :  { %7915 = vst [vmem:[#allocation2 + $0x258] sm:$0xff] %v12264_v23  ;;  %5147 = vst [vmem:[#allocation2 + $0x278] sm:$0xff] %v12280_v33  ;;  %v8077_v22 = vmax.f32 %v12264_v23, 0.0  ;;  %v4013_v30 = vadd.f32 %v11178_v6, %v3931_v32  ;;  %v3841_v14 = vpop.f32.mrb[27].mxu0 }
 0x3c8   :  { %v8734_v13 = vadd.f32 %v8733_v50, %v8648_v3  ;;  %7914 = vst [vmem:[#allocation2 + $0x250] sm:$0xff] %v12268_v45  ;;  %v8076_v56 = vmax.f32 %v12268_v45, 0.0  ;;  %v11666_v47 = vpop.f32.mrb[118].mxu1  ;;  %v4012_v28 = vadd.f32 %v3930_v61, %v3841_v14  ;;  %v5778_v2 = vadd.f32 %v12284_v58, %v16452_v26 }
 0x3c9   :  { %v12272_v40 = vadd.f32 %v11666_v47, %v4009_v63  ;;  %v7661_v59 = vpop.f32.mrb[119].mxu1  ;;  %4095 = vst [vmem:[#allocation2 + $0x288] sm:$0xff] %v4013_v30  ;;  %v8651_v17 = vmul.f32 %v15702_v27, %v8077_v22  ;;  %v8564_v4 = vpop.permute.xlu1 %8563 }
 0x3ca   :  { %v8650_v25 = vmul.f32 %v15697_v5, %v8076_v56  ;;  %v12276_v29 = vadd.f32 %v7661_v59, %v4008_v42  ;;  %v8735_v55 = vadd.f32 %v8734_v13, %v8649_v43  ;;  %v5066_v49 = vadd.f32 %v16453_v60, %v4012_v28 }
 0x3cb   :  { %7917 = vst [vmem:[#allocation2 + $0x268] sm:$0xff] %v12272_v40  ;;  %v6808_v9 = vadd.f32 %v16454_v31, %v5778_v2  ;;  %v8079_v12 = vmax.f32 %v12272_v40, 0.0  ;;  %v8699_v43 = vadd.f32 %v8698_v0, %v15663_v24  ;;  %v9606_v24 = vld [vmem:[%s15740_s4] ss:$0 sm:$0xff] }
 0x3cc   :  { %7916 = vst [vmem:[#allocation2 + $0x260] sm:$0xff] %v12276_v29  ;;  %v8078_v37 = vmax.f32 %v12276_v29, 0.0  ;;  %v11669_v52 = vpop.f32.mrb[128].mxu1  ;;  %v8736_v36 = vadd.f32 %v8735_v55, %v8650_v25  ;;  %5148 = vst [vmem:[#allocation2 + $0x280] sm:$0xff] %v5066_v49  ;;  %v8082_v50 = vmax.f32 %v5066_v49, 0.0 }
 0x3cd   :  { %v7671_v18 = vpop.f32.mrb[129].mxu1  ;;  %v8653_v21 = vmul.f32 %v8554_v53, %v8079_v12  ;;  %v8569_v19 = vpop.permute.xlu1 %8568  ;;  %v8700_v32 = vrot.slane %v8699_v43, 2 }
 0x3ce   :  { %v7838_v1 = vadd.f32 %v7671_v18, %v6808_v9  ;;  %v8652_v5 = vmul.f32 %v8549_v10, %v8078_v37  ;;  %v8737_v54 = vadd.f32 %v8736_v36, %v8651_v17  ;;  %v5699_v51 = vld [vmem:[#allocation2 + $0x278] sm:$0x7f]  ;;  %v8656_v63 = vmul.f32 %v8569_v19, %v8082_v50 }
 0x3cf   :  { %v5779_v38 = vadd.f32 %v16455_v35, %v5699_v51  ;;  %v8701_v56 = vadd.f32 %v8700_v32, %v8699_v43 }
 0x3d0   :  { %7918 = vst [vmem:[#allocation2 + $0x270] sm:$0xff] %v7838_v1  ;;  %v8080_v46 = vmax.f32 %v7838_v1, 0.0  ;;  %v8738_v48 = vadd.f32 %v8737_v54, %v8652_v5  ;;  %v4985_v41 = vld [vmem:[#allocation2 + $0x288] sm:$0x7f] }
 0x3d1   :  { %5859 = vst [vmem:[#allocation2 + $0x278] sm:$0x7f] %v5779_v38  ;;  %v5067_v8 = vadd.f32 %v16456_v15, %v4985_v41  ;;  %v8574_v57 = vpop.permute.xlu1 %8573  ;;  %v8702_v14 = vrot.slane %v8701_v56, 1 }
 0x3d2   :  { %v8654_v44 = vmul.f32 %v8559_v20, %v8080_v46  ;;  %v8739_v27 = vadd.f32 %v8738_v48, %v8653_v21 }
 0x3d3   :  { %5149 = vst [vmem:[#allocation2 + $0x288] sm:$0x7f] %v5067_v8  ;;  %v8703_v28 = vadd.f32 %v8702_v14, %v8701_v56 }
 0x3d4   :  { %v8740_v39 = vadd.f32 %v8739_v27, %v8654_v44 }
 0x3d8   :  { %v6729_v34 = vld [vmem:[#allocation2 + $0x278] sm:$0x3f] }
 0x3d9   :  { %v6809_v7 = vadd.f32 %v16457_v11, %v6729_v34 }
 0x3da   :  { %v8001_v62 = vld [vmem:[#allocation2 + $0x288] sm:$0xff] }
 0x3db   :  { %6889 = vst [vmem:[#allocation2 + $0x278] sm:$0x3f] %v6809_v7  ;;  %v8083_v33 = vmax.f32 %v8001_v62, 0.0 }
 0x3dd   :  { %v8657_v58 = vmul.f32 %v8574_v57, %v8083_v33 }
 0x3e2   :  { %v7759_v10 = vld [vmem:[#allocation2 + $0x278] sm:$0x1f] }
 0x3e3   :  { %v7839_v23 = vadd.f32 %v11669_v52, %v7759_v10 }
 0x3e5   :  { %7919 = vst [vmem:[#allocation2 + $0x278] sm:$0x1f] %v7839_v23 }
 0x3ec   :  { %v7999_v16 = vld [vmem:[#allocation2 + $0x278] sm:$0xff] }
 0x3ed   :  { %v8081_v3 = vmax.f32 %v7999_v16, 0.0 }
 0x3ef   :  { %v8655_v45 = vmul.f32 %v8564_v4, %v8081_v3 }
 0x3f1   :  { %v8741_v42 = vadd.f32 %v8740_v39, %v8655_v45 }
 0x3f3   :  { %v8742_v6 = vadd.f32 %v8741_v42, %v8656_v63 }
 0x3f5   :  { %v8743_v13 = vadd.f32 %v8742_v6, %v8657_v58 }
 0x3f7   :  { %v8744_v22 = vrot.slane %v8743_v13, 4 }
 0x3f9   :  { %v8745_v30 = vadd.f32 %v8744_v22, %v8743_v13 }
 0x3fb   :  { %v8746_v47 = vrot.slane %v8745_v30, 2 }
 0x3fd   :  { %v8747_v61 = vadd.f32 %v8746_v47, %v8745_v30 }
 0x3ff   :  { %v8748_v40 = vrot.slane %v8747_v61, 1 }
 0x401   :  { %v8749_v59 = vadd.f32 %v8748_v40, %v8747_v61 }
 0x403   :  { %v8776_v26 = vsel %vm8775_vm6, %v8749_v59, %v8703_v28 }
 0x404   :  { %11703 = vmatmul.mubr.f32.vlgmr.msra.gmra.mrb[28].mxu0 %v8776_v26 }
 0x4d7   :  { %v8844_v2 = vpop.f32.mrb[28].mxu0 }
 0x4d8   :  { %v8845_v25 = vadd.f32 %v9606_v24, %v8844_v2  ;;  %v11704_v29 = vpop.f32.mrb[29].mxu0 }
 0x4da   :  { %8848 = vst [vmem:[#allocation3] sm:$0x3] %v8845_v25 }
 0x4db   :  { %12616 = shalt.err (!%p12613_p4)
}
 0x4dc   :  { %s12617_s29 = scalar_lea.hbm %s15741_s5, 32 }
 0x4dd   :  { %p12618_p5 = scmp.ne.s32.totalorder %s15741_s5, %s12617_s29  ;;  %p12621_p6 = scmp.lt.u32.totalorder %s12617_s29, %s15741_s5 }
 0x4df   :  { %p12623_p7 = pnand %p12621_p6, %p12618_p5 }
 0x4e1   :  { %12626 = shalt.err (!%p12623_p7)
}
 0x4e2   :  { %8858 = dma.vmem_to_hbm [thread:$0]  %s8856_s25, 32, %s15741_s5, [#allocation4]  }
 0x4e3   :  { %12627 = dma.done.wait [#allocation4], 32  }
 0x4e4   :  { %12628 = vsyncadd [#allocation4], 4294967264 }
 0x4e5   :  { %8862 = vsyncpa [#allocation4], 1 }

</bundles_post_ra>
